<compile_context>
chip_gen: v6e
topology: v6e:2x2x1
jax: 0.10.0
libtpu: 0.0.40
codegen_flags: <defaults>
</compile_context>

<pallas_src>
import functools
import numpy as np
import jax
import jax.numpy as jnp
from jax.experimental import pallas as pl
from jax.experimental.pallas import tpu as pltpu


def _round_up(x, m):
    return ((x + m - 1) // m) * m


# ----------------------------- Pallas kernels -----------------------------

def _gemm_kernel(*refs, relu, has_residual):
    """out = act((A @ B) * scale + bias [+ residual]); M/N/K-tiled, f32 accumulator."""
    if has_residual:
        a_ref, b_ref, scale_ref, bias_ref, res_ref, o_ref, acc_ref = refs
    else:
        a_ref, b_ref, scale_ref, bias_ref, o_ref, acc_ref = refs
        res_ref = None
    k = pl.program_id(2)

    @pl.when(k == 0)
    def _():
        acc_ref[...] = jnp.zeros_like(acc_ref)

    acc_ref[...] += jnp.dot(a_ref[...], b_ref[...], preferred_element_type=jnp.float32)

    @pl.when(k == pl.num_programs(2) - 1)
    def _():
        y = acc_ref[...] * scale_ref[...] + bias_ref[...]
        if has_residual:
            y = y + res_ref[...]
        if relu:
            y = jnp.maximum(y, 0.0)
        o_ref[...] = y


def _max_reduce_kernel(x_ref, o_ref):
    # x: [9, TM, C] -> max over the window axis
    o_ref[...] = jnp.max(x_ref[...], axis=0)


def _mean_reduce_kernel(x_ref, o_ref, *, denom):
    # x: [N, H*W, C] -> mean over spatial axis
    o_ref[...] = jnp.sum(x_ref[...], axis=1) * (1.0 / denom)


def _head_kernel(x_ref, w1_ref, b1_ref, w2_ref, b2_ref, o_ref):
    # out = (relu(x @ w1 + b1)) @ w2 + b2  -- both tail linears fused, single launch
    h = jnp.dot(x_ref[...], w1_ref[...], preferred_element_type=jnp.float32) + b1_ref[...]
    h = jnp.maximum(h, 0.0)
    o_ref[...] = jnp.dot(h, w2_ref[...], preferred_element_type=jnp.float32) + b2_ref[...]


# ----------------------------- kernel wrappers -----------------------------

def _pick_tk(k_pad):
    """K tile: single step when small, else the largest 128-multiple divisor."""
    if k_pad <= 1024:
        return k_pad
    for cand in (512, 384, 256):
        if k_pad % cand == 0:
            return cand
    return 128


def fused_gemm(a, b, scale, bias, residual=None, relu=False):
    """a:[M,K] bf16 @ b:[K,N] bf16 -> [M,N] f32 with fused per-column scale/bias
    (+ optional residual add) (+ optional ReLU)."""
    M, K = a.shape
    N = b.shape[1]

    TM = min(256, _round_up(M, 16))
    TN = min(256, _round_up(N, 128))
    M_pad = _round_up(M, TM)
    N_pad = _round_up(N, TN)
    K_pad = _round_up(K, 128)
    TK = _pick_tk(K_pad)

    a_p = a if (M_pad == M and K_pad == K) else jnp.pad(a, ((0, M_pad - M), (0, K_pad - K)))
    b_p = b if (K_pad == K and N_pad == N) else jnp.pad(b, ((0, K_pad - K), (0, N_pad - N)))
    s_p = jnp.pad(scale, (0, N_pad - N)).reshape(1, N_pad)
    z_p = jnp.pad(bias, (0, N_pad - N)).reshape(1, N_pad)

    in_specs = [
        pl.BlockSpec((TM, TK), lambda i, j, k: (i, k)),
        pl.BlockSpec((TK, TN), lambda i, j, k: (k, j)),
        pl.BlockSpec((1, TN), lambda i, j, k: (0, j)),
        pl.BlockSpec((1, TN), lambda i, j, k: (0, j)),
    ]
    args = [a_p, b_p, s_p, z_p]

    has_residual = residual is not None
    if has_residual:
        r_p = residual
        if (M_pad, N_pad) != (M, N):
            r_p = jnp.pad(residual, ((0, M_pad - M), (0, N_pad - N)))
        # index_map constant over k -> block stays resident, fetched once per (i, j)
        in_specs.append(pl.BlockSpec((TM, TN), lambda i, j, k: (i, j)))
        args.append(r_p)

    grid = (M_pad // TM, N_pad // TN, K_pad // TK)
    out = pl.pallas_call(
        functools.partial(_gemm_kernel, relu=relu, has_residual=has_residual),
        out_shape=jax.ShapeDtypeStruct((M_pad, N_pad), jnp.float32),
        grid_spec=pltpu.PrefetchScalarGridSpec(
            num_scalar_prefetch=0,
            grid=grid,
            in_specs=in_specs,
            out_specs=pl.BlockSpec((TM, TN), lambda i, j, k: (i, j)),
            scratch_shapes=[pltpu.VMEM((TM, TN), jnp.float32)],
        ),
        compiler_params=pltpu.CompilerParams(
            dimension_semantics=("parallel", "parallel", "arbitrary"),
            vmem_limit_bytes=32 * 1024 * 1024,
        ),
    )(*args)

    if (M_pad, N_pad) != (M, N):
        out = out[:M, :N]
    return out


def im2col(x, kh, kw, stride, pad):
    """x: NHWC -> ([N*Ho*Wo, kh*kw*Cin], Ho, Wo) with (ky, kx, cin) K-ordering."""
    N, H, W, C = x.shape
    Ho = (H + 2 * pad - kh) // stride + 1
    Wo = (W + 2 * pad - kw) // stride + 1
    xp = jnp.pad(x, ((0, 0), (pad, pad), (pad, pad), (0, 0)))
    cols = []
    for ky in range(kh):
        for kx in range(kw):
            patch = jax.lax.slice(
                xp,
                (0, ky, kx, 0),
                (N, ky + stride * (Ho - 1) + 1, kx + stride * (Wo - 1) + 1, C),
                (1, stride, stride, 1),
            )
            cols.append(patch)
    cols = jnp.stack(cols, axis=3)  # [N, Ho, Wo, kh*kw, C]
    return cols.reshape(N * Ho * Wo, kh * kw * C), Ho, Wo


def conv_bn(x, w, bn, stride, pad, relu, residual=None):
    """conv (no bias, PyTorch weight [Cout,Cin,KH,KW]) + eval-mode BN
    (+ optional fused residual add) (+ optional ReLU)."""
    Cout, Cin, KH, KW = w.shape
    # bf16 MXU operands (im2col copy in HBM is bf16 -> half the traffic), f32 accum.
    cols, Ho, Wo = im2col(x.astype(jnp.bfloat16), KH, KW, stride, pad)
    wm = jnp.transpose(w, (2, 3, 1, 0)).reshape(KH * KW * Cin, Cout).astype(jnp.bfloat16)
    gamma, beta, mean, var = bn
    scale = gamma / jnp.sqrt(var + 1e-5)
    bias = beta - mean * scale
    N = x.shape[0]
    res2 = None
    if residual is not None:
        res2 = residual.reshape(N * Ho * Wo, Cout)
    out = fused_gemm(cols, wm, scale, bias, residual=res2, relu=relu)
    return out.reshape(N, Ho, Wo, Cout)


def maxpool_3x3_s2_p1(x):
    N, H, W, C = x.shape
    Ho = (H + 2 - 3) // 2 + 1
    Wo = (W + 2 - 3) // 2 + 1
    xp = jnp.pad(x, ((0, 0), (1, 1), (1, 1), (0, 0)), constant_values=-jnp.inf)
    wins = []
    for dy in range(3):
        for dx in range(3):
            wins.append(
                jax.lax.slice(
                    xp,
                    (0, dy, dx, 0),
                    (N, dy + 2 * (Ho - 1) + 1, dx + 2 * (Wo - 1) + 1, C),
                    (1, 2, 2, 1),
                )
            )
    M = N * Ho * Wo
    w = jnp.stack(wins, axis=0).reshape(9, M, C)
    TM = min(512, _round_up(M, 8))
    M_pad = _round_up(M, TM)
    C_pad = _round_up(max(C, 128), 128)
    if (M_pad, C_pad) != (M, C):
        w = jnp.pad(w, ((0, 0), (0, M_pad - M), (0, C_pad - C)), constant_values=-jnp.inf)
    out = pl.pallas_call(
        _max_reduce_kernel,
        out_shape=jax.ShapeDtypeStruct((M_pad, C_pad), jnp.float32),
        grid_spec=pltpu.PrefetchScalarGridSpec(
            num_scalar_prefetch=0,
            grid=(M_pad // TM,),
            in_specs=[pl.BlockSpec((9, TM, C_pad), lambda i: (0, i, 0))],
            out_specs=pl.BlockSpec((TM, C_pad), lambda i: (i, 0)),
        ),
        compiler_params=pltpu.CompilerParams(dimension_semantics=("parallel",)),
    )(w)
    return out[:M, :C].reshape(N, Ho, Wo, C)


def global_avg_pool(x):
    N, H, W, C = x.shape
    HW = H * W
    C_pad = _round_up(max(C, 128), 128)
    x2 = x.reshape(N, HW, C)
    if C_pad != C:
        x2 = jnp.pad(x2, ((0, 0), (0, 0), (0, C_pad - C)))
    out = pl.pallas_call(
        functools.partial(_mean_reduce_kernel, denom=float(HW)),
        out_shape=jax.ShapeDtypeStruct((N, C_pad), jnp.float32),
    )(x2)
    return out[:, :C]


def head_forward(feat, fc_w, fc_b, head_w, head_b):
    """head(relu(fc(feat))) fused into one tiny Pallas kernel (M = batch is tiny)."""
    N, F = feat.shape
    H = fc_w.shape[0]
    O = head_w.shape[0]
    N_pad = _round_up(max(N, 8), 8)
    F_pad = _round_up(F, 128)
    H_pad = _round_up(max(H, 128), 128)
    O_pad = _round_up(max(O, 128), 128)
    x_p = jnp.pad(feat, ((0, N_pad - N), (0, F_pad - F)))
    w1 = jnp.pad(fc_w.T, ((0, F_pad - F), (0, H_pad - H)))
    b1 = jnp.pad(fc_b, (0, H_pad - H)).reshape(1, H_pad)
    w2 = jnp.pad(head_w.T, ((0, H_pad - H), (0, O_pad - O)))
    b2 = jnp.pad(head_b, (0, O_pad - O)).reshape(1, O_pad)
    out = pl.pallas_call(
        _head_kernel,
        out_shape=jax.ShapeDtypeStruct((N_pad, O_pad), jnp.float32),
    )(x_p, w1, b1, w2, b2)
    return out[:N, :O]


# ----------------------------- model definition -----------------------------

def basic_block(x, p, stride):
    if "down_w" in p:
        identity = conv_bn(x, p["down_w"], p["down_bn"], stride=stride, pad=0, relu=False)
    else:
        identity = x
    out = conv_bn(x, p["conv1_w"], p["bn1"], stride=stride, pad=1, relu=True)
    # residual add + ReLU fused into conv2's GEMM epilogue
    out = conv_bn(out, p["conv2_w"], p["bn2"], stride=1, pad=1, relu=True, residual=identity)
    return out


def supervised_net_forward(params, x_nchw):
    x = jnp.transpose(x_nchw, (0, 2, 3, 1))  # NCHW -> NHWC
    # resnet18 stem
    x = conv_bn(x, params["conv1_w"], params["bn1"], stride=2, pad=3, relu=True)
    x = maxpool_3x3_s2_p1(x)
    # 4 stages x 2 BasicBlocks
    for li in range(4):
        blocks = params["layer%d" % (li + 1)]
        for bi, blk in enumerate(blocks):
            stride = 2 if (li > 0 and bi == 0) else 1
            x = basic_block(x, blk, stride)
    feat = global_avg_pool(x)                              # [N, 512]
    out = head_forward(feat, params["fc_w"], params["fc_b"],
                       params["head_w"], params["head_b"])  # head(relu(fc(feat)))
    return out


# ----------------------------- deterministic init -----------------------------

class KeyGen:
    def __init__(self, key):
        self.key = key

    def __call__(self):
        self.key, sub = jax.random.split(self.key)
        return sub


def init_conv(kg, cout, cin, kh, kw):
    fan_in = cin * kh * kw
    return jax.random.normal(kg(), (cout, cin, kh, kw), jnp.float32) / np.sqrt(fan_in)


def init_bn(kg, c):
    gamma = 1.0 + 0.1 * jax.random.normal(kg(), (c,), jnp.float32)
    beta = 0.1 * jax.random.normal(kg(), (c,), jnp.float32)
    mean = 0.1 * jax.random.normal(kg(), (c,), jnp.float32)
    var = 0.5 + jax.random.uniform(kg(), (c,), jnp.float32)
    return (gamma, beta, mean, var)


def init_linear(kg, out_d, in_d):
    bound = 1.0 / np.sqrt(in_d)
    w = jax.random.uniform(kg(), (out_d, in_d), jnp.float32, minval=-bound, maxval=bound)
    b = jax.random.uniform(kg(), (out_d,), jnp.float32, minval=-bound, maxval=bound)
    return w, b


def init_params(key, out_dim):
    kg = KeyGen(key)
    p = {}
    p["conv1_w"] = init_conv(kg, 64, 3, 7, 7)
    p["bn1"] = init_bn(kg, 64)
    stage_cfg = [(64, 64, 1), (64, 128, 2), (128, 256, 2), (256, 512, 2)]
    for li, (cin, cout, stride) in enumerate(stage_cfg):
        blocks = []
        for bi in range(2):
            s = stride if bi == 0 else 1
            in_c = cin if bi == 0 else cout
            blk = {
                "conv1_w": init_conv(kg, cout, in_c, 3, 3),
                "bn1": init_bn(kg, cout),
                "conv2_w": init_conv(kg, cout, cout, 3, 3),
                "bn2": init_bn(kg, cout),
            }
            if s != 1 or in_c != cout:
                blk["down_w"] = init_conv(kg, cout, in_c, 1, 1)
                blk["down_bn"] = init_bn(kg, cout)
            blocks.append(blk)
        p["layer%d" % (li + 1)] = blocks
    p["fc_w"], p["fc_b"] = init_linear(kg, 128, 512)          # model.fc = Linear(512, 128)
    p["head_w"], p["head_b"] = init_linear(kg, out_dim, 128)  # head = Linear(128, out_dim)
    return p


# ----------------------------- main -----------------------------

if __name__ == "__main__":
    out_dim = 10
    root = jax.random.PRNGKey(0)
    pkey, xkey = jax.random.split(root)
    params = init_params(pkey, out_dim)
    x = jax.random.normal(xkey, (2, 3, 32, 32), jnp.float32)  # NCHW, like PyTorch

    fwd = jax.jit(supervised_net_forward)
    y = fwd(params, x)
    jax.block_until_ready(y)
    assert y.shape == (2, out_dim)
    assert jnp.all(jnp.isfinite(y))
    print("KERNEL_OK")
</pallas_src>

<mosaic_0001>
module attributes {stable_mosaic.version = 11 : i64} {
  func.func @_gemm_kernel(%arg0: i32, %arg1: i32, %arg2: i32, %arg3: memref<256x256xbf16, #tpu.memory_space<vmem>>, %arg4: memref<256x128xbf16, #tpu.memory_space<vmem>>, %arg5: memref<1x128xf32, #tpu.memory_space<vmem>>, %arg6: memref<1x128xf32, #tpu.memory_space<vmem>>, %arg7: memref<256x128xf32, #tpu.memory_space<vmem>>, %arg8: memref<256x128xf32, #tpu.memory_space<vmem>>) attributes {dimension_semantics = [#tpu.dimension_semantics<parallel>, #tpu.dimension_semantics<parallel>, #tpu.dimension_semantics<arbitrary>], iteration_bounds = array<i64: 2, 1, 1>, scalar_prefetch = 0 : i64, scratch_operands = 1 : i64, tpu.core_type = #tpu.core_type<tc>, window_params = [{transform_indices = @transform_0, window_bounds = array<i64: 256, 256>}, {transform_indices = @transform_1, window_bounds = array<i64: 256, 128>}, {transform_indices = @transform_2, window_bounds = array<i64: 1, 128>}, {transform_indices = @transform_3, window_bounds = array<i64: 1, 128>}, {transform_indices = @transform_4, window_bounds = array<i64: 256, 128>}]} {
    %c0_i32 = arith.constant 0 : i32
    %0 = arith.cmpi eq, %arg2, %c0_i32 : i32
    %1 = arith.extui %0 : i1 to i32
    %c0_i32_0 = arith.constant 0 : i32
    %2 = arith.cmpi ne, %1, %c0_i32_0 : i32
    scf.if %2 {
      %cst_10 = arith.constant 0.000000e+00 : f32
      %12 = vector.broadcast %cst_10 : f32 to vector<256x128xf32>
      %c0_11 = arith.constant 0 : index
      %c0_12 = arith.constant 0 : index
      %13 = vector.load %arg8[%c0_11, %c0_12] : memref<256x128xf32, #tpu.memory_space<vmem>>, vector<256x128xf32>
      tpu.vector_store %arg8[%c0_11, %c0_12], %12 {strides = array<i32>} : memref<256x128xf32, #tpu.memory_space<vmem>>, vector<256x128xf32>,
    } else {
    }
    %c0 = arith.constant 0 : index
    %c0_1 = arith.constant 0 : index
    %3 = vector.load %arg8[%c0, %c0_1] : memref<256x128xf32, #tpu.memory_space<vmem>>, vector<256x128xf32>
    %c0_2 = arith.constant 0 : index
    %c0_3 = arith.constant 0 : index
    %4 = vector.load %arg3[%c0_2, %c0_3] : memref<256x256xbf16, #tpu.memory_space<vmem>>, vector<256x256xbf16>
    %c0_4 = arith.constant 0 : index
    %c0_5 = arith.constant 0 : index
    %5 = vector.load %arg4[%c0_4, %c0_5] : memref<256x128xbf16, #tpu.memory_space<vmem>>, vector<256x128xbf16>
    %cst = arith.constant dense<0.000000e+00> : vector<256x128xf32>
    %6 = tpu.matmul %4, %5, %cst {dimension_numbers = #tpu.dot_dimension_numbers<[1], [0], [0], [1], [0, 0, 1, 1], [], []>} : vector<256x256xbf16>, vector<256x128xbf16>, vector<256x128xf32> -> vector<256x128xf32>
    %7 = arith.addf %3, %6 : vector<256x128xf32>
    %c0_6 = arith.constant 0 : index
    %c0_7 = arith.constant 0 : index
    %8 = vector.load %arg8[%c0_6, %c0_7] : memref<256x128xf32, #tpu.memory_space<vmem>>, vector<256x128xf32>
    tpu.vector_store %arg8[%c0_6, %c0_7], %7 {strides = array<i32>} : memref<256x128xf32, #tpu.memory_space<vmem>>, vector<256x128xf32>,
    %c0_i32_8 = arith.constant 0 : i32
    %9 = arith.cmpi eq, %arg2, %c0_i32_8 : i32
    %10 = arith.extui %9 : i1 to i32
    %c0_i32_9 = arith.constant 0 : i32
    %11 = arith.cmpi ne, %10, %c0_i32_9 : i32
    scf.if %11 {
      %c0_10 = arith.constant 0 : index
      %c0_11 = arith.constant 0 : index
      %12 = vector.load %arg8[%c0_10, %c0_11] : memref<256x128xf32, #tpu.memory_space<vmem>>, vector<256x128xf32>
      %c0_12 = arith.constant 0 : index
      %c0_13 = arith.constant 0 : index
      %13 = vector.load %arg5[%c0_12, %c0_13] : memref<1x128xf32, #tpu.memory_space<vmem>>, vector<1x128xf32>
      %14 = vector.broadcast %13 : vector<1x128xf32> to vector<256x128xf32>
      %15 = arith.mulf %12, %14 : vector<256x128xf32>
      %c0_14 = arith.constant 0 : index
      %c0_15 = arith.constant 0 : index
      %16 = vector.load %arg6[%c0_14, %c0_15] : memref<1x128xf32, #tpu.memory_space<vmem>>, vector<1x128xf32>
      %17 = vector.broadcast %16 : vector<1x128xf32> to vector<256x128xf32>
      %18 = arith.addf %15, %17 : vector<256x128xf32>
      %cst_16 = arith.constant 0.000000e+00 : f32
      %19 = vector.broadcast %cst_16 : f32 to vector<256x128xf32>
      %20 = arith.maximumf %18, %19 : vector<256x128xf32>
      %c0_17 = arith.constant 0 : index
      %c0_18 = arith.constant 0 : index
      %21 = vector.load %arg7[%c0_17, %c0_18] : memref<256x128xf32, #tpu.memory_space<vmem>>, vector<256x128xf32>
      tpu.vector_store %arg7[%c0_17, %c0_18], %20 {strides = array<i32>} : memref<256x128xf32, #tpu.memory_space<vmem>>, vector<256x128xf32>,
    } else {
    }
    return
  }
  func.func @transform_0(%arg0: i32, %arg1: i32, %arg2: i32) -> (i32, i32) {
    %c0_i32 = arith.constant 0 : i32
    return %arg0, %arg2 : i32, i32
  }
  func.func @transform_1(%arg0: i32, %arg1: i32, %arg2: i32) -> (i32, i32) {
    %c0_i32 = arith.constant 0 : i32
    return %arg2, %arg1 : i32, i32
  }
  func.func @transform_2(%arg0: i32, %arg1: i32, %arg2: i32) -> (i32, i32) {
    %c0_i32 = arith.constant 0 : i32
    %c0_i32_0 = arith.constant 0 : i32
    return %c0_i32, %arg1 : i32, i32
  }
  func.func @transform_3(%arg0: i32, %arg1: i32, %arg2: i32) -> (i32, i32) {
    %c0_i32 = arith.constant 0 : i32
    %c0_i32_0 = arith.constant 0 : i32
    return %c0_i32, %arg1 : i32, i32
  }
  func.func @transform_4(%arg0: i32, %arg1: i32, %arg2: i32) -> (i32, i32) {
    %c0_i32 = arith.constant 0 : i32
    return %arg0, %arg1 : i32, i32
  }
}

module attributes {stable_mosaic.version = 11 : i64} {
  func.func @_max_reduce_kernel(%arg0: i32, %arg1: memref<9x128x128xf32, #tpu.memory_space<vmem>>, %arg2: memref<128x128xf32, #tpu.memory_space<vmem>>) attributes {dimension_semantics = [#tpu.dimension_semantics<parallel>], iteration_bounds = array<i64: 1>, scalar_prefetch = 0 : i64, scratch_operands = 0 : i64, tpu.core_type = #tpu.core_type<tc>, window_params = [{transform_indices = @transform_0, window_bounds = array<i64: 9, 128, 128>}, {transform_indices = @transform_1, window_bounds = array<i64: 128, 128>}]} {
    %c0 = arith.constant 0 : index
    %c0_0 = arith.constant 0 : index
    %c0_1 = arith.constant 0 : index
    %0 = vector.load %arg1[%c0, %c0_0, %c0_1] : memref<9x128x128xf32, #tpu.memory_space<vmem>>, vector<9x128x128xf32>
    %cst = arith.constant dense<0xFF800000> : vector<128x128xf32>
    %1 = vector.multi_reduction <maximumf>, %0, %cst [0] : vector<9x128x128xf32> to vector<128x128xf32>
    %c0_2 = arith.constant 0 : index
    %c0_3 = arith.constant 0 : index
    %2 = vector.load %arg2[%c0_2, %c0_3] : memref<128x128xf32, #tpu.memory_space<vmem>>, vector<128x128xf32>
    tpu.vector_store %arg2[%c0_2, %c0_3], %1 {strides = array<i32>} : memref<128x128xf32, #tpu.memory_space<vmem>>, vector<128x128xf32>,
    return
  }
  func.func @transform_0(%arg0: i32) -> (i32, i32, i32) {
    %c0_i32 = arith.constant 0 : i32
    %c0_i32_0 = arith.constant 0 : i32
    %c0_i32_1 = arith.constant 0 : i32
    return %c0_i32, %arg0, %c0_i32_0 : i32, i32, i32
  }
  func.func @transform_1(%arg0: i32) -> (i32, i32) {
    %c0_i32 = arith.constant 0 : i32
    %c0_i32_0 = arith.constant 0 : i32
    return %arg0, %c0_i32 : i32, i32
  }
}

module attributes {stable_mosaic.version = 11 : i64} {
  func.func @_gemm_kernel(%arg0: i32, %arg1: i32, %arg2: i32, %arg3: memref<128x640xbf16, #tpu.memory_space<vmem>>, %arg4: memref<640x128xbf16, #tpu.memory_space<vmem>>, %arg5: memref<1x128xf32, #tpu.memory_space<vmem>>, %arg6: memref<1x128xf32, #tpu.memory_space<vmem>>, %arg7: memref<128x128xf32, #tpu.memory_space<vmem>>, %arg8: memref<128x128xf32, #tpu.memory_space<vmem>>, %arg9: memref<128x128xf32, #tpu.memory_space<vmem>>) attributes {dimension_semantics = [#tpu.dimension_semantics<parallel>, #tpu.dimension_semantics<parallel>, #tpu.dimension_semantics<arbitrary>], iteration_bounds = array<i64: 1, 1, 1>, scalar_prefetch = 0 : i64, scratch_operands = 1 : i64, tpu.core_type = #tpu.core_type<tc>, window_params = [{transform_indices = @transform_0, window_bounds = array<i64: 128, 640>}, {transform_indices = @transform_1, window_bounds = array<i64: 640, 128>}, {transform_indices = @transform_2, window_bounds = array<i64: 1, 128>}, {transform_indices = @transform_3, window_bounds = array<i64: 1, 128>}, {transform_indices = @transform_4, window_bounds = array<i64: 128, 128>}, {transform_indices = @transform_5, window_bounds = array<i64: 128, 128>}]} {
    %c0_i32 = arith.constant 0 : i32
    %0 = arith.cmpi eq, %arg2, %c0_i32 : i32
    %1 = arith.extui %0 : i1 to i32
    %c0_i32_0 = arith.constant 0 : i32
    %2 = arith.cmpi ne, %1, %c0_i32_0 : i32
    scf.if %2 {
      %cst_10 = arith.constant 0.000000e+00 : f32
      %12 = vector.broadcast %cst_10 : f32 to vector<128x128xf32>
      %c0_11 = arith.constant 0 : index
      %c0_12 = arith.constant 0 : index
      %13 = vector.load %arg9[%c0_11, %c0_12] : memref<128x128xf32, #tpu.memory_space<vmem>>, vector<128x128xf32>
      tpu.vector_store %arg9[%c0_11, %c0_12], %12 {strides = array<i32>} : memref<128x128xf32, #tpu.memory_space<vmem>>, vector<128x128xf32>,
    } else {
    }
    %c0 = arith.constant 0 : index
    %c0_1 = arith.constant 0 : index
    %3 = vector.load %arg9[%c0, %c0_1] : memref<128x128xf32, #tpu.memory_space<vmem>>, vector<128x128xf32>
    %c0_2 = arith.constant 0 : index
    %c0_3 = arith.constant 0 : index
    %4 = vector.load %arg3[%c0_2, %c0_3] : memref<128x640xbf16, #tpu.memory_space<vmem>>, vector<128x640xbf16>
    %c0_4 = arith.constant 0 : index
    %c0_5 = arith.constant 0 : index
    %5 = vector.load %arg4[%c0_4, %c0_5] : memref<640x128xbf16, #tpu.memory_space<vmem>>, vector<640x128xbf16>
    %cst = arith.constant dense<0.000000e+00> : vector<128x128xf32>
    %6 = tpu.matmul %4, %5, %cst {dimension_numbers = #tpu.dot_dimension_numbers<[1], [0], [0], [1], [0, 0, 1, 1], [], []>} : vector<128x640xbf16>, vector<640x128xbf16>, vector<128x128xf32> -> vector<128x128xf32>
    %7 = arith.addf %3, %6 : vector<128x128xf32>
    %c0_6 = arith.constant 0 : index
    %c0_7 = arith.constant 0 : index
    %8 = vector.load %arg9[%c0_6, %c0_7] : memref<128x128xf32, #tpu.memory_space<vmem>>, vector<128x128xf32>
    tpu.vector_store %arg9[%c0_6, %c0_7], %7 {strides = array<i32>} : memref<128x128xf32, #tpu.memory_space<vmem>>, vector<128x128xf32>,
    %c0_i32_8 = arith.constant 0 : i32
    %9 = arith.cmpi eq, %arg2, %c0_i32_8 : i32
    %10 = arith.extui %9 : i1 to i32
    %c0_i32_9 = arith.constant 0 : i32
    %11 = arith.cmpi ne, %10, %c0_i32_9 : i32
    scf.if %11 {
      %c0_10 = arith.constant 0 : index
      %c0_11 = arith.constant 0 : index
      %12 = vector.load %arg9[%c0_10, %c0_11] : memref<128x128xf32, #tpu.memory_space<vmem>>, vector<128x128xf32>
      %c0_12 = arith.constant 0 : index
      %c0_13 = arith.constant 0 : index
      %13 = vector.load %arg5[%c0_12, %c0_13] : memref<1x128xf32, #tpu.memory_space<vmem>>, vector<1x128xf32>
      %14 = vector.broadcast %13 : vector<1x128xf32> to vector<128x128xf32>
      %15 = arith.mulf %12, %14 : vector<128x128xf32>
      %c0_14 = arith.constant 0 : index
      %c0_15 = arith.constant 0 : index
      %16 = vector.load %arg6[%c0_14, %c0_15] : memref<1x128xf32, #tpu.memory_space<vmem>>, vector<1x128xf32>
      %17 = vector.broadcast %16 : vector<1x128xf32> to vector<128x128xf32>
      %18 = arith.addf %15, %17 : vector<128x128xf32>
      %c0_16 = arith.constant 0 : index
      %c0_17 = arith.constant 0 : index
      %19 = vector.load %arg7[%c0_16, %c0_17] : memref<128x128xf32, #tpu.memory_space<vmem>>, vector<128x128xf32>
      %20 = arith.addf %18, %19 : vector<128x128xf32>
      %cst_18 = arith.constant 0.000000e+00 : f32
      %21 = vector.broadcast %cst_18 : f32 to vector<128x128xf32>
      %22 = arith.maximumf %20, %21 : vector<128x128xf32>
      %c0_19 = arith.constant 0 : index
      %c0_20 = arith.constant 0 : index
      %23 = vector.load %arg8[%c0_19, %c0_20] : memref<128x128xf32, #tpu.memory_space<vmem>>, vector<128x128xf32>
      tpu.vector_store %arg8[%c0_19, %c0_20], %22 {strides = array<i32>} : memref<128x128xf32, #tpu.memory_space<vmem>>, vector<128x128xf32>,
    } else {
    }
    return
  }
  func.func @transform_0(%arg0: i32, %arg1: i32, %arg2: i32) -> (i32, i32) {
    %c0_i32 = arith.constant 0 : i32
    return %arg0, %arg2 : i32, i32
  }
  func.func @transform_1(%arg0: i32, %arg1: i32, %arg2: i32) -> (i32, i32) {
    %c0_i32 = arith.constant 0 : i32
    return %arg2, %arg1 : i32, i32
  }
  func.func @transform_2(%arg0: i32, %arg1: i32, %arg2: i32) -> (i32, i32) {
    %c0_i32 = arith.constant 0 : i32
    %c0_i32_0 = arith.constant 0 : i32
    return %c0_i32, %arg1 : i32, i32
  }
  func.func @transform_3(%arg0: i32, %arg1: i32, %arg2: i32) -> (i32, i32) {
    %c0_i32 = arith.constant 0 : i32
    %c0_i32_0 = arith.constant 0 : i32
    return %c0_i32, %arg1 : i32, i32
  }
  func.func @transform_4(%arg0: i32, %arg1: i32, %arg2: i32) -> (i32, i32) {
    %c0_i32 = arith.constant 0 : i32
    return %arg0, %arg1 : i32, i32
  }
  func.func @transform_5(%arg0: i32, %arg1: i32, %arg2: i32) -> (i32, i32) {
    %c0_i32 = arith.constant 0 : i32
    return %arg0, %arg1 : i32, i32
  }
}

module attributes {stable_mosaic.version = 11 : i64} {
  func.func @_gemm_kernel(%arg0: i32, %arg1: i32, %arg2: i32, %arg3: memref<128x640xbf16, #tpu.memory_space<vmem>>, %arg4: memref<640x128xbf16, #tpu.memory_space<vmem>>, %arg5: memref<1x128xf32, #tpu.memory_space<vmem>>, %arg6: memref<1x128xf32, #tpu.memory_space<vmem>>, %arg7: memref<128x128xf32, #tpu.memory_space<vmem>>, %arg8: memref<128x128xf32, #tpu.memory_space<vmem>>) attributes {dimension_semantics = [#tpu.dimension_semantics<parallel>, #tpu.dimension_semantics<parallel>, #tpu.dimension_semantics<arbitrary>], iteration_bounds = array<i64: 1, 1, 1>, scalar_prefetch = 0 : i64, scratch_operands = 1 : i64, tpu.core_type = #tpu.core_type<tc>, window_params = [{transform_indices = @transform_0, window_bounds = array<i64: 128, 640>}, {transform_indices = @transform_1, window_bounds = array<i64: 640, 128>}, {transform_indices = @transform_2, window_bounds = array<i64: 1, 128>}, {transform_indices = @transform_3, window_bounds = array<i64: 1, 128>}, {transform_indices = @transform_4, window_bounds = array<i64: 128, 128>}]} {
    %c0_i32 = arith.constant 0 : i32
    %0 = arith.cmpi eq, %arg2, %c0_i32 : i32
    %1 = arith.extui %0 : i1 to i32
    %c0_i32_0 = arith.constant 0 : i32
    %2 = arith.cmpi ne, %1, %c0_i32_0 : i32
    scf.if %2 {
      %cst_10 = arith.constant 0.000000e+00 : f32
      %12 = vector.broadcast %cst_10 : f32 to vector<128x128xf32>
      %c0_11 = arith.constant 0 : index
      %c0_12 = arith.constant 0 : index
      %13 = vector.load %arg8[%c0_11, %c0_12] : memref<128x128xf32, #tpu.memory_space<vmem>>, vector<128x128xf32>
      tpu.vector_store %arg8[%c0_11, %c0_12], %12 {strides = array<i32>} : memref<128x128xf32, #tpu.memory_space<vmem>>, vector<128x128xf32>,
    } else {
    }
    %c0 = arith.constant 0 : index
    %c0_1 = arith.constant 0 : index
    %3 = vector.load %arg8[%c0, %c0_1] : memref<128x128xf32, #tpu.memory_space<vmem>>, vector<128x128xf32>
    %c0_2 = arith.constant 0 : index
    %c0_3 = arith.constant 0 : index
    %4 = vector.load %arg3[%c0_2, %c0_3] : memref<128x640xbf16, #tpu.memory_space<vmem>>, vector<128x640xbf16>
    %c0_4 = arith.constant 0 : index
    %c0_5 = arith.constant 0 : index
    %5 = vector.load %arg4[%c0_4, %c0_5] : memref<640x128xbf16, #tpu.memory_space<vmem>>, vector<640x128xbf16>
    %cst = arith.constant dense<0.000000e+00> : vector<128x128xf32>
    %6 = tpu.matmul %4, %5, %cst {dimension_numbers = #tpu.dot_dimension_numbers<[1], [0], [0], [1], [0, 0, 1, 1], [], []>} : vector<128x640xbf16>, vector<640x128xbf16>, vector<128x128xf32> -> vector<128x128xf32>
    %7 = arith.addf %3, %6 : vector<128x128xf32>
    %c0_6 = arith.constant 0 : index
    %c0_7 = arith.constant 0 : index
    %8 = vector.load %arg8[%c0_6, %c0_7] : memref<128x128xf32, #tpu.memory_space<vmem>>, vector<128x128xf32>
    tpu.vector_store %arg8[%c0_6, %c0_7], %7 {strides = array<i32>} : memref<128x128xf32, #tpu.memory_space<vmem>>, vector<128x128xf32>,
    %c0_i32_8 = arith.constant 0 : i32
    %9 = arith.cmpi eq, %arg2, %c0_i32_8 : i32
    %10 = arith.extui %9 : i1 to i32
    %c0_i32_9 = arith.constant 0 : i32
    %11 = arith.cmpi ne, %10, %c0_i32_9 : i32
    scf.if %11 {
      %c0_10 = arith.constant 0 : index
      %c0_11 = arith.constant 0 : index
      %12 = vector.load %arg8[%c0_10, %c0_11] : memref<128x128xf32, #tpu.memory_space<vmem>>, vector<128x128xf32>
      %c0_12 = arith.constant 0 : index
      %c0_13 = arith.constant 0 : index
      %13 = vector.load %arg5[%c0_12, %c0_13] : memref<1x128xf32, #tpu.memory_space<vmem>>, vector<1x128xf32>
      %14 = vector.broadcast %13 : vector<1x128xf32> to vector<128x128xf32>
      %15 = arith.mulf %12, %14 : vector<128x128xf32>
      %c0_14 = arith.constant 0 : index
      %c0_15 = arith.constant 0 : index
      %16 = vector.load %arg6[%c0_14, %c0_15] : memref<1x128xf32, #tpu.memory_space<vmem>>, vector<1x128xf32>
      %17 = vector.broadcast %16 : vector<1x128xf32> to vector<128x128xf32>
      %18 = arith.addf %15, %17 : vector<128x128xf32>
      %cst_16 = arith.constant 0.000000e+00 : f32
      %19 = vector.broadcast %cst_16 : f32 to vector<128x128xf32>
      %20 = arith.maximumf %18, %19 : vector<128x128xf32>
      %c0_17 = arith.constant 0 : index
      %c0_18 = arith.constant 0 : index
      %21 = vector.load %arg7[%c0_17, %c0_18] : memref<128x128xf32, #tpu.memory_space<vmem>>, vector<128x128xf32>
      tpu.vector_store %arg7[%c0_17, %c0_18], %20 {strides = array<i32>} : memref<128x128xf32, #tpu.memory_space<vmem>>, vector<128x128xf32>,
    } else {
    }
    return
  }
  func.func @transform_0(%arg0: i32, %arg1: i32, %arg2: i32) -> (i32, i32) {
    %c0_i32 = arith.constant 0 : i32
    return %arg0, %arg2 : i32, i32
  }
  func.func @transform_1(%arg0: i32, %arg1: i32, %arg2: i32) -> (i32, i32) {
    %c0_i32 = arith.constant 0 : i32
    return %arg2, %arg1 : i32, i32
  }
  func.func @transform_2(%arg0: i32, %arg1: i32, %arg2: i32) -> (i32, i32) {
    %c0_i32 = arith.constant 0 : i32
    %c0_i32_0 = arith.constant 0 : i32
    return %c0_i32, %arg1 : i32, i32
  }
  func.func @transform_3(%arg0: i32, %arg1: i32, %arg2: i32) -> (i32, i32) {
    %c0_i32 = arith.constant 0 : i32
    %c0_i32_0 = arith.constant 0 : i32
    return %c0_i32, %arg1 : i32, i32
  }
  func.func @transform_4(%arg0: i32, %arg1: i32, %arg2: i32) -> (i32, i32) {
    %c0_i32 = arith.constant 0 : i32
    return %arg0, %arg1 : i32, i32
  }
}

module attributes {stable_mosaic.version = 11 : i64} {
  func.func @_gemm_kernel(%arg0: i32, %arg1: i32, %arg2: i32, %arg3: memref<32x640xbf16, #tpu.memory_space<vmem>>, %arg4: memref<640x128xbf16, #tpu.memory_space<vmem>>, %arg5: memref<1x128xf32, #tpu.memory_space<vmem>>, %arg6: memref<1x128xf32, #tpu.memory_space<vmem>>, %arg7: memref<32x128xf32, #tpu.memory_space<vmem>>, %arg8: memref<32x128xf32, #tpu.memory_space<vmem>>) attributes {dimension_semantics = [#tpu.dimension_semantics<parallel>, #tpu.dimension_semantics<parallel>, #tpu.dimension_semantics<arbitrary>], iteration_bounds = array<i64: 1, 1, 1>, scalar_prefetch = 0 : i64, scratch_operands = 1 : i64, tpu.core_type = #tpu.core_type<tc>, window_params = [{transform_indices = @transform_0, window_bounds = array<i64: 32, 640>}, {transform_indices = @transform_1, window_bounds = array<i64: 640, 128>}, {transform_indices = @transform_2, window_bounds = array<i64: 1, 128>}, {transform_indices = @transform_3, window_bounds = array<i64: 1, 128>}, {transform_indices = @transform_4, window_bounds = array<i64: 32, 128>}]} {
    %c0_i32 = arith.constant 0 : i32
    %0 = arith.cmpi eq, %arg2, %c0_i32 : i32
    %1 = arith.extui %0 : i1 to i32
    %c0_i32_0 = arith.constant 0 : i32
    %2 = arith.cmpi ne, %1, %c0_i32_0 : i32
    scf.if %2 {
      %cst_10 = arith.constant 0.000000e+00 : f32
      %12 = vector.broadcast %cst_10 : f32 to vector<32x128xf32>
      %c0_11 = arith.constant 0 : index
      %c0_12 = arith.constant 0 : index
      %13 = vector.load %arg8[%c0_11, %c0_12] : memref<32x128xf32, #tpu.memory_space<vmem>>, vector<32x128xf32>
      tpu.vector_store %arg8[%c0_11, %c0_12], %12 {strides = array<i32>} : memref<32x128xf32, #tpu.memory_space<vmem>>, vector<32x128xf32>,
    } else {
    }
    %c0 = arith.constant 0 : index
    %c0_1 = arith.constant 0 : index
    %3 = vector.load %arg8[%c0, %c0_1] : memref<32x128xf32, #tpu.memory_space<vmem>>, vector<32x128xf32>
    %c0_2 = arith.constant 0 : index
    %c0_3 = arith.constant 0 : index
    %4 = vector.load %arg3[%c0_2, %c0_3] : memref<32x640xbf16, #tpu.memory_space<vmem>>, vector<32x640xbf16>
    %c0_4 = arith.constant 0 : index
    %c0_5 = arith.constant 0 : index
    %5 = vector.load %arg4[%c0_4, %c0_5] : memref<640x128xbf16, #tpu.memory_space<vmem>>, vector<640x128xbf16>
    %cst = arith.constant dense<0.000000e+00> : vector<32x128xf32>
    %6 = tpu.matmul %4, %5, %cst {dimension_numbers = #tpu.dot_dimension_numbers<[1], [0], [0], [1], [0, 0, 1, 1], [], []>} : vector<32x640xbf16>, vector<640x128xbf16>, vector<32x128xf32> -> vector<32x128xf32>
    %7 = arith.addf %3, %6 : vector<32x128xf32>
    %c0_6 = arith.constant 0 : index
    %c0_7 = arith.constant 0 : index
    %8 = vector.load %arg8[%c0_6, %c0_7] : memref<32x128xf32, #tpu.memory_space<vmem>>, vector<32x128xf32>
    tpu.vector_store %arg8[%c0_6, %c0_7], %7 {strides = array<i32>} : memref<32x128xf32, #tpu.memory_space<vmem>>, vector<32x128xf32>,
    %c0_i32_8 = arith.constant 0 : i32
    %9 = arith.cmpi eq, %arg2, %c0_i32_8 : i32
    %10 = arith.extui %9 : i1 to i32
    %c0_i32_9 = arith.constant 0 : i32
    %11 = arith.cmpi ne, %10, %c0_i32_9 : i32
    scf.if %11 {
      %c0_10 = arith.constant 0 : index
      %c0_11 = arith.constant 0 : index
      %12 = vector.load %arg8[%c0_10, %c0_11] : memref<32x128xf32, #tpu.memory_space<vmem>>, vector<32x128xf32>
      %c0_12 = arith.constant 0 : index
      %c0_13 = arith.constant 0 : index
      %13 = vector.load %arg5[%c0_12, %c0_13] : memref<1x128xf32, #tpu.memory_space<vmem>>, vector<1x128xf32>
      %14 = vector.broadcast %13 : vector<1x128xf32> to vector<32x128xf32>
      %15 = arith.mulf %12, %14 : vector<32x128xf32>
      %c0_14 = arith.constant 0 : index
      %c0_15 = arith.constant 0 : index
      %16 = vector.load %arg6[%c0_14, %c0_15] : memref<1x128xf32, #tpu.memory_space<vmem>>, vector<1x128xf32>
      %17 = vector.broadcast %16 : vector<1x128xf32> to vector<32x128xf32>
      %18 = arith.addf %15, %17 : vector<32x128xf32>
      %cst_16 = arith.constant 0.000000e+00 : f32
      %19 = vector.broadcast %cst_16 : f32 to vector<32x128xf32>
      %20 = arith.maximumf %18, %19 : vector<32x128xf32>
      %c0_17 = arith.constant 0 : index
      %c0_18 = arith.constant 0 : index
      %21 = vector.load %arg7[%c0_17, %c0_18] : memref<32x128xf32, #tpu.memory_space<vmem>>, vector<32x128xf32>
      tpu.vector_store %arg7[%c0_17, %c0_18], %20 {strides = array<i32>} : memref<32x128xf32, #tpu.memory_space<vmem>>, vector<32x128xf32>,
    } else {
    }
    return
  }
  func.func @transform_0(%arg0: i32, %arg1: i32, %arg2: i32) -> (i32, i32) {
    %c0_i32 = arith.constant 0 : i32
    return %arg0, %arg2 : i32, i32
  }
  func.func @transform_1(%arg0: i32, %arg1: i32, %arg2: i32) -> (i32, i32) {
    %c0_i32 = arith.constant 0 : i32
    return %arg2, %arg1 : i32, i32
  }
  func.func @transform_2(%arg0: i32, %arg1: i32, %arg2: i32) -> (i32, i32) {
    %c0_i32 = arith.constant 0 : i32
    %c0_i32_0 = arith.constant 0 : i32
    return %c0_i32, %arg1 : i32, i32
  }
  func.func @transform_3(%arg0: i32, %arg1: i32, %arg2: i32) -> (i32, i32) {
    %c0_i32 = arith.constant 0 : i32
    %c0_i32_0 = arith.constant 0 : i32
    return %c0_i32, %arg1 : i32, i32
  }
  func.func @transform_4(%arg0: i32, %arg1: i32, %arg2: i32) -> (i32, i32) {
    %c0_i32 = arith.constant 0 : i32
    return %arg0, %arg1 : i32, i32
  }
}

module attributes {stable_mosaic.version = 11 : i64} {
  func.func @_gemm_kernel(%arg0: i32, %arg1: i32, %arg2: i32, %arg3: memref<32x128xbf16, #tpu.memory_space<vmem>>, %arg4: memref<128x128xbf16, #tpu.memory_space<vmem>>, %arg5: memref<1x128xf32, #tpu.memory_space<vmem>>, %arg6: memref<1x128xf32, #tpu.memory_space<vmem>>, %arg7: memref<32x128xf32, #tpu.memory_space<vmem>>, %arg8: memref<32x128xf32, #tpu.memory_space<vmem>>) attributes {dimension_semantics = [#tpu.dimension_semantics<parallel>, #tpu.dimension_semantics<parallel>, #tpu.dimension_semantics<arbitrary>], iteration_bounds = array<i64: 1, 1, 1>, scalar_prefetch = 0 : i64, scratch_operands = 1 : i64, tpu.core_type = #tpu.core_type<tc>, window_params = [{transform_indices = @transform_0, window_bounds = array<i64: 32, 128>}, {transform_indices = @transform_1, window_bounds = array<i64: 128, 128>}, {transform_indices = @transform_2, window_bounds = array<i64: 1, 128>}, {transform_indices = @transform_3, window_bounds = array<i64: 1, 128>}, {transform_indices = @transform_4, window_bounds = array<i64: 32, 128>}]} {
    %c0_i32 = arith.constant 0 : i32
    %0 = arith.cmpi eq, %arg2, %c0_i32 : i32
    %1 = arith.extui %0 : i1 to i32
    %c0_i32_0 = arith.constant 0 : i32
    %2 = arith.cmpi ne, %1, %c0_i32_0 : i32
    scf.if %2 {
      %cst_10 = arith.constant 0.000000e+00 : f32
      %12 = vector.broadcast %cst_10 : f32 to vector<32x128xf32>
      %c0_11 = arith.constant 0 : index
      %c0_12 = arith.constant 0 : index
      %13 = vector.load %arg8[%c0_11, %c0_12] : memref<32x128xf32, #tpu.memory_space<vmem>>, vector<32x128xf32>
      tpu.vector_store %arg8[%c0_11, %c0_12], %12 {strides = array<i32>} : memref<32x128xf32, #tpu.memory_space<vmem>>, vector<32x128xf32>,
    } else {
    }
    %c0 = arith.constant 0 : index
    %c0_1 = arith.constant 0 : index
    %3 = vector.load %arg8[%c0, %c0_1] : memref<32x128xf32, #tpu.memory_space<vmem>>, vector<32x128xf32>
    %c0_2 = arith.constant 0 : index
    %c0_3 = arith.constant 0 : index
    %4 = vector.load %arg3[%c0_2, %c0_3] : memref<32x128xbf16, #tpu.memory_space<vmem>>, vector<32x128xbf16>
    %c0_4 = arith.constant 0 : index
    %c0_5 = arith.constant 0 : index
    %5 = vector.load %arg4[%c0_4, %c0_5] : memref<128x128xbf16, #tpu.memory_space<vmem>>, vector<128x128xbf16>
    %cst = arith.constant dense<0.000000e+00> : vector<32x128xf32>
    %6 = tpu.matmul %4, %5, %cst {dimension_numbers = #tpu.dot_dimension_numbers<[1], [0], [0], [1], [0, 0, 1, 1], [], []>} : vector<32x128xbf16>, vector<128x128xbf16>, vector<32x128xf32> -> vector<32x128xf32>
    %7 = arith.addf %3, %6 : vector<32x128xf32>
    %c0_6 = arith.constant 0 : index
    %c0_7 = arith.constant 0 : index
    %8 = vector.load %arg8[%c0_6, %c0_7] : memref<32x128xf32, #tpu.memory_space<vmem>>, vector<32x128xf32>
    tpu.vector_store %arg8[%c0_6, %c0_7], %7 {strides = array<i32>} : memref<32x128xf32, #tpu.memory_space<vmem>>, vector<32x128xf32>,
    %c0_i32_8 = arith.constant 0 : i32
    %9 = arith.cmpi eq, %arg2, %c0_i32_8 : i32
    %10 = arith.extui %9 : i1 to i32
    %c0_i32_9 = arith.constant 0 : i32
    %11 = arith.cmpi ne, %10, %c0_i32_9 : i32
    scf.if %11 {
      %c0_10 = arith.constant 0 : index
      %c0_11 = arith.constant 0 : index
      %12 = vector.load %arg8[%c0_10, %c0_11] : memref<32x128xf32, #tpu.memory_space<vmem>>, vector<32x128xf32>
      %c0_12 = arith.constant 0 : index
      %c0_13 = arith.constant 0 : index
      %13 = vector.load %arg5[%c0_12, %c0_13] : memref<1x128xf32, #tpu.memory_space<vmem>>, vector<1x128xf32>
      %14 = vector.broadcast %13 : vector<1x128xf32> to vector<32x128xf32>
      %15 = arith.mulf %12, %14 : vector<32x128xf32>
      %c0_14 = arith.constant 0 : index
      %c0_15 = arith.constant 0 : index
      %16 = vector.load %arg6[%c0_14, %c0_15] : memref<1x128xf32, #tpu.memory_space<vmem>>, vector<1x128xf32>
      %17 = vector.broadcast %16 : vector<1x128xf32> to vector<32x128xf32>
      %18 = arith.addf %15, %17 : vector<32x128xf32>
      %c0_16 = arith.constant 0 : index
      %c0_17 = arith.constant 0 : index
      %19 = vector.load %arg7[%c0_16, %c0_17] : memref<32x128xf32, #tpu.memory_space<vmem>>, vector<32x128xf32>
      tpu.vector_store %arg7[%c0_16, %c0_17], %18 {strides = array<i32>} : memref<32x128xf32, #tpu.memory_space<vmem>>, vector<32x128xf32>,
    } else {
    }
    return
  }
  func.func @transform_0(%arg0: i32, %arg1: i32, %arg2: i32) -> (i32, i32) {
    %c0_i32 = arith.constant 0 : i32
    return %arg0, %arg2 : i32, i32
  }
  func.func @transform_1(%arg0: i32, %arg1: i32, %arg2: i32) -> (i32, i32) {
    %c0_i32 = arith.constant 0 : i32
    return %arg2, %arg1 : i32, i32
  }
  func.func @transform_2(%arg0: i32, %arg1: i32, %arg2: i32) -> (i32, i32) {
    %c0_i32 = arith.constant 0 : i32
    %c0_i32_0 = arith.constant 0 : i32
    return %c0_i32, %arg1 : i32, i32
  }
  func.func @transform_3(%arg0: i32, %arg1: i32, %arg2: i32) -> (i32, i32) {
    %c0_i32 = arith.constant 0 : i32
    %c0_i32_0 = arith.constant 0 : i32
    return %c0_i32, %arg1 : i32, i32
  }
  func.func @transform_4(%arg0: i32, %arg1: i32, %arg2: i32) -> (i32, i32) {
    %c0_i32 = arith.constant 0 : i32
    return %arg0, %arg1 : i32, i32
  }
}

module attributes {stable_mosaic.version = 11 : i64} {
  func.func @_gemm_kernel(%arg0: i32, %arg1: i32, %arg2: i32, %arg3: memref<32x384xbf16, #tpu.memory_space<vmem>>, %arg4: memref<384x128xbf16, #tpu.memory_space<vmem>>, %arg5: memref<1x128xf32, #tpu.memory_space<vmem>>, %arg6: memref<1x128xf32, #tpu.memory_space<vmem>>, %arg7: memref<32x128xf32, #tpu.memory_space<vmem>>, %arg8: memref<32x128xf32, #tpu.memory_space<vmem>>) attributes {dimension_semantics = [#tpu.dimension_semantics<parallel>, #tpu.dimension_semantics<parallel>, #tpu.dimension_semantics<arbitrary>], iteration_bounds = array<i64: 1, 1, 3>, scalar_prefetch = 0 : i64, scratch_operands = 1 : i64, tpu.core_type = #tpu.core_type<tc>, window_params = [{transform_indices = @transform_0, window_bounds = array<i64: 32, 384>}, {transform_indices = @transform_1, window_bounds = array<i64: 384, 128>}, {transform_indices = @transform_2, window_bounds = array<i64: 1, 128>}, {transform_indices = @transform_3, window_bounds = array<i64: 1, 128>}, {transform_indices = @transform_4, window_bounds = array<i64: 32, 128>}]} {
    %c0_i32 = arith.constant 0 : i32
    %0 = arith.cmpi eq, %arg2, %c0_i32 : i32
    %1 = arith.extui %0 : i1 to i32
    %c0_i32_0 = arith.constant 0 : i32
    %2 = arith.cmpi ne, %1, %c0_i32_0 : i32
    scf.if %2 {
      %cst_9 = arith.constant 0.000000e+00 : f32
      %12 = vector.broadcast %cst_9 : f32 to vector<32x128xf32>
      %c0_10 = arith.constant 0 : index
      %c0_11 = arith.constant 0 : index
      %13 = vector.load %arg8[%c0_10, %c0_11] : memref<32x128xf32, #tpu.memory_space<vmem>>, vector<32x128xf32>
      tpu.vector_store %arg8[%c0_10, %c0_11], %12 {strides = array<i32>} : memref<32x128xf32, #tpu.memory_space<vmem>>, vector<32x128xf32>,
    } else {
    }
    %c0 = arith.constant 0 : index
    %c0_1 = arith.constant 0 : index
    %3 = vector.load %arg8[%c0, %c0_1] : memref<32x128xf32, #tpu.memory_space<vmem>>, vector<32x128xf32>
    %c0_2 = arith.constant 0 : index
    %c0_3 = arith.constant 0 : index
    %4 = vector.load %arg3[%c0_2, %c0_3] : memref<32x384xbf16, #tpu.memory_space<vmem>>, vector<32x384xbf16>
    %c0_4 = arith.constant 0 : index
    %c0_5 = arith.constant 0 : index
    %5 = vector.load %arg4[%c0_4, %c0_5] : memref<384x128xbf16, #tpu.memory_space<vmem>>, vector<384x128xbf16>
    %cst = arith.constant dense<0.000000e+00> : vector<32x128xf32>
    %6 = tpu.matmul %4, %5, %cst {dimension_numbers = #tpu.dot_dimension_numbers<[1], [0], [0], [1], [0, 0, 1, 1], [], []>} : vector<32x384xbf16>, vector<384x128xbf16>, vector<32x128xf32> -> vector<32x128xf32>
    %7 = arith.addf %3, %6 : vector<32x128xf32>
    %c0_6 = arith.constant 0 : index
    %c0_7 = arith.constant 0 : index
    %8 = vector.load %arg8[%c0_6, %c0_7] : memref<32x128xf32, #tpu.memory_space<vmem>>, vector<32x128xf32>
    tpu.vector_store %arg8[%c0_6, %c0_7], %7 {strides = array<i32>} : memref<32x128xf32, #tpu.memory_space<vmem>>, vector<32x128xf32>,
    %c2_i32 = arith.constant 2 : i32
    %9 = arith.cmpi eq, %arg2, %c2_i32 : i32
    %10 = arith.extui %9 : i1 to i32
    %c0_i32_8 = arith.constant 0 : i32
    %11 = arith.cmpi ne, %10, %c0_i32_8 : i32
    scf.if %11 {
      %c0_9 = arith.constant 0 : index
      %c0_10 = arith.constant 0 : index
      %12 = vector.load %arg8[%c0_9, %c0_10] : memref<32x128xf32, #tpu.memory_space<vmem>>, vector<32x128xf32>
      %c0_11 = arith.constant 0 : index
      %c0_12 = arith.constant 0 : index
      %13 = vector.load %arg5[%c0_11, %c0_12] : memref<1x128xf32, #tpu.memory_space<vmem>>, vector<1x128xf32>
      %14 = vector.broadcast %13 : vector<1x128xf32> to vector<32x128xf32>
      %15 = arith.mulf %12, %14 : vector<32x128xf32>
      %c0_13 = arith.constant 0 : index
      %c0_14 = arith.constant 0 : index
      %16 = vector.load %arg6[%c0_13, %c0_14] : memref<1x128xf32, #tpu.memory_space<vmem>>, vector<1x128xf32>
      %17 = vector.broadcast %16 : vector<1x128xf32> to vector<32x128xf32>
      %18 = arith.addf %15, %17 : vector<32x128xf32>
      %cst_15 = arith.constant 0.000000e+00 : f32
      %19 = vector.broadcast %cst_15 : f32 to vector<32x128xf32>
      %20 = arith.maximumf %18, %19 : vector<32x128xf32>
      %c0_16 = arith.constant 0 : index
      %c0_17 = arith.constant 0 : index
      %21 = vector.load %arg7[%c0_16, %c0_17] : memref<32x128xf32, #tpu.memory_space<vmem>>, vector<32x128xf32>
      tpu.vector_store %arg7[%c0_16, %c0_17], %20 {strides = array<i32>} : memref<32x128xf32, #tpu.memory_space<vmem>>, vector<32x128xf32>,
    } else {
    }
    return
  }
  func.func @transform_0(%arg0: i32, %arg1: i32, %arg2: i32) -> (i32, i32) {
    %c0_i32 = arith.constant 0 : i32
    return %arg0, %arg2 : i32, i32
  }
  func.func @transform_1(%arg0: i32, %arg1: i32, %arg2: i32) -> (i32, i32) {
    %c0_i32 = arith.constant 0 : i32
    return %arg2, %arg1 : i32, i32
  }
  func.func @transform_2(%arg0: i32, %arg1: i32, %arg2: i32) -> (i32, i32) {
    %c0_i32 = arith.constant 0 : i32
    %c0_i32_0 = arith.constant 0 : i32
    return %c0_i32, %arg1 : i32, i32
  }
  func.func @transform_3(%arg0: i32, %arg1: i32, %arg2: i32) -> (i32, i32) {
    %c0_i32 = arith.constant 0 : i32
    %c0_i32_0 = arith.constant 0 : i32
    return %c0_i32, %arg1 : i32, i32
  }
  func.func @transform_4(%arg0: i32, %arg1: i32, %arg2: i32) -> (i32, i32) {
    %c0_i32 = arith.constant 0 : i32
    return %arg0, %arg1 : i32, i32
  }
}

module attributes {stable_mosaic.version = 11 : i64} {
  func.func @_gemm_kernel(%arg0: i32, %arg1: i32, %arg2: i32, %arg3: memref<32x384xbf16, #tpu.memory_space<vmem>>, %arg4: memref<384x128xbf16, #tpu.memory_space<vmem>>, %arg5: memref<1x128xf32, #tpu.memory_space<vmem>>, %arg6: memref<1x128xf32, #tpu.memory_space<vmem>>, %arg7: memref<32x128xf32, #tpu.memory_space<vmem>>, %arg8: memref<32x128xf32, #tpu.memory_space<vmem>>, %arg9: memref<32x128xf32, #tpu.memory_space<vmem>>) attributes {dimension_semantics = [#tpu.dimension_semantics<parallel>, #tpu.dimension_semantics<parallel>, #tpu.dimension_semantics<arbitrary>], iteration_bounds = array<i64: 1, 1, 3>, scalar_prefetch = 0 : i64, scratch_operands = 1 : i64, tpu.core_type = #tpu.core_type<tc>, window_params = [{transform_indices = @transform_0, window_bounds = array<i64: 32, 384>}, {transform_indices = @transform_1, window_bounds = array<i64: 384, 128>}, {transform_indices = @transform_2, window_bounds = array<i64: 1, 128>}, {transform_indices = @transform_3, window_bounds = array<i64: 1, 128>}, {transform_indices = @transform_4, window_bounds = array<i64: 32, 128>}, {transform_indices = @transform_5, window_bounds = array<i64: 32, 128>}]} {
    %c0_i32 = arith.constant 0 : i32
    %0 = arith.cmpi eq, %arg2, %c0_i32 : i32
    %1 = arith.extui %0 : i1 to i32
    %c0_i32_0 = arith.constant 0 : i32
    %2 = arith.cmpi ne, %1, %c0_i32_0 : i32
    scf.if %2 {
      %cst_9 = arith.constant 0.000000e+00 : f32
      %12 = vector.broadcast %cst_9 : f32 to vector<32x128xf32>
      %c0_10 = arith.constant 0 : index
      %c0_11 = arith.constant 0 : index
      %13 = vector.load %arg9[%c0_10, %c0_11] : memref<32x128xf32, #tpu.memory_space<vmem>>, vector<32x128xf32>
      tpu.vector_store %arg9[%c0_10, %c0_11], %12 {strides = array<i32>} : memref<32x128xf32, #tpu.memory_space<vmem>>, vector<32x128xf32>,
    } else {
    }
    %c0 = arith.constant 0 : index
    %c0_1 = arith.constant 0 : index
    %3 = vector.load %arg9[%c0, %c0_1] : memref<32x128xf32, #tpu.memory_space<vmem>>, vector<32x128xf32>
    %c0_2 = arith.constant 0 : index
    %c0_3 = arith.constant 0 : index
    %4 = vector.load %arg3[%c0_2, %c0_3] : memref<32x384xbf16, #tpu.memory_space<vmem>>, vector<32x384xbf16>
    %c0_4 = arith.constant 0 : index
    %c0_5 = arith.constant 0 : index
    %5 = vector.load %arg4[%c0_4, %c0_5] : memref<384x128xbf16, #tpu.memory_space<vmem>>, vector<384x128xbf16>
    %cst = arith.constant dense<0.000000e+00> : vector<32x128xf32>
    %6 = tpu.matmul %4, %5, %cst {dimension_numbers = #tpu.dot_dimension_numbers<[1], [0], [0], [1], [0, 0, 1, 1], [], []>} : vector<32x384xbf16>, vector<384x128xbf16>, vector<32x128xf32> -> vector<32x128xf32>
    %7 = arith.addf %3, %6 : vector<32x128xf32>
    %c0_6 = arith.constant 0 : index
    %c0_7 = arith.constant 0 : index
    %8 = vector.load %arg9[%c0_6, %c0_7] : memref<32x128xf32, #tpu.memory_space<vmem>>, vector<32x128xf32>
    tpu.vector_store %arg9[%c0_6, %c0_7], %7 {strides = array<i32>} : memref<32x128xf32, #tpu.memory_space<vmem>>, vector<32x128xf32>,
    %c2_i32 = arith.constant 2 : i32
    %9 = arith.cmpi eq, %arg2, %c2_i32 : i32
    %10 = arith.extui %9 : i1 to i32
    %c0_i32_8 = arith.constant 0 : i32
    %11 = arith.cmpi ne, %10, %c0_i32_8 : i32
    scf.if %11 {
      %c0_9 = arith.constant 0 : index
      %c0_10 = arith.constant 0 : index
      %12 = vector.load %arg9[%c0_9, %c0_10] : memref<32x128xf32, #tpu.memory_space<vmem>>, vector<32x128xf32>
      %c0_11 = arith.constant 0 : index
      %c0_12 = arith.constant 0 : index
      %13 = vector.load %arg5[%c0_11, %c0_12] : memref<1x128xf32, #tpu.memory_space<vmem>>, vector<1x128xf32>
      %14 = vector.broadcast %13 : vector<1x128xf32> to vector<32x128xf32>
      %15 = arith.mulf %12, %14 : vector<32x128xf32>
      %c0_13 = arith.constant 0 : index
      %c0_14 = arith.constant 0 : index
      %16 = vector.load %arg6[%c0_13, %c0_14] : memref<1x128xf32, #tpu.memory_space<vmem>>, vector<1x128xf32>
      %17 = vector.broadcast %16 : vector<1x128xf32> to vector<32x128xf32>
      %18 = arith.addf %15, %17 : vector<32x128xf32>
      %c0_15 = arith.constant 0 : index
      %c0_16 = arith.constant 0 : index
      %19 = vector.load %arg7[%c0_15, %c0_16] : memref<32x128xf32, #tpu.memory_space<vmem>>, vector<32x128xf32>
      %20 = arith.addf %18, %19 : vector<32x128xf32>
      %cst_17 = arith.constant 0.000000e+00 : f32
      %21 = vector.broadcast %cst_17 : f32 to vector<32x128xf32>
      %22 = arith.maximumf %20, %21 : vector<32x128xf32>
      %c0_18 = arith.constant 0 : index
      %c0_19 = arith.constant 0 : index
      %23 = vector.load %arg8[%c0_18, %c0_19] : memref<32x128xf32, #tpu.memory_space<vmem>>, vector<32x128xf32>
      tpu.vector_store %arg8[%c0_18, %c0_19], %22 {strides = array<i32>} : memref<32x128xf32, #tpu.memory_space<vmem>>, vector<32x128xf32>,
    } else {
    }
    return
  }
  func.func @transform_0(%arg0: i32, %arg1: i32, %arg2: i32) -> (i32, i32) {
    %c0_i32 = arith.constant 0 : i32
    return %arg0, %arg2 : i32, i32
  }
  func.func @transform_1(%arg0: i32, %arg1: i32, %arg2: i32) -> (i32, i32) {
    %c0_i32 = arith.constant 0 : i32
    return %arg2, %arg1 : i32, i32
  }
  func.func @transform_2(%arg0: i32, %arg1: i32, %arg2: i32) -> (i32, i32) {
    %c0_i32 = arith.constant 0 : i32
    %c0_i32_0 = arith.constant 0 : i32
    return %c0_i32, %arg1 : i32, i32
  }
  func.func @transform_3(%arg0: i32, %arg1: i32, %arg2: i32) -> (i32, i32) {
    %c0_i32 = arith.constant 0 : i32
    %c0_i32_0 = arith.constant 0 : i32
    return %c0_i32, %arg1 : i32, i32
  }
  func.func @transform_4(%arg0: i32, %arg1: i32, %arg2: i32) -> (i32, i32) {
    %c0_i32 = arith.constant 0 : i32
    return %arg0, %arg1 : i32, i32
  }
  func.func @transform_5(%arg0: i32, %arg1: i32, %arg2: i32) -> (i32, i32) {
    %c0_i32 = arith.constant 0 : i32
    return %arg0, %arg1 : i32, i32
  }
}

module attributes {stable_mosaic.version = 11 : i64} {
  func.func @_gemm_kernel(%arg0: i32, %arg1: i32, %arg2: i32, %arg3: memref<16x384xbf16, #tpu.memory_space<vmem>>, %arg4: memref<384x256xbf16, #tpu.memory_space<vmem>>, %arg5: memref<1x256xf32, #tpu.memory_space<vmem>>, %arg6: memref<1x256xf32, #tpu.memory_space<vmem>>, %arg7: memref<16x256xf32, #tpu.memory_space<vmem>>, %arg8: memref<16x256xf32, #tpu.memory_space<vmem>>) attributes {dimension_semantics = [#tpu.dimension_semantics<parallel>, #tpu.dimension_semantics<parallel>, #tpu.dimension_semantics<arbitrary>], iteration_bounds = array<i64: 1, 1, 3>, scalar_prefetch = 0 : i64, scratch_operands = 1 : i64, tpu.core_type = #tpu.core_type<tc>, window_params = [{transform_indices = @transform_0, window_bounds = array<i64: 16, 384>}, {transform_indices = @transform_1, window_bounds = array<i64: 384, 256>}, {transform_indices = @transform_2, window_bounds = array<i64: 1, 256>}, {transform_indices = @transform_3, window_bounds = array<i64: 1, 256>}, {transform_indices = @transform_4, window_bounds = array<i64: 16, 256>}]} {
    %c0_i32 = arith.constant 0 : i32
    %0 = arith.cmpi eq, %arg2, %c0_i32 : i32
    %1 = arith.extui %0 : i1 to i32
    %c0_i32_0 = arith.constant 0 : i32
    %2 = arith.cmpi ne, %1, %c0_i32_0 : i32
    scf.if %2 {
      %cst_9 = arith.constant 0.000000e+00 : f32
      %12 = vector.broadcast %cst_9 : f32 to vector<16x256xf32>
      %c0_10 = arith.constant 0 : index
      %c0_11 = arith.constant 0 : index
      %13 = vector.load %arg8[%c0_10, %c0_11] : memref<16x256xf32, #tpu.memory_space<vmem>>, vector<16x256xf32>
      tpu.vector_store %arg8[%c0_10, %c0_11], %12 {strides = array<i32>} : memref<16x256xf32, #tpu.memory_space<vmem>>, vector<16x256xf32>,
    } else {
    }
    %c0 = arith.constant 0 : index
    %c0_1 = arith.constant 0 : index
    %3 = vector.load %arg8[%c0, %c0_1] : memref<16x256xf32, #tpu.memory_space<vmem>>, vector<16x256xf32>
    %c0_2 = arith.constant 0 : index
    %c0_3 = arith.constant 0 : index
    %4 = vector.load %arg3[%c0_2, %c0_3] : memref<16x384xbf16, #tpu.memory_space<vmem>>, vector<16x384xbf16>
    %c0_4 = arith.constant 0 : index
    %c0_5 = arith.constant 0 : index
    %5 = vector.load %arg4[%c0_4, %c0_5] : memref<384x256xbf16, #tpu.memory_space<vmem>>, vector<384x256xbf16>
    %cst = arith.constant dense<0.000000e+00> : vector<16x256xf32>
    %6 = tpu.matmul %4, %5, %cst {dimension_numbers = #tpu.dot_dimension_numbers<[1], [0], [0], [1], [0, 0, 1, 1], [], []>} : vector<16x384xbf16>, vector<384x256xbf16>, vector<16x256xf32> -> vector<16x256xf32>
    %7 = arith.addf %3, %6 : vector<16x256xf32>
    %c0_6 = arith.constant 0 : index
    %c0_7 = arith.constant 0 : index
    %8 = vector.load %arg8[%c0_6, %c0_7] : memref<16x256xf32, #tpu.memory_space<vmem>>, vector<16x256xf32>
    tpu.vector_store %arg8[%c0_6, %c0_7], %7 {strides = array<i32>} : memref<16x256xf32, #tpu.memory_space<vmem>>, vector<16x256xf32>,
    %c2_i32 = arith.constant 2 : i32
    %9 = arith.cmpi eq, %arg2, %c2_i32 : i32
    %10 = arith.extui %9 : i1 to i32
    %c0_i32_8 = arith.constant 0 : i32
    %11 = arith.cmpi ne, %10, %c0_i32_8 : i32
    scf.if %11 {
      %c0_9 = arith.constant 0 : index
      %c0_10 = arith.constant 0 : index
      %12 = vector.load %arg8[%c0_9, %c0_10] : memref<16x256xf32, #tpu.memory_space<vmem>>, vector<16x256xf32>
      %c0_11 = arith.constant 0 : index
      %c0_12 = arith.constant 0 : index
      %13 = vector.load %arg5[%c0_11, %c0_12] : memref<1x256xf32, #tpu.memory_space<vmem>>, vector<1x256xf32>
      %14 = vector.broadcast %13 : vector<1x256xf32> to vector<16x256xf32>
      %15 = arith.mulf %12, %14 : vector<16x256xf32>
      %c0_13 = arith.constant 0 : index
      %c0_14 = arith.constant 0 : index
      %16 = vector.load %arg6[%c0_13, %c0_14] : memref<1x256xf32, #tpu.memory_space<vmem>>, vector<1x256xf32>
      %17 = vector.broadcast %16 : vector<1x256xf32> to vector<16x256xf32>
      %18 = arith.addf %15, %17 : vector<16x256xf32>
      %cst_15 = arith.constant 0.000000e+00 : f32
      %19 = vector.broadcast %cst_15 : f32 to vector<16x256xf32>
      %20 = arith.maximumf %18, %19 : vector<16x256xf32>
      %c0_16 = arith.constant 0 : index
      %c0_17 = arith.constant 0 : index
      %21 = vector.load %arg7[%c0_16, %c0_17] : memref<16x256xf32, #tpu.memory_space<vmem>>, vector<16x256xf32>
      tpu.vector_store %arg7[%c0_16, %c0_17], %20 {strides = array<i32>} : memref<16x256xf32, #tpu.memory_space<vmem>>, vector<16x256xf32>,
    } else {
    }
    return
  }
  func.func @transform_0(%arg0: i32, %arg1: i32, %arg2: i32) -> (i32, i32) {
    %c0_i32 = arith.constant 0 : i32
    return %arg0, %arg2 : i32, i32
  }
  func.func @transform_1(%arg0: i32, %arg1: i32, %arg2: i32) -> (i32, i32) {
    %c0_i32 = arith.constant 0 : i32
    return %arg2, %arg1 : i32, i32
  }
  func.func @transform_2(%arg0: i32, %arg1: i32, %arg2: i32) -> (i32, i32) {
    %c0_i32 = arith.constant 0 : i32
    %c0_i32_0 = arith.constant 0 : i32
    return %c0_i32, %arg1 : i32, i32
  }
  func.func @transform_3(%arg0: i32, %arg1: i32, %arg2: i32) -> (i32, i32) {
    %c0_i32 = arith.constant 0 : i32
    %c0_i32_0 = arith.constant 0 : i32
    return %c0_i32, %arg1 : i32, i32
  }
  func.func @transform_4(%arg0: i32, %arg1: i32, %arg2: i32) -> (i32, i32) {
    %c0_i32 = arith.constant 0 : i32
    return %arg0, %arg1 : i32, i32
  }
}

module attributes {stable_mosaic.version = 11 : i64} {
  func.func @_gemm_kernel(%arg0: i32, %arg1: i32, %arg2: i32, %arg3: memref<16x128xbf16, #tpu.memory_space<vmem>>, %arg4: memref<128x256xbf16, #tpu.memory_space<vmem>>, %arg5: memref<1x256xf32, #tpu.memory_space<vmem>>, %arg6: memref<1x256xf32, #tpu.memory_space<vmem>>, %arg7: memref<16x256xf32, #tpu.memory_space<vmem>>, %arg8: memref<16x256xf32, #tpu.memory_space<vmem>>) attributes {dimension_semantics = [#tpu.dimension_semantics<parallel>, #tpu.dimension_semantics<parallel>, #tpu.dimension_semantics<arbitrary>], iteration_bounds = array<i64: 1, 1, 1>, scalar_prefetch = 0 : i64, scratch_operands = 1 : i64, tpu.core_type = #tpu.core_type<tc>, window_params = [{transform_indices = @transform_0, window_bounds = array<i64: 16, 128>}, {transform_indices = @transform_1, window_bounds = array<i64: 128, 256>}, {transform_indices = @transform_2, window_bounds = array<i64: 1, 256>}, {transform_indices = @transform_3, window_bounds = array<i64: 1, 256>}, {transform_indices = @transform_4, window_bounds = array<i64: 16, 256>}]} {
    %c0_i32 = arith.constant 0 : i32
    %0 = arith.cmpi eq, %arg2, %c0_i32 : i32
    %1 = arith.extui %0 : i1 to i32
    %c0_i32_0 = arith.constant 0 : i32
    %2 = arith.cmpi ne, %1, %c0_i32_0 : i32
    scf.if %2 {
      %cst_10 = arith.constant 0.000000e+00 : f32
      %12 = vector.broadcast %cst_10 : f32 to vector<16x256xf32>
      %c0_11 = arith.constant 0 : index
      %c0_12 = arith.constant 0 : index
      %13 = vector.load %arg8[%c0_11, %c0_12] : memref<16x256xf32, #tpu.memory_space<vmem>>, vector<16x256xf32>
      tpu.vector_store %arg8[%c0_11, %c0_12], %12 {strides = array<i32>} : memref<16x256xf32, #tpu.memory_space<vmem>>, vector<16x256xf32>,
    } else {
    }
    %c0 = arith.constant 0 : index
    %c0_1 = arith.constant 0 : index
    %3 = vector.load %arg8[%c0, %c0_1] : memref<16x256xf32, #tpu.memory_space<vmem>>, vector<16x256xf32>
    %c0_2 = arith.constant 0 : index
    %c0_3 = arith.constant 0 : index
    %4 = vector.load %arg3[%c0_2, %c0_3] : memref<16x128xbf16, #tpu.memory_space<vmem>>, vector<16x128xbf16>
    %c0_4 = arith.constant 0 : index
    %c0_5 = arith.constant 0 : index
    %5 = vector.load %arg4[%c0_4, %c0_5] : memref<128x256xbf16, #tpu.memory_space<vmem>>, vector<128x256xbf16>
    %cst = arith.constant dense<0.000000e+00> : vector<16x256xf32>
    %6 = tpu.matmul %4, %5, %cst {dimension_numbers = #tpu.dot_dimension_numbers<[1], [0], [0], [1], [0, 0, 1, 1], [], []>} : vector<16x128xbf16>, vector<128x256xbf16>, vector<16x256xf32> -> vector<16x256xf32>
    %7 = arith.addf %3, %6 : vector<16x256xf32>
    %c0_6 = arith.constant 0 : index
    %c0_7 = arith.constant 0 : index
    %8 = vector.load %arg8[%c0_6, %c0_7] : memref<16x256xf32, #tpu.memory_space<vmem>>, vector<16x256xf32>
    tpu.vector_store %arg8[%c0_6, %c0_7], %7 {strides = array<i32>} : memref<16x256xf32, #tpu.memory_space<vmem>>, vector<16x256xf32>,
    %c0_i32_8 = arith.constant 0 : i32
    %9 = arith.cmpi eq, %arg2, %c0_i32_8 : i32
    %10 = arith.extui %9 : i1 to i32
    %c0_i32_9 = arith.constant 0 : i32
    %11 = arith.cmpi ne, %10, %c0_i32_9 : i32
    scf.if %11 {
      %c0_10 = arith.constant 0 : index
      %c0_11 = arith.constant 0 : index
      %12 = vector.load %arg8[%c0_10, %c0_11] : memref<16x256xf32, #tpu.memory_space<vmem>>, vector<16x256xf32>
      %c0_12 = arith.constant 0 : index
      %c0_13 = arith.constant 0 : index
      %13 = vector.load %arg5[%c0_12, %c0_13] : memref<1x256xf32, #tpu.memory_space<vmem>>, vector<1x256xf32>
      %14 = vector.broadcast %13 : vector<1x256xf32> to vector<16x256xf32>
      %15 = arith.mulf %12, %14 : vector<16x256xf32>
      %c0_14 = arith.constant 0 : index
      %c0_15 = arith.constant 0 : index
      %16 = vector.load %arg6[%c0_14, %c0_15] : memref<1x256xf32, #tpu.memory_space<vmem>>, vector<1x256xf32>
      %17 = vector.broadcast %16 : vector<1x256xf32> to vector<16x256xf32>
      %18 = arith.addf %15, %17 : vector<16x256xf32>
      %c0_16 = arith.constant 0 : index
      %c0_17 = arith.constant 0 : index
      %19 = vector.load %arg7[%c0_16, %c0_17] : memref<16x256xf32, #tpu.memory_space<vmem>>, vector<16x256xf32>
      tpu.vector_store %arg7[%c0_16, %c0_17], %18 {strides = array<i32>} : memref<16x256xf32, #tpu.memory_space<vmem>>, vector<16x256xf32>,
    } else {
    }
    return
  }
  func.func @transform_0(%arg0: i32, %arg1: i32, %arg2: i32) -> (i32, i32) {
    %c0_i32 = arith.constant 0 : i32
    return %arg0, %arg2 : i32, i32
  }
  func.func @transform_1(%arg0: i32, %arg1: i32, %arg2: i32) -> (i32, i32) {
    %c0_i32 = arith.constant 0 : i32
    return %arg2, %arg1 : i32, i32
  }
  func.func @transform_2(%arg0: i32, %arg1: i32, %arg2: i32) -> (i32, i32) {
    %c0_i32 = arith.constant 0 : i32
    %c0_i32_0 = arith.constant 0 : i32
    return %c0_i32, %arg1 : i32, i32
  }
  func.func @transform_3(%arg0: i32, %arg1: i32, %arg2: i32) -> (i32, i32) {
    %c0_i32 = arith.constant 0 : i32
    %c0_i32_0 = arith.constant 0 : i32
    return %c0_i32, %arg1 : i32, i32
  }
  func.func @transform_4(%arg0: i32, %arg1: i32, %arg2: i32) -> (i32, i32) {
    %c0_i32 = arith.constant 0 : i32
    return %arg0, %arg1 : i32, i32
  }
}

module attributes {stable_mosaic.version = 11 : i64} {
  func.func @_gemm_kernel(%arg0: i32, %arg1: i32, %arg2: i32, %arg3: memref<16x384xbf16, #tpu.memory_space<vmem>>, %arg4: memref<384x256xbf16, #tpu.memory_space<vmem>>, %arg5: memref<1x256xf32, #tpu.memory_space<vmem>>, %arg6: memref<1x256xf32, #tpu.memory_space<vmem>>, %arg7: memref<16x256xf32, #tpu.memory_space<vmem>>, %arg8: memref<16x256xf32, #tpu.memory_space<vmem>>, %arg9: memref<16x256xf32, #tpu.memory_space<vmem>>) attributes {dimension_semantics = [#tpu.dimension_semantics<parallel>, #tpu.dimension_semantics<parallel>, #tpu.dimension_semantics<arbitrary>], iteration_bounds = array<i64: 1, 1, 6>, scalar_prefetch = 0 : i64, scratch_operands = 1 : i64, tpu.core_type = #tpu.core_type<tc>, window_params = [{transform_indices = @transform_0, window_bounds = array<i64: 16, 384>}, {transform_indices = @transform_1, window_bounds = array<i64: 384, 256>}, {transform_indices = @transform_2, window_bounds = array<i64: 1, 256>}, {transform_indices = @transform_3, window_bounds = array<i64: 1, 256>}, {transform_indices = @transform_4, window_bounds = array<i64: 16, 256>}, {transform_indices = @transform_5, window_bounds = array<i64: 16, 256>}]} {
    %c0_i32 = arith.constant 0 : i32
    %0 = arith.cmpi eq, %arg2, %c0_i32 : i32
    %1 = arith.extui %0 : i1 to i32
    %c0_i32_0 = arith.constant 0 : i32
    %2 = arith.cmpi ne, %1, %c0_i32_0 : i32
    scf.if %2 {
      %cst_9 = arith.constant 0.000000e+00 : f32
      %12 = vector.broadcast %cst_9 : f32 to vector<16x256xf32>
      %c0_10 = arith.constant 0 : index
      %c0_11 = arith.constant 0 : index
      %13 = vector.load %arg9[%c0_10, %c0_11] : memref<16x256xf32, #tpu.memory_space<vmem>>, vector<16x256xf32>
      tpu.vector_store %arg9[%c0_10, %c0_11], %12 {strides = array<i32>} : memref<16x256xf32, #tpu.memory_space<vmem>>, vector<16x256xf32>,
    } else {
    }
    %c0 = arith.constant 0 : index
    %c0_1 = arith.constant 0 : index
    %3 = vector.load %arg9[%c0, %c0_1] : memref<16x256xf32, #tpu.memory_space<vmem>>, vector<16x256xf32>
    %c0_2 = arith.constant 0 : index
    %c0_3 = arith.constant 0 : index
    %4 = vector.load %arg3[%c0_2, %c0_3] : memref<16x384xbf16, #tpu.memory_space<vmem>>, vector<16x384xbf16>
    %c0_4 = arith.constant 0 : index
    %c0_5 = arith.constant 0 : index
    %5 = vector.load %arg4[%c0_4, %c0_5] : memref<384x256xbf16, #tpu.memory_space<vmem>>, vector<384x256xbf16>
    %cst = arith.constant dense<0.000000e+00> : vector<16x256xf32>
    %6 = tpu.matmul %4, %5, %cst {dimension_numbers = #tpu.dot_dimension_numbers<[1], [0], [0], [1], [0, 0, 1, 1], [], []>} : vector<16x384xbf16>, vector<384x256xbf16>, vector<16x256xf32> -> vector<16x256xf32>
    %7 = arith.addf %3, %6 : vector<16x256xf32>
    %c0_6 = arith.constant 0 : index
    %c0_7 = arith.constant 0 : index
    %8 = vector.load %arg9[%c0_6, %c0_7] : memref<16x256xf32, #tpu.memory_space<vmem>>, vector<16x256xf32>
    tpu.vector_store %arg9[%c0_6, %c0_7], %7 {strides = array<i32>} : memref<16x256xf32, #tpu.memory_space<vmem>>, vector<16x256xf32>,
    %c5_i32 = arith.constant 5 : i32
    %9 = arith.cmpi eq, %arg2, %c5_i32 : i32
    %10 = arith.extui %9 : i1 to i32
    %c0_i32_8 = arith.constant 0 : i32
    %11 = arith.cmpi ne, %10, %c0_i32_8 : i32
    scf.if %11 {
      %c0_9 = arith.constant 0 : index
      %c0_10 = arith.constant 0 : index
      %12 = vector.load %arg9[%c0_9, %c0_10] : memref<16x256xf32, #tpu.memory_space<vmem>>, vector<16x256xf32>
      %c0_11 = arith.constant 0 : index
      %c0_12 = arith.constant 0 : index
      %13 = vector.load %arg5[%c0_11, %c0_12] : memref<1x256xf32, #tpu.memory_space<vmem>>, vector<1x256xf32>
      %14 = vector.broadcast %13 : vector<1x256xf32> to vector<16x256xf32>
      %15 = arith.mulf %12, %14 : vector<16x256xf32>
      %c0_13 = arith.constant 0 : index
      %c0_14 = arith.constant 0 : index
      %16 = vector.load %arg6[%c0_13, %c0_14] : memref<1x256xf32, #tpu.memory_space<vmem>>, vector<1x256xf32>
      %17 = vector.broadcast %16 : vector<1x256xf32> to vector<16x256xf32>
      %18 = arith.addf %15, %17 : vector<16x256xf32>
      %c0_15 = arith.constant 0 : index
      %c0_16 = arith.constant 0 : index
      %19 = vector.load %arg7[%c0_15, %c0_16] : memref<16x256xf32, #tpu.memory_space<vmem>>, vector<16x256xf32>
      %20 = arith.addf %18, %19 : vector<16x256xf32>
      %cst_17 = arith.constant 0.000000e+00 : f32
      %21 = vector.broadcast %cst_17 : f32 to vector<16x256xf32>
      %22 = arith.maximumf %20, %21 : vector<16x256xf32>
      %c0_18 = arith.constant 0 : index
      %c0_19 = arith.constant 0 : index
      %23 = vector.load %arg8[%c0_18, %c0_19] : memref<16x256xf32, #tpu.memory_space<vmem>>, vector<16x256xf32>
      tpu.vector_store %arg8[%c0_18, %c0_19], %22 {strides = array<i32>} : memref<16x256xf32, #tpu.memory_space<vmem>>, vector<16x256xf32>,
    } else {
    }
    return
  }
  func.func @transform_0(%arg0: i32, %arg1: i32, %arg2: i32) -> (i32, i32) {
    %c0_i32 = arith.constant 0 : i32
    return %arg0, %arg2 : i32, i32
  }
  func.func @transform_1(%arg0: i32, %arg1: i32, %arg2: i32) -> (i32, i32) {
    %c0_i32 = arith.constant 0 : i32
    return %arg2, %arg1 : i32, i32
  }
  func.func @transform_2(%arg0: i32, %arg1: i32, %arg2: i32) -> (i32, i32) {
    %c0_i32 = arith.constant 0 : i32
    %c0_i32_0 = arith.constant 0 : i32
    return %c0_i32, %arg1 : i32, i32
  }
  func.func @transform_3(%arg0: i32, %arg1: i32, %arg2: i32) -> (i32, i32) {
    %c0_i32 = arith.constant 0 : i32
    %c0_i32_0 = arith.constant 0 : i32
    return %c0_i32, %arg1 : i32, i32
  }
  func.func @transform_4(%arg0: i32, %arg1: i32, %arg2: i32) -> (i32, i32) {
    %c0_i32 = arith.constant 0 : i32
    return %arg0, %arg1 : i32, i32
  }
  func.func @transform_5(%arg0: i32, %arg1: i32, %arg2: i32) -> (i32, i32) {
    %c0_i32 = arith.constant 0 : i32
    return %arg0, %arg1 : i32, i32
  }
}

module attributes {stable_mosaic.version = 11 : i64} {
  func.func @_gemm_kernel(%arg0: i32, %arg1: i32, %arg2: i32, %arg3: memref<16x384xbf16, #tpu.memory_space<vmem>>, %arg4: memref<384x256xbf16, #tpu.memory_space<vmem>>, %arg5: memref<1x256xf32, #tpu.memory_space<vmem>>, %arg6: memref<1x256xf32, #tpu.memory_space<vmem>>, %arg7: memref<16x256xf32, #tpu.memory_space<vmem>>, %arg8: memref<16x256xf32, #tpu.memory_space<vmem>>) attributes {dimension_semantics = [#tpu.dimension_semantics<parallel>, #tpu.dimension_semantics<parallel>, #tpu.dimension_semantics<arbitrary>], iteration_bounds = array<i64: 1, 1, 6>, scalar_prefetch = 0 : i64, scratch_operands = 1 : i64, tpu.core_type = #tpu.core_type<tc>, window_params = [{transform_indices = @transform_0, window_bounds = array<i64: 16, 384>}, {transform_indices = @transform_1, window_bounds = array<i64: 384, 256>}, {transform_indices = @transform_2, window_bounds = array<i64: 1, 256>}, {transform_indices = @transform_3, window_bounds = array<i64: 1, 256>}, {transform_indices = @transform_4, window_bounds = array<i64: 16, 256>}]} {
    %c0_i32 = arith.constant 0 : i32
    %0 = arith.cmpi eq, %arg2, %c0_i32 : i32
    %1 = arith.extui %0 : i1 to i32
    %c0_i32_0 = arith.constant 0 : i32
    %2 = arith.cmpi ne, %1, %c0_i32_0 : i32
    scf.if %2 {
      %cst_9 = arith.constant 0.000000e+00 : f32
      %12 = vector.broadcast %cst_9 : f32 to vector<16x256xf32>
      %c0_10 = arith.constant 0 : index
      %c0_11 = arith.constant 0 : index
      %13 = vector.load %arg8[%c0_10, %c0_11] : memref<16x256xf32, #tpu.memory_space<vmem>>, vector<16x256xf32>
      tpu.vector_store %arg8[%c0_10, %c0_11], %12 {strides = array<i32>} : memref<16x256xf32, #tpu.memory_space<vmem>>, vector<16x256xf32>,
    } else {
    }
    %c0 = arith.constant 0 : index
    %c0_1 = arith.constant 0 : index
    %3 = vector.load %arg8[%c0, %c0_1] : memref<16x256xf32, #tpu.memory_space<vmem>>, vector<16x256xf32>
    %c0_2 = arith.constant 0 : index
    %c0_3 = arith.constant 0 : index
    %4 = vector.load %arg3[%c0_2, %c0_3] : memref<16x384xbf16, #tpu.memory_space<vmem>>, vector<16x384xbf16>
    %c0_4 = arith.constant 0 : index
    %c0_5 = arith.constant 0 : index
    %5 = vector.load %arg4[%c0_4, %c0_5] : memref<384x256xbf16, #tpu.memory_space<vmem>>, vector<384x256xbf16>
    %cst = arith.constant dense<0.000000e+00> : vector<16x256xf32>
    %6 = tpu.matmul %4, %5, %cst {dimension_numbers = #tpu.dot_dimension_numbers<[1], [0], [0], [1], [0, 0, 1, 1], [], []>} : vector<16x384xbf16>, vector<384x256xbf16>, vector<16x256xf32> -> vector<16x256xf32>
    %7 = arith.addf %3, %6 : vector<16x256xf32>
    %c0_6 = arith.constant 0 : index
    %c0_7 = arith.constant 0 : index
    %8 = vector.load %arg8[%c0_6, %c0_7] : memref<16x256xf32, #tpu.memory_space<vmem>>, vector<16x256xf32>
    tpu.vector_store %arg8[%c0_6, %c0_7], %7 {strides = array<i32>} : memref<16x256xf32, #tpu.memory_space<vmem>>, vector<16x256xf32>,
    %c5_i32 = arith.constant 5 : i32
    %9 = arith.cmpi eq, %arg2, %c5_i32 : i32
    %10 = arith.extui %9 : i1 to i32
    %c0_i32_8 = arith.constant 0 : i32
    %11 = arith.cmpi ne, %10, %c0_i32_8 : i32
    scf.if %11 {
      %c0_9 = arith.constant 0 : index
      %c0_10 = arith.constant 0 : index
      %12 = vector.load %arg8[%c0_9, %c0_10] : memref<16x256xf32, #tpu.memory_space<vmem>>, vector<16x256xf32>
      %c0_11 = arith.constant 0 : index
      %c0_12 = arith.constant 0 : index
      %13 = vector.load %arg5[%c0_11, %c0_12] : memref<1x256xf32, #tpu.memory_space<vmem>>, vector<1x256xf32>
      %14 = vector.broadcast %13 : vector<1x256xf32> to vector<16x256xf32>
      %15 = arith.mulf %12, %14 : vector<16x256xf32>
      %c0_13 = arith.constant 0 : index
      %c0_14 = arith.constant 0 : index
      %16 = vector.load %arg6[%c0_13, %c0_14] : memref<1x256xf32, #tpu.memory_space<vmem>>, vector<1x256xf32>
      %17 = vector.broadcast %16 : vector<1x256xf32> to vector<16x256xf32>
      %18 = arith.addf %15, %17 : vector<16x256xf32>
      %cst_15 = arith.constant 0.000000e+00 : f32
      %19 = vector.broadcast %cst_15 : f32 to vector<16x256xf32>
      %20 = arith.maximumf %18, %19 : vector<16x256xf32>
      %c0_16 = arith.constant 0 : index
      %c0_17 = arith.constant 0 : index
      %21 = vector.load %arg7[%c0_16, %c0_17] : memref<16x256xf32, #tpu.memory_space<vmem>>, vector<16x256xf32>
      tpu.vector_store %arg7[%c0_16, %c0_17], %20 {strides = array<i32>} : memref<16x256xf32, #tpu.memory_space<vmem>>, vector<16x256xf32>,
    } else {
    }
    return
  }
  func.func @transform_0(%arg0: i32, %arg1: i32, %arg2: i32) -> (i32, i32) {
    %c0_i32 = arith.constant 0 : i32
    return %arg0, %arg2 : i32, i32
  }
  func.func @transform_1(%arg0: i32, %arg1: i32, %arg2: i32) -> (i32, i32) {
    %c0_i32 = arith.constant 0 : i32
    return %arg2, %arg1 : i32, i32
  }
  func.func @transform_2(%arg0: i32, %arg1: i32, %arg2: i32) -> (i32, i32) {
    %c0_i32 = arith.constant 0 : i32
    %c0_i32_0 = arith.constant 0 : i32
    return %c0_i32, %arg1 : i32, i32
  }
  func.func @transform_3(%arg0: i32, %arg1: i32, %arg2: i32) -> (i32, i32) {
    %c0_i32 = arith.constant 0 : i32
    %c0_i32_0 = arith.constant 0 : i32
    return %c0_i32, %arg1 : i32, i32
  }
  func.func @transform_4(%arg0: i32, %arg1: i32, %arg2: i32) -> (i32, i32) {
    %c0_i32 = arith.constant 0 : i32
    return %arg0, %arg1 : i32, i32
  }
}

module attributes {stable_mosaic.version = 11 : i64} {
  func.func @_gemm_kernel(%arg0: i32, %arg1: i32, %arg2: i32, %arg3: memref<16x384xbf16, #tpu.memory_space<vmem>>, %arg4: memref<384x256xbf16, #tpu.memory_space<vmem>>, %arg5: memref<1x256xf32, #tpu.memory_space<vmem>>, %arg6: memref<1x256xf32, #tpu.memory_space<vmem>>, %arg7: memref<16x256xf32, #tpu.memory_space<vmem>>, %arg8: memref<16x256xf32, #tpu.memory_space<vmem>>) attributes {dimension_semantics = [#tpu.dimension_semantics<parallel>, #tpu.dimension_semantics<parallel>, #tpu.dimension_semantics<arbitrary>], iteration_bounds = array<i64: 1, 2, 6>, scalar_prefetch = 0 : i64, scratch_operands = 1 : i64, tpu.core_type = #tpu.core_type<tc>, window_params = [{transform_indices = @transform_0, window_bounds = array<i64: 16, 384>}, {transform_indices = @transform_1, window_bounds = array<i64: 384, 256>}, {transform_indices = @transform_2, window_bounds = array<i64: 1, 256>}, {transform_indices = @transform_3, window_bounds = array<i64: 1, 256>}, {transform_indices = @transform_4, window_bounds = array<i64: 16, 256>}]} {
    %c0_i32 = arith.constant 0 : i32
    %0 = arith.cmpi eq, %arg2, %c0_i32 : i32
    %1 = arith.extui %0 : i1 to i32
    %c0_i32_0 = arith.constant 0 : i32
    %2 = arith.cmpi ne, %1, %c0_i32_0 : i32
    scf.if %2 {
      %cst_9 = arith.constant 0.000000e+00 : f32
      %12 = vector.broadcast %cst_9 : f32 to vector<16x256xf32>
      %c0_10 = arith.constant 0 : index
      %c0_11 = arith.constant 0 : index
      %13 = vector.load %arg8[%c0_10, %c0_11] : memref<16x256xf32, #tpu.memory_space<vmem>>, vector<16x256xf32>
      tpu.vector_store %arg8[%c0_10, %c0_11], %12 {strides = array<i32>} : memref<16x256xf32, #tpu.memory_space<vmem>>, vector<16x256xf32>,
    } else {
    }
    %c0 = arith.constant 0 : index
    %c0_1 = arith.constant 0 : index
    %3 = vector.load %arg8[%c0, %c0_1] : memref<16x256xf32, #tpu.memory_space<vmem>>, vector<16x256xf32>
    %c0_2 = arith.constant 0 : index
    %c0_3 = arith.constant 0 : index
    %4 = vector.load %arg3[%c0_2, %c0_3] : memref<16x384xbf16, #tpu.memory_space<vmem>>, vector<16x384xbf16>
    %c0_4 = arith.constant 0 : index
    %c0_5 = arith.constant 0 : index
    %5 = vector.load %arg4[%c0_4, %c0_5] : memref<384x256xbf16, #tpu.memory_space<vmem>>, vector<384x256xbf16>
    %cst = arith.constant dense<0.000000e+00> : vector<16x256xf32>
    %6 = tpu.matmul %4, %5, %cst {dimension_numbers = #tpu.dot_dimension_numbers<[1], [0], [0], [1], [0, 0, 1, 1], [], []>} : vector<16x384xbf16>, vector<384x256xbf16>, vector<16x256xf32> -> vector<16x256xf32>
    %7 = arith.addf %3, %6 : vector<16x256xf32>
    %c0_6 = arith.constant 0 : index
    %c0_7 = arith.constant 0 : index
    %8 = vector.load %arg8[%c0_6, %c0_7] : memref<16x256xf32, #tpu.memory_space<vmem>>, vector<16x256xf32>
    tpu.vector_store %arg8[%c0_6, %c0_7], %7 {strides = array<i32>} : memref<16x256xf32, #tpu.memory_space<vmem>>, vector<16x256xf32>,
    %c5_i32 = arith.constant 5 : i32
    %9 = arith.cmpi eq, %arg2, %c5_i32 : i32
    %10 = arith.extui %9 : i1 to i32
    %c0_i32_8 = arith.constant 0 : i32
    %11 = arith.cmpi ne, %10, %c0_i32_8 : i32
    scf.if %11 {
      %c0_9 = arith.constant 0 : index
      %c0_10 = arith.constant 0 : index
      %12 = vector.load %arg8[%c0_9, %c0_10] : memref<16x256xf32, #tpu.memory_space<vmem>>, vector<16x256xf32>
      %c0_11 = arith.constant 0 : index
      %c0_12 = arith.constant 0 : index
      %13 = vector.load %arg5[%c0_11, %c0_12] : memref<1x256xf32, #tpu.memory_space<vmem>>, vector<1x256xf32>
      %14 = vector.broadcast %13 : vector<1x256xf32> to vector<16x256xf32>
      %15 = arith.mulf %12, %14 : vector<16x256xf32>
      %c0_13 = arith.constant 0 : index
      %c0_14 = arith.constant 0 : index
      %16 = vector.load %arg6[%c0_13, %c0_14] : memref<1x256xf32, #tpu.memory_space<vmem>>, vector<1x256xf32>
      %17 = vector.broadcast %16 : vector<1x256xf32> to vector<16x256xf32>
      %18 = arith.addf %15, %17 : vector<16x256xf32>
      %cst_15 = arith.constant 0.000000e+00 : f32
      %19 = vector.broadcast %cst_15 : f32 to vector<16x256xf32>
      %20 = arith.maximumf %18, %19 : vector<16x256xf32>
      %c0_16 = arith.constant 0 : index
      %c0_17 = arith.constant 0 : index
      %21 = vector.load %arg7[%c0_16, %c0_17] : memref<16x256xf32, #tpu.memory_space<vmem>>, vector<16x256xf32>
      tpu.vector_store %arg7[%c0_16, %c0_17], %20 {strides = array<i32>} : memref<16x256xf32, #tpu.memory_space<vmem>>, vector<16x256xf32>,
    } else {
    }
    return
  }
  func.func @transform_0(%arg0: i32, %arg1: i32, %arg2: i32) -> (i32, i32) {
    %c0_i32 = arith.constant 0 : i32
    return %arg0, %arg2 : i32, i32
  }
  func.func @transform_1(%arg0: i32, %arg1: i32, %arg2: i32) -> (i32, i32) {
    %c0_i32 = arith.constant 0 : i32
    return %arg2, %arg1 : i32, i32
  }
  func.func @transform_2(%arg0: i32, %arg1: i32, %arg2: i32) -> (i32, i32) {
    %c0_i32 = arith.constant 0 : i32
    %c0_i32_0 = arith.constant 0 : i32
    return %c0_i32, %arg1 : i32, i32
  }
  func.func @transform_3(%arg0: i32, %arg1: i32, %arg2: i32) -> (i32, i32) {
    %c0_i32 = arith.constant 0 : i32
    %c0_i32_0 = arith.constant 0 : i32
    return %c0_i32, %arg1 : i32, i32
  }
  func.func @transform_4(%arg0: i32, %arg1: i32, %arg2: i32) -> (i32, i32) {
    %c0_i32 = arith.constant 0 : i32
    return %arg0, %arg1 : i32, i32
  }
}

module attributes {stable_mosaic.version = 11 : i64} {
  func.func @_gemm_kernel(%arg0: i32, %arg1: i32, %arg2: i32, %arg3: memref<16x256xbf16, #tpu.memory_space<vmem>>, %arg4: memref<256x256xbf16, #tpu.memory_space<vmem>>, %arg5: memref<1x256xf32, #tpu.memory_space<vmem>>, %arg6: memref<1x256xf32, #tpu.memory_space<vmem>>, %arg7: memref<16x256xf32, #tpu.memory_space<vmem>>, %arg8: memref<16x256xf32, #tpu.memory_space<vmem>>) attributes {dimension_semantics = [#tpu.dimension_semantics<parallel>, #tpu.dimension_semantics<parallel>, #tpu.dimension_semantics<arbitrary>], iteration_bounds = array<i64: 1, 2, 1>, scalar_prefetch = 0 : i64, scratch_operands = 1 : i64, tpu.core_type = #tpu.core_type<tc>, window_params = [{transform_indices = @transform_0, window_bounds = array<i64: 16, 256>}, {transform_indices = @transform_1, window_bounds = array<i64: 256, 256>}, {transform_indices = @transform_2, window_bounds = array<i64: 1, 256>}, {transform_indices = @transform_3, window_bounds = array<i64: 1, 256>}, {transform_indices = @transform_4, window_bounds = array<i64: 16, 256>}]} {
    %c0_i32 = arith.constant 0 : i32
    %0 = arith.cmpi eq, %arg2, %c0_i32 : i32
    %1 = arith.extui %0 : i1 to i32
    %c0_i32_0 = arith.constant 0 : i32
    %2 = arith.cmpi ne, %1, %c0_i32_0 : i32
    scf.if %2 {
      %cst_10 = arith.constant 0.000000e+00 : f32
      %12 = vector.broadcast %cst_10 : f32 to vector<16x256xf32>
      %c0_11 = arith.constant 0 : index
      %c0_12 = arith.constant 0 : index
      %13 = vector.load %arg8[%c0_11, %c0_12] : memref<16x256xf32, #tpu.memory_space<vmem>>, vector<16x256xf32>
      tpu.vector_store %arg8[%c0_11, %c0_12], %12 {strides = array<i32>} : memref<16x256xf32, #tpu.memory_space<vmem>>, vector<16x256xf32>,
    } else {
    }
    %c0 = arith.constant 0 : index
    %c0_1 = arith.constant 0 : index
    %3 = vector.load %arg8[%c0, %c0_1] : memref<16x256xf32, #tpu.memory_space<vmem>>, vector<16x256xf32>
    %c0_2 = arith.constant 0 : index
    %c0_3 = arith.constant 0 : index
    %4 = vector.load %arg3[%c0_2, %c0_3] : memref<16x256xbf16, #tpu.memory_space<vmem>>, vector<16x256xbf16>
    %c0_4 = arith.constant 0 : index
    %c0_5 = arith.constant 0 : index
    %5 = vector.load %arg4[%c0_4, %c0_5] : memref<256x256xbf16, #tpu.memory_space<vmem>>, vector<256x256xbf16>
    %cst = arith.constant dense<0.000000e+00> : vector<16x256xf32>
    %6 = tpu.matmul %4, %5, %cst {dimension_numbers = #tpu.dot_dimension_numbers<[1], [0], [0], [1], [0, 0, 1, 1], [], []>} : vector<16x256xbf16>, vector<256x256xbf16>, vector<16x256xf32> -> vector<16x256xf32>
    %7 = arith.addf %3, %6 : vector<16x256xf32>
    %c0_6 = arith.constant 0 : index
    %c0_7 = arith.constant 0 : index
    %8 = vector.load %arg8[%c0_6, %c0_7] : memref<16x256xf32, #tpu.memory_space<vmem>>, vector<16x256xf32>
    tpu.vector_store %arg8[%c0_6, %c0_7], %7 {strides = array<i32>} : memref<16x256xf32, #tpu.memory_space<vmem>>, vector<16x256xf32>,
    %c0_i32_8 = arith.constant 0 : i32
    %9 = arith.cmpi eq, %arg2, %c0_i32_8 : i32
    %10 = arith.extui %9 : i1 to i32
    %c0_i32_9 = arith.constant 0 : i32
    %11 = arith.cmpi ne, %10, %c0_i32_9 : i32
    scf.if %11 {
      %c0_10 = arith.constant 0 : index
      %c0_11 = arith.constant 0 : index
      %12 = vector.load %arg8[%c0_10, %c0_11] : memref<16x256xf32, #tpu.memory_space<vmem>>, vector<16x256xf32>
      %c0_12 = arith.constant 0 : index
      %c0_13 = arith.constant 0 : index
      %13 = vector.load %arg5[%c0_12, %c0_13] : memref<1x256xf32, #tpu.memory_space<vmem>>, vector<1x256xf32>
      %14 = vector.broadcast %13 : vector<1x256xf32> to vector<16x256xf32>
      %15 = arith.mulf %12, %14 : vector<16x256xf32>
      %c0_14 = arith.constant 0 : index
      %c0_15 = arith.constant 0 : index
      %16 = vector.load %arg6[%c0_14, %c0_15] : memref<1x256xf32, #tpu.memory_space<vmem>>, vector<1x256xf32>
      %17 = vector.broadcast %16 : vector<1x256xf32> to vector<16x256xf32>
      %18 = arith.addf %15, %17 : vector<16x256xf32>
      %c0_16 = arith.constant 0 : index
      %c0_17 = arith.constant 0 : index
      %19 = vector.load %arg7[%c0_16, %c0_17] : memref<16x256xf32, #tpu.memory_space<vmem>>, vector<16x256xf32>
      tpu.vector_store %arg7[%c0_16, %c0_17], %18 {strides = array<i32>} : memref<16x256xf32, #tpu.memory_space<vmem>>, vector<16x256xf32>,
    } else {
    }
    return
  }
  func.func @transform_0(%arg0: i32, %arg1: i32, %arg2: i32) -> (i32, i32) {
    %c0_i32 = arith.constant 0 : i32
    return %arg0, %arg2 : i32, i32
  }
  func.func @transform_1(%arg0: i32, %arg1: i32, %arg2: i32) -> (i32, i32) {
    %c0_i32 = arith.constant 0 : i32
    return %arg2, %arg1 : i32, i32
  }
  func.func @transform_2(%arg0: i32, %arg1: i32, %arg2: i32) -> (i32, i32) {
    %c0_i32 = arith.constant 0 : i32
    %c0_i32_0 = arith.constant 0 : i32
    return %c0_i32, %arg1 : i32, i32
  }
  func.func @transform_3(%arg0: i32, %arg1: i32, %arg2: i32) -> (i32, i32) {
    %c0_i32 = arith.constant 0 : i32
    %c0_i32_0 = arith.constant 0 : i32
    return %c0_i32, %arg1 : i32, i32
  }
  func.func @transform_4(%arg0: i32, %arg1: i32, %arg2: i32) -> (i32, i32) {
    %c0_i32 = arith.constant 0 : i32
    return %arg0, %arg1 : i32, i32
  }
}

module attributes {stable_mosaic.version = 11 : i64} {
  func.func @_gemm_kernel(%arg0: i32, %arg1: i32, %arg2: i32, %arg3: memref<16x512xbf16, #tpu.memory_space<vmem>>, %arg4: memref<512x256xbf16, #tpu.memory_space<vmem>>, %arg5: memref<1x256xf32, #tpu.memory_space<vmem>>, %arg6: memref<1x256xf32, #tpu.memory_space<vmem>>, %arg7: memref<16x256xf32, #tpu.memory_space<vmem>>, %arg8: memref<16x256xf32, #tpu.memory_space<vmem>>, %arg9: memref<16x256xf32, #tpu.memory_space<vmem>>) attributes {dimension_semantics = [#tpu.dimension_semantics<parallel>, #tpu.dimension_semantics<parallel>, #tpu.dimension_semantics<arbitrary>], iteration_bounds = array<i64: 1, 2, 9>, scalar_prefetch = 0 : i64, scratch_operands = 1 : i64, tpu.core_type = #tpu.core_type<tc>, window_params = [{transform_indices = @transform_0, window_bounds = array<i64: 16, 512>}, {transform_indices = @transform_1, window_bounds = array<i64: 512, 256>}, {transform_indices = @transform_2, window_bounds = array<i64: 1, 256>}, {transform_indices = @transform_3, window_bounds = array<i64: 1, 256>}, {transform_indices = @transform_4, window_bounds = array<i64: 16, 256>}, {transform_indices = @transform_5, window_bounds = array<i64: 16, 256>}]} {
    %c0_i32 = arith.constant 0 : i32
    %0 = arith.cmpi eq, %arg2, %c0_i32 : i32
    %1 = arith.extui %0 : i1 to i32
    %c0_i32_0 = arith.constant 0 : i32
    %2 = arith.cmpi ne, %1, %c0_i32_0 : i32
    scf.if %2 {
      %cst_9 = arith.constant 0.000000e+00 : f32
      %12 = vector.broadcast %cst_9 : f32 to vector<16x256xf32>
      %c0_10 = arith.constant 0 : index
      %c0_11 = arith.constant 0 : index
      %13 = vector.load %arg9[%c0_10, %c0_11] : memref<16x256xf32, #tpu.memory_space<vmem>>, vector<16x256xf32>
      tpu.vector_store %arg9[%c0_10, %c0_11], %12 {strides = array<i32>} : memref<16x256xf32, #tpu.memory_space<vmem>>, vector<16x256xf32>,
    } else {
    }
    %c0 = arith.constant 0 : index
    %c0_1 = arith.constant 0 : index
    %3 = vector.load %arg9[%c0, %c0_1] : memref<16x256xf32, #tpu.memory_space<vmem>>, vector<16x256xf32>
    %c0_2 = arith.constant 0 : index
    %c0_3 = arith.constant 0 : index
    %4 = vector.load %arg3[%c0_2, %c0_3] : memref<16x512xbf16, #tpu.memory_space<vmem>>, vector<16x512xbf16>
    %c0_4 = arith.constant 0 : index
    %c0_5 = arith.constant 0 : index
    %5 = vector.load %arg4[%c0_4, %c0_5] : memref<512x256xbf16, #tpu.memory_space<vmem>>, vector<512x256xbf16>
    %cst = arith.constant dense<0.000000e+00> : vector<16x256xf32>
    %6 = tpu.matmul %4, %5, %cst {dimension_numbers = #tpu.dot_dimension_numbers<[1], [0], [0], [1], [0, 0, 1, 1], [], []>} : vector<16x512xbf16>, vector<512x256xbf16>, vector<16x256xf32> -> vector<16x256xf32>
    %7 = arith.addf %3, %6 : vector<16x256xf32>
    %c0_6 = arith.constant 0 : index
    %c0_7 = arith.constant 0 : index
    %8 = vector.load %arg9[%c0_6, %c0_7] : memref<16x256xf32, #tpu.memory_space<vmem>>, vector<16x256xf32>
    tpu.vector_store %arg9[%c0_6, %c0_7], %7 {strides = array<i32>} : memref<16x256xf32, #tpu.memory_space<vmem>>, vector<16x256xf32>,
    %c8_i32 = arith.constant 8 : i32
    %9 = arith.cmpi eq, %arg2, %c8_i32 : i32
    %10 = arith.extui %9 : i1 to i32
    %c0_i32_8 = arith.constant 0 : i32
    %11 = arith.cmpi ne, %10, %c0_i32_8 : i32
    scf.if %11 {
      %c0_9 = arith.constant 0 : index
      %c0_10 = arith.constant 0 : index
      %12 = vector.load %arg9[%c0_9, %c0_10] : memref<16x256xf32, #tpu.memory_space<vmem>>, vector<16x256xf32>
      %c0_11 = arith.constant 0 : index
      %c0_12 = arith.constant 0 : index
      %13 = vector.load %arg5[%c0_11, %c0_12] : memref<1x256xf32, #tpu.memory_space<vmem>>, vector<1x256xf32>
      %14 = vector.broadcast %13 : vector<1x256xf32> to vector<16x256xf32>
      %15 = arith.mulf %12, %14 : vector<16x256xf32>
      %c0_13 = arith.constant 0 : index
      %c0_14 = arith.constant 0 : index
      %16 = vector.load %arg6[%c0_13, %c0_14] : memref<1x256xf32, #tpu.memory_space<vmem>>, vector<1x256xf32>
      %17 = vector.broadcast %16 : vector<1x256xf32> to vector<16x256xf32>
      %18 = arith.addf %15, %17 : vector<16x256xf32>
      %c0_15 = arith.constant 0 : index
      %c0_16 = arith.constant 0 : index
      %19 = vector.load %arg7[%c0_15, %c0_16] : memref<16x256xf32, #tpu.memory_space<vmem>>, vector<16x256xf32>
      %20 = arith.addf %18, %19 : vector<16x256xf32>
      %cst_17 = arith.constant 0.000000e+00 : f32
      %21 = vector.broadcast %cst_17 : f32 to vector<16x256xf32>
      %22 = arith.maximumf %20, %21 : vector<16x256xf32>
      %c0_18 = arith.constant 0 : index
      %c0_19 = arith.constant 0 : index
      %23 = vector.load %arg8[%c0_18, %c0_19] : memref<16x256xf32, #tpu.memory_space<vmem>>, vector<16x256xf32>
      tpu.vector_store %arg8[%c0_18, %c0_19], %22 {strides = array<i32>} : memref<16x256xf32, #tpu.memory_space<vmem>>, vector<16x256xf32>,
    } else {
    }
    return
  }
  func.func @transform_0(%arg0: i32, %arg1: i32, %arg2: i32) -> (i32, i32) {
    %c0_i32 = arith.constant 0 : i32
    return %arg0, %arg2 : i32, i32
  }
  func.func @transform_1(%arg0: i32, %arg1: i32, %arg2: i32) -> (i32, i32) {
    %c0_i32 = arith.constant 0 : i32
    return %arg2, %arg1 : i32, i32
  }
  func.func @transform_2(%arg0: i32, %arg1: i32, %arg2: i32) -> (i32, i32) {
    %c0_i32 = arith.constant 0 : i32
    %c0_i32_0 = arith.constant 0 : i32
    return %c0_i32, %arg1 : i32, i32
  }
  func.func @transform_3(%arg0: i32, %arg1: i32, %arg2: i32) -> (i32, i32) {
    %c0_i32 = arith.constant 0 : i32
    %c0_i32_0 = arith.constant 0 : i32
    return %c0_i32, %arg1 : i32, i32
  }
  func.func @transform_4(%arg0: i32, %arg1: i32, %arg2: i32) -> (i32, i32) {
    %c0_i32 = arith.constant 0 : i32
    return %arg0, %arg1 : i32, i32
  }
  func.func @transform_5(%arg0: i32, %arg1: i32, %arg2: i32) -> (i32, i32) {
    %c0_i32 = arith.constant 0 : i32
    return %arg0, %arg1 : i32, i32
  }
}

module attributes {stable_mosaic.version = 11 : i64} {
  func.func @_gemm_kernel(%arg0: i32, %arg1: i32, %arg2: i32, %arg3: memref<16x512xbf16, #tpu.memory_space<vmem>>, %arg4: memref<512x256xbf16, #tpu.memory_space<vmem>>, %arg5: memref<1x256xf32, #tpu.memory_space<vmem>>, %arg6: memref<1x256xf32, #tpu.memory_space<vmem>>, %arg7: memref<16x256xf32, #tpu.memory_space<vmem>>, %arg8: memref<16x256xf32, #tpu.memory_space<vmem>>) attributes {dimension_semantics = [#tpu.dimension_semantics<parallel>, #tpu.dimension_semantics<parallel>, #tpu.dimension_semantics<arbitrary>], iteration_bounds = array<i64: 1, 2, 9>, scalar_prefetch = 0 : i64, scratch_operands = 1 : i64, tpu.core_type = #tpu.core_type<tc>, window_params = [{transform_indices = @transform_0, window_bounds = array<i64: 16, 512>}, {transform_indices = @transform_1, window_bounds = array<i64: 512, 256>}, {transform_indices = @transform_2, window_bounds = array<i64: 1, 256>}, {transform_indices = @transform_3, window_bounds = array<i64: 1, 256>}, {transform_indices = @transform_4, window_bounds = array<i64: 16, 256>}]} {
    %c0_i32 = arith.constant 0 : i32
    %0 = arith.cmpi eq, %arg2, %c0_i32 : i32
    %1 = arith.extui %0 : i1 to i32
    %c0_i32_0 = arith.constant 0 : i32
    %2 = arith.cmpi ne, %1, %c0_i32_0 : i32
    scf.if %2 {
      %cst_9 = arith.constant 0.000000e+00 : f32
      %12 = vector.broadcast %cst_9 : f32 to vector<16x256xf32>
      %c0_10 = arith.constant 0 : index
      %c0_11 = arith.constant 0 : index
      %13 = vector.load %arg8[%c0_10, %c0_11] : memref<16x256xf32, #tpu.memory_space<vmem>>, vector<16x256xf32>
      tpu.vector_store %arg8[%c0_10, %c0_11], %12 {strides = array<i32>} : memref<16x256xf32, #tpu.memory_space<vmem>>, vector<16x256xf32>,
    } else {
    }
    %c0 = arith.constant 0 : index
    %c0_1 = arith.constant 0 : index
    %3 = vector.load %arg8[%c0, %c0_1] : memref<16x256xf32, #tpu.memory_space<vmem>>, vector<16x256xf32>
    %c0_2 = arith.constant 0 : index
    %c0_3 = arith.constant 0 : index
    %4 = vector.load %arg3[%c0_2, %c0_3] : memref<16x512xbf16, #tpu.memory_space<vmem>>, vector<16x512xbf16>
    %c0_4 = arith.constant 0 : index
    %c0_5 = arith.constant 0 : index
    %5 = vector.load %arg4[%c0_4, %c0_5] : memref<512x256xbf16, #tpu.memory_space<vmem>>, vector<512x256xbf16>
    %cst = arith.constant dense<0.000000e+00> : vector<16x256xf32>
    %6 = tpu.matmul %4, %5, %cst {dimension_numbers = #tpu.dot_dimension_numbers<[1], [0], [0], [1], [0, 0, 1, 1], [], []>} : vector<16x512xbf16>, vector<512x256xbf16>, vector<16x256xf32> -> vector<16x256xf32>
    %7 = arith.addf %3, %6 : vector<16x256xf32>
    %c0_6 = arith.constant 0 : index
    %c0_7 = arith.constant 0 : index
    %8 = vector.load %arg8[%c0_6, %c0_7] : memref<16x256xf32, #tpu.memory_space<vmem>>, vector<16x256xf32>
    tpu.vector_store %arg8[%c0_6, %c0_7], %7 {strides = array<i32>} : memref<16x256xf32, #tpu.memory_space<vmem>>, vector<16x256xf32>,
    %c8_i32 = arith.constant 8 : i32
    %9 = arith.cmpi eq, %arg2, %c8_i32 : i32
    %10 = arith.extui %9 : i1 to i32
    %c0_i32_8 = arith.constant 0 : i32
    %11 = arith.cmpi ne, %10, %c0_i32_8 : i32
    scf.if %11 {
      %c0_9 = arith.constant 0 : index
      %c0_10 = arith.constant 0 : index
      %12 = vector.load %arg8[%c0_9, %c0_10] : memref<16x256xf32, #tpu.memory_space<vmem>>, vector<16x256xf32>
      %c0_11 = arith.constant 0 : index
      %c0_12 = arith.constant 0 : index
      %13 = vector.load %arg5[%c0_11, %c0_12] : memref<1x256xf32, #tpu.memory_space<vmem>>, vector<1x256xf32>
      %14 = vector.broadcast %13 : vector<1x256xf32> to vector<16x256xf32>
      %15 = arith.mulf %12, %14 : vector<16x256xf32>
      %c0_13 = arith.constant 0 : index
      %c0_14 = arith.constant 0 : index
      %16 = vector.load %arg6[%c0_13, %c0_14] : memref<1x256xf32, #tpu.memory_space<vmem>>, vector<1x256xf32>
      %17 = vector.broadcast %16 : vector<1x256xf32> to vector<16x256xf32>
      %18 = arith.addf %15, %17 : vector<16x256xf32>
      %cst_15 = arith.constant 0.000000e+00 : f32
      %19 = vector.broadcast %cst_15 : f32 to vector<16x256xf32>
      %20 = arith.maximumf %18, %19 : vector<16x256xf32>
      %c0_16 = arith.constant 0 : index
      %c0_17 = arith.constant 0 : index
      %21 = vector.load %arg7[%c0_16, %c0_17] : memref<16x256xf32, #tpu.memory_space<vmem>>, vector<16x256xf32>
      tpu.vector_store %arg7[%c0_16, %c0_17], %20 {strides = array<i32>} : memref<16x256xf32, #tpu.memory_space<vmem>>, vector<16x256xf32>,
    } else {
    }
    return
  }
  func.func @transform_0(%arg0: i32, %arg1: i32, %arg2: i32) -> (i32, i32) {
    %c0_i32 = arith.constant 0 : i32
    return %arg0, %arg2 : i32, i32
  }
  func.func @transform_1(%arg0: i32, %arg1: i32, %arg2: i32) -> (i32, i32) {
    %c0_i32 = arith.constant 0 : i32
    return %arg2, %arg1 : i32, i32
  }
  func.func @transform_2(%arg0: i32, %arg1: i32, %arg2: i32) -> (i32, i32) {
    %c0_i32 = arith.constant 0 : i32
    %c0_i32_0 = arith.constant 0 : i32
    return %c0_i32, %arg1 : i32, i32
  }
  func.func @transform_3(%arg0: i32, %arg1: i32, %arg2: i32) -> (i32, i32) {
    %c0_i32 = arith.constant 0 : i32
    %c0_i32_0 = arith.constant 0 : i32
    return %c0_i32, %arg1 : i32, i32
  }
  func.func @transform_4(%arg0: i32, %arg1: i32, %arg2: i32) -> (i32, i32) {
    %c0_i32 = arith.constant 0 : i32
    return %arg0, %arg1 : i32, i32
  }
}

module attributes {stable_mosaic.version = 11 : i64} {
  func.func @_mean_reduce_kernel(%arg0: memref<2x1x512xf32, #tpu.memory_space<vmem>>, %arg1: memref<2x512xf32, #tpu.memory_space<vmem>>) attributes {dimension_semantics = [], scalar_prefetch = 0 : i64, scratch_operands = 0 : i64, tpu.core_type = #tpu.core_type<tc>} {
    %c0 = arith.constant 0 : index
    %c0_0 = arith.constant 0 : index
    %c0_1 = arith.constant 0 : index
    %0 = vector.load %arg0[%c0, %c0_0, %c0_1] : memref<2x1x512xf32, #tpu.memory_space<vmem>>, vector<2x1x512xf32>
    %cst = arith.constant dense<0.000000e+00> : vector<2x512xf32>
    %1 = vector.multi_reduction <add>, %0, %cst [1] : vector<2x1x512xf32> to vector<2x512xf32>
    %cst_2 = arith.constant 1.000000e+00 : f32
    %2 = vector.broadcast %cst_2 : f32 to vector<2x512xf32>
    %3 = arith.mulf %1, %2 : vector<2x512xf32>
    %c0_3 = arith.constant 0 : index
    %c0_4 = arith.constant 0 : index
    %4 = vector.load %arg1[%c0_3, %c0_4] : memref<2x512xf32, #tpu.memory_space<vmem>>, vector<2x512xf32>
    tpu.vector_store %arg1[%c0_3, %c0_4], %3 {strides = array<i32>} : memref<2x512xf32, #tpu.memory_space<vmem>>, vector<2x512xf32>,
    return
  }
}

module attributes {stable_mosaic.version = 11 : i64} {
  func.func @_head_kernel(%arg0: memref<8x512xf32, #tpu.memory_space<vmem>>, %arg1: memref<512x128xf32, #tpu.memory_space<vmem>>, %arg2: memref<1x128xf32, #tpu.memory_space<vmem>>, %arg3: memref<128x128xf32, #tpu.memory_space<vmem>>, %arg4: memref<1x128xf32, #tpu.memory_space<vmem>>, %arg5: memref<8x128xf32, #tpu.memory_space<vmem>>) attributes {dimension_semantics = [], scalar_prefetch = 0 : i64, scratch_operands = 0 : i64, tpu.core_type = #tpu.core_type<tc>} {
    %c0 = arith.constant 0 : index
    %c0_0 = arith.constant 0 : index
    %0 = vector.load %arg0[%c0, %c0_0] : memref<8x512xf32, #tpu.memory_space<vmem>>, vector<8x512xf32>
    %c0_1 = arith.constant 0 : index
    %c0_2 = arith.constant 0 : index
    %1 = vector.load %arg1[%c0_1, %c0_2] : memref<512x128xf32, #tpu.memory_space<vmem>>, vector<512x128xf32>
    %cst = arith.constant dense<0.000000e+00> : vector<8x128xf32>
    %2 = tpu.matmul %0, %1, %cst {dimension_numbers = #tpu.dot_dimension_numbers<[1], [0], [0], [1], [0, 0, 1, 1], [], []>} : vector<8x512xf32>, vector<512x128xf32>, vector<8x128xf32> -> vector<8x128xf32>
    %c0_3 = arith.constant 0 : index
    %c0_4 = arith.constant 0 : index
    %3 = vector.load %arg2[%c0_3, %c0_4] : memref<1x128xf32, #tpu.memory_space<vmem>>, vector<1x128xf32>
    %4 = vector.broadcast %3 : vector<1x128xf32> to vector<8x128xf32>
    %5 = arith.addf %2, %4 : vector<8x128xf32>
    %cst_5 = arith.constant 0.000000e+00 : f32
    %6 = vector.broadcast %cst_5 : f32 to vector<8x128xf32>
    %7 = arith.maximumf %5, %6 : vector<8x128xf32>
    %c0_6 = arith.constant 0 : index
    %c0_7 = arith.constant 0 : index
    %8 = vector.load %arg3[%c0_6, %c0_7] : memref<128x128xf32, #tpu.memory_space<vmem>>, vector<128x128xf32>
    %cst_8 = arith.constant dense<0.000000e+00> : vector<8x128xf32>
    %9 = tpu.matmul %7, %8, %cst_8 {dimension_numbers = #tpu.dot_dimension_numbers<[1], [0], [0], [1], [0, 0, 1, 1], [], []>} : vector<8x128xf32>, vector<128x128xf32>, vector<8x128xf32> -> vector<8x128xf32>
    %c0_9 = arith.constant 0 : index
    %c0_10 = arith.constant 0 : index
    %10 = vector.load %arg4[%c0_9, %c0_10] : memref<1x128xf32, #tpu.memory_space<vmem>>, vector<1x128xf32>
    %11 = vector.broadcast %10 : vector<1x128xf32> to vector<8x128xf32>
    %12 = arith.addf %9, %11 : vector<8x128xf32>
    %c0_11 = arith.constant 0 : index
    %c0_12 = arith.constant 0 : index
    %13 = vector.load %arg5[%c0_11, %c0_12] : memref<8x128xf32, #tpu.memory_space<vmem>>, vector<8x128xf32>
    tpu.vector_store %arg5[%c0_11, %c0_12], %12 {strides = array<i32>} : memref<8x128xf32, #tpu.memory_space<vmem>>, vector<8x128xf32>,
    return
  }
}

</mosaic_0001>

<bundles_post_ra>
// kernel: supervised_net_forward.24
= control target key start
LH: loop header
LB: loop body
LE: loop exit
PB: predicated region body
PF: predicated region fallthrough
CT: control target
= control target key end

     0   :  { %s790_s0 = inlined_call_operand.vmem [shape: f32[9,128,128], index: 0, kind: input, shape index: {}]   ;;  %s791_s1 = inlined_call_operand.vmem [shape: f32[128,128], index: 1, kind: output, shape index: {}]  }
   0x1   :  { %v8_v0 = vld [vmem:[%s790_s0] sm:$0xff]  ;;  %v9_v6 = vld [vmem:[%s790_s0 + $0x8] sm:$0xff]  ;;  %v10_v15 = vld [vmem:[%s790_s0 + $0x10] sm:$0xff] }
   0x2   :  { %v24_v1 = vld [vmem:[%s790_s0 + $0x80] sm:$0xff]  ;;  %v25_v7 = vld [vmem:[%s790_s0 + $0x88] sm:$0xff]  ;;  %v26_v16 = vld [vmem:[%s790_s0 + $0x90] sm:$0xff] }
   0x3   :  { %v40_v2 = vld [vmem:[%s790_s0 + $0x100] sm:$0xff]  ;;  %v152_v3 = vmax.f32 %v8_v0, %v24_v1  ;;  %v41_v8 = vld [vmem:[%s790_s0 + $0x108] sm:$0xff]  ;;  %v160_v10 = vmax.f32 %v9_v6, %v25_v7  ;;  %v42_v17 = vld [vmem:[%s790_s0 + $0x110] sm:$0xff]  ;;  %v168_v20 = vmax.f32 %v10_v15, %v26_v16 }
   0x4   :  { %v56_v4 = vld [vmem:[%s790_s0 + $0x180] sm:$0xff]  ;;  %v57_v13 = vld [vmem:[%s790_s0 + $0x188] sm:$0xff]  ;;  %v58_v24 = vld [vmem:[%s790_s0 + $0x190] sm:$0xff] }
   0x5   :  { %v153_v5 = vmax.f32 %v152_v3, %v40_v2  ;;  %v72_v9 = vld [vmem:[%s790_s0 + $0x200] sm:$0xff]  ;;  %v161_v14 = vmax.f32 %v160_v10, %v41_v8  ;;  %v73_v19 = vld [vmem:[%s790_s0 + $0x208] sm:$0xff]  ;;  %v169_v26 = vmax.f32 %v168_v20, %v42_v17  ;;  %v11_v27 = vld [vmem:[%s790_s0 + $0x18] sm:$0xff] }
   0x6   :  { %v88_v11 = vld [vmem:[%s790_s0 + $0x280] sm:$0xff]  ;;  %v89_v22 = vld [vmem:[%s790_s0 + $0x288] sm:$0xff]  ;;  %v27_v28 = vld [vmem:[%s790_s0 + $0x98] sm:$0xff] }
   0x7   :  { %v154_v12 = vmax.f32 %v153_v5, %v56_v4  ;;  %v104_v21 = vld [vmem:[%s790_s0 + $0x300] sm:$0xff]  ;;  %v162_v23 = vmax.f32 %v161_v14, %v57_v13  ;;  %v43_v29 = vld [vmem:[%s790_s0 + $0x118] sm:$0xff]  ;;  %v74_v33 = vld [vmem:[%s790_s0 + $0x210] sm:$0xff]  ;;  %v176_v34 = vmax.f32 %v11_v27, %v27_v28  ;;  %v170_v38 = vmax.f32 %v169_v26, %v58_v24 }
   0x8   :  { %v120_v30 = vld [vmem:[%s790_s0 + $0x380] sm:$0xff]  ;;  %v105_v36 = vld [vmem:[%s790_s0 + $0x308] sm:$0xff]  ;;  %v90_v37 = vld [vmem:[%s790_s0 + $0x290] sm:$0xff] }
   0x9   :  { %v155_v18 = vmax.f32 %v154_v12, %v72_v9  ;;  %v136_v31 = vld [vmem:[%s790_s0 + $0x400] sm:$0xff]  ;;  %v163_v32 = vmax.f32 %v162_v23, %v73_v19  ;;  %v59_v39 = vld [vmem:[%s790_s0 + $0x198] sm:$0xff]  ;;  %v177_v41 = vmax.f32 %v176_v34, %v43_v29  ;;  %v121_v46 = vld [vmem:[%s790_s0 + $0x388] sm:$0xff]  ;;  %v171_v48 = vmax.f32 %v170_v38, %v74_v33 }
   0xa   :  { %v12_v42 = vld [vmem:[%s790_s0 + $0x20] sm:$0xff]  ;;  %v137_v47 = vld [vmem:[%s790_s0 + $0x408] sm:$0xff]  ;;  %v75_v49 = vld [vmem:[%s790_s0 + $0x218] sm:$0xff] }
   0xb   :  { %v156_v25 = vmax.f32 %v155_v18, %v88_v11  ;;  %v164_v40 = vmax.f32 %v163_v32, %v89_v22  ;;  %v28_v43 = vld [vmem:[%s790_s0 + $0xa0] sm:$0xff]  ;;  %v106_v52 = vld [vmem:[%s790_s0 + $0x310] sm:$0xff]  ;;  %v91_v53 = vld [vmem:[%s790_s0 + $0x298] sm:$0xff]  ;;  %v178_v54 = vmax.f32 %v177_v41, %v59_v39  ;;  %v172_v57 = vmax.f32 %v171_v48, %v90_v37 }
   0xc   :  { %v44_v44 = vld [vmem:[%s790_s0 + $0x120] sm:$0xff]  ;;  %v184_v50 = vmax.f32 %v12_v42, %v28_v43  ;;  %v13_v59 = vld [vmem:[%s790_s0 + $0x28] sm:$0xff]  ;;  %v122_v63 = vld [vmem:[%s790_s0 + $0x390] sm:$0xff] }
   0xd   :  { %v157_v35 = vmax.f32 %v156_v25, %v104_v21  ;;  %v165_v51 = vmax.f32 %v164_v40, %v105_v36  ;;  %v60_v55 = vld [vmem:[%s790_s0 + $0x1a0] sm:$0xff]  ;;  %v29_v60 = vld [vmem:[%s790_s0 + $0xa8] sm:$0xff]  ;;  %v138_v0 = vld [vmem:[%s790_s0 + $0x410] sm:$0xff]  ;;  %v179_v1 = vmax.f32 %v178_v54, %v75_v49  ;;  %v173_v4 = vmax.f32 %v172_v57, %v106_v52 }
   0xe   :  { %v185_v58 = vmax.f32 %v184_v50, %v44_v44  ;;  %v45_v61 = vld [vmem:[%s790_s0 + $0x128] sm:$0xff]  ;;  %v76_v2 = vld [vmem:[%s790_s0 + $0x220] sm:$0xff]  ;;  %v192_v3 = vmax.f32 %v13_v59, %v29_v60  ;;  %v107_v5 = vld [vmem:[%s790_s0 + $0x318] sm:$0xff] }
   0xf   :  { %v158_v45 = vmax.f32 %v157_v35, %v120_v30  ;;  %v166_v62 = vmax.f32 %v165_v51, %v121_v46  ;;  %v92_v6 = vld [vmem:[%s790_s0 + $0x2a0] sm:$0xff]  ;;  %v61_v8 = vld [vmem:[%s790_s0 + $0x1a8] sm:$0xff]  ;;  %v180_v10 = vmax.f32 %v179_v1, %v91_v53  ;;  %v14_v12 = vld [vmem:[%s790_s0 + $0x30] sm:$0xff]  ;;  %v174_v15 = vmax.f32 %v173_v4, %v122_v63 }
  0x10   :  { %v186_v7 = vmax.f32 %v185_v58, %v60_v55  ;;  %v193_v11 = vmax.f32 %v192_v3, %v45_v61  ;;  %v30_v13 = vld [vmem:[%s790_s0 + $0xb0] sm:$0xff]  ;;  %v123_v16 = vld [vmem:[%s790_s0 + $0x398] sm:$0xff]  ;;  %v77_v19 = vld [vmem:[%s790_s0 + $0x228] sm:$0xff] }
  0x11   :  { %v159_v56 = vmax.f32 %v158_v45, %v136_v31  ;;  %v167_v9 = vmax.f32 %v166_v62, %v137_v47  ;;  %v46_v14 = vld [vmem:[%s790_s0 + $0x130] sm:$0xff]  ;;  %v139_v17 = vld [vmem:[%s790_s0 + $0x418] sm:$0xff]  ;;  %v200_v20 = vmax.f32 %v14_v12, %v30_v13  ;;  %v181_v21 = vmax.f32 %v180_v10, %v107_v5  ;;  %v108_v22 = vld [vmem:[%s790_s0 + $0x320] sm:$0xff] }
  0x12   :  { %v187_v18 = vmax.f32 %v186_v7, %v76_v2  ;;  %v93_v23 = vld [vmem:[%s790_s0 + $0x2a8] sm:$0xff]  ;;  %v194_v24 = vmax.f32 %v193_v11, %v61_v8  ;;  %v62_v25 = vld [vmem:[%s790_s0 + $0x1b0] sm:$0xff]  ;;  %v175_v26 = vmax.f32 %v174_v15, %v138_v0  ;;  %v15_v29 = vld [vmem:[%s790_s0 + $0x38] sm:$0xff] }
  0x13   :  { %280 = vst [vmem:[%s791_s1] sm:$0xff] %v159_v56  ;;  %281 = vst [vmem:[%s791_s1 + $0x8] sm:$0xff] %v167_v9  ;;  %v201_v28 = vmax.f32 %v200_v20, %v46_v14  ;;  %v31_v30 = vld [vmem:[%s790_s0 + $0xb8] sm:$0xff]  ;;  %v182_v32 = vmax.f32 %v181_v21, %v123_v16  ;;  %v124_v33 = vld [vmem:[%s790_s0 + $0x3a0] sm:$0xff] }
  0x14   :  { %v188_v27 = vmax.f32 %v187_v18, %v92_v6  ;;  %v47_v31 = vld [vmem:[%s790_s0 + $0x138] sm:$0xff]  ;;  %v140_v34 = vld [vmem:[%s790_s0 + $0x420] sm:$0xff]  ;;  %v195_v35 = vmax.f32 %v194_v24, %v77_v19  ;;  %v78_v36 = vld [vmem:[%s790_s0 + $0x230] sm:$0xff]  ;;  %v208_v37 = vmax.f32 %v15_v29, %v31_v30  ;;  %282 = vst [vmem:[%s791_s1 + $0x10] sm:$0xff] %v175_v26 }
  0x15   :  { %v109_v39 = vld [vmem:[%s790_s0 + $0x328] sm:$0xff]  ;;  %v94_v40 = vld [vmem:[%s790_s0 + $0x2b0] sm:$0xff]  ;;  %v202_v41 = vmax.f32 %v201_v28, %v62_v25  ;;  %v63_v42 = vld [vmem:[%s790_s0 + $0x1b8] sm:$0xff]  ;;  %v183_v43 = vmax.f32 %v182_v32, %v139_v17 }
  0x16   :  { %v189_v38 = vmax.f32 %v188_v27, %v108_v22  ;;  %v196_v44 = vmax.f32 %v195_v35, %v93_v23  ;;  %v209_v45 = vmax.f32 %v208_v37, %v47_v31  ;;  %v16_v46 = vld [vmem:[%s790_s0 + $0x40] sm:$0xff]  ;;  %v125_v50 = vld [vmem:[%s790_s0 + $0x3a8] sm:$0xff]  ;;  %v79_v53 = vld [vmem:[%s790_s0 + $0x238] sm:$0xff] }
  0x17   :  { %v32_v47 = vld [vmem:[%s790_s0 + $0xc0] sm:$0xff]  ;;  %v141_v51 = vld [vmem:[%s790_s0 + $0x428] sm:$0xff]  ;;  %v203_v52 = vmax.f32 %v202_v41, %v78_v36  ;;  %283 = vst [vmem:[%s791_s1 + $0x18] sm:$0xff] %v183_v43  ;;  %v110_v56 = vld [vmem:[%s790_s0 + $0x330] sm:$0xff] }
  0x18   :  { %v48_v48 = vld [vmem:[%s790_s0 + $0x140] sm:$0xff]  ;;  %v190_v49 = vmax.f32 %v189_v38, %v124_v33  ;;  %v216_v54 = vmax.f32 %v16_v46, %v32_v47  ;;  %v197_v55 = vmax.f32 %v196_v44, %v109_v39  ;;  %v95_v57 = vld [vmem:[%s790_s0 + $0x2b8] sm:$0xff]  ;;  %v210_v58 = vmax.f32 %v209_v45, %v63_v42  ;;  %v17_v63 = vld [vmem:[%s790_s0 + $0x48] sm:$0xff] }
  0x19   :  { %v64_v59 = vld [vmem:[%s790_s0 + $0x1c0] sm:$0xff]  ;;  %v204_v61 = vmax.f32 %v203_v52, %v94_v40  ;;  %v33_v0 = vld [vmem:[%s790_s0 + $0xc8] sm:$0xff]  ;;  %v126_v3 = vld [vmem:[%s790_s0 + $0x3b0] sm:$0xff] }
  0x1a   :  { %v191_v60 = vmax.f32 %v190_v49, %v140_v34  ;;  %v217_v62 = vmax.f32 %v216_v54, %v48_v48  ;;  %v49_v1 = vld [vmem:[%s790_s0 + $0x148] sm:$0xff]  ;;  %v198_v2 = vmax.f32 %v197_v55, %v125_v50  ;;  %v142_v4 = vld [vmem:[%s790_s0 + $0x430] sm:$0xff]  ;;  %v211_v5 = vmax.f32 %v210_v58, %v79_v53  ;;  %v80_v6 = vld [vmem:[%s790_s0 + $0x240] sm:$0xff] }
  0x1b   :  { %v224_v7 = vmax.f32 %v17_v63, %v33_v0  ;;  %v205_v8 = vmax.f32 %v204_v61, %v110_v56  ;;  %v111_v9 = vld [vmem:[%s790_s0 + $0x338] sm:$0xff]  ;;  %v96_v10 = vld [vmem:[%s790_s0 + $0x2c0] sm:$0xff]  ;;  %v65_v12 = vld [vmem:[%s790_s0 + $0x1c8] sm:$0xff] }
  0x1c   :  { %284 = vst [vmem:[%s791_s1 + $0x20] sm:$0xff] %v191_v60  ;;  %v218_v11 = vmax.f32 %v217_v62, %v64_v59  ;;  %v199_v13 = vmax.f32 %v198_v2, %v141_v51  ;;  %v212_v14 = vmax.f32 %v211_v5, %v95_v57  ;;  %v18_v16 = vld [vmem:[%s790_s0 + $0x50] sm:$0xff]  ;;  %v127_v20 = vld [vmem:[%s790_s0 + $0x3b8] sm:$0xff]  ;;  %v81_v23 = vld [vmem:[%s790_s0 + $0x248] sm:$0xff] }
  0x1d   :  { %v225_v15 = vmax.f32 %v224_v7, %v49_v1  ;;  %v34_v17 = vld [vmem:[%s790_s0 + $0xd0] sm:$0xff]  ;;  %v206_v19 = vmax.f32 %v205_v8, %v126_v3  ;;  %v143_v21 = vld [vmem:[%s790_s0 + $0x438] sm:$0xff]  ;;  %v112_v26 = vld [vmem:[%s790_s0 + $0x340] sm:$0xff] }
  0x1e   :  { %v50_v18 = vld [vmem:[%s790_s0 + $0x150] sm:$0xff]  ;;  %v219_v22 = vmax.f32 %v218_v11, %v80_v6  ;;  %v232_v24 = vmax.f32 %v18_v16, %v34_v17  ;;  %285 = vst [vmem:[%s791_s1 + $0x28] sm:$0xff] %v199_v13  ;;  %v213_v25 = vmax.f32 %v212_v14, %v111_v9  ;;  %v97_v27 = vld [vmem:[%s790_s0 + $0x2c8] sm:$0xff]  ;;  %v19_v33 = vld [vmem:[%s790_s0 + $0x58] sm:$0xff] }
  0x1f   :  { %v226_v28 = vmax.f32 %v225_v15, %v65_v12  ;;  %v66_v29 = vld [vmem:[%s790_s0 + $0x1d0] sm:$0xff]  ;;  %v207_v30 = vmax.f32 %v206_v19, %v142_v4  ;;  %v35_v34 = vld [vmem:[%s790_s0 + $0xd8] sm:$0xff]  ;;  %v128_v37 = vld [vmem:[%s790_s0 + $0x3c0] sm:$0xff] }
  0x20   :  { %v220_v31 = vmax.f32 %v219_v22, %v96_v10  ;;  %v233_v32 = vmax.f32 %v232_v24, %v50_v18  ;;  %v51_v35 = vld [vmem:[%s790_s0 + $0x158] sm:$0xff]  ;;  %v214_v36 = vmax.f32 %v213_v25, %v127_v20  ;;  %v144_v38 = vld [vmem:[%s790_s0 + $0x440] sm:$0xff]  ;;  %v82_v40 = vld [vmem:[%s790_s0 + $0x250] sm:$0xff]  ;;  %v240_v41 = vmax.f32 %v19_v33, %v35_v34 }
  0x21   :  { %v227_v39 = vmax.f32 %v226_v28, %v81_v23  ;;  %286 = vst [vmem:[%s791_s1 + $0x30] sm:$0xff] %v207_v30  ;;  %v113_v43 = vld [vmem:[%s790_s0 + $0x348] sm:$0xff]  ;;  %v98_v44 = vld [vmem:[%s790_s0 + $0x2d0] sm:$0xff]  ;;  %v67_v46 = vld [vmem:[%s790_s0 + $0x1d8] sm:$0xff] }
  0x22   :  { %v221_v42 = vmax.f32 %v220_v31, %v112_v26  ;;  %v234_v45 = vmax.f32 %v233_v32, %v66_v29  ;;  %v215_v47 = vmax.f32 %v214_v36, %v143_v21  ;;  %v241_v49 = vmax.f32 %v240_v41, %v51_v35  ;;  %v20_v50 = vld [vmem:[%s790_s0 + $0x60] sm:$0xff]  ;;  %v129_v54 = vld [vmem:[%s790_s0 + $0x3c8] sm:$0xff]  ;;  %v83_v57 = vld [vmem:[%s790_s0 + $0x258] sm:$0xff] }
  0x23   :  { %v228_v48 = vmax.f32 %v227_v39, %v97_v27  ;;  %v36_v51 = vld [vmem:[%s790_s0 + $0xe0] sm:$0xff]  ;;  %v145_v55 = vld [vmem:[%s790_s0 + $0x448] sm:$0xff]  ;;  %v114_v60 = vld [vmem:[%s790_s0 + $0x350] sm:$0xff] }
  0x24   :  { %v52_v52 = vld [vmem:[%s790_s0 + $0x160] sm:$0xff]  ;;  %v222_v53 = vmax.f32 %v221_v42, %v128_v37  ;;  %v235_v56 = vmax.f32 %v234_v45, %v82_v40  ;;  %v248_v58 = vmax.f32 %v20_v50, %v36_v51  ;;  %287 = vst [vmem:[%s791_s1 + $0x38] sm:$0xff] %v215_v47  ;;  %v99_v61 = vld [vmem:[%s790_s0 + $0x2d8] sm:$0xff]  ;;  %v242_v62 = vmax.f32 %v241_v49, %v67_v46  ;;  %v21_v3 = vld [vmem:[%s790_s0 + $0x68] sm:$0xff] }
  0x25   :  { %v229_v59 = vmax.f32 %v228_v48, %v113_v43  ;;  %v68_v63 = vld [vmem:[%s790_s0 + $0x1e0] sm:$0xff]  ;;  %v37_v4 = vld [vmem:[%s790_s0 + $0xe8] sm:$0xff]  ;;  %v130_v7 = vld [vmem:[%s790_s0 + $0x3d0] sm:$0xff] }
  0x26   :  { %v223_v0 = vmax.f32 %v222_v53, %v144_v38  ;;  %v236_v1 = vmax.f32 %v235_v56, %v98_v44  ;;  %v249_v2 = vmax.f32 %v248_v58, %v52_v52  ;;  %v53_v5 = vld [vmem:[%s790_s0 + $0x168] sm:$0xff]  ;;  %v146_v8 = vld [vmem:[%s790_s0 + $0x450] sm:$0xff]  ;;  %v243_v9 = vmax.f32 %v242_v62, %v83_v57  ;;  %v84_v10 = vld [vmem:[%s790_s0 + $0x260] sm:$0xff] }
  0x27   :  { %v230_v6 = vmax.f32 %v229_v59, %v129_v54  ;;  %v256_v11 = vmax.f32 %v21_v3, %v37_v4  ;;  %v115_v13 = vld [vmem:[%s790_s0 + $0x358] sm:$0xff]  ;;  %v100_v14 = vld [vmem:[%s790_s0 + $0x2e0] sm:$0xff]  ;;  %v69_v16 = vld [vmem:[%s790_s0 + $0x1e8] sm:$0xff] }
  0x28   :  { %288 = vst [vmem:[%s791_s1 + $0x40] sm:$0xff] %v223_v0  ;;  %v237_v12 = vmax.f32 %v236_v1, %v114_v60  ;;  %v250_v15 = vmax.f32 %v249_v2, %v68_v63  ;;  %v244_v18 = vmax.f32 %v243_v9, %v99_v61  ;;  %v22_v20 = vld [vmem:[%s790_s0 + $0x70] sm:$0xff]  ;;  %v131_v24 = vld [vmem:[%s790_s0 + $0x3d8] sm:$0xff]  ;;  %v85_v27 = vld [vmem:[%s790_s0 + $0x268] sm:$0xff] }
  0x29   :  { %v231_v17 = vmax.f32 %v230_v6, %v145_v55  ;;  %v257_v19 = vmax.f32 %v256_v11, %v53_v5  ;;  %v38_v21 = vld [vmem:[%s790_s0 + $0xf0] sm:$0xff]  ;;  %v147_v25 = vld [vmem:[%s790_s0 + $0x458] sm:$0xff]  ;;  %v116_v30 = vld [vmem:[%s790_s0 + $0x360] sm:$0xff] }
  0x2a   :  { %v54_v22 = vld [vmem:[%s790_s0 + $0x170] sm:$0xff]  ;;  %v238_v23 = vmax.f32 %v237_v12, %v130_v7  ;;  %v251_v26 = vmax.f32 %v250_v15, %v84_v10  ;;  %v264_v28 = vmax.f32 %v22_v20, %v38_v21  ;;  %v245_v29 = vmax.f32 %v244_v18, %v115_v13  ;;  %v101_v31 = vld [vmem:[%s790_s0 + $0x2e8] sm:$0xff]  ;;  %v23_v37 = vld [vmem:[%s790_s0 + $0x78] sm:$0xff] }
  0x2b   :  { %289 = vst [vmem:[%s791_s1 + $0x48] sm:$0xff] %v231_v17  ;;  %v258_v32 = vmax.f32 %v257_v19, %v69_v16  ;;  %v70_v33 = vld [vmem:[%s790_s0 + $0x1f0] sm:$0xff]  ;;  %v39_v38 = vld [vmem:[%s790_s0 + $0xf8] sm:$0xff]  ;;  %v132_v41 = vld [vmem:[%s790_s0 + $0x3e0] sm:$0xff] }
  0x2c   :  { %v239_v34 = vmax.f32 %v238_v23, %v146_v8  ;;  %v252_v35 = vmax.f32 %v251_v26, %v100_v14  ;;  %v265_v36 = vmax.f32 %v264_v28, %v54_v22  ;;  %v55_v39 = vld [vmem:[%s790_s0 + $0x178] sm:$0xff]  ;;  %v246_v40 = vmax.f32 %v245_v29, %v131_v24  ;;  %v86_v43 = vld [vmem:[%s790_s0 + $0x270] sm:$0xff]  ;;  %v117_v46 = vld [vmem:[%s790_s0 + $0x368] sm:$0xff] }
  0x2d   :  { %v259_v42 = vmax.f32 %v258_v32, %v85_v27  ;;  %v272_v44 = vmax.f32 %v23_v37, %v39_v38  ;;  %v71_v48 = vld [vmem:[%s790_s0 + $0x1f8] sm:$0xff]  ;;  %v148_v50 = vld [vmem:[%s790_s0 + $0x460] sm:$0xff]  ;;  %v102_v52 = vld [vmem:[%s790_s0 + $0x2f0] sm:$0xff] }
  0x2e   :  { %290 = vst [vmem:[%s791_s1 + $0x50] sm:$0xff] %v239_v34  ;;  %v253_v45 = vmax.f32 %v252_v35, %v116_v30  ;;  %v266_v47 = vmax.f32 %v265_v36, %v70_v33  ;;  %v247_v49 = vmax.f32 %v246_v40, %v147_v25  ;;  %v133_v55 = vld [vmem:[%s790_s0 + $0x3e8] sm:$0xff]  ;;  %v87_v57 = vld [vmem:[%s790_s0 + $0x278] sm:$0xff]  ;;  %v118_v59 = vld [vmem:[%s790_s0 + $0x370] sm:$0xff] }
  0x2f   :  { %v260_v51 = vmax.f32 %v259_v42, %v101_v31  ;;  %v273_v53 = vmax.f32 %v272_v44, %v55_v39  ;;  %v149_v62 = vld [vmem:[%s790_s0 + $0x468] sm:$0xff]  ;;  %v103_v0 = vld [vmem:[%s790_s0 + $0x2f8] sm:$0xff]  ;;  %v134_v2 = vld [vmem:[%s790_s0 + $0x3f0] sm:$0xff] }
  0x30   :  { %v254_v54 = vmax.f32 %v253_v45, %v132_v41  ;;  %v267_v56 = vmax.f32 %v266_v47, %v86_v43  ;;  %291 = vst [vmem:[%s791_s1 + $0x58] sm:$0xff] %v247_v49  ;;  %v119_v5 = vld [vmem:[%s790_s0 + $0x378] sm:$0xff]  ;;  %v150_v7 = vld [vmem:[%s790_s0 + $0x470] sm:$0xff] }
  0x31   :  { %v261_v58 = vmax.f32 %v260_v51, %v117_v46  ;;  %v274_v60 = vmax.f32 %v273_v53, %v71_v48  ;;  %v135_v10 = vld [vmem:[%s790_s0 + $0x3f8] sm:$0xff] }
  0x32   :  { %v255_v61 = vmax.f32 %v254_v54, %v148_v50  ;;  %v268_v63 = vmax.f32 %v267_v56, %v102_v52  ;;  %v151_v13 = vld [vmem:[%s790_s0 + $0x478] sm:$0xff] }
  0x33   :  { %v262_v1 = vmax.f32 %v261_v58, %v133_v55  ;;  %v275_v3 = vmax.f32 %v274_v60, %v87_v57 }
  0x34   :  { %292 = vst [vmem:[%s791_s1 + $0x60] sm:$0xff] %v255_v61  ;;  %v269_v4 = vmax.f32 %v268_v63, %v118_v59 }
  0x35   :  { %v263_v6 = vmax.f32 %v262_v1, %v149_v62  ;;  %v276_v8 = vmax.f32 %v275_v3, %v103_v0 }
  0x36   :  { %v270_v9 = vmax.f32 %v269_v4, %v134_v2 }
  0x37   :  { %293 = vst [vmem:[%s791_s1 + $0x68] sm:$0xff] %v263_v6  ;;  %v277_v11 = vmax.f32 %v276_v8, %v119_v5 }
  0x38   :  { %v271_v12 = vmax.f32 %v270_v9, %v150_v7 }
  0x39   :  { %v278_v14 = vmax.f32 %v277_v11, %v135_v10 }
  0x3a   :  { %294 = vst [vmem:[%s791_s1 + $0x70] sm:$0xff] %v271_v12 }
  0x3b   :  { %v279_v15 = vmax.f32 %v278_v14, %v151_v13 }
  0x3d   :  { %295 = vst [vmem:[%s791_s1 + $0x78] sm:$0xff] %v279_v15 }

// kernel: supervised_net_forward.23
= control target key start
LH: loop header
LB: loop body
LE: loop exit
PB: predicated region body
PF: predicated region fallthrough
CT: control target
= control target key end

     0   :  { %s1556_s15 = smov 0   ;;  %s1558_s16 = smov 0   ;;  %s1786_s0 = inlined_call_operand.vmem [shape: bf16[512,256], index: 0, kind: input, shape index: {}]   ;;  %s1787_s1 = inlined_call_operand.vmem [shape: bf16[256,128], index: 1, kind: input, shape index: {}]   ;;  %s1788_s2 = inlined_call_operand.vmem [shape: f32[1,128], index: 2, kind: input, shape index: {}]   ;;  %s1789_s3 = inlined_call_operand.vmem [shape: f32[1,128], index: 3, kind: input, shape index: {}]   ;;  %s1790_s4 = inlined_call_operand.vmem [shape: f32[512,128], index: 4, kind: output, shape index: {}]  }
   0x1   :  { %s1560_s17 = smov 0  }
   0x2 LB: > { %s33_s18 = sadd.s32 1, %s1525_s16  ;;  %p1232_p0 = scmp.ge.s32.totalorder %s1529_s17, 1  ;;  %s1529_s17 = sphi %s1560_s17, %s14_s17   ;;  %s1525_s16 = sphi %s1558_s16, %s1792_s16   ;;  %s1521_s15 = sphi %s1556_s15, %s1791_s15  }
   0x3   : > { %p35_p1 = scmp.ge.s32.totalorder %s33_s18, 2  ;;  %p224_p2 = scmp.lt.s32.totalorder %s1529_s17, 3 }
   0x5   : > { %s1794_s18 = smov (%p35_p1, %s33_s18), 0  ;;  %p225_p3 = pnand %p1232_p0, %p224_p2 }
   0x6   : > { %s1233_s21 = sshll.u32 (!%p225_p3), %s1521_s15, 5 }
   0x7   : > { %228 = sbr.rel (%p225_p3) target bundleno = 309 (0x135), region = 36  ;;  %p274_p4 = scmp.lt.s32.totalorder (!%p225_p3), %s1233_s21, 63 }
   0xc   : > { %v1443_v0 = vld [vmem:[%s1787_s1 + $0x78] sm:$0xff]   ;;  %v1445_v2 = vld [vmem:[%s1787_s1 + $0x70] sm:$0xff]   ;;  %v1447_v4 = vld [vmem:[%s1787_s1 + $0x68] sm:$0xff]   ;;  %s1796_s21 = smov (!%p274_p4, %s1233_s21), 63 }
   0xd   : > { %v1444_v1 = vld [vmem:[%s1787_s1 + $0x38] sm:$0xff]   ;;  %1291 = vmatprep.subr.bf16.mxu0 %v1443_v0  ;;  %1403 = vmatprep.subr.bf16.mxu1 %v1443_v0  ;;  %v1446_v3 = vld [vmem:[%s1787_s1 + $0x30] sm:$0xff]   ;;  %v1448_v5 = vld [vmem:[%s1787_s1 + $0x28] sm:$0xff]   ;;  %s1290_s10 = sshll.u32 %s1796_s21, 3 }
   0xe   : > { %1292 = vmatpush3.bf16.msra.mxu0 %v1444_v1  ;;  %1411 = vmatpush3.bf16.msra.mxu1 %v1444_v1  ;;  %v1449_v6 = vld [vmem:[%s1787_s1 + $0x60] sm:$0xff]   ;;  %v1451_v8 = vld [vmem:[%s1787_s1 + $0x58] sm:$0xff]   ;;  %s1609_s15 = scalar_lea.vmem %s1786_s0, %s1290_s10  ;;  %v1453_v10 = vld [vmem:[%s1787_s1 + $0x50] sm:$0xff]  }
   0xf   : > { %1293 = vmatprep.subr.bf16.mxu0 %v1445_v2  ;;  %1404 = vmatprep.subr.bf16.mxu1 %v1445_v2  ;;  %v1450_v7 = vld [vmem:[%s1787_s1 + $0x20] sm:$0xff]   ;;  %v1452_v9 = vld [vmem:[%s1787_s1 + $0x18] sm:$0xff]   ;;  %v1454_v13 = vld [vmem:[%s1787_s1 + $0x10] sm:$0xff]  }
  0x10   : > { %v1461_v11 = vld [vmem:[%s1609_s15 + $0x4] ss:$8 sps:$4 sm:$0xff]   ;;  %v1459_v18 = vld [vmem:[%s1609_s15] ss:$8 sps:$4 sm:$0xff]   ;;  %v1465_v20 = vld [vmem:[%s1609_s15 + $0x14] ss:$8 sps:$4 sm:$0xff]  }
  0x11   : > { %v1464_v12 = vld [vmem:[%s1609_s15 + $0x84] ss:$8 sps:$4 sm:$0xff]   ;;  %729 = vmatprep.mubr.bf16.mxu0 %v1461_v11  ;;  %v1462_v19 = vld [vmem:[%s1609_s15 + $0x80] ss:$8 sps:$4 sm:$0xff]   ;;  %v1467_v21 = vld [vmem:[%s1609_s15 + $0x94] ss:$8 sps:$4 sm:$0xff]  }
  0x12   : > { %1294 = vmatpush3.bf16.msra.mxu0 %v1446_v3  ;;  %1412 = vmatpush3.bf16.msra.mxu1 %v1446_v3  ;;  %v1455_v14 = vld [vmem:[%s1787_s1 + $0x48] sm:$0xff]   ;;  %v1457_v16 = vld [vmem:[%s1787_s1 + $0x40] sm:$0xff]   ;;  %v1469_v22 = vld [vmem:[%s1609_s15 + $0x10] ss:$8 sps:$4 sm:$0xff]  }
  0x13   : > { %1295 = vmatprep.subr.bf16.mxu0 %v1447_v4  ;;  %1405 = vmatprep.subr.bf16.mxu1 %v1447_v4  ;;  %v1456_v15 = vld [vmem:[%s1787_s1 + $0x8] sm:$0xff]   ;;  %v1458_v17 = vld [vmem:[%s1787_s1] sm:$0xff]   ;;  %v1470_v23 = vld [vmem:[%s1609_s15 + $0x90] ss:$8 sps:$4 sm:$0xff]  }
  0x14   : > { %793 = vmatprep.mubr.bf16.mxu1 %v1464_v12  ;;  %v1471_v24 = vld [vmem:[%s1609_s15 + $0x24] ss:$8 sps:$4 sm:$0xff]   ;;  %v1475_v26 = vld [vmem:[%s1609_s15 + $0x20] ss:$8 sps:$4 sm:$0xff]   ;;  %v1477_v28 = vld [vmem:[%s1609_s15 + $0x34] ss:$8 sps:$4 sm:$0xff]  }
  0x15   : > { %v1473_v25 = vld [vmem:[%s1609_s15 + $0xa4] ss:$8 sps:$4 sm:$0xff]   ;;  %v1476_v27 = vld [vmem:[%s1609_s15 + $0xa0] ss:$8 sps:$4 sm:$0xff]   ;;  %v1479_v29 = vld [vmem:[%s1609_s15 + $0xb4] ss:$8 sps:$4 sm:$0xff]  }
  0x16   : > { %1296 = vmatpush3.bf16.msra.mxu0 %v1448_v5  ;;  %1413 = vmatpush3.bf16.msra.mxu1 %v1448_v5  ;;  %v1481_v30 = vld [vmem:[%s1609_s15 + $0x30] ss:$8 sps:$4 sm:$0xff]   ;;  %v1483_v32 = vld [vmem:[%s1609_s15 + $0x44] ss:$8 sps:$4 sm:$0xff]   ;;  %v1487_v34 = vld [vmem:[%s1609_s15 + $0x40] ss:$8 sps:$4 sm:$0xff]  }
  0x17   : > { %1297 = vmatprep.subr.bf16.mxu0 %v1449_v6  ;;  %1406 = vmatprep.subr.bf16.mxu1 %v1449_v6  ;;  %v1482_v31 = vld [vmem:[%s1609_s15 + $0xb0] ss:$8 sps:$4 sm:$0xff]   ;;  %v1485_v33 = vld [vmem:[%s1609_s15 + $0xc4] ss:$8 sps:$4 sm:$0xff]   ;;  %v1488_v35 = vld [vmem:[%s1609_s15 + $0xc0] ss:$8 sps:$4 sm:$0xff]  }
  0x18   : > { %v1489_v36 = vld [vmem:[%s1609_s15 + $0x54] ss:$8 sps:$4 sm:$0xff]   ;;  %v1493_v38 = vld [vmem:[%s1609_s15 + $0x50] ss:$8 sps:$4 sm:$0xff]   ;;  %v1495_v40 = vld [vmem:[%s1609_s15 + $0x64] ss:$8 sps:$4 sm:$0xff]  }
  0x19   : > { %v1491_v37 = vld [vmem:[%s1609_s15 + $0xd4] ss:$8 sps:$4 sm:$0xff]   ;;  %v1494_v39 = vld [vmem:[%s1609_s15 + $0xd0] ss:$8 sps:$4 sm:$0xff]   ;;  %v1497_v41 = vld [vmem:[%s1609_s15 + $0xe4] ss:$8 sps:$4 sm:$0xff]  }
  0x1a   : > { %1298 = vmatpush3.bf16.msra.mxu0 %v1450_v7  ;;  %1414 = vmatpush3.bf16.msra.mxu1 %v1450_v7  ;;  %v1499_v42 = vld [vmem:[%s1609_s15 + $0x60] ss:$8 sps:$4 sm:$0xff]   ;;  %v1501_v44 = vld [vmem:[%s1609_s15 + $0x74] ss:$8 sps:$4 sm:$0xff]   ;;  %v1505_v46 = vld [vmem:[%s1609_s15 + $0x70] ss:$8 sps:$4 sm:$0xff]  }
  0x1b   : > { %1299 = vmatprep.subr.bf16.mxu0 %v1451_v8  ;;  %1407 = vmatprep.subr.bf16.mxu1 %v1451_v8  ;;  %v1500_v43 = vld [vmem:[%s1609_s15 + $0xe0] ss:$8 sps:$4 sm:$0xff]   ;;  %v1503_v45 = vld [vmem:[%s1609_s15 + $0xf4] ss:$8 sps:$4 sm:$0xff]   ;;  %v1506_v47 = vld [vmem:[%s1609_s15 + $0xf0] ss:$8 sps:$4 sm:$0xff]   ;;  %s1683_s15 = scalar_lea.vmem %s1790_s4, %s1290_s10 }
  0x1c   : > { %v1667_v51 = vld [vmem:[%s1788_s2] ss:$0 sm:$0xff] }
  0x1d   : > { %v1672_v55 = vld [vmem:[%s1789_s3] ss:$0 sm:$0xff] }
  0x1e   : > { %1300 = vmatpush3.bf16.msra.mxu0 %v1452_v9  ;;  %1415 = vmatpush3.bf16.msra.mxu1 %v1452_v9 }
  0x1f   : > { %1301 = vmatprep.subr.bf16.mxu0 %v1453_v10  ;;  %1408 = vmatprep.subr.bf16.mxu1 %v1453_v10 }
  0x22   : > { %1302 = vmatpush3.bf16.msra.mxu0 %v1454_v13  ;;  %1416 = vmatpush3.bf16.msra.mxu1 %v1454_v13 }
  0x23   : > { %1303 = vmatprep.subr.bf16.mxu0 %v1455_v14  ;;  %1409 = vmatprep.subr.bf16.mxu1 %v1455_v14 }
  0x26   : > { %1304 = vmatpush3.bf16.msra.mxu0 %v1456_v15  ;;  %1417 = vmatpush3.bf16.msra.mxu1 %v1456_v15 }
  0x27   : > { %1305 = vmatprep.subr.bf16.mxu0 %v1457_v16  ;;  %1410 = vmatprep.subr.bf16.mxu1 %v1457_v16 }
  0x2a   : > { %1306 = vmatpush3.bf16.msra.mxu0 %v1458_v17  ;;  %1418 = vmatpush3.bf16.msra.mxu1 %v1458_v17 }
  0x2d   : > { %730 = vmatmul.mubr.bf16.vlgmr.msra.gmra.mxu0 %v1459_v18  ;;  %794 = vmatmul.mubr.bf16.vlgmr.msra.gmra.mxu1 %v1462_v19 }
  0x2e   : > { %737 = vmatprep.mubr.bf16.mxu0 %v1465_v20  ;;  %801 = vmatprep.mubr.bf16.mxu1 %v1467_v21 }
  0x35   : > { %738 = vmatmul.mubr.bf16.gmra.mxu0 %v1469_v22  ;;  %802 = vmatmul.mubr.bf16.gmra.mxu1 %v1470_v23 }
  0x36   : > { %745 = vmatprep.mubr.bf16.mxu0 %v1471_v24  ;;  %809 = vmatprep.mubr.bf16.mxu1 %v1473_v25 }
  0x3d   : > { %746 = vmatmul.mubr.bf16.gmra.mxu0 %v1475_v26  ;;  %810 = vmatmul.mubr.bf16.gmra.mxu1 %v1476_v27 }
  0x3e   : > { %753 = vmatprep.mubr.bf16.mxu0 %v1477_v28  ;;  %817 = vmatprep.mubr.bf16.mxu1 %v1479_v29 }
  0x45   : > { %754 = vmatmul.mubr.bf16.gmra.mxu0 %v1481_v30  ;;  %818 = vmatmul.mubr.bf16.gmra.mxu1 %v1482_v31 }
  0x46   : > { %761 = vmatprep.mubr.bf16.mxu0 %v1483_v32  ;;  %825 = vmatprep.mubr.bf16.mxu1 %v1485_v33 }
  0x4d   : > { %762 = vmatmul.mubr.bf16.gmra.mxu0 %v1487_v34  ;;  %826 = vmatmul.mubr.bf16.gmra.mxu1 %v1488_v35 }
  0x4e   : > { %769 = vmatprep.mubr.bf16.mxu0 %v1489_v36  ;;  %833 = vmatprep.mubr.bf16.mxu1 %v1491_v37 }
  0x55   : > { %770 = vmatmul.mubr.bf16.gmra.mxu0 %v1493_v38  ;;  %834 = vmatmul.mubr.bf16.gmra.mxu1 %v1494_v39 }
  0x56   : > { %777 = vmatprep.mubr.bf16.mxu0 %v1495_v40  ;;  %841 = vmatprep.mubr.bf16.mxu1 %v1497_v41 }
  0x5d   : > { %778 = vmatmul.mubr.bf16.gmra.mxu0 %v1499_v42  ;;  %842 = vmatmul.mubr.bf16.gmra.mxu1 %v1500_v43 }
  0x5e   : > { %785 = vmatprep.mubr.bf16.mxu0 %v1501_v44  ;;  %849 = vmatprep.mubr.bf16.mxu1 %v1503_v45 }
  0x65   : > { %786 = vmatmul.mubr.bf16.gmra.mxu0 %v1505_v46  ;;  %850 = vmatmul.mubr.bf16.gmra.mxu1 %v1506_v47 }
  0xed   : > { %v1307_v48 = vpop.f32.mrf.mxu0  ;;  %v1355_v49 = vpop.f32.mrf.mxu1 }
  0xef   : > { %v1308_v50 = vpop.f32.mrf.mxu0  ;;  %v1356_v52 = vpop.f32.mrf.mxu1 }
  0xf0   : > { %v1309_v53 = vadd.f32 %v1308_v50, %v1307_v48  ;;  %v1357_v54 = vadd.f32 %v1356_v52, %v1355_v49 }
  0xf1   : > { %v1310_v56 = vpop.f32.mrf.mxu0  ;;  %v1358_v57 = vpop.f32.mrf.mxu1 }
  0xf2   : > { %v964_v58 = vmul.f32 %v1309_v53, %v1667_v51  ;;  %v980_v59 = vmul.f32 %v1357_v54, %v1667_v51 }
  0xf3   : > { %v1311_v60 = vpop.f32.mrf.mxu0  ;;  %v1359_v61 = vpop.f32.mrf.mxu1 }
  0xf4   : > { %v1003_v62 = vadd.f32 %v1672_v55, %v964_v58  ;;  %v1019_v63 = vadd.f32 %v1672_v55, %v980_v59  ;;  %v1312_v0 = vadd.f32 %v1311_v60, %v1310_v56  ;;  %v1360_v1 = vadd.f32 %v1359_v61, %v1358_v57 }
  0xf5   : > { %v1313_v2 = vpop.f32.mrf.mxu0  ;;  %v1361_v3 = vpop.f32.mrf.mxu1 }
  0xf6   : > { %v1035_v4 = vmax.f32 %v1003_v62, 0.0  ;;  %v1051_v5 = vmax.f32 %v1019_v63, 0.0  ;;  %v965_v6 = vmul.f32 %v1312_v0, %v1667_v51  ;;  %v981_v7 = vmul.f32 %v1360_v1, %v1667_v51 }
  0xf7   : > { %v1314_v8 = vpop.f32.mrf.mxu0  ;;  %v1362_v9 = vpop.f32.mrf.mxu1 }
  0xf8   : > { %1067 = vst [vmem:[%s1683_s15] sm:$0xff] %v1035_v4  ;;  %1083 = vst [vmem:[%s1683_s15 + $0x80] sm:$0xff] %v1051_v5  ;;  %v1004_v10 = vadd.f32 %v1672_v55, %v965_v6  ;;  %v1020_v11 = vadd.f32 %v1672_v55, %v981_v7  ;;  %v1315_v12 = vadd.f32 %v1314_v8, %v1313_v2 }
  0xf9   : > { %v1363_v13 = vadd.f32 %v1362_v9, %v1361_v3  ;;  %v1316_v14 = vpop.f32.mrf.mxu0  ;;  %v1364_v15 = vpop.f32.mrf.mxu1 }
  0xfa   : > { %v1036_v16 = vmax.f32 %v1004_v10, 0.0  ;;  %v1052_v17 = vmax.f32 %v1020_v11, 0.0  ;;  %v966_v18 = vmul.f32 %v1315_v12, %v1667_v51 }
  0xfb   : > { %v982_v19 = vmul.f32 %v1363_v13, %v1667_v51  ;;  %v1317_v20 = vpop.f32.mrf.mxu0  ;;  %v1365_v21 = vpop.f32.mrf.mxu1 }
  0xfc   : > { %1068 = vst [vmem:[%s1683_s15 + $0x8] sm:$0xff] %v1036_v16  ;;  %1084 = vst [vmem:[%s1683_s15 + $0x88] sm:$0xff] %v1052_v17  ;;  %v1005_v22 = vadd.f32 %v1672_v55, %v966_v18  ;;  %v1318_v24 = vadd.f32 %v1317_v20, %v1316_v14  ;;  %v1366_v25 = vadd.f32 %v1365_v21, %v1364_v15 }
  0xfd   : > { %v1021_v23 = vadd.f32 %v1672_v55, %v982_v19  ;;  %v1319_v26 = vpop.f32.mrf.mxu0  ;;  %v1367_v27 = vpop.f32.mrf.mxu1 }
  0xfe   : > { %v1037_v28 = vmax.f32 %v1005_v22, 0.0  ;;  %v967_v30 = vmul.f32 %v1318_v24, %v1667_v51  ;;  %v983_v31 = vmul.f32 %v1366_v25, %v1667_v51 }
  0xff   : > { %v1053_v29 = vmax.f32 %v1021_v23, 0.0  ;;  %v1320_v32 = vpop.f32.mrf.mxu0  ;;  %v1368_v33 = vpop.f32.mrf.mxu1 }
 0x100   : > { %1069 = vst [vmem:[%s1683_s15 + $0x10] sm:$0xff] %v1037_v28  ;;  %v1006_v34 = vadd.f32 %v1672_v55, %v967_v30  ;;  %v1022_v35 = vadd.f32 %v1672_v55, %v983_v31  ;;  %v1321_v36 = vadd.f32 %v1320_v32, %v1319_v26  ;;  %v1369_v37 = vadd.f32 %v1368_v33, %v1367_v27 }
 0x101   : > { %1085 = vst [vmem:[%s1683_s15 + $0x90] sm:$0xff] %v1053_v29  ;;  %v1322_v38 = vpop.f32.mrf.mxu0  ;;  %v1370_v39 = vpop.f32.mrf.mxu1 }
 0x102   : > { %v1038_v40 = vmax.f32 %v1006_v34, 0.0  ;;  %v1054_v41 = vmax.f32 %v1022_v35, 0.0  ;;  %v968_v42 = vmul.f32 %v1321_v36, %v1667_v51  ;;  %v984_v43 = vmul.f32 %v1369_v37, %v1667_v51 }
 0x103   : > { %v1323_v44 = vpop.f32.mrf.mxu0  ;;  %v1371_v45 = vpop.f32.mrf.mxu1 }
 0x104   : > { %1070 = vst [vmem:[%s1683_s15 + $0x18] sm:$0xff] %v1038_v40  ;;  %1086 = vst [vmem:[%s1683_s15 + $0x98] sm:$0xff] %v1054_v41  ;;  %v1007_v46 = vadd.f32 %v1672_v55, %v968_v42  ;;  %v1023_v47 = vadd.f32 %v1672_v55, %v984_v43  ;;  %v1324_v48 = vadd.f32 %v1323_v44, %v1322_v38 }
 0x105   : > { %v1372_v49 = vadd.f32 %v1371_v45, %v1370_v39  ;;  %v1325_v50 = vpop.f32.mrf.mxu0  ;;  %v1373_v52 = vpop.f32.mrf.mxu1 }
 0x106   : > { %v1039_v53 = vmax.f32 %v1007_v46, 0.0  ;;  %v1055_v54 = vmax.f32 %v1023_v47, 0.0  ;;  %v969_v56 = vmul.f32 %v1324_v48, %v1667_v51 }
 0x107   : > { %v985_v57 = vmul.f32 %v1372_v49, %v1667_v51  ;;  %v1326_v58 = vpop.f32.mrf.mxu0  ;;  %v1374_v59 = vpop.f32.mrf.mxu1 }
 0x108   : > { %1071 = vst [vmem:[%s1683_s15 + $0x20] sm:$0xff] %v1039_v53  ;;  %1087 = vst [vmem:[%s1683_s15 + $0xa0] sm:$0xff] %v1055_v54  ;;  %v1008_v60 = vadd.f32 %v1672_v55, %v969_v56  ;;  %v1327_v62 = vadd.f32 %v1326_v58, %v1325_v50  ;;  %v1375_v63 = vadd.f32 %v1374_v59, %v1373_v52 }
 0x109   : > { %v1024_v61 = vadd.f32 %v1672_v55, %v985_v57  ;;  %v1328_v0 = vpop.f32.mrf.mxu0  ;;  %v1376_v1 = vpop.f32.mrf.mxu1 }
 0x10a   : > { %v1040_v2 = vmax.f32 %v1008_v60, 0.0  ;;  %v970_v4 = vmul.f32 %v1327_v62, %v1667_v51  ;;  %v986_v5 = vmul.f32 %v1375_v63, %v1667_v51 }
 0x10b   : > { %v1056_v3 = vmax.f32 %v1024_v61, 0.0  ;;  %v1329_v6 = vpop.f32.mrf.mxu0  ;;  %v1377_v7 = vpop.f32.mrf.mxu1 }
 0x10c   : > { %1072 = vst [vmem:[%s1683_s15 + $0x28] sm:$0xff] %v1040_v2  ;;  %v1009_v8 = vadd.f32 %v1672_v55, %v970_v4  ;;  %v1025_v9 = vadd.f32 %v1672_v55, %v986_v5  ;;  %v1330_v10 = vadd.f32 %v1329_v6, %v1328_v0  ;;  %v1378_v11 = vadd.f32 %v1377_v7, %v1376_v1 }
 0x10d   : > { %1088 = vst [vmem:[%s1683_s15 + $0xa8] sm:$0xff] %v1056_v3  ;;  %v1331_v12 = vpop.f32.mrf.mxu0  ;;  %v1379_v13 = vpop.f32.mrf.mxu1 }
 0x10e   : > { %v1041_v14 = vmax.f32 %v1009_v8, 0.0  ;;  %v1057_v15 = vmax.f32 %v1025_v9, 0.0  ;;  %v971_v16 = vmul.f32 %v1330_v10, %v1667_v51  ;;  %v987_v17 = vmul.f32 %v1378_v11, %v1667_v51 }
 0x10f   : > { %v1332_v18 = vpop.f32.mrf.mxu0  ;;  %v1380_v19 = vpop.f32.mrf.mxu1 }
 0x110   : > { %1073 = vst [vmem:[%s1683_s15 + $0x30] sm:$0xff] %v1041_v14  ;;  %1089 = vst [vmem:[%s1683_s15 + $0xb0] sm:$0xff] %v1057_v15  ;;  %v1010_v20 = vadd.f32 %v1672_v55, %v971_v16  ;;  %v1026_v21 = vadd.f32 %v1672_v55, %v987_v17  ;;  %v1333_v22 = vadd.f32 %v1332_v18, %v1331_v12 }
 0x111   : > { %v1381_v23 = vadd.f32 %v1380_v19, %v1379_v13  ;;  %v1334_v24 = vpop.f32.mrf.mxu0  ;;  %v1382_v25 = vpop.f32.mrf.mxu1 }
 0x112   : > { %v1042_v26 = vmax.f32 %v1010_v20, 0.0  ;;  %v1058_v27 = vmax.f32 %v1026_v21, 0.0  ;;  %v972_v28 = vmul.f32 %v1333_v22, %v1667_v51 }
 0x113   : > { %v988_v29 = vmul.f32 %v1381_v23, %v1667_v51  ;;  %v1335_v30 = vpop.f32.mrf.mxu0  ;;  %v1383_v31 = vpop.f32.mrf.mxu1 }
 0x114   : > { %1074 = vst [vmem:[%s1683_s15 + $0x38] sm:$0xff] %v1042_v26  ;;  %1090 = vst [vmem:[%s1683_s15 + $0xb8] sm:$0xff] %v1058_v27  ;;  %v1011_v32 = vadd.f32 %v1672_v55, %v972_v28  ;;  %v1336_v34 = vadd.f32 %v1335_v30, %v1334_v24  ;;  %v1384_v35 = vadd.f32 %v1383_v31, %v1382_v25 }
 0x115   : > { %v1027_v33 = vadd.f32 %v1672_v55, %v988_v29  ;;  %v1337_v36 = vpop.f32.mrf.mxu0  ;;  %v1385_v37 = vpop.f32.mrf.mxu1 }
 0x116   : > { %v1043_v38 = vmax.f32 %v1011_v32, 0.0  ;;  %v973_v40 = vmul.f32 %v1336_v34, %v1667_v51  ;;  %v989_v41 = vmul.f32 %v1384_v35, %v1667_v51 }
 0x117   : > { %v1059_v39 = vmax.f32 %v1027_v33, 0.0  ;;  %v1338_v42 = vpop.f32.mrf.mxu0  ;;  %v1386_v43 = vpop.f32.mrf.mxu1 }
 0x118   : > { %1075 = vst [vmem:[%s1683_s15 + $0x40] sm:$0xff] %v1043_v38  ;;  %v1012_v44 = vadd.f32 %v1672_v55, %v973_v40  ;;  %v1028_v45 = vadd.f32 %v1672_v55, %v989_v41  ;;  %v1339_v46 = vadd.f32 %v1338_v42, %v1337_v36  ;;  %v1387_v47 = vadd.f32 %v1386_v43, %v1385_v37 }
 0x119   : > { %1091 = vst [vmem:[%s1683_s15 + $0xc0] sm:$0xff] %v1059_v39  ;;  %v1340_v48 = vpop.f32.mrf.mxu0  ;;  %v1388_v49 = vpop.f32.mrf.mxu1 }
 0x11a   : > { %v1044_v50 = vmax.f32 %v1012_v44, 0.0  ;;  %v1060_v52 = vmax.f32 %v1028_v45, 0.0  ;;  %v974_v53 = vmul.f32 %v1339_v46, %v1667_v51  ;;  %v990_v54 = vmul.f32 %v1387_v47, %v1667_v51 }
 0x11b   : > { %v1341_v56 = vpop.f32.mrf.mxu0  ;;  %v1389_v57 = vpop.f32.mrf.mxu1 }
 0x11c   : > { %1076 = vst [vmem:[%s1683_s15 + $0x48] sm:$0xff] %v1044_v50  ;;  %1092 = vst [vmem:[%s1683_s15 + $0xc8] sm:$0xff] %v1060_v52  ;;  %v1013_v58 = vadd.f32 %v1672_v55, %v974_v53  ;;  %v1029_v59 = vadd.f32 %v1672_v55, %v990_v54  ;;  %v1342_v60 = vadd.f32 %v1341_v56, %v1340_v48 }
 0x11d   : > { %v1390_v61 = vadd.f32 %v1389_v57, %v1388_v49  ;;  %v1343_v62 = vpop.f32.mrf.mxu0  ;;  %v1391_v63 = vpop.f32.mrf.mxu1 }
 0x11e   : > { %v1045_v0 = vmax.f32 %v1013_v58, 0.0  ;;  %v1061_v1 = vmax.f32 %v1029_v59, 0.0  ;;  %v975_v2 = vmul.f32 %v1342_v60, %v1667_v51 }
 0x11f   : > { %v991_v3 = vmul.f32 %v1390_v61, %v1667_v51  ;;  %v1344_v4 = vpop.f32.mrf.mxu0  ;;  %v1392_v5 = vpop.f32.mrf.mxu1 }
 0x120   : > { %1077 = vst [vmem:[%s1683_s15 + $0x50] sm:$0xff] %v1045_v0  ;;  %1093 = vst [vmem:[%s1683_s15 + $0xd0] sm:$0xff] %v1061_v1  ;;  %v1014_v6 = vadd.f32 %v1672_v55, %v975_v2  ;;  %v1345_v8 = vadd.f32 %v1344_v4, %v1343_v62  ;;  %v1393_v9 = vadd.f32 %v1392_v5, %v1391_v63 }
 0x121   : > { %v1030_v7 = vadd.f32 %v1672_v55, %v991_v3  ;;  %v1346_v10 = vpop.f32.mrf.mxu0  ;;  %v1394_v11 = vpop.f32.mrf.mxu1 }
 0x122   : > { %v1046_v12 = vmax.f32 %v1014_v6, 0.0  ;;  %v976_v14 = vmul.f32 %v1345_v8, %v1667_v51  ;;  %v992_v15 = vmul.f32 %v1393_v9, %v1667_v51 }
 0x123   : > { %v1062_v13 = vmax.f32 %v1030_v7, 0.0  ;;  %v1347_v16 = vpop.f32.mrf.mxu0  ;;  %v1395_v17 = vpop.f32.mrf.mxu1 }
 0x124   : > { %1078 = vst [vmem:[%s1683_s15 + $0x58] sm:$0xff] %v1046_v12  ;;  %v1015_v18 = vadd.f32 %v1672_v55, %v976_v14  ;;  %v1031_v19 = vadd.f32 %v1672_v55, %v992_v15  ;;  %v1348_v20 = vadd.f32 %v1347_v16, %v1346_v10  ;;  %v1396_v21 = vadd.f32 %v1395_v17, %v1394_v11 }
 0x125   : > { %1094 = vst [vmem:[%s1683_s15 + $0xd8] sm:$0xff] %v1062_v13  ;;  %v1349_v22 = vpop.f32.mrf.mxu0  ;;  %v1397_v23 = vpop.f32.mrf.mxu1 }
 0x126   : > { %v1047_v24 = vmax.f32 %v1015_v18, 0.0  ;;  %v1063_v25 = vmax.f32 %v1031_v19, 0.0  ;;  %v977_v26 = vmul.f32 %v1348_v20, %v1667_v51  ;;  %v993_v27 = vmul.f32 %v1396_v21, %v1667_v51 }
 0x127   : > { %v1350_v28 = vpop.f32.mrf.mxu0  ;;  %v1398_v29 = vpop.f32.mrf.mxu1 }
 0x128   : > { %1079 = vst [vmem:[%s1683_s15 + $0x60] sm:$0xff] %v1047_v24  ;;  %1095 = vst [vmem:[%s1683_s15 + $0xe0] sm:$0xff] %v1063_v25  ;;  %v1016_v30 = vadd.f32 %v1672_v55, %v977_v26  ;;  %v1032_v31 = vadd.f32 %v1672_v55, %v993_v27  ;;  %v1351_v32 = vadd.f32 %v1350_v28, %v1349_v22 }
 0x129   : > { %v1399_v33 = vadd.f32 %v1398_v29, %v1397_v23  ;;  %v1352_v34 = vpop.f32.mrf.mxu0  ;;  %v1400_v35 = vpop.f32.mrf.mxu1 }
 0x12a   : > { %v1048_v36 = vmax.f32 %v1016_v30, 0.0  ;;  %v1064_v37 = vmax.f32 %v1032_v31, 0.0  ;;  %v978_v38 = vmul.f32 %v1351_v32, %v1667_v51 }
 0x12b   : > { %v994_v39 = vmul.f32 %v1399_v33, %v1667_v51  ;;  %v1353_v40 = vpop.f32.mrf.mxu0  ;;  %v1401_v41 = vpop.f32.mrf.mxu1 }
 0x12c   : > { %1080 = vst [vmem:[%s1683_s15 + $0x68] sm:$0xff] %v1048_v36  ;;  %1096 = vst [vmem:[%s1683_s15 + $0xe8] sm:$0xff] %v1064_v37  ;;  %v1017_v42 = vadd.f32 %v1672_v55, %v978_v38  ;;  %v1354_v44 = vadd.f32 %v1353_v40, %v1352_v34  ;;  %v1402_v45 = vadd.f32 %v1401_v41, %v1400_v35 }
 0x12d   : > { %v1033_v43 = vadd.f32 %v1672_v55, %v994_v39 }
 0x12e   : > { %v1049_v46 = vmax.f32 %v1017_v42, 0.0  ;;  %v979_v48 = vmul.f32 %v1354_v44, %v1667_v51  ;;  %v995_v49 = vmul.f32 %v1402_v45, %v1667_v51 }
 0x12f   : > { %v1065_v47 = vmax.f32 %v1033_v43, 0.0 }
 0x130   : > { %1081 = vst [vmem:[%s1683_s15 + $0x70] sm:$0xff] %v1049_v46  ;;  %v1018_v50 = vadd.f32 %v1672_v55, %v979_v48  ;;  %v1034_v52 = vadd.f32 %v1672_v55, %v995_v49 }
 0x131   : > { %1097 = vst [vmem:[%s1683_s15 + $0xf0] sm:$0xff] %v1065_v47 }
 0x132   : > { %v1050_v53 = vmax.f32 %v1018_v50, 0.0  ;;  %v1066_v54 = vmax.f32 %v1034_v52, 0.0 }
 0x134   : > { %1082 = vst [vmem:[%s1683_s15 + $0x78] sm:$0xff] %v1050_v53  ;;  %1098 = vst [vmem:[%s1683_s15 + $0xf8] sm:$0xff] %v1066_v54 }
 0x135 PF: > { %s14_s17 = sadd.s32 1, %s1529_s17   ;;  %s1791_s15 = smov %s1525_s16 }
 0x136   : > { %p11_p5 = scmp.ge.s32.totalorder %s14_s17, 4   ;;  %s1792_s16 = smov %s1794_s18 }
 0x138   :  { %13 = sbr.rel (!%p11_p5) target bundleno = 2 (0x2), region = 83 }

// kernel: supervised_net_forward.26
= control target key start
LH: loop header
LB: loop body
LE: loop exit
PB: predicated region body
PF: predicated region fallthrough
CT: control target
= control target key end

     0   :  { %s1891_s1 = inlined_call_operand.vmem [shape: bf16[640,128], index: 1, kind: input, shape index: {}]   ;;  %s1892_s0 = inlined_call_operand.vmem [shape: bf16[128,640], index: 0, kind: input, shape index: {}]   ;;  %s1893_s2 = inlined_call_operand.vmem [shape: f32[1,128], index: 2, kind: input, shape index: {}]   ;;  %s1894_s3 = inlined_call_operand.vmem [shape: f32[1,128], index: 3, kind: input, shape index: {}]   ;;  %s1895_s4 = inlined_call_operand.vmem [shape: f32[128,128], index: 4, kind: input, shape index: {}]   ;;  %s1896_s5 = inlined_call_operand.vmem [shape: f32[128,128], index: 5, kind: output, shape index: {}]  }
   0x1   :  { %v1363_v0 = vld [vmem:[%s1891_s1 + $0x78] sm:$0xff]   ;;  %v1367_v4 = vld [vmem:[%s1891_s1 + $0x70] sm:$0xff]   ;;  %v1371_v8 = vld [vmem:[%s1891_s1 + $0x68] sm:$0xff]  }
   0x2   :  { %v1364_v1 = vld [vmem:[%s1891_s1 + $0xf8] sm:$0xff]   ;;  %1171 = vmatprep.subr.bf16.mxu0 %v1363_v0  ;;  %v1368_v5 = vld [vmem:[%s1891_s1 + $0xf0] sm:$0xff]   ;;  %v1372_v9 = vld [vmem:[%s1891_s1 + $0xe8] sm:$0xff]  }
   0x3   :  { %v1365_v2 = vld [vmem:[%s1891_s1 + $0x38] sm:$0xff]   ;;  %1235 = vmatprep.subr.bf16.mxu1 %v1364_v1  ;;  %v1369_v6 = vld [vmem:[%s1891_s1 + $0x30] sm:$0xff]   ;;  %v1373_v10 = vld [vmem:[%s1891_s1 + $0x28] sm:$0xff]  }
   0x4   :  { %v1366_v3 = vld [vmem:[%s1891_s1 + $0xb8] sm:$0xff]   ;;  %1172 = vmatpush3.bf16.msra.mxu0 %v1365_v2  ;;  %v1370_v7 = vld [vmem:[%s1891_s1 + $0xb0] sm:$0xff]   ;;  %v1374_v11 = vld [vmem:[%s1891_s1 + $0xa8] sm:$0xff]  }
   0x5   :  { %1236 = vmatpush3.bf16.msra.mxu1 %v1366_v3  ;;  %1173 = vmatprep.subr.bf16.mxu0 %v1367_v4  ;;  %v1375_v12 = vld [vmem:[%s1891_s1 + $0x60] sm:$0xff]   ;;  %v1379_v16 = vld [vmem:[%s1891_s1 + $0x58] sm:$0xff]   ;;  %v1383_v20 = vld [vmem:[%s1891_s1 + $0x50] sm:$0xff]  }
   0x6   :  { %1237 = vmatprep.subr.bf16.mxu1 %v1368_v5  ;;  %v1376_v13 = vld [vmem:[%s1891_s1 + $0xe0] sm:$0xff]   ;;  %v1380_v17 = vld [vmem:[%s1891_s1 + $0xd8] sm:$0xff]   ;;  %v1384_v21 = vld [vmem:[%s1891_s1 + $0xd0] sm:$0xff]  }
   0x7   :  { %v1377_v14 = vld [vmem:[%s1891_s1 + $0x20] sm:$0xff]   ;;  %v1381_v18 = vld [vmem:[%s1891_s1 + $0x18] sm:$0xff]   ;;  %v1385_v22 = vld [vmem:[%s1891_s1 + $0x10] sm:$0xff]  }
   0x8   :  { %1174 = vmatpush3.bf16.msra.mxu0 %v1369_v6  ;;  %v1378_v15 = vld [vmem:[%s1891_s1 + $0xa0] sm:$0xff]   ;;  %v1382_v19 = vld [vmem:[%s1891_s1 + $0x98] sm:$0xff]   ;;  %v1386_v23 = vld [vmem:[%s1891_s1 + $0x90] sm:$0xff]  }
   0x9   :  { %1238 = vmatpush3.bf16.msra.mxu1 %v1370_v7  ;;  %1175 = vmatprep.subr.bf16.mxu0 %v1371_v8  ;;  %v1387_v24 = vld [vmem:[%s1891_s1 + $0x48] sm:$0xff]   ;;  %v1391_v28 = vld [vmem:[%s1891_s1 + $0x40] sm:$0xff]   ;;  %v1401_v36 = vld [vmem:[%s1891_s1 + $0x138] sm:$0xff]  }
   0xa   :  { %1239 = vmatprep.subr.bf16.mxu1 %v1372_v9  ;;  %v1388_v25 = vld [vmem:[%s1891_s1 + $0xc8] sm:$0xff]   ;;  %v1392_v29 = vld [vmem:[%s1891_s1 + $0xc0] sm:$0xff]   ;;  %v1408_v39 = vld [vmem:[%s1891_s1 + $0x130] sm:$0xff]  }
   0xb   :  { %v1389_v26 = vld [vmem:[%s1891_s1 + $0x8] sm:$0xff]   ;;  %v1393_v30 = vld [vmem:[%s1891_s1] sm:$0xff]   ;;  %v1411_v43 = vld [vmem:[%s1892_s0 + $0x5c] ss:$20 sps:$4 sm:$0xff]  }
   0xc   :  { %1176 = vmatpush3.bf16.msra.mxu0 %v1373_v10  ;;  %v1390_v27 = vld [vmem:[%s1891_s1 + $0x88] sm:$0xff]   ;;  %v1394_v31 = vld [vmem:[%s1891_s1 + $0x80] sm:$0xff]   ;;  %v1416_v48 = vld [vmem:[%s1892_s0 + $0x7c] ss:$20 sps:$4 sm:$0xff]  }
   0xd   :  { %1240 = vmatpush3.bf16.msra.mxu1 %v1374_v11  ;;  %1177 = vmatprep.subr.bf16.mxu0 %v1375_v12  ;;  %v1395_v32 = vld [vmem:[%s1892_s0] ss:$20 sps:$4 sm:$0xff]   ;;  %v1397_v33 = vld [vmem:[%s1892_s0 + $0x4] ss:$20 sps:$4 sm:$0xff]   ;;  %v1398_v34 = vld [vmem:[%s1892_s0 + $0x8] ss:$20 sps:$4 sm:$0xff]  }
   0xe   :  { %1241 = vmatprep.subr.bf16.mxu1 %v1376_v13  ;;  %v1400_v35 = vld [vmem:[%s1892_s0 + $0xc] ss:$20 sps:$4 sm:$0xff]   ;;  %665 = vmatprep.mubr.bf16.mxu0 %v1397_v33  ;;  %v1404_v38 = vld [vmem:[%s1892_s0 + $0x34] ss:$20 sps:$4 sm:$0xff]   ;;  %v1407_v41 = vld [vmem:[%s1892_s0 + $0x30] ss:$20 sps:$4 sm:$0xff]  }
   0xf   :  { %762 = vmatprep.mubr.bf16.mxu1 %v1400_v35  ;;  %v1402_v37 = vld [vmem:[%s1892_s0 + $0x2c] ss:$20 sps:$4 sm:$0xff]   ;;  %v1406_v40 = vld [vmem:[%s1892_s0 + $0x28] ss:$20 sps:$4 sm:$0xff]   ;;  %v1413_v46 = vld [vmem:[%s1892_s0 + $0x50] ss:$20 sps:$4 sm:$0xff]  }
  0x10   :  { %1178 = vmatpush3.bf16.msra.mxu0 %v1377_v14  ;;  %v1409_v42 = vld [vmem:[%s1892_s0 + $0x54] ss:$20 sps:$4 sm:$0xff]   ;;  %v1422_v45 = vld [vmem:[%s1891_s1 + $0x120] sm:$0xff]   ;;  %v1414_v47 = vld [vmem:[%s1892_s0 + $0x58] ss:$20 sps:$4 sm:$0xff]  }
  0x11   :  { %1242 = vmatpush3.bf16.msra.mxu1 %v1378_v15  ;;  %1179 = vmatprep.subr.bf16.mxu0 %v1379_v16  ;;  %v1415_v44 = vld [vmem:[%s1891_s1 + $0x128] sm:$0xff]   ;;  %v1418_v49 = vld [vmem:[%s1892_s0 + $0x84] ss:$20 sps:$4 sm:$0xff]   ;;  %v1436_v51 = vld [vmem:[%s1891_s1 + $0x110] sm:$0xff]  }
  0x12   :  { %1243 = vmatprep.subr.bf16.mxu1 %v1380_v17  ;;  %v1429_v50 = vld [vmem:[%s1891_s1 + $0x118] sm:$0xff]   ;;  %v1421_v53 = vld [vmem:[%s1892_s0 + $0x80] ss:$20 sps:$4 sm:$0xff]   ;;  %v1443_v55 = vld [vmem:[%s1891_s1 + $0x108] sm:$0xff]  }
  0x13   :  { %v1420_v52 = vld [vmem:[%s1892_s0 + $0x78] ss:$20 sps:$4 sm:$0xff]   ;;  %v1450_v57 = vld [vmem:[%s1891_s1 + $0x100] sm:$0xff]   ;;  %v1428_v59 = vld [vmem:[%s1892_s0 + $0xa8] ss:$20 sps:$4 sm:$0xff]  }
  0x14   :  { %1180 = vmatpush3.bf16.msra.mxu0 %v1381_v18  ;;  %v1423_v54 = vld [vmem:[%s1892_s0 + $0xa4] ss:$20 sps:$4 sm:$0xff]   ;;  %v1425_v56 = vld [vmem:[%s1892_s0 + $0xac] ss:$20 sps:$4 sm:$0xff]   ;;  %v1432_v61 = vld [vmem:[%s1892_s0 + $0xd4] ss:$20 sps:$4 sm:$0xff]  }
  0x15   :  { %1244 = vmatpush3.bf16.msra.mxu1 %v1382_v19  ;;  %1181 = vmatprep.subr.bf16.mxu0 %v1383_v20  ;;  %v1427_v58 = vld [vmem:[%s1892_s0 + $0xa0] ss:$20 sps:$4 sm:$0xff]   ;;  %v1434_v62 = vld [vmem:[%s1892_s0 + $0xc8] ss:$20 sps:$4 sm:$0xff]   ;;  %v1435_v63 = vld [vmem:[%s1892_s0 + $0xd0] ss:$20 sps:$4 sm:$0xff]  }
  0x16   :  { %1245 = vmatprep.subr.bf16.mxu1 %v1384_v21  ;;  %v1430_v60 = vld [vmem:[%s1892_s0 + $0xcc] ss:$20 sps:$4 sm:$0xff]   ;;  %v1437_v0 = vld [vmem:[%s1892_s0 + $0xf4] ss:$20 sps:$4 sm:$0xff]   ;;  %v1439_v1 = vld [vmem:[%s1892_s0 + $0xfc] ss:$20 sps:$4 sm:$0xff]  }
  0x17   :  { %v1441_v2 = vld [vmem:[%s1892_s0 + $0xf0] ss:$20 sps:$4 sm:$0xff]   ;;  %v1442_v3 = vld [vmem:[%s1892_s0 + $0xf8] ss:$20 sps:$4 sm:$0xff]   ;;  %v1449_v7 = vld [vmem:[%s1892_s0 + $0x120] ss:$20 sps:$4 sm:$0xff]  }
  0x18   :  { %1182 = vmatpush3.bf16.msra.mxu0 %v1385_v22  ;;  %v1444_v4 = vld [vmem:[%s1892_s0 + $0x11c] ss:$20 sps:$4 sm:$0xff]   ;;  %v1446_v5 = vld [vmem:[%s1892_s0 + $0x124] ss:$20 sps:$4 sm:$0xff]   ;;  %v1455_v12 = vld [vmem:[%s1892_s0 + $0x60] ss:$20 sps:$4 sm:$0xff]  }
  0x19   :  { %1246 = vmatpush3.bf16.msra.mxu1 %v1386_v23  ;;  %1183 = vmatprep.subr.bf16.mxu0 %v1387_v24  ;;  %v1448_v6 = vld [vmem:[%s1892_s0 + $0x118] ss:$20 sps:$4 sm:$0xff]   ;;  %v1451_v8 = vld [vmem:[%s1892_s0 + $0x10] ss:$20 sps:$4 sm:$0xff]   ;;  %v1456_v13 = vld [vmem:[%s1892_s0 + $0x100] ss:$20 sps:$4 sm:$0xff]  }
  0x1a   :  { %1247 = vmatprep.subr.bf16.mxu1 %v1388_v25  ;;  %v1452_v9 = vld [vmem:[%s1892_s0 + $0xb0] ss:$20 sps:$4 sm:$0xff]   ;;  %v1453_v10 = vld [vmem:[%s1892_s0 + $0x38] ss:$20 sps:$4 sm:$0xff]   ;;  %v1457_v14 = vld [vmem:[%s1892_s0 + $0x88] ss:$20 sps:$4 sm:$0xff]  }
  0x1b   :  { %v1454_v11 = vld [vmem:[%s1892_s0 + $0xd8] ss:$20 sps:$4 sm:$0xff]   ;;  %v1458_v15 = vld [vmem:[%s1892_s0 + $0x128] ss:$20 sps:$4 sm:$0xff]  }
  0x1c   :  { %1184 = vmatpush3.bf16.msra.mxu0 %v1389_v26 }
  0x1d   :  { %1248 = vmatpush3.bf16.msra.mxu1 %v1390_v27  ;;  %1185 = vmatprep.subr.bf16.mxu0 %v1391_v28 }
  0x1e   :  { %1249 = vmatprep.subr.bf16.mxu1 %v1392_v29 }
  0x20   :  { %1186 = vmatpush3.bf16.msra.mxu0 %v1393_v30 }
  0x21   :  { %1250 = vmatpush3.bf16.msra.mxu1 %v1394_v31  ;;  %1315 = vmatprep.subr.bf16.mxu0 %v1401_v36 }
  0x22   :  { %1347 = vmatprep.subr.bf16.mxu1 %v1401_v36 }
  0x23   :  { %666 = vmatmul.mubr.bf16.vlgmr.msra.gmra.mxu0 %v1395_v32 }
  0x24   :  { %763 = vmatmul.mubr.bf16.vlgmr.msra.gmra.mxu1 %v1398_v34  ;;  %1316 = vmatpush3.bf16.msra.mxu0 %v1401_v36 }
  0x25   :  { %1355 = vmatpush3.bf16.msra.mxu1 %v1401_v36  ;;  %673 = vmatprep.mubr.bf16.mxu0 %v1402_v37 }
  0x26   :  { %770 = vmatprep.mubr.bf16.mxu1 %v1404_v38  ;;  %1317 = vmatprep.subr.bf16.mxu0 %v1408_v39 }
  0x27   :  { %1348 = vmatprep.subr.bf16.mxu1 %v1408_v39 }
  0x28   :  { %1318 = vmatpush3.bf16.msra.mxu0 %v1408_v39 }
  0x29   :  { %1356 = vmatpush3.bf16.msra.mxu1 %v1408_v39  ;;  %1319 = vmatprep.subr.bf16.mxu0 %v1415_v44 }
  0x2a   :  { %1349 = vmatprep.subr.bf16.mxu1 %v1415_v44 }
  0x2b   :  { %674 = vmatmul.mubr.bf16.gmra.mxu0 %v1406_v40 }
  0x2c   :  { %771 = vmatmul.mubr.bf16.gmra.mxu1 %v1407_v41  ;;  %681 = vmatprep.mubr.bf16.mxu0 %v1409_v42 }
  0x2d   :  { %778 = vmatprep.mubr.bf16.mxu1 %v1411_v43  ;;  %1320 = vmatpush3.bf16.msra.mxu0 %v1415_v44 }
  0x2e   :  { %1357 = vmatpush3.bf16.msra.mxu1 %v1415_v44  ;;  %1321 = vmatprep.subr.bf16.mxu0 %v1422_v45 }
  0x2f   :  { %1350 = vmatprep.subr.bf16.mxu1 %v1422_v45 }
  0x31   :  { %1322 = vmatpush3.bf16.msra.mxu0 %v1422_v45 }
  0x32   :  { %1358 = vmatpush3.bf16.msra.mxu1 %v1422_v45  ;;  %1323 = vmatprep.subr.bf16.mxu0 %v1429_v50 }
  0x33   :  { %682 = vmatmul.mubr.bf16.gmra.mxu0 %v1413_v46  ;;  %1351 = vmatprep.subr.bf16.mxu1 %v1429_v50 }
  0x34   :  { %779 = vmatmul.mubr.bf16.gmra.mxu1 %v1414_v47  ;;  %689 = vmatprep.mubr.bf16.mxu0 %v1416_v48 }
  0x35   :  { %786 = vmatprep.mubr.bf16.mxu1 %v1418_v49  ;;  %1324 = vmatpush3.bf16.msra.mxu0 %v1429_v50 }
  0x36   :  { %1359 = vmatpush3.bf16.msra.mxu1 %v1429_v50  ;;  %1325 = vmatprep.subr.bf16.mxu0 %v1436_v51 }
  0x37   :  { %1352 = vmatprep.subr.bf16.mxu1 %v1436_v51 }
  0x39   :  { %1326 = vmatpush3.bf16.msra.mxu0 %v1436_v51 }
  0x3a   :  { %1360 = vmatpush3.bf16.msra.mxu1 %v1436_v51  ;;  %1327 = vmatprep.subr.bf16.mxu0 %v1443_v55 }
  0x3b   :  { %690 = vmatmul.mubr.bf16.gmra.mxu0 %v1420_v52  ;;  %1353 = vmatprep.subr.bf16.mxu1 %v1443_v55 }
  0x3c   :  { %787 = vmatmul.mubr.bf16.gmra.mxu1 %v1421_v53  ;;  %697 = vmatprep.mubr.bf16.mxu0 %v1423_v54 }
  0x3d   :  { %794 = vmatprep.mubr.bf16.mxu1 %v1425_v56  ;;  %1328 = vmatpush3.bf16.msra.mxu0 %v1443_v55 }
  0x3e   :  { %1361 = vmatpush3.bf16.msra.mxu1 %v1443_v55  ;;  %1329 = vmatprep.subr.bf16.mxu0 %v1450_v57 }
  0x3f   :  { %1354 = vmatprep.subr.bf16.mxu1 %v1450_v57 }
  0x41   :  { %1330 = vmatpush3.bf16.msra.mxu0 %v1450_v57 }
  0x42   :  { %1362 = vmatpush3.bf16.msra.mxu1 %v1450_v57 }
  0x43   :  { %698 = vmatmul.mubr.bf16.gmra.mxu0 %v1427_v58 }
  0x44   :  { %795 = vmatmul.mubr.bf16.gmra.mxu1 %v1428_v59  ;;  %705 = vmatprep.mubr.bf16.mxu0 %v1430_v60 }
  0x45   :  { %802 = vmatprep.mubr.bf16.mxu1 %v1432_v61 }
  0x4b   :  { %706 = vmatmul.mubr.bf16.gmra.mxu0 %v1434_v62 }
  0x4c   :  { %803 = vmatmul.mubr.bf16.gmra.mxu1 %v1435_v63  ;;  %713 = vmatprep.mubr.bf16.mxu0 %v1437_v0 }
  0x4d   :  { %810 = vmatprep.mubr.bf16.mxu1 %v1439_v1 }
  0x53   :  { %714 = vmatmul.mubr.bf16.gmra.mxu0 %v1441_v2 }
  0x54   :  { %811 = vmatmul.mubr.bf16.gmra.mxu1 %v1442_v3  ;;  %721 = vmatprep.mubr.bf16.mxu0 %v1444_v4 }
  0x55   :  { %818 = vmatprep.mubr.bf16.mxu1 %v1446_v5 }
  0x5b   :  { %722 = vmatmul.mubr.bf16.gmra.mxu0 %v1448_v6 }
  0x5c   :  { %819 = vmatmul.mubr.bf16.gmra.mxu1 %v1449_v7  ;;  %1331 = vmatprep.mubr.bf16.mxu0 %v1451_v8 }
  0x5d   :  { %1339 = vmatprep.mubr.bf16.mxu1 %v1452_v9 }
  0x63   :  { %1332 = vmatmul.mubr.bf16.vlgmr.msra.gmra.mxu0 %v1453_v10 }
  0x64   :  { %1340 = vmatmul.mubr.bf16.vlgmr.msra.gmra.mxu1 %v1454_v11  ;;  %1335 = vmatprep.mubr.bf16.mxu0 %v1455_v12 }
  0x65   :  { %1343 = vmatprep.mubr.bf16.mxu1 %v1456_v13 }
  0x6b   :  { %1336 = vmatmul.mubr.bf16.gmra.mxu0 %v1457_v14 }
  0x6c   :  { %1344 = vmatmul.mubr.bf16.gmra.mxu1 %v1458_v15 }
  0xe3   :  { %v1187_v16 = vpop.f32.mrf.mxu0 }
  0xe4   :  { %v1251_v17 = vpop.f32.mrf.mxu1 }
  0xe5   :  { %v1188_v18 = vpop.f32.mrf.mxu0 }
  0xe6   :  { %v1252_v19 = vpop.f32.mrf.mxu1  ;;  %v1189_v7 = vadd.f32 %v1188_v18, %v1187_v16 }
  0xe7   :  { %v1190_v20 = vpop.f32.mrf.mxu0  ;;  %v1253_v8 = vadd.f32 %v1252_v19, %v1251_v17 }
  0xe8   :  { %v1254_v21 = vpop.f32.mrf.mxu1 }
  0xe9   :  { %v1191_v22 = vpop.f32.mrf.mxu0 }
  0xea   :  { %v1255_v23 = vpop.f32.mrf.mxu1  ;;  %v1192_v9 = vadd.f32 %v1191_v22, %v1190_v20 }
  0xeb   :  { %v1193_v24 = vpop.f32.mrf.mxu0  ;;  %v1256_v10 = vadd.f32 %v1255_v23, %v1254_v21 }
  0xec   :  { %v1257_v25 = vpop.f32.mrf.mxu1 }
  0xed   :  { %v1194_v26 = vpop.f32.mrf.mxu0 }
  0xee   :  { %v1258_v27 = vpop.f32.mrf.mxu1  ;;  %v1195_v12 = vadd.f32 %v1194_v26, %v1193_v24 }
  0xef   :  { %v1196_v28 = vpop.f32.mrf.mxu0  ;;  %v1259_v13 = vadd.f32 %v1258_v27, %v1257_v25 }
  0xf0   :  { %v1260_v29 = vpop.f32.mrf.mxu1 }
  0xf1   :  { %v1197_v30 = vpop.f32.mrf.mxu0 }
  0xf2   :  { %v1261_v31 = vpop.f32.mrf.mxu1  ;;  %v1198_v14 = vadd.f32 %v1197_v30, %v1196_v28  ;;  %v773_v30 = vadd.f32 %v1259_v13, %v1195_v12  ;;  %v1031_v13 = vld [vmem:[%s1895_s4 + $0x50] sm:$0xff] }
  0xf3   :  { %v1199_v32 = vpop.f32.mrf.mxu0  ;;  %v1262_v15 = vadd.f32 %v1261_v31, %v1260_v29  ;;  %v765_v29 = vadd.f32 %v1253_v8, %v1189_v7 }
  0xf4   :  { %v1263_v33 = vpop.f32.mrf.mxu1 }
  0xf5   :  { %v1200_v34 = vpop.f32.mrf.mxu0  ;;  %v776_v31 = vadd.f32 %v1262_v15, %v1198_v14 }
  0xf6   :  { %v1264_v35 = vpop.f32.mrf.mxu1  ;;  %v1201_v18 = vadd.f32 %v1200_v34, %v1199_v32  ;;  %v1729_v32 = vadd.f32 %v1256_v10, %v1192_v9 }
  0xf7   :  { %v1202_v36 = vpop.f32.mrf.mxu0  ;;  %v1265_v17 = vadd.f32 %v1264_v35, %v1263_v33 }
  0xf8   :  { %v1266_v37 = vpop.f32.mrf.mxu1 }
  0xf9   :  { %v1203_v38 = vpop.f32.mrf.mxu0 }
  0xfa   :  { %v1267_v39 = vpop.f32.mrf.mxu1  ;;  %v1204_v19 = vadd.f32 %v1203_v38, %v1202_v36  ;;  %v1731_v36 = vadd.f32 %v1265_v17, %v1201_v18 }
  0xfb   :  { %v1205_v40 = vpop.f32.mrf.mxu0  ;;  %v1268_v20 = vadd.f32 %v1267_v39, %v1266_v37 }
  0xfc   :  { %v1269_v41 = vpop.f32.mrf.mxu1 }
  0xfd   :  { %v1206_v42 = vpop.f32.mrf.mxu0  ;;  %v1733_v38 = vadd.f32 %v1268_v20, %v1204_v19  ;;  %v1021_v19 = vld [vmem:[%s1895_s4] sm:$0xff] }
  0xfe   :  { %v1270_v43 = vpop.f32.mrf.mxu1  ;;  %v1207_v21 = vadd.f32 %v1206_v42, %v1205_v40 }
  0xff   :  { %v1208_v44 = vpop.f32.mrf.mxu0  ;;  %v1271_v23 = vadd.f32 %v1270_v43, %v1269_v41 }
 0x100   :  { %v1272_v45 = vpop.f32.mrf.mxu1 }
 0x101   :  { %v1209_v46 = vpop.f32.mrf.mxu0  ;;  %v1735_v42 = vadd.f32 %v1271_v23, %v1207_v21 }
 0x102   :  { %v1273_v47 = vpop.f32.mrf.mxu1  ;;  %v1210_v34 = vadd.f32 %v1209_v46, %v1208_v44 }
 0x103   :  { %v1211_v48 = vpop.f32.mrf.mxu0  ;;  %v1274_v33 = vadd.f32 %v1273_v47, %v1272_v45  ;;  %v1740_v47 = vld [vmem:[%s1893_s2] ss:$0 sm:$0xff] }
 0x104   :  { %v1275_v49 = vpop.f32.mrf.mxu1 }
 0x105   :  { %v1212_v50 = vpop.f32.mrf.mxu0 }
 0x106   :  { %v1276_v51 = vpop.f32.mrf.mxu1  ;;  %v1213_v37 = vadd.f32 %v1212_v50, %v1211_v48 }
 0x107   :  { %v1214_v52 = vpop.f32.mrf.mxu0  ;;  %v1277_v39 = vadd.f32 %v1276_v51, %v1275_v49 }
 0x108   :  { %v1278_v53 = vpop.f32.mrf.mxu1 }
 0x109   :  { %v1215_v54 = vpop.f32.mrf.mxu0 }
 0x10a   :  { %v1279_v55 = vpop.f32.mrf.mxu1  ;;  %v1216_v40 = vadd.f32 %v1215_v54, %v1214_v52  ;;  %v1742_v52 = vadd.f32 %v1274_v33, %v1210_v34  ;;  %v1024_v34 = vld [vmem:[%s1895_s4 + $0x18] sm:$0xff] }
 0x10b   :  { %v1217_v56 = vpop.f32.mrf.mxu0  ;;  %v1280_v43 = vadd.f32 %v1279_v55, %v1278_v53  ;;  %v1747_v55 = vld [vmem:[%s1894_s3] ss:$0 sm:$0xff] }
 0x10c   :  { %v1281_v57 = vpop.f32.mrf.mxu1 }
 0x10d   :  { %v1218_v58 = vpop.f32.mrf.mxu0 }
 0x10e   :  { %v1282_v59 = vpop.f32.mrf.mxu1  ;;  %v1219_v26 = vadd.f32 %v1218_v58, %v1217_v56 }
 0x10f   :  { %v1220_v60 = vpop.f32.mrf.mxu0  ;;  %v1283_v25 = vadd.f32 %v1282_v59, %v1281_v57 }
 0x110   :  { %v1284_v61 = vpop.f32.mrf.mxu1 }
 0x111   :  { %v1221_v62 = vpop.f32.mrf.mxu0  ;;  %v805_v59 = vadd.f32 %v1283_v25, %v1219_v26  ;;  %v1029_v25 = vld [vmem:[%s1895_s4 + $0x40] sm:$0xff] }
 0x112   :  { %v1285_v63 = vpop.f32.mrf.mxu1  ;;  %v1222_v56 = vadd.f32 %v1221_v62, %v1220_v60  ;;  %v797_v62 = vadd.f32 %v1277_v39, %v1213_v37 }
 0x113   :  { %v1223_v0 = vpop.f32.mrf.mxu0  ;;  %v1286_v57 = vadd.f32 %v1285_v63, %v1284_v61 }
 0x114   :  { %v1287_v1 = vpop.f32.mrf.mxu1 }
 0x115   :  { %v1224_v2 = vpop.f32.mrf.mxu0 }
 0x116   :  { %v1288_v3 = vpop.f32.mrf.mxu1  ;;  %v1225_v7 = vadd.f32 %v1224_v2, %v1223_v0  ;;  %v808_v2 = vadd.f32 %v1286_v57, %v1222_v56 }
 0x117   :  { %v1226_v4 = vpop.f32.mrf.mxu0  ;;  %v1289_v8 = vadd.f32 %v1288_v3, %v1287_v1  ;;  %v800_v3 = vadd.f32 %v1280_v43, %v1216_v40 }
 0x118   :  { %v1290_v5 = vpop.f32.mrf.mxu1 }
 0x119   :  { %v1227_v6 = vpop.f32.mrf.mxu0  ;;  %v1754_v10 = vadd.f32 %v1289_v8, %v1225_v7  ;;  %v1022_v7 = vld [vmem:[%s1895_s4 + $0x8] sm:$0xff] }
 0x11a   :  { %v1291_v11 = vpop.f32.mrf.mxu1  ;;  %v1228_v44 = vadd.f32 %v1227_v6, %v1226_v4  ;;  %v1023_v4 = vld [vmem:[%s1895_s4 + $0x10] sm:$0xff] }
 0x11b   :  { %v1229_v16 = vpop.f32.mrf.mxu0  ;;  %v1292_v45 = vadd.f32 %v1291_v11, %v1290_v5 }
 0x11c   :  { %v1293_v22 = vpop.f32.mrf.mxu1 }
 0x11d   :  { %v1230_v24 = vpop.f32.mrf.mxu0  ;;  %v1756_v11 = vadd.f32 %v1292_v45, %v1228_v44 }
 0x11e   :  { %v1294_v27 = vpop.f32.mrf.mxu1  ;;  %v1231_v48 = vadd.f32 %v1230_v24, %v1229_v16 }
 0x11f   :  { %v1232_v28 = vpop.f32.mrf.mxu0  ;;  %v1295_v49 = vadd.f32 %v1294_v27, %v1293_v22 }
 0x120   :  { %v1296_v35 = vpop.f32.mrf.mxu1 }
 0x121   :  { %v1233_v41 = vpop.f32.mrf.mxu0  ;;  %v821_v18 = vadd.f32 %v1295_v49, %v1231_v48  ;;  %v1030_v49 = vld [vmem:[%s1895_s4 + $0x48] sm:$0xff] }
 0x122   :  { %v1297_v58 = vpop.f32.mrf.mxu1  ;;  %v1234_v53 = vadd.f32 %v1233_v41, %v1232_v28 }
 0x123   :  { %v1333_v46 = vpop.f32.mrf.mxu0  ;;  %v1298_v54 = vadd.f32 %v1297_v58, %v1296_v35 }
 0x124   :  { %v870_v50 = vadd.f32 %v1333_v46, %v773_v30  ;;  %v1341_v51 = vpop.f32.mrf.mxu1 }
 0x125   :  { %v902_v60 = vadd.f32 %v1341_v51, %v805_v59  ;;  %v861_v61 = vpop.f32.mrf.mxu0  ;;  %v1768_v23 = vadd.f32 %v1298_v54, %v1234_v53 }
 0x126   :  { %v984_v63 = vmul.f32 %v1740_v47, %v870_v50  ;;  %v862_v0 = vadd.f32 %v861_v61, %v765_v29  ;;  %v893_v1 = vpop.f32.mrf.mxu1 }
 0x127   :  { %v992_v5 = vmul.f32 %v1740_v47, %v902_v60  ;;  %v894_v6 = vadd.f32 %v893_v1, %v797_v62  ;;  %v1334_v9 = vpop.f32.mrf.mxu0 }
 0x128   :  { %v1007_v12 = vadd.f32 %v1747_v55, %v984_v63  ;;  %v982_v14 = vmul.f32 %v1740_v47, %v862_v0  ;;  %v873_v15 = vadd.f32 %v1334_v9, %v776_v31  ;;  %v1342_v16 = vpop.f32.mrf.mxu1 }
 0x129   :  { %v1015_v17 = vadd.f32 %v1747_v55, %v992_v5  ;;  %v990_v20 = vmul.f32 %v1740_v47, %v894_v6  ;;  %v905_v22 = vadd.f32 %v1342_v16, %v808_v2  ;;  %v864_v21 = vpop.f32.mrf.mxu0  ;;  %v1027_v5 = vld [vmem:[%s1895_s4 + $0x30] sm:$0xff] }
 0x12a   :  { %v1039_v24 = vadd.f32 %v1023_v4, %v1007_v12  ;;  %v1005_v26 = vadd.f32 %v1747_v55, %v982_v14  ;;  %v985_v27 = vmul.f32 %v1740_v47, %v873_v15  ;;  %v865_v28 = vadd.f32 %v864_v21, %v1729_v32  ;;  %v896_v30 = vpop.f32.mrf.mxu1  ;;  %v1032_v32 = vld [vmem:[%s1895_s4 + $0x58] sm:$0xff]  ;;  %v1035_v14 = vld [vmem:[%s1895_s4 + $0x70] sm:$0xff] }
 0x12b   :  { %v1047_v29 = vadd.f32 %v1031_v13, %v1015_v17  ;;  %v1013_v31 = vadd.f32 %v1747_v55, %v990_v20  ;;  %v993_v33 = vmul.f32 %v1740_v47, %v905_v22  ;;  %v897_v35 = vadd.f32 %v896_v30, %v800_v3  ;;  %v1337_v37 = vpop.f32.mrf.mxu0 }
 0x12c   :  { %v1055_v39 = vmax.f32 %v1039_v24, 0.0  ;;  %v1037_v40 = vadd.f32 %v1021_v19, %v1005_v26  ;;  %v1008_v41 = vadd.f32 %v1747_v55, %v985_v27  ;;  %v983_v43 = vmul.f32 %v1740_v47, %v865_v28  ;;  %v1345_v56 = vpop.f32.mrf.mxu1  ;;  %v1025_v19 = vld [vmem:[%s1895_s4 + $0x20] sm:$0xff]  ;;  %v1028_v28 = vld [vmem:[%s1895_s4 + $0x38] sm:$0xff] }
 0x12d   :  { %v1063_v57 = vmax.f32 %v1047_v29, 0.0  ;;  %v1045_v58 = vadd.f32 %v1029_v25, %v1013_v31  ;;  %v1016_v59 = vadd.f32 %v1747_v55, %v993_v33  ;;  %v991_v8 = vmul.f32 %v1740_v47, %v897_v35  ;;  %v877_v44 = vpop.f32.mrf.mxu0  ;;  %v1033_v24 = vld [vmem:[%s1895_s4 + $0x60] sm:$0xff] }
 0x12e   :  { %1071 = vst [vmem:[%s1896_s5 + $0x10] sm:$0xff] %v1055_v39  ;;  %v1053_v45 = vmax.f32 %v1037_v40, 0.0  ;;  %v1040_v46 = vadd.f32 %v1024_v34, %v1008_v41  ;;  %v1006_v48 = vadd.f32 %v1747_v55, %v983_v43  ;;  %v886_v50 = vadd.f32 %v1337_v37, %v1735_v42  ;;  %v909_v51 = vpop.f32.mrf.mxu1  ;;  %v1026_v41 = vld [vmem:[%s1895_s4 + $0x28] sm:$0xff] }
 0x12f   :  { %1079 = vst [vmem:[%s1896_s5 + $0x50] sm:$0xff] %v1063_v57  ;;  %v1061_v53 = vmax.f32 %v1045_v58, 0.0  ;;  %v1048_v54 = vadd.f32 %v1032_v32, %v1016_v59  ;;  %v1014_v60 = vadd.f32 %v1747_v55, %v991_v8  ;;  %v918_v61 = vadd.f32 %v1345_v56, %v821_v18  ;;  %v1338_v62 = vpop.f32.mrf.mxu0  ;;  %v1034_v57 = vld [vmem:[%s1895_s4 + $0x68] sm:$0xff] }
 0x130   :  { %1069 = vst [vmem:[%s1896_s5] sm:$0xff] %v1053_v45  ;;  %v1056_v63 = vmax.f32 %v1040_v46, 0.0  ;;  %v1038_v0 = vadd.f32 %v1022_v7, %v1006_v48  ;;  %v988_v1 = vmul.f32 %v1740_v47, %v886_v50  ;;  %v878_v42 = vadd.f32 %v877_v44, %v1731_v36  ;;  %v1346_v2 = vpop.f32.mrf.mxu1 }
 0x131   :  { %1077 = vst [vmem:[%s1896_s5 + $0x40] sm:$0xff] %v1061_v53  ;;  %v1064_v3 = vmax.f32 %v1048_v54, 0.0  ;;  %v1046_v4 = vadd.f32 %v1030_v49, %v1014_v60  ;;  %v996_v6 = vmul.f32 %v1740_v47, %v918_v61  ;;  %v910_v9 = vadd.f32 %v909_v51, %v1754_v10  ;;  %v880_v12 = vpop.f32.mrf.mxu0 }
 0x132   :  { %1072 = vst [vmem:[%s1896_s5 + $0x18] sm:$0xff] %v1056_v63  ;;  %v1054_v36 = vmax.f32 %v1038_v0, 0.0  ;;  %v1011_v13 = vadd.f32 %v1747_v55, %v988_v1  ;;  %v986_v15 = vmul.f32 %v1740_v47, %v878_v42  ;;  %v889_v16 = vadd.f32 %v1338_v62, %v1742_v52  ;;  %v912_v18 = vpop.f32.mrf.mxu1 }
 0x133   :  { %1080 = vst [vmem:[%s1896_s5 + $0x58] sm:$0xff] %v1064_v3  ;;  %v1062_v10 = vmax.f32 %v1046_v4, 0.0  ;;  %v1019_v17 = vadd.f32 %v1747_v55, %v996_v6  ;;  %v994_v20 = vmul.f32 %v1740_v47, %v910_v9  ;;  %v921_v22 = vadd.f32 %v1346_v2, %v1768_v23 }
 0x134   :  { %1070 = vst [vmem:[%s1896_s5 + $0x8] sm:$0xff] %v1054_v36  ;;  %v1043_v52 = vadd.f32 %v1027_v5, %v1011_v13  ;;  %v1009_v21 = vadd.f32 %v1747_v55, %v986_v15  ;;  %v989_v26 = vmul.f32 %v1740_v47, %v889_v16  ;;  %v881_v25 = vadd.f32 %v880_v12, %v1733_v38  ;;  %v1036_v38 = vld [vmem:[%s1895_s4 + $0x78] sm:$0xff] }
 0x135   :  { %1078 = vst [vmem:[%s1896_s5 + $0x48] sm:$0xff] %v1062_v10  ;;  %v1051_v23 = vadd.f32 %v1035_v14, %v1019_v17  ;;  %v1017_v27 = vadd.f32 %v1747_v55, %v994_v20  ;;  %v997_v30 = vmul.f32 %v1740_v47, %v921_v22  ;;  %v913_v29 = vadd.f32 %v912_v18, %v1756_v11 }
 0x136   :  { %v1059_v31 = vmax.f32 %v1043_v52, 0.0  ;;  %v1041_v34 = vadd.f32 %v1025_v19, %v1009_v21  ;;  %v1012_v33 = vadd.f32 %v1747_v55, %v989_v26  ;;  %v987_v35 = vmul.f32 %v1740_v47, %v881_v25 }
 0x137   :  { %v1067_v37 = vmax.f32 %v1051_v23, 0.0  ;;  %v1049_v39 = vadd.f32 %v1033_v24, %v1017_v27  ;;  %v1020_v40 = vadd.f32 %v1747_v55, %v997_v30  ;;  %v995_v11 = vmul.f32 %v1740_v47, %v913_v29 }
 0x138   :  { %1075 = vst [vmem:[%s1896_s5 + $0x30] sm:$0xff] %v1059_v31  ;;  %v1057_v32 = vmax.f32 %v1041_v34, 0.0  ;;  %v1044_v43 = vadd.f32 %v1028_v28, %v1012_v33  ;;  %v1010_v56 = vadd.f32 %v1747_v55, %v987_v35 }
 0x139   :  { %1083 = vst [vmem:[%s1896_s5 + $0x70] sm:$0xff] %v1067_v37  ;;  %v1065_v58 = vmax.f32 %v1049_v39, 0.0  ;;  %v1052_v59 = vadd.f32 %v1036_v38, %v1020_v40  ;;  %v1018_v47 = vadd.f32 %v1747_v55, %v995_v11 }
 0x13a   :  { %1073 = vst [vmem:[%s1896_s5 + $0x20] sm:$0xff] %v1057_v32  ;;  %v1060_v7 = vmax.f32 %v1044_v43, 0.0  ;;  %v1042_v8 = vadd.f32 %v1026_v41, %v1010_v56 }
 0x13b   :  { %1081 = vst [vmem:[%s1896_s5 + $0x60] sm:$0xff] %v1065_v58  ;;  %v1068_v44 = vmax.f32 %v1052_v59, 0.0  ;;  %v1050_v45 = vadd.f32 %v1034_v57, %v1018_v47 }
 0x13c   :  { %1076 = vst [vmem:[%s1896_s5 + $0x38] sm:$0xff] %v1060_v7  ;;  %v1058_v46 = vmax.f32 %v1042_v8, 0.0 }
 0x13d   :  { %1084 = vst [vmem:[%s1896_s5 + $0x78] sm:$0xff] %v1068_v44  ;;  %v1066_v55 = vmax.f32 %v1050_v45, 0.0 }
 0x13e   :  { %1074 = vst [vmem:[%s1896_s5 + $0x28] sm:$0xff] %v1058_v46 }
 0x13f   :  { %1082 = vst [vmem:[%s1896_s5 + $0x68] sm:$0xff] %v1066_v55 }

// kernel: supervised_net_forward.25
= control target key start
LH: loop header
LB: loop body
LE: loop exit
PB: predicated region body
PF: predicated region fallthrough
CT: control target
= control target key end

     0   :  { %s1791_s1 = inlined_call_operand.vmem [shape: bf16[640,128], index: 1, kind: input, shape index: {}]   ;;  %s1792_s0 = inlined_call_operand.vmem [shape: bf16[128,640], index: 0, kind: input, shape index: {}]   ;;  %s1793_s2 = inlined_call_operand.vmem [shape: f32[1,128], index: 2, kind: input, shape index: {}]   ;;  %s1794_s3 = inlined_call_operand.vmem [shape: f32[1,128], index: 3, kind: input, shape index: {}]   ;;  %s1795_s4 = inlined_call_operand.vmem [shape: f32[128,128], index: 4, kind: output, shape index: {}]  }
   0x1   :  { %v1328_v0 = vld [vmem:[%s1791_s1 + $0x78] sm:$0xff]   ;;  %v1332_v4 = vld [vmem:[%s1791_s1 + $0x70] sm:$0xff]   ;;  %v1336_v8 = vld [vmem:[%s1791_s1 + $0x68] sm:$0xff]  }
   0x2   :  { %v1329_v1 = vld [vmem:[%s1791_s1 + $0xf8] sm:$0xff]   ;;  %1136 = vmatprep.subr.bf16.mxu0 %v1328_v0  ;;  %v1333_v5 = vld [vmem:[%s1791_s1 + $0xf0] sm:$0xff]   ;;  %v1337_v9 = vld [vmem:[%s1791_s1 + $0xe8] sm:$0xff]  }
   0x3   :  { %v1330_v2 = vld [vmem:[%s1791_s1 + $0x38] sm:$0xff]   ;;  %1200 = vmatprep.subr.bf16.mxu1 %v1329_v1  ;;  %v1334_v6 = vld [vmem:[%s1791_s1 + $0x30] sm:$0xff]   ;;  %v1338_v10 = vld [vmem:[%s1791_s1 + $0x28] sm:$0xff]  }
   0x4   :  { %v1331_v3 = vld [vmem:[%s1791_s1 + $0xb8] sm:$0xff]   ;;  %1137 = vmatpush3.bf16.msra.mxu0 %v1330_v2  ;;  %v1335_v7 = vld [vmem:[%s1791_s1 + $0xb0] sm:$0xff]   ;;  %v1339_v11 = vld [vmem:[%s1791_s1 + $0xa8] sm:$0xff]  }
   0x5   :  { %1201 = vmatpush3.bf16.msra.mxu1 %v1331_v3  ;;  %1138 = vmatprep.subr.bf16.mxu0 %v1332_v4  ;;  %v1340_v12 = vld [vmem:[%s1791_s1 + $0x60] sm:$0xff]   ;;  %v1344_v16 = vld [vmem:[%s1791_s1 + $0x58] sm:$0xff]   ;;  %v1348_v20 = vld [vmem:[%s1791_s1 + $0x50] sm:$0xff]  }
   0x6   :  { %1202 = vmatprep.subr.bf16.mxu1 %v1333_v5  ;;  %v1341_v13 = vld [vmem:[%s1791_s1 + $0xe0] sm:$0xff]   ;;  %v1345_v17 = vld [vmem:[%s1791_s1 + $0xd8] sm:$0xff]   ;;  %v1349_v21 = vld [vmem:[%s1791_s1 + $0xd0] sm:$0xff]  }
   0x7   :  { %v1342_v14 = vld [vmem:[%s1791_s1 + $0x20] sm:$0xff]   ;;  %v1346_v18 = vld [vmem:[%s1791_s1 + $0x18] sm:$0xff]   ;;  %v1350_v22 = vld [vmem:[%s1791_s1 + $0x10] sm:$0xff]  }
   0x8   :  { %1139 = vmatpush3.bf16.msra.mxu0 %v1334_v6  ;;  %v1343_v15 = vld [vmem:[%s1791_s1 + $0xa0] sm:$0xff]   ;;  %v1347_v19 = vld [vmem:[%s1791_s1 + $0x98] sm:$0xff]   ;;  %v1351_v23 = vld [vmem:[%s1791_s1 + $0x90] sm:$0xff]  }
   0x9   :  { %1203 = vmatpush3.bf16.msra.mxu1 %v1335_v7  ;;  %1140 = vmatprep.subr.bf16.mxu0 %v1336_v8  ;;  %v1352_v24 = vld [vmem:[%s1791_s1 + $0x48] sm:$0xff]   ;;  %v1356_v28 = vld [vmem:[%s1791_s1 + $0x40] sm:$0xff]   ;;  %v1366_v36 = vld [vmem:[%s1791_s1 + $0x138] sm:$0xff]  }
   0xa   :  { %1204 = vmatprep.subr.bf16.mxu1 %v1337_v9  ;;  %v1353_v25 = vld [vmem:[%s1791_s1 + $0xc8] sm:$0xff]   ;;  %v1357_v29 = vld [vmem:[%s1791_s1 + $0xc0] sm:$0xff]   ;;  %v1373_v39 = vld [vmem:[%s1791_s1 + $0x130] sm:$0xff]  }
   0xb   :  { %v1354_v26 = vld [vmem:[%s1791_s1 + $0x8] sm:$0xff]   ;;  %v1358_v30 = vld [vmem:[%s1791_s1] sm:$0xff]   ;;  %v1376_v43 = vld [vmem:[%s1792_s0 + $0x5c] ss:$20 sps:$4 sm:$0xff]  }
   0xc   :  { %1141 = vmatpush3.bf16.msra.mxu0 %v1338_v10  ;;  %v1355_v27 = vld [vmem:[%s1791_s1 + $0x88] sm:$0xff]   ;;  %v1359_v31 = vld [vmem:[%s1791_s1 + $0x80] sm:$0xff]   ;;  %v1381_v48 = vld [vmem:[%s1792_s0 + $0x7c] ss:$20 sps:$4 sm:$0xff]  }
   0xd   :  { %1205 = vmatpush3.bf16.msra.mxu1 %v1339_v11  ;;  %1142 = vmatprep.subr.bf16.mxu0 %v1340_v12  ;;  %v1360_v32 = vld [vmem:[%s1792_s0] ss:$20 sps:$4 sm:$0xff]   ;;  %v1362_v33 = vld [vmem:[%s1792_s0 + $0x4] ss:$20 sps:$4 sm:$0xff]   ;;  %v1363_v34 = vld [vmem:[%s1792_s0 + $0x8] ss:$20 sps:$4 sm:$0xff]  }
   0xe   :  { %1206 = vmatprep.subr.bf16.mxu1 %v1341_v13  ;;  %v1365_v35 = vld [vmem:[%s1792_s0 + $0xc] ss:$20 sps:$4 sm:$0xff]   ;;  %662 = vmatprep.mubr.bf16.mxu0 %v1362_v33  ;;  %v1369_v38 = vld [vmem:[%s1792_s0 + $0x34] ss:$20 sps:$4 sm:$0xff]   ;;  %v1372_v41 = vld [vmem:[%s1792_s0 + $0x30] ss:$20 sps:$4 sm:$0xff]  }
   0xf   :  { %759 = vmatprep.mubr.bf16.mxu1 %v1365_v35  ;;  %v1367_v37 = vld [vmem:[%s1792_s0 + $0x2c] ss:$20 sps:$4 sm:$0xff]   ;;  %v1371_v40 = vld [vmem:[%s1792_s0 + $0x28] ss:$20 sps:$4 sm:$0xff]   ;;  %v1378_v46 = vld [vmem:[%s1792_s0 + $0x50] ss:$20 sps:$4 sm:$0xff]  }
  0x10   :  { %1143 = vmatpush3.bf16.msra.mxu0 %v1342_v14  ;;  %v1374_v42 = vld [vmem:[%s1792_s0 + $0x54] ss:$20 sps:$4 sm:$0xff]   ;;  %v1387_v45 = vld [vmem:[%s1791_s1 + $0x120] sm:$0xff]   ;;  %v1379_v47 = vld [vmem:[%s1792_s0 + $0x58] ss:$20 sps:$4 sm:$0xff]  }
  0x11   :  { %1207 = vmatpush3.bf16.msra.mxu1 %v1343_v15  ;;  %1144 = vmatprep.subr.bf16.mxu0 %v1344_v16  ;;  %v1380_v44 = vld [vmem:[%s1791_s1 + $0x128] sm:$0xff]   ;;  %v1383_v49 = vld [vmem:[%s1792_s0 + $0x84] ss:$20 sps:$4 sm:$0xff]   ;;  %v1401_v51 = vld [vmem:[%s1791_s1 + $0x110] sm:$0xff]  }
  0x12   :  { %1208 = vmatprep.subr.bf16.mxu1 %v1345_v17  ;;  %v1394_v50 = vld [vmem:[%s1791_s1 + $0x118] sm:$0xff]   ;;  %v1386_v53 = vld [vmem:[%s1792_s0 + $0x80] ss:$20 sps:$4 sm:$0xff]   ;;  %v1408_v55 = vld [vmem:[%s1791_s1 + $0x108] sm:$0xff]  }
  0x13   :  { %v1385_v52 = vld [vmem:[%s1792_s0 + $0x78] ss:$20 sps:$4 sm:$0xff]   ;;  %v1415_v57 = vld [vmem:[%s1791_s1 + $0x100] sm:$0xff]   ;;  %v1393_v59 = vld [vmem:[%s1792_s0 + $0xa8] ss:$20 sps:$4 sm:$0xff]  }
  0x14   :  { %1145 = vmatpush3.bf16.msra.mxu0 %v1346_v18  ;;  %v1388_v54 = vld [vmem:[%s1792_s0 + $0xa4] ss:$20 sps:$4 sm:$0xff]   ;;  %v1390_v56 = vld [vmem:[%s1792_s0 + $0xac] ss:$20 sps:$4 sm:$0xff]   ;;  %v1397_v61 = vld [vmem:[%s1792_s0 + $0xd4] ss:$20 sps:$4 sm:$0xff]  }
  0x15   :  { %1209 = vmatpush3.bf16.msra.mxu1 %v1347_v19  ;;  %1146 = vmatprep.subr.bf16.mxu0 %v1348_v20  ;;  %v1392_v58 = vld [vmem:[%s1792_s0 + $0xa0] ss:$20 sps:$4 sm:$0xff]   ;;  %v1399_v62 = vld [vmem:[%s1792_s0 + $0xc8] ss:$20 sps:$4 sm:$0xff]   ;;  %v1400_v63 = vld [vmem:[%s1792_s0 + $0xd0] ss:$20 sps:$4 sm:$0xff]  }
  0x16   :  { %1210 = vmatprep.subr.bf16.mxu1 %v1349_v21  ;;  %v1395_v60 = vld [vmem:[%s1792_s0 + $0xcc] ss:$20 sps:$4 sm:$0xff]   ;;  %v1402_v0 = vld [vmem:[%s1792_s0 + $0xf4] ss:$20 sps:$4 sm:$0xff]   ;;  %v1404_v1 = vld [vmem:[%s1792_s0 + $0xfc] ss:$20 sps:$4 sm:$0xff]  }
  0x17   :  { %v1406_v2 = vld [vmem:[%s1792_s0 + $0xf0] ss:$20 sps:$4 sm:$0xff]   ;;  %v1407_v3 = vld [vmem:[%s1792_s0 + $0xf8] ss:$20 sps:$4 sm:$0xff]   ;;  %v1414_v7 = vld [vmem:[%s1792_s0 + $0x120] ss:$20 sps:$4 sm:$0xff]  }
  0x18   :  { %1147 = vmatpush3.bf16.msra.mxu0 %v1350_v22  ;;  %v1409_v4 = vld [vmem:[%s1792_s0 + $0x11c] ss:$20 sps:$4 sm:$0xff]   ;;  %v1411_v5 = vld [vmem:[%s1792_s0 + $0x124] ss:$20 sps:$4 sm:$0xff]   ;;  %v1420_v12 = vld [vmem:[%s1792_s0 + $0x60] ss:$20 sps:$4 sm:$0xff]  }
  0x19   :  { %1211 = vmatpush3.bf16.msra.mxu1 %v1351_v23  ;;  %1148 = vmatprep.subr.bf16.mxu0 %v1352_v24  ;;  %v1413_v6 = vld [vmem:[%s1792_s0 + $0x118] ss:$20 sps:$4 sm:$0xff]   ;;  %v1416_v8 = vld [vmem:[%s1792_s0 + $0x10] ss:$20 sps:$4 sm:$0xff]   ;;  %v1421_v13 = vld [vmem:[%s1792_s0 + $0x100] ss:$20 sps:$4 sm:$0xff]  }
  0x1a   :  { %1212 = vmatprep.subr.bf16.mxu1 %v1353_v25  ;;  %v1417_v9 = vld [vmem:[%s1792_s0 + $0xb0] ss:$20 sps:$4 sm:$0xff]   ;;  %v1418_v10 = vld [vmem:[%s1792_s0 + $0x38] ss:$20 sps:$4 sm:$0xff]   ;;  %v1422_v14 = vld [vmem:[%s1792_s0 + $0x88] ss:$20 sps:$4 sm:$0xff]  }
  0x1b   :  { %v1419_v11 = vld [vmem:[%s1792_s0 + $0xd8] ss:$20 sps:$4 sm:$0xff]   ;;  %v1423_v15 = vld [vmem:[%s1792_s0 + $0x128] ss:$20 sps:$4 sm:$0xff]  }
  0x1c   :  { %1149 = vmatpush3.bf16.msra.mxu0 %v1354_v26 }
  0x1d   :  { %1213 = vmatpush3.bf16.msra.mxu1 %v1355_v27  ;;  %1150 = vmatprep.subr.bf16.mxu0 %v1356_v28 }
  0x1e   :  { %1214 = vmatprep.subr.bf16.mxu1 %v1357_v29 }
  0x20   :  { %1151 = vmatpush3.bf16.msra.mxu0 %v1358_v30 }
  0x21   :  { %1215 = vmatpush3.bf16.msra.mxu1 %v1359_v31  ;;  %1280 = vmatprep.subr.bf16.mxu0 %v1366_v36 }
  0x22   :  { %1312 = vmatprep.subr.bf16.mxu1 %v1366_v36 }
  0x23   :  { %663 = vmatmul.mubr.bf16.vlgmr.msra.gmra.mxu0 %v1360_v32 }
  0x24   :  { %760 = vmatmul.mubr.bf16.vlgmr.msra.gmra.mxu1 %v1363_v34  ;;  %1281 = vmatpush3.bf16.msra.mxu0 %v1366_v36 }
  0x25   :  { %1320 = vmatpush3.bf16.msra.mxu1 %v1366_v36  ;;  %670 = vmatprep.mubr.bf16.mxu0 %v1367_v37 }
  0x26   :  { %767 = vmatprep.mubr.bf16.mxu1 %v1369_v38  ;;  %1282 = vmatprep.subr.bf16.mxu0 %v1373_v39 }
  0x27   :  { %1313 = vmatprep.subr.bf16.mxu1 %v1373_v39 }
  0x28   :  { %1283 = vmatpush3.bf16.msra.mxu0 %v1373_v39 }
  0x29   :  { %1321 = vmatpush3.bf16.msra.mxu1 %v1373_v39  ;;  %1284 = vmatprep.subr.bf16.mxu0 %v1380_v44 }
  0x2a   :  { %1314 = vmatprep.subr.bf16.mxu1 %v1380_v44 }
  0x2b   :  { %671 = vmatmul.mubr.bf16.gmra.mxu0 %v1371_v40 }
  0x2c   :  { %768 = vmatmul.mubr.bf16.gmra.mxu1 %v1372_v41  ;;  %678 = vmatprep.mubr.bf16.mxu0 %v1374_v42 }
  0x2d   :  { %775 = vmatprep.mubr.bf16.mxu1 %v1376_v43  ;;  %1285 = vmatpush3.bf16.msra.mxu0 %v1380_v44 }
  0x2e   :  { %1322 = vmatpush3.bf16.msra.mxu1 %v1380_v44  ;;  %1286 = vmatprep.subr.bf16.mxu0 %v1387_v45 }
  0x2f   :  { %1315 = vmatprep.subr.bf16.mxu1 %v1387_v45 }
  0x31   :  { %1287 = vmatpush3.bf16.msra.mxu0 %v1387_v45 }
  0x32   :  { %1323 = vmatpush3.bf16.msra.mxu1 %v1387_v45  ;;  %1288 = vmatprep.subr.bf16.mxu0 %v1394_v50 }
  0x33   :  { %679 = vmatmul.mubr.bf16.gmra.mxu0 %v1378_v46  ;;  %1316 = vmatprep.subr.bf16.mxu1 %v1394_v50 }
  0x34   :  { %776 = vmatmul.mubr.bf16.gmra.mxu1 %v1379_v47  ;;  %686 = vmatprep.mubr.bf16.mxu0 %v1381_v48 }
  0x35   :  { %783 = vmatprep.mubr.bf16.mxu1 %v1383_v49  ;;  %1289 = vmatpush3.bf16.msra.mxu0 %v1394_v50 }
  0x36   :  { %1324 = vmatpush3.bf16.msra.mxu1 %v1394_v50  ;;  %1290 = vmatprep.subr.bf16.mxu0 %v1401_v51 }
  0x37   :  { %1317 = vmatprep.subr.bf16.mxu1 %v1401_v51 }
  0x39   :  { %1291 = vmatpush3.bf16.msra.mxu0 %v1401_v51 }
  0x3a   :  { %1325 = vmatpush3.bf16.msra.mxu1 %v1401_v51  ;;  %1292 = vmatprep.subr.bf16.mxu0 %v1408_v55 }
  0x3b   :  { %687 = vmatmul.mubr.bf16.gmra.mxu0 %v1385_v52  ;;  %1318 = vmatprep.subr.bf16.mxu1 %v1408_v55 }
  0x3c   :  { %784 = vmatmul.mubr.bf16.gmra.mxu1 %v1386_v53  ;;  %694 = vmatprep.mubr.bf16.mxu0 %v1388_v54 }
  0x3d   :  { %791 = vmatprep.mubr.bf16.mxu1 %v1390_v56  ;;  %1293 = vmatpush3.bf16.msra.mxu0 %v1408_v55 }
  0x3e   :  { %1326 = vmatpush3.bf16.msra.mxu1 %v1408_v55  ;;  %1294 = vmatprep.subr.bf16.mxu0 %v1415_v57 }
  0x3f   :  { %1319 = vmatprep.subr.bf16.mxu1 %v1415_v57 }
  0x41   :  { %1295 = vmatpush3.bf16.msra.mxu0 %v1415_v57 }
  0x42   :  { %1327 = vmatpush3.bf16.msra.mxu1 %v1415_v57 }
  0x43   :  { %695 = vmatmul.mubr.bf16.gmra.mxu0 %v1392_v58 }
  0x44   :  { %792 = vmatmul.mubr.bf16.gmra.mxu1 %v1393_v59  ;;  %702 = vmatprep.mubr.bf16.mxu0 %v1395_v60 }
  0x45   :  { %799 = vmatprep.mubr.bf16.mxu1 %v1397_v61 }
  0x4b   :  { %703 = vmatmul.mubr.bf16.gmra.mxu0 %v1399_v62 }
  0x4c   :  { %800 = vmatmul.mubr.bf16.gmra.mxu1 %v1400_v63  ;;  %710 = vmatprep.mubr.bf16.mxu0 %v1402_v0 }
  0x4d   :  { %807 = vmatprep.mubr.bf16.mxu1 %v1404_v1 }
  0x53   :  { %711 = vmatmul.mubr.bf16.gmra.mxu0 %v1406_v2 }
  0x54   :  { %808 = vmatmul.mubr.bf16.gmra.mxu1 %v1407_v3  ;;  %718 = vmatprep.mubr.bf16.mxu0 %v1409_v4 }
  0x55   :  { %815 = vmatprep.mubr.bf16.mxu1 %v1411_v5 }
  0x5b   :  { %719 = vmatmul.mubr.bf16.gmra.mxu0 %v1413_v6 }
  0x5c   :  { %816 = vmatmul.mubr.bf16.gmra.mxu1 %v1414_v7  ;;  %1296 = vmatprep.mubr.bf16.mxu0 %v1416_v8 }
  0x5d   :  { %1304 = vmatprep.mubr.bf16.mxu1 %v1417_v9 }
  0x63   :  { %1297 = vmatmul.mubr.bf16.vlgmr.msra.gmra.mxu0 %v1418_v10 }
  0x64   :  { %1305 = vmatmul.mubr.bf16.vlgmr.msra.gmra.mxu1 %v1419_v11  ;;  %1300 = vmatprep.mubr.bf16.mxu0 %v1420_v12 }
  0x65   :  { %1308 = vmatprep.mubr.bf16.mxu1 %v1421_v13 }
  0x6b   :  { %1301 = vmatmul.mubr.bf16.gmra.mxu0 %v1422_v14 }
  0x6c   :  { %1309 = vmatmul.mubr.bf16.gmra.mxu1 %v1423_v15 }
  0xe3   :  { %v1152_v16 = vpop.f32.mrf.mxu0 }
  0xe4   :  { %v1216_v17 = vpop.f32.mrf.mxu1 }
  0xe5   :  { %v1153_v18 = vpop.f32.mrf.mxu0 }
  0xe6   :  { %v1217_v19 = vpop.f32.mrf.mxu1  ;;  %v1154_v7 = vadd.f32 %v1153_v18, %v1152_v16 }
  0xe7   :  { %v1155_v20 = vpop.f32.mrf.mxu0  ;;  %v1218_v8 = vadd.f32 %v1217_v19, %v1216_v17 }
  0xe8   :  { %v1219_v21 = vpop.f32.mrf.mxu1 }
  0xe9   :  { %v1156_v22 = vpop.f32.mrf.mxu0 }
  0xea   :  { %v1220_v23 = vpop.f32.mrf.mxu1  ;;  %v1157_v9 = vadd.f32 %v1156_v22, %v1155_v20 }
  0xeb   :  { %v1158_v24 = vpop.f32.mrf.mxu0  ;;  %v1221_v10 = vadd.f32 %v1220_v23, %v1219_v21 }
  0xec   :  { %v1222_v25 = vpop.f32.mrf.mxu1 }
  0xed   :  { %v1159_v26 = vpop.f32.mrf.mxu0 }
  0xee   :  { %v1223_v27 = vpop.f32.mrf.mxu1  ;;  %v1160_v12 = vadd.f32 %v1159_v26, %v1158_v24 }
  0xef   :  { %v1161_v28 = vpop.f32.mrf.mxu0  ;;  %v1224_v13 = vadd.f32 %v1223_v27, %v1222_v25 }
  0xf0   :  { %v1225_v29 = vpop.f32.mrf.mxu1 }
  0xf1   :  { %v1162_v30 = vpop.f32.mrf.mxu0 }
  0xf2   :  { %v1226_v31 = vpop.f32.mrf.mxu1  ;;  %v1163_v14 = vadd.f32 %v1162_v30, %v1161_v28  ;;  %v770_v30 = vadd.f32 %v1224_v13, %v1160_v12 }
  0xf3   :  { %v1164_v32 = vpop.f32.mrf.mxu0  ;;  %v1227_v15 = vadd.f32 %v1226_v31, %v1225_v29  ;;  %v762_v29 = vadd.f32 %v1218_v8, %v1154_v7 }
  0xf4   :  { %v1228_v33 = vpop.f32.mrf.mxu1 }
  0xf5   :  { %v1165_v34 = vpop.f32.mrf.mxu0  ;;  %v773_v31 = vadd.f32 %v1227_v15, %v1163_v14 }
  0xf6   :  { %v1229_v35 = vpop.f32.mrf.mxu1  ;;  %v1166_v18 = vadd.f32 %v1165_v34, %v1164_v32  ;;  %v765_v32 = vadd.f32 %v1221_v10, %v1157_v9 }
  0xf7   :  { %v1167_v36 = vpop.f32.mrf.mxu0  ;;  %v1230_v17 = vadd.f32 %v1229_v35, %v1228_v33 }
  0xf8   :  { %v1231_v37 = vpop.f32.mrf.mxu1 }
  0xf9   :  { %v1168_v38 = vpop.f32.mrf.mxu0 }
  0xfa   :  { %v1232_v39 = vpop.f32.mrf.mxu1  ;;  %v1169_v19 = vadd.f32 %v1168_v38, %v1167_v36  ;;  %v1689_v36 = vadd.f32 %v1230_v17, %v1166_v18 }
  0xfb   :  { %v1170_v40 = vpop.f32.mrf.mxu0  ;;  %v1233_v20 = vadd.f32 %v1232_v39, %v1231_v37 }
  0xfc   :  { %v1234_v41 = vpop.f32.mrf.mxu1 }
  0xfd   :  { %v1171_v42 = vpop.f32.mrf.mxu0  ;;  %v1691_v38 = vadd.f32 %v1233_v20, %v1169_v19 }
  0xfe   :  { %v1235_v43 = vpop.f32.mrf.mxu1  ;;  %v1172_v21 = vadd.f32 %v1171_v42, %v1170_v40 }
  0xff   :  { %v1173_v44 = vpop.f32.mrf.mxu0  ;;  %v1236_v23 = vadd.f32 %v1235_v43, %v1234_v41 }
 0x100   :  { %v1237_v45 = vpop.f32.mrf.mxu1 }
 0x101   :  { %v1174_v46 = vpop.f32.mrf.mxu0  ;;  %v786_v42 = vadd.f32 %v1236_v23, %v1172_v21 }
 0x102   :  { %v1238_v47 = vpop.f32.mrf.mxu1  ;;  %v1175_v34 = vadd.f32 %v1174_v46, %v1173_v44  ;;  %v1696_v46 = vld [vmem:[%s1793_s2] ss:$0 sm:$0xff] }
 0x103   :  { %v1176_v48 = vpop.f32.mrf.mxu0  ;;  %v1239_v33 = vadd.f32 %v1238_v47, %v1237_v45 }
 0x104   :  { %v1240_v49 = vpop.f32.mrf.mxu1 }
 0x105   :  { %v1177_v50 = vpop.f32.mrf.mxu0 }
 0x106   :  { %v1241_v51 = vpop.f32.mrf.mxu1  ;;  %v1178_v37 = vadd.f32 %v1177_v50, %v1176_v48 }
 0x107   :  { %v1179_v52 = vpop.f32.mrf.mxu0  ;;  %v1242_v39 = vadd.f32 %v1241_v51, %v1240_v49  ;;  %v1698_v51 = vadd.f32 %v1239_v33, %v1175_v34 }
 0x108   :  { %v1243_v53 = vpop.f32.mrf.mxu1 }
 0x109   :  { %v1180_v54 = vpop.f32.mrf.mxu0 }
 0x10a   :  { %v1244_v55 = vpop.f32.mrf.mxu1  ;;  %v1181_v40 = vadd.f32 %v1180_v54, %v1179_v52  ;;  %v1703_v54 = vld [vmem:[%s1794_s3] ss:$0 sm:$0xff] }
 0x10b   :  { %v1182_v56 = vpop.f32.mrf.mxu0  ;;  %v1245_v43 = vadd.f32 %v1244_v55, %v1243_v53 }
 0x10c   :  { %v1246_v57 = vpop.f32.mrf.mxu1 }
 0x10d   :  { %v1183_v58 = vpop.f32.mrf.mxu0 }
 0x10e   :  { %v1247_v59 = vpop.f32.mrf.mxu1  ;;  %v1184_v26 = vadd.f32 %v1183_v58, %v1182_v56 }
 0x10f   :  { %v1185_v60 = vpop.f32.mrf.mxu0  ;;  %v1248_v25 = vadd.f32 %v1247_v59, %v1246_v57 }
 0x110   :  { %v1249_v61 = vpop.f32.mrf.mxu1 }
 0x111   :  { %v1186_v62 = vpop.f32.mrf.mxu0  ;;  %v802_v59 = vadd.f32 %v1248_v25, %v1184_v26 }
 0x112   :  { %v1250_v63 = vpop.f32.mrf.mxu1  ;;  %v1187_v56 = vadd.f32 %v1186_v62, %v1185_v60 }
 0x113   :  { %v1188_v0 = vpop.f32.mrf.mxu0  ;;  %v1251_v57 = vadd.f32 %v1250_v63, %v1249_v61  ;;  %v794_v61 = vadd.f32 %v1242_v39, %v1178_v37 }
 0x114   :  { %v1252_v1 = vpop.f32.mrf.mxu1 }
 0x115   :  { %v1189_v2 = vpop.f32.mrf.mxu0 }
 0x116   :  { %v1253_v3 = vpop.f32.mrf.mxu1  ;;  %v1190_v7 = vadd.f32 %v1189_v2, %v1188_v0  ;;  %v797_v2 = vadd.f32 %v1245_v43, %v1181_v40 }
 0x117   :  { %v1191_v4 = vpop.f32.mrf.mxu0  ;;  %v1254_v8 = vadd.f32 %v1253_v3, %v1252_v1  ;;  %v805_v1 = vadd.f32 %v1251_v57, %v1187_v56 }
 0x118   :  { %v1255_v5 = vpop.f32.mrf.mxu1 }
 0x119   :  { %v1192_v6 = vpop.f32.mrf.mxu0 }
 0x11a   :  { %v1256_v11 = vpop.f32.mrf.mxu1  ;;  %v1193_v9 = vadd.f32 %v1192_v6, %v1191_v4  ;;  %v810_v6 = vadd.f32 %v1254_v8, %v1190_v7 }
 0x11b   :  { %v1194_v16 = vpop.f32.mrf.mxu0  ;;  %v1257_v44 = vadd.f32 %v1256_v11, %v1255_v5 }
 0x11c   :  { %v1258_v22 = vpop.f32.mrf.mxu1 }
 0x11d   :  { %v1195_v24 = vpop.f32.mrf.mxu0  ;;  %v1707_v10 = vadd.f32 %v1257_v44, %v1193_v9 }
 0x11e   :  { %v1259_v27 = vpop.f32.mrf.mxu1  ;;  %v1196_v47 = vadd.f32 %v1195_v24, %v1194_v16 }
 0x11f   :  { %v1197_v28 = vpop.f32.mrf.mxu0  ;;  %v1260_v48 = vadd.f32 %v1259_v27, %v1258_v22 }
 0x120   :  { %v1261_v35 = vpop.f32.mrf.mxu1 }
 0x121   :  { %v1198_v41 = vpop.f32.mrf.mxu0  ;;  %v818_v15 = vadd.f32 %v1260_v48, %v1196_v47 }
 0x122   :  { %v1262_v58 = vpop.f32.mrf.mxu1  ;;  %v1199_v52 = vadd.f32 %v1198_v41, %v1197_v28 }
 0x123   :  { %v1298_v45 = vpop.f32.mrf.mxu0  ;;  %v1263_v53 = vadd.f32 %v1262_v58, %v1261_v35 }
 0x124   :  { %v867_v49 = vadd.f32 %v1298_v45, %v770_v30  ;;  %v1306_v50 = vpop.f32.mrf.mxu1 }
 0x125   :  { %v899_v55 = vadd.f32 %v1306_v50, %v802_v59  ;;  %v858_v60 = vpop.f32.mrf.mxu0  ;;  %v821_v20 = vadd.f32 %v1263_v53, %v1199_v52 }
 0x126   :  { %v981_v62 = vmul.f32 %v1696_v46, %v867_v49  ;;  %v859_v63 = vadd.f32 %v858_v60, %v762_v29  ;;  %v890_v0 = vpop.f32.mrf.mxu1 }
 0x127   :  { %v989_v3 = vmul.f32 %v1696_v46, %v899_v55  ;;  %v891_v4 = vadd.f32 %v890_v0, %v794_v61  ;;  %v1299_v5 = vpop.f32.mrf.mxu0 }
 0x128   :  { %v1004_v11 = vadd.f32 %v1703_v54, %v981_v62  ;;  %v979_v12 = vmul.f32 %v1696_v46, %v859_v63  ;;  %v870_v13 = vadd.f32 %v1299_v5, %v773_v31  ;;  %v1307_v14 = vpop.f32.mrf.mxu1 }
 0x129   :  { %v1012_v16 = vadd.f32 %v1703_v54, %v989_v3  ;;  %v987_v18 = vmul.f32 %v1696_v46, %v891_v4  ;;  %v902_v17 = vadd.f32 %v1307_v14, %v805_v1  ;;  %v861_v19 = vpop.f32.mrf.mxu0 }
 0x12a   :  { %v1020_v22 = vmax.f32 %v1004_v11, 0.0  ;;  %v1002_v21 = vadd.f32 %v1703_v54, %v979_v12  ;;  %v982_v23 = vmul.f32 %v1696_v46, %v870_v13  ;;  %v862_v24 = vadd.f32 %v861_v19, %v765_v32  ;;  %v893_v26 = vpop.f32.mrf.mxu1 }
 0x12b   :  { %v1028_v25 = vmax.f32 %v1012_v16, 0.0  ;;  %v1010_v27 = vadd.f32 %v1703_v54, %v987_v18  ;;  %v990_v28 = vmul.f32 %v1696_v46, %v902_v17  ;;  %v894_v30 = vadd.f32 %v893_v26, %v797_v2  ;;  %v1302_v29 = vpop.f32.mrf.mxu0 }
 0x12c   :  { %1036 = vst [vmem:[%s1795_s4 + $0x10] sm:$0xff] %v1020_v22  ;;  %v1018_v31 = vmax.f32 %v1002_v21, 0.0  ;;  %v1005_v34 = vadd.f32 %v1703_v54, %v982_v23  ;;  %v980_v33 = vmul.f32 %v1696_v46, %v862_v24  ;;  %v883_v35 = vadd.f32 %v1302_v29, %v786_v42  ;;  %v1310_v37 = vpop.f32.mrf.mxu1 }
 0x12d   :  { %1044 = vst [vmem:[%s1795_s4 + $0x50] sm:$0xff] %v1028_v25  ;;  %v1026_v32 = vmax.f32 %v1010_v27, 0.0  ;;  %v1013_v39 = vadd.f32 %v1703_v54, %v990_v28  ;;  %v988_v40 = vmul.f32 %v1696_v46, %v894_v30  ;;  %v915_v41 = vadd.f32 %v1310_v37, %v818_v15  ;;  %v874_v43 = vpop.f32.mrf.mxu0 }
 0x12e   :  { %1034 = vst [vmem:[%s1795_s4] sm:$0xff] %v1018_v31  ;;  %v1021_v56 = vmax.f32 %v1005_v34, 0.0  ;;  %v1003_v57 = vadd.f32 %v1703_v54, %v980_v33  ;;  %v985_v42 = vmul.f32 %v1696_v46, %v883_v35  ;;  %v875_v58 = vadd.f32 %v874_v43, %v1689_v36  ;;  %v906_v59 = vpop.f32.mrf.mxu1 }
 0x12f   :  { %1042 = vst [vmem:[%s1795_s4 + $0x40] sm:$0xff] %v1026_v32  ;;  %v1029_v7 = vmax.f32 %v1013_v39, 0.0  ;;  %v1011_v8 = vadd.f32 %v1703_v54, %v988_v40  ;;  %v993_v9 = vmul.f32 %v1696_v46, %v915_v41  ;;  %v907_v44 = vadd.f32 %v906_v59, %v810_v6  ;;  %v1303_v45 = vpop.f32.mrf.mxu0 }
 0x130   :  { %1037 = vst [vmem:[%s1795_s4 + $0x18] sm:$0xff] %v1021_v56  ;;  %v1019_v47 = vmax.f32 %v1003_v57, 0.0  ;;  %v1008_v48 = vadd.f32 %v1703_v54, %v985_v42  ;;  %v983_v36 = vmul.f32 %v1696_v46, %v875_v58  ;;  %v886_v49 = vadd.f32 %v1303_v45, %v1698_v51  ;;  %v1311_v50 = vpop.f32.mrf.mxu1 }
 0x131   :  { %1045 = vst [vmem:[%s1795_s4 + $0x58] sm:$0xff] %v1029_v7  ;;  %v1027_v52 = vmax.f32 %v1011_v8, 0.0  ;;  %v1016_v53 = vadd.f32 %v1703_v54, %v993_v9  ;;  %v991_v55 = vmul.f32 %v1696_v46, %v907_v44  ;;  %v918_v60 = vadd.f32 %v1311_v50, %v821_v20  ;;  %v877_v61 = vpop.f32.mrf.mxu0 }
 0x132   :  { %1035 = vst [vmem:[%s1795_s4 + $0x8] sm:$0xff] %v1019_v47  ;;  %v1024_v62 = vmax.f32 %v1008_v48, 0.0  ;;  %v1006_v63 = vadd.f32 %v1703_v54, %v983_v36  ;;  %v986_v51 = vmul.f32 %v1696_v46, %v886_v49  ;;  %v878_v0 = vadd.f32 %v877_v61, %v1691_v38  ;;  %v909_v1 = vpop.f32.mrf.mxu1 }
 0x133   :  { %1043 = vst [vmem:[%s1795_s4 + $0x48] sm:$0xff] %v1027_v52  ;;  %v1032_v2 = vmax.f32 %v1016_v53, 0.0  ;;  %v1014_v3 = vadd.f32 %v1703_v54, %v991_v55  ;;  %v994_v4 = vmul.f32 %v1696_v46, %v918_v60  ;;  %v910_v5 = vadd.f32 %v909_v1, %v1707_v10 }
 0x134   :  { %1040 = vst [vmem:[%s1795_s4 + $0x30] sm:$0xff] %v1024_v62  ;;  %v1022_v6 = vmax.f32 %v1006_v63, 0.0  ;;  %v1009_v11 = vadd.f32 %v1703_v54, %v986_v51  ;;  %v984_v38 = vmul.f32 %v1696_v46, %v878_v0 }
 0x135   :  { %1048 = vst [vmem:[%s1795_s4 + $0x70] sm:$0xff] %v1032_v2  ;;  %v1030_v12 = vmax.f32 %v1014_v3, 0.0  ;;  %v1017_v13 = vadd.f32 %v1703_v54, %v994_v4  ;;  %v992_v14 = vmul.f32 %v1696_v46, %v910_v5 }
 0x136   :  { %1038 = vst [vmem:[%s1795_s4 + $0x20] sm:$0xff] %v1022_v6  ;;  %v1025_v10 = vmax.f32 %v1009_v11, 0.0  ;;  %v1007_v15 = vadd.f32 %v1703_v54, %v984_v38 }
 0x137   :  { %1046 = vst [vmem:[%s1795_s4 + $0x60] sm:$0xff] %v1030_v12  ;;  %v1033_v16 = vmax.f32 %v1017_v13, 0.0  ;;  %v1015_v18 = vadd.f32 %v1703_v54, %v992_v14 }
 0x138   :  { %1041 = vst [vmem:[%s1795_s4 + $0x38] sm:$0xff] %v1025_v10  ;;  %v1023_v17 = vmax.f32 %v1007_v15, 0.0 }
 0x139   :  { %1049 = vst [vmem:[%s1795_s4 + $0x78] sm:$0xff] %v1033_v16  ;;  %v1031_v46 = vmax.f32 %v1015_v18, 0.0 }
 0x13a   :  { %1039 = vst [vmem:[%s1795_s4 + $0x28] sm:$0xff] %v1023_v17 }
 0x13b   :  { %1047 = vst [vmem:[%s1795_s4 + $0x68] sm:$0xff] %v1031_v46 }

// kernel: supervised_net_forward.30
= control target key start
LH: loop header
LB: loop body
LE: loop exit
PB: predicated region body
PF: predicated region fallthrough
CT: control target
= control target key end

     0   :  { %s995_s1 = inlined_call_operand.vmem [shape: bf16[640,128], index: 1, kind: input, shape index: {}]   ;;  %s996_s0 = inlined_call_operand.vmem [shape: bf16[32,640], index: 0, kind: input, shape index: {}]   ;;  %s997_s2 = inlined_call_operand.vmem [shape: f32[1,128], index: 2, kind: input, shape index: {}]   ;;  %s998_s3 = inlined_call_operand.vmem [shape: f32[1,128], index: 3, kind: input, shape index: {}]   ;;  %s999_s4 = inlined_call_operand.vmem [shape: f32[32,128], index: 4, kind: output, shape index: {}]  }
   0x1   :  { %v748_v0 = vld [vmem:[%s995_s1 + $0x78] sm:$0xff]   ;;  %v752_v4 = vld [vmem:[%s995_s1 + $0x70] sm:$0xff]   ;;  %v756_v8 = vld [vmem:[%s995_s1 + $0x68] sm:$0xff]  }
   0x2   :  { %v749_v1 = vld [vmem:[%s995_s1 + $0xf8] sm:$0xff]   ;;  %662 = vmatprep.subr.bf16.mxu0 %v748_v0  ;;  %v753_v5 = vld [vmem:[%s995_s1 + $0xf0] sm:$0xff]   ;;  %v757_v9 = vld [vmem:[%s995_s1 + $0xe8] sm:$0xff]  }
   0x3   :  { %v750_v2 = vld [vmem:[%s995_s1 + $0x38] sm:$0xff]   ;;  %690 = vmatprep.subr.bf16.mxu1 %v749_v1  ;;  %v754_v6 = vld [vmem:[%s995_s1 + $0x30] sm:$0xff]   ;;  %v758_v10 = vld [vmem:[%s995_s1 + $0x28] sm:$0xff]  }
   0x4   :  { %v751_v3 = vld [vmem:[%s995_s1 + $0xb8] sm:$0xff]   ;;  %663 = vmatpush3.bf16.msra.mxu0 %v750_v2  ;;  %v755_v7 = vld [vmem:[%s995_s1 + $0xb0] sm:$0xff]   ;;  %v759_v11 = vld [vmem:[%s995_s1 + $0xa8] sm:$0xff]  }
   0x5   :  { %691 = vmatpush3.bf16.msra.mxu1 %v751_v3  ;;  %664 = vmatprep.subr.bf16.mxu0 %v752_v4  ;;  %v760_v12 = vld [vmem:[%s995_s1 + $0x60] sm:$0xff]   ;;  %v764_v16 = vld [vmem:[%s995_s1 + $0x58] sm:$0xff]   ;;  %v768_v20 = vld [vmem:[%s995_s1 + $0x50] sm:$0xff]  }
   0x6   :  { %692 = vmatprep.subr.bf16.mxu1 %v753_v5  ;;  %v761_v13 = vld [vmem:[%s995_s1 + $0xe0] sm:$0xff]   ;;  %v765_v17 = vld [vmem:[%s995_s1 + $0xd8] sm:$0xff]   ;;  %v769_v21 = vld [vmem:[%s995_s1 + $0xd0] sm:$0xff]  }
   0x7   :  { %v762_v14 = vld [vmem:[%s995_s1 + $0x20] sm:$0xff]   ;;  %v766_v18 = vld [vmem:[%s995_s1 + $0x18] sm:$0xff]   ;;  %v770_v22 = vld [vmem:[%s995_s1 + $0x10] sm:$0xff]  }
   0x8   :  { %665 = vmatpush3.bf16.msra.mxu0 %v754_v6  ;;  %v763_v15 = vld [vmem:[%s995_s1 + $0xa0] sm:$0xff]   ;;  %v767_v19 = vld [vmem:[%s995_s1 + $0x98] sm:$0xff]   ;;  %v771_v23 = vld [vmem:[%s995_s1 + $0x90] sm:$0xff]  }
   0x9   :  { %693 = vmatpush3.bf16.msra.mxu1 %v755_v7  ;;  %666 = vmatprep.subr.bf16.mxu0 %v756_v8  ;;  %v772_v24 = vld [vmem:[%s995_s1 + $0x48] sm:$0xff]   ;;  %v776_v28 = vld [vmem:[%s995_s1 + $0x40] sm:$0xff]   ;;  %v786_v36 = vld [vmem:[%s995_s1 + $0x138] sm:$0xff]  }
   0xa   :  { %694 = vmatprep.subr.bf16.mxu1 %v757_v9  ;;  %v773_v25 = vld [vmem:[%s995_s1 + $0xc8] sm:$0xff]   ;;  %v777_v29 = vld [vmem:[%s995_s1 + $0xc0] sm:$0xff]   ;;  %v787_v37 = vld [vmem:[%s995_s1 + $0x130] sm:$0xff]  }
   0xb   :  { %v774_v26 = vld [vmem:[%s995_s1 + $0x8] sm:$0xff]   ;;  %v778_v30 = vld [vmem:[%s995_s1] sm:$0xff]   ;;  %v790_v45 = vld [vmem:[%s995_s1 + $0x118] sm:$0xff]  }
   0xc   :  { %667 = vmatpush3.bf16.msra.mxu0 %v758_v10  ;;  %v775_v27 = vld [vmem:[%s995_s1 + $0x88] sm:$0xff]   ;;  %v779_v31 = vld [vmem:[%s995_s1 + $0x80] sm:$0xff]   ;;  %v797_v46 = vld [vmem:[%s995_s1 + $0x110] sm:$0xff]  }
   0xd   :  { %695 = vmatpush3.bf16.msra.mxu1 %v759_v11  ;;  %668 = vmatprep.subr.bf16.mxu0 %v760_v12  ;;  %v780_v32 = vld [vmem:[%s996_s0] ss:$20 sps:$4 sm:$0xff]   ;;  %v782_v33 = vld [vmem:[%s996_s0 + $0x4] ss:$20 sps:$4 sm:$0xff]   ;;  %v783_v34 = vld [vmem:[%s996_s0 + $0x8] ss:$20 sps:$4 sm:$0xff]  }
   0xe   :  { %696 = vmatprep.subr.bf16.mxu1 %v761_v13  ;;  %v785_v35 = vld [vmem:[%s996_s0 + $0xc] ss:$20 sps:$4 sm:$0xff]   ;;  %446 = vmatprep.mubr.bf16.mxu0 %v782_v33  ;;  %v793_v40 = vld [vmem:[%s996_s0 + $0x34] ss:$20 sps:$4 sm:$0xff]   ;;  %v796_v42 = vld [vmem:[%s996_s0 + $0x30] ss:$20 sps:$4 sm:$0xff]  }
   0xf   :  { %495 = vmatprep.mubr.bf16.mxu1 %v785_v35  ;;  %v788_v38 = vld [vmem:[%s995_s1 + $0x128] sm:$0xff]   ;;  %v789_v43 = vld [vmem:[%s995_s1 + $0x120] sm:$0xff]  }
  0x10   :  { %669 = vmatpush3.bf16.msra.mxu0 %v762_v14  ;;  %v791_v39 = vld [vmem:[%s996_s0 + $0x2c] ss:$20 sps:$4 sm:$0xff]   ;;  %v795_v41 = vld [vmem:[%s996_s0 + $0x28] ss:$20 sps:$4 sm:$0xff]   ;;  %v800_v44 = vld [vmem:[%s996_s0 + $0x10] ss:$20 sps:$4 sm:$0xff]  }
  0x11   :  { %697 = vmatpush3.bf16.msra.mxu1 %v763_v15  ;;  %670 = vmatprep.subr.bf16.mxu0 %v764_v16  ;;  %v798_v47 = vld [vmem:[%s995_s1 + $0x108] sm:$0xff]   ;;  %v799_v48 = vld [vmem:[%s995_s1 + $0x100] sm:$0xff]  }
  0x12   :  { %698 = vmatprep.subr.bf16.mxu1 %v765_v17  ;;  %v801_v49 = vld [vmem:[%s996_s0 + $0x38] ss:$20 sps:$4 sm:$0xff]   ;;  %v660_v10 = vld [vmem:[%s997_s2] ss:$0 sm:$0xff] }
  0x13   :  { %v661_v15 = vld [vmem:[%s998_s3] ss:$0 sm:$0xff] }
  0x14   :  { %671 = vmatpush3.bf16.msra.mxu0 %v766_v18 }
  0x15   :  { %699 = vmatpush3.bf16.msra.mxu1 %v767_v19  ;;  %672 = vmatprep.subr.bf16.mxu0 %v768_v20 }
  0x16   :  { %700 = vmatprep.subr.bf16.mxu1 %v769_v21 }
  0x18   :  { %673 = vmatpush3.bf16.msra.mxu0 %v770_v22 }
  0x19   :  { %701 = vmatpush3.bf16.msra.mxu1 %v771_v23  ;;  %674 = vmatprep.subr.bf16.mxu0 %v772_v24 }
  0x1a   :  { %702 = vmatprep.subr.bf16.mxu1 %v773_v25 }
  0x1c   :  { %675 = vmatpush3.bf16.msra.mxu0 %v774_v26 }
  0x1d   :  { %703 = vmatpush3.bf16.msra.mxu1 %v775_v27  ;;  %676 = vmatprep.subr.bf16.mxu0 %v776_v28 }
  0x1e   :  { %704 = vmatprep.subr.bf16.mxu1 %v777_v29 }
  0x20   :  { %677 = vmatpush3.bf16.msra.mxu0 %v778_v30 }
  0x21   :  { %705 = vmatpush3.bf16.msra.mxu1 %v779_v31  ;;  %728 = vmatprep.subr.bf16.mxu0 %v786_v36 }
  0x23   :  { %447 = vmatmul.mubr.bf16.vlgmr.msra.gmra.mxu0 %v780_v32 }
  0x24   :  { %496 = vmatmul.mubr.bf16.vlgmr.msra.gmra.mxu1 %v783_v34  ;;  %729 = vmatpush3.bf16.msra.mxu0 %v786_v36 }
  0x25   :  { %730 = vmatprep.subr.bf16.mxu0 %v787_v37  ;;  %454 = vmatprep.mubr.bf16.mxu0 %v791_v39 }
  0x26   :  { %503 = vmatprep.mubr.bf16.mxu1 %v793_v40 }
  0x28   :  { %731 = vmatpush3.bf16.msra.mxu0 %v787_v37 }
  0x29   :  { %732 = vmatprep.subr.bf16.mxu0 %v788_v38 }
  0x2b   :  { %455 = vmatmul.mubr.bf16.gmra.mxu0 %v795_v41 }
  0x2c   :  { %504 = vmatmul.mubr.bf16.gmra.mxu1 %v796_v42  ;;  %733 = vmatpush3.bf16.msra.mxu0 %v788_v38 }
  0x2d   :  { %734 = vmatprep.subr.bf16.mxu0 %v789_v43  ;;  %744 = vmatprep.mubr.bf16.mxu0 %v800_v44 }
  0x30   :  { %735 = vmatpush3.bf16.msra.mxu0 %v789_v43 }
  0x31   :  { %736 = vmatprep.subr.bf16.mxu0 %v790_v45 }
  0x34   :  { %737 = vmatpush3.bf16.msra.mxu0 %v790_v45 }
  0x35   :  { %738 = vmatprep.subr.bf16.mxu0 %v797_v46 }
  0x38   :  { %739 = vmatpush3.bf16.msra.mxu0 %v797_v46 }
  0x39   :  { %740 = vmatprep.subr.bf16.mxu0 %v798_v47 }
  0x3c   :  { %741 = vmatpush3.bf16.msra.mxu0 %v798_v47 }
  0x3d   :  { %742 = vmatprep.subr.bf16.mxu0 %v799_v48 }
  0x40   :  { %743 = vmatpush3.bf16.msra.mxu0 %v799_v48 }
  0x43   :  { %745 = vmatmul.mubr.bf16.vlgmr.msra.gmra.mxu0 %v801_v49 }
  0xe3   :  { %v678_v50 = vpop.f32.mrf.mxu0 }
  0xe4   :  { %v706_v51 = vpop.f32.mrf.mxu1 }
  0xe5   :  { %v679_v52 = vpop.f32.mrf.mxu0 }
  0xe6   :  { %v707_v53 = vpop.f32.mrf.mxu1  ;;  %v680_v4 = vadd.f32 %v679_v52, %v678_v50 }
  0xe7   :  { %v681_v54 = vpop.f32.mrf.mxu0  ;;  %v708_v5 = vadd.f32 %v707_v53, %v706_v51 }
  0xe8   :  { %v709_v55 = vpop.f32.mrf.mxu1 }
  0xe9   :  { %v682_v56 = vpop.f32.mrf.mxu0  ;;  %v498_v14 = vadd.f32 %v708_v5, %v680_v4 }
  0xea   :  { %v710_v57 = vpop.f32.mrf.mxu1  ;;  %v683_v11 = vadd.f32 %v682_v56, %v681_v54 }
  0xeb   :  { %v684_v58 = vpop.f32.mrf.mxu0  ;;  %v711_v12 = vadd.f32 %v710_v57, %v709_v55 }
  0xec   :  { %v712_v59 = vpop.f32.mrf.mxu1 }
  0xed   :  { %v685_v60 = vpop.f32.mrf.mxu0  ;;  %v501_v24 = vadd.f32 %v711_v12, %v683_v11 }
  0xee   :  { %v713_v61 = vpop.f32.mrf.mxu1  ;;  %v686_v0 = vadd.f32 %v685_v60, %v684_v58 }
  0xef   :  { %v687_v62 = vpop.f32.mrf.mxu0  ;;  %v714_v1 = vadd.f32 %v713_v61, %v712_v59 }
  0xf0   :  { %v715_v63 = vpop.f32.mrf.mxu1 }
  0xf1   :  { %v688_v2 = vpop.f32.mrf.mxu0  ;;  %v506_v8 = vadd.f32 %v714_v1, %v686_v0 }
  0xf2   :  { %v716_v3 = vpop.f32.mrf.mxu1  ;;  %v689_v6 = vadd.f32 %v688_v2, %v687_v62 }
  0xf3   :  { %v717_v7 = vadd.f32 %v716_v3, %v715_v63 }
  0xf5   :  { %v509_v19 = vadd.f32 %v717_v7, %v689_v6 }
 0x103   :  { %v746_v9 = vpop.f32.mrf.mxu0 }
 0x104   :  { %v555_v13 = vadd.f32 %v746_v9, %v506_v8 }
 0x105   :  { %v546_v16 = vpop.f32.mrf.mxu0 }
 0x106   :  { %v585_v17 = vmul.f32 %v660_v10, %v555_v13  ;;  %v547_v18 = vadd.f32 %v546_v16, %v498_v14 }
 0x107   :  { %v747_v20 = vpop.f32.mrf.mxu0 }
 0x108   :  { %v596_v21 = vadd.f32 %v661_v15, %v585_v17  ;;  %v583_v22 = vmul.f32 %v660_v10, %v547_v18  ;;  %v558_v23 = vadd.f32 %v747_v20, %v509_v19 }
 0x109   :  { %v549_v25 = vpop.f32.mrf.mxu0 }
 0x10a   :  { %v600_v26 = vmax.f32 %v596_v21, 0.0  ;;  %v594_v27 = vadd.f32 %v661_v15, %v583_v22  ;;  %v586_v28 = vmul.f32 %v660_v10, %v558_v23  ;;  %v550_v29 = vadd.f32 %v549_v25, %v501_v24 }
 0x10c   :  { %604 = vst [vmem:[%s999_s4 + $0x10] sm:$0xff] %v600_v26  ;;  %v598_v30 = vmax.f32 %v594_v27, 0.0  ;;  %v597_v31 = vadd.f32 %v661_v15, %v586_v28  ;;  %v584_v32 = vmul.f32 %v660_v10, %v550_v29 }
 0x10e   :  { %602 = vst [vmem:[%s999_s4] sm:$0xff] %v598_v30  ;;  %v601_v33 = vmax.f32 %v597_v31, 0.0  ;;  %v595_v34 = vadd.f32 %v661_v15, %v584_v32 }
 0x110   :  { %605 = vst [vmem:[%s999_s4 + $0x18] sm:$0xff] %v601_v33  ;;  %v599_v35 = vmax.f32 %v595_v34, 0.0 }
 0x112   :  { %603 = vst [vmem:[%s999_s4 + $0x8] sm:$0xff] %v599_v35 }

// kernel: supervised_net_forward.29
= control target key start
LH: loop header
LB: loop body
LE: loop exit
PB: predicated region body
PF: predicated region fallthrough
CT: control target
= control target key end

     0   :  { %s329_s1 = inlined_call_operand.vmem [shape: bf16[128,128], index: 1, kind: input, shape index: {}]   ;;  %s330_s0 = inlined_call_operand.vmem [shape: bf16[32,128], index: 0, kind: input, shape index: {}]   ;;  %s331_s2 = inlined_call_operand.vmem [shape: f32[1,128], index: 2, kind: input, shape index: {}]   ;;  %s332_s3 = inlined_call_operand.vmem [shape: f32[1,128], index: 3, kind: input, shape index: {}]   ;;  %s333_s4 = inlined_call_operand.vmem [shape: f32[32,128], index: 4, kind: output, shape index: {}]  }
   0x1   :  { %v246_v0 = vld [vmem:[%s329_s1 + $0x38] sm:$0xff]   ;;  %v247_v1 = vld [vmem:[%s329_s1 + $0x30] sm:$0xff]   ;;  %v248_v2 = vld [vmem:[%s329_s1 + $0x28] sm:$0xff]  }
   0x2   :  { %226 = vmatprep.subr.bf16.mxu0 %v246_v0  ;;  %v249_v3 = vld [vmem:[%s329_s1 + $0x20] sm:$0xff]   ;;  %v250_v5 = vld [vmem:[%s329_s1 + $0x18] sm:$0xff]   ;;  %v251_v6 = vld [vmem:[%s329_s1 + $0x10] sm:$0xff]  }
   0x3   :  { %227 = vmatpush3.bf16.msra.mxu0 %v246_v0  ;;  %v254_v4 = vld [vmem:[%s330_s0] sm:$0xff]   ;;  %v252_v7 = vld [vmem:[%s329_s1 + $0x8] sm:$0xff]  }
   0x4   :  { %228 = vmatprep.subr.bf16.mxu0 %v247_v1  ;;  %242 = vmatprep.mubr.bf16.mxu0 %v254_v4  ;;  %v253_v8 = vld [vmem:[%s329_s1] sm:$0xff]   ;;  %v255_v9 = vld [vmem:[%s330_s0 + $0x8] sm:$0xff]  }
   0x5   :  { %v214_v10 = vld [vmem:[%s331_s2] ss:$0 sm:$0xff] }
   0x6   :  { %v215_v12 = vld [vmem:[%s332_s3] ss:$0 sm:$0xff] }
   0x7   :  { %229 = vmatpush3.bf16.msra.mxu0 %v247_v1 }
   0x8   :  { %230 = vmatprep.subr.bf16.mxu0 %v248_v2 }
   0xb   :  { %231 = vmatpush3.bf16.msra.mxu0 %v248_v2 }
   0xc   :  { %232 = vmatprep.subr.bf16.mxu0 %v249_v3 }
   0xf   :  { %233 = vmatpush3.bf16.msra.mxu0 %v249_v3 }
  0x10   :  { %234 = vmatprep.subr.bf16.mxu0 %v250_v5 }
  0x13   :  { %235 = vmatpush3.bf16.msra.mxu0 %v250_v5 }
  0x14   :  { %236 = vmatprep.subr.bf16.mxu0 %v251_v6 }
  0x17   :  { %237 = vmatpush3.bf16.msra.mxu0 %v251_v6 }
  0x18   :  { %238 = vmatprep.subr.bf16.mxu0 %v252_v7 }
  0x1b   :  { %239 = vmatpush3.bf16.msra.mxu0 %v252_v7 }
  0x1c   :  { %240 = vmatprep.subr.bf16.mxu0 %v253_v8 }
  0x1f   :  { %241 = vmatpush3.bf16.msra.mxu0 %v253_v8 }
  0x22   :  { %243 = vmatmul.mubr.bf16.vlgmr.msra.gmra.mxu0 %v255_v9 }
  0xe2   :  { %v244_v11 = vpop.f32.mrf.mxu0 }
  0xe3   :  { %v183_v13 = vmul.f32 %v244_v11, %v214_v10 }
  0xe4   :  { %v144_v14 = vpop.f32.mrf.mxu0 }
  0xe5   :  { %v194_v15 = vadd.f32 %v215_v12, %v183_v13  ;;  %v181_v16 = vmul.f32 %v214_v10, %v144_v14 }
  0xe6   :  { %v245_v17 = vpop.f32.mrf.mxu0 }
  0xe7   :  { %198 = vst [vmem:[%s333_s4 + $0x10] sm:$0xff] %v194_v15  ;;  %v192_v18 = vadd.f32 %v215_v12, %v181_v16  ;;  %v184_v19 = vmul.f32 %v245_v17, %v214_v10 }
  0xe8   :  { %v147_v20 = vpop.f32.mrf.mxu0 }
  0xe9   :  { %196 = vst [vmem:[%s333_s4] sm:$0xff] %v192_v18  ;;  %v195_v21 = vadd.f32 %v215_v12, %v184_v19  ;;  %v182_v22 = vmul.f32 %v214_v10, %v147_v20 }
  0xeb   :  { %199 = vst [vmem:[%s333_s4 + $0x18] sm:$0xff] %v195_v21  ;;  %v193_v23 = vadd.f32 %v215_v12, %v182_v22 }
  0xed   :  { %197 = vst [vmem:[%s333_s4 + $0x8] sm:$0xff] %v193_v23 }

// kernel: supervised_net_forward.32
= control target key start
LH: loop header
LB: loop body
LE: loop exit
PB: predicated region body
PF: predicated region fallthrough
CT: control target
= control target key end

     0   :  { %s1108_s15 = smov 0   ;;  %s1110_s16 = smov 0   ;;  %s1227_s0 = inlined_call_operand.vmem [shape: bf16[32,1152], index: 0, kind: input, shape index: {}]   ;;  %s1228_s1 = inlined_call_operand.vmem [shape: bf16[1152,128], index: 1, kind: input, shape index: {}]   ;;  %s1229_s2 = inlined_call_operand.vmem [shape: f32[1,128], index: 2, kind: input, shape index: {}]   ;;  %s1230_s3 = inlined_call_operand.vmem [shape: f32[1,128], index: 3, kind: input, shape index: {}]   ;;  %s1231_s4 = inlined_call_operand.vmem [shape: f32[32,128], index: 4, kind: output, shape index: {}]  }
   0x1   :  { %s1112_s17 = smov 0   ;;  %s1114_s18 = smov 0  }
   0x2   :  { %s1116_s19 = smov 0  }
   0x3 LB: > { %s26_s20 = sadd.s32 1, %s1076_s18  ;;  %p49_p1 = scmp.ne.s32.totalorder %s1068_s16, %s1064_s15  ;;  %s1080_s19 = sphi %s1116_s19, %s14_s19   ;;  %s1076_s18 = sphi %s1114_s18, %s1235_s18   ;;  %s1072_s17 = sphi %s1112_s17, %s1234_s17   ;;  %s1068_s16 = sphi %s1110_s16, %s1233_s16   ;;  %s1064_s15 = sphi %s1108_s15, %s1232_s15  }
   0x4   : > { %p27_p0 = scmp.ge.s32.totalorder %s26_s20, 3  ;;  %p50_p2 = scmp.eq.s32.totalorder %s1080_s19, 0 }
   0x5   : > { %s42_s22 = sadd.s32 1, %s1068_s16  ;;  %p858_p5 = scmp.ge.s32.totalorder %s1080_s19, 3 }
   0x6   : > { %s1237_s20 = smov (%p27_p0, %s26_s20), 0  ;;  %p51_p3 = por %p50_p2, %p49_p1 }
   0x7   : > { %s38_s21 = ssub.s32 %s1076_s18, %s1237_s20  ;;  %195 = sbr.rel (%p858_p5) target bundleno = 21 (0x15), region = 24 }
   0x8   : > { %p40_p4 = scmp.eq.s32.totalorder %s38_s21, 0 }
   0xa   : > { %s1143_s23 = scalar_select %p40_p4, %s1068_s16, %s42_s22  }
   0xc   : > { %198 = sbr.rel (!%p51_p3) target bundleno = 21 (0x15), region = 28  ;;  %s200_s24 = sand.u32 (%p51_p3), 1, %s1068_s16  }
   0xd   : > { %s908_s25 = smul.u32 (%p51_p3), 12, %s1076_s18 }
   0xe   : > { %s967_s26 = smul.u32 (%p51_p3), 48, %s200_s24 }
   0xf   : > { %s208_s29 = scalar_lea.vmem (%p51_p3), %s1227_s0, %s908_s25 }
  0x10   : > { %v223_v0 = vld [vmem:[%s208_s29] sm:$0xff] (%p51_p3)  ;;  %v227_v2 = vld [vmem:[%s208_s29 + $0x48] sm:$0xff] (%p51_p3)  ;;  %s202_s30 = scalar_lea.vmem (%p51_p3), [#allocation3], %s967_s26  ;;  %v864_v6 = vld [vmem:[%s208_s29 + $0x50] sm:$0xf] (%p51_p3) }
  0x11   : > { %v225_v1 = vld [vmem:[%s208_s29 + $0x24] sm:$0xff]  ;;  %224 = vst [vmem:[%s202_s30] sm:$0xff] %v223_v0  ;;  %228 = vst [vmem:[%s202_s30 + $0x18] sm:$0xff] %v227_v2  ;;  %v229_v3 = vld [vmem:[%s208_s29 + $0x6c] sm:$0xff] }
  0x12   : > { %226 = vst [vmem:[%s202_s30 + $0xc] sm:$0xff] %v225_v1  ;;  %v860_v4 = vld [vmem:[%s208_s29 + $0x8] sm:$0xf]  ;;  %v862_v5 = vld [vmem:[%s208_s29 + $0x2c] sm:$0xf]  ;;  %230 = vst [vmem:[%s202_s30 + $0x24] sm:$0xff] %v229_v3 }
  0x13   : > { %861 = vst [vmem:[%s202_s30 + $0x8] sm:$0xf] %v860_v4  ;;  %863 = vst [vmem:[%s202_s30 + $0x14] sm:$0xf] %v862_v5  ;;  %v866_v7 = vld [vmem:[%s208_s29 + $0x74] sm:$0xf] }
  0x14   : > { %865 = vst [vmem:[%s202_s30 + $0x20] sm:$0xf] %v864_v6  ;;  %867 = vst [vmem:[%s202_s30 + $0x2c] sm:$0xf] %v866_v7 }
  0x15 PF: > { %p868_p6 = scmp.ge.s32.totalorder %s1080_s19, 1  ;;  %p263_p7 = scmp.lt.s32.totalorder %s1080_s19, 4 }
  0x17   : > { %p264_p8 = pnand %p868_p6, %p263_p7 }
  0x18   : > { %s270_s5 = sand.u32 (!%p264_p8), 1, %s1064_s15   ;;  %s314_s6 = smul.u32 (!%p264_p8), 48, %s1072_s17 }
  0x19   : > { %267 = sbr.rel (%p264_p8) target bundleno = 299 (0x12b), region = 58  ;;  %p870_p10 = scmp.ne.s32.totalorder (!%p264_p8), %s1072_s17, 0 }
  0x1a   : > { %s968_s7 = smul.u32 (!%p264_p8), 48, %s270_s5  ;;  %p315_p9 = scmp.lt.s32.totalorder (!%p264_p8), %s314_s6, 143 }
  0x1c   : > { %s1160_s12 = scalar_lea.vmem (!%p264_p8), [#allocation3], %s968_s7 }
  0x1e   : > { %s1239_s6 = smov (!%p315_p9, %s314_s6), 143  ;;  %342 = sbr.rel (%p870_p10) target bundleno = 38 (0x26), region = 66 }
  0x1f   : > { %s869_s8 = sshll.u32 %s1239_s6, 2 }
  0x20   : > { %s1158_s11 = scalar_lea.vmem %s1228_s1, %s869_s8 }
  0x23   : > { %v1082_v8 = vmov 0.0  }
  0x24   : > { %343 = vst [vmem:[#allocation2 + $0x10] sm:$0xff] %v1082_v8  ;;  %344 = vst [vmem:[#allocation2] sm:$0xff] %v1082_v8 }
  0x25   : > { %345 = vst [vmem:[#allocation2 + $0x18] sm:$0xff] %v1082_v8  ;;  %346 = vst [vmem:[#allocation2 + $0x8] sm:$0xff] %v1082_v8 }
  0x26 PF: > { %v1010_v9 = vld [vmem:[%s1158_s11 + $0x78] sm:$0xff]   ;;  %v1013_v12 = vld [vmem:[%s1158_s11 + $0x70] sm:$0xff]   ;;  %v1016_v15 = vld [vmem:[%s1158_s11 + $0x68] sm:$0xff]   ;;  %p901_p11 = scmp.ne.s32.totalorder %s1072_s17, 2 }
  0x27   : > { %v1011_v10 = vld [vmem:[%s1158_s11 + $0x38] sm:$0xff]   ;;  %909 = vmatprep.subr.bf16.mxu0 %v1010_v9  ;;  %v1014_v13 = vld [vmem:[%s1158_s11 + $0x30] sm:$0xff]   ;;  %v1017_v16 = vld [vmem:[%s1158_s11 + $0x28] sm:$0xff]  }
  0x28   : > { %v1012_v11 = vld [vmem:[%s1158_s11 + $0xb8] sm:$0xff]   ;;  %910 = vmatpush3.bf16.msra.mxu0 %v1011_v10  ;;  %v1015_v14 = vld [vmem:[%s1158_s11 + $0xb0] sm:$0xff]   ;;  %v1018_v17 = vld [vmem:[%s1158_s11 + $0xa8] sm:$0xff]  }
  0x29   : > { %947 = vmatprep.subr.bf16.mxu1 %v1012_v11  ;;  %911 = vmatprep.subr.bf16.mxu0 %v1013_v12  ;;  %v1019_v18 = vld [vmem:[%s1158_s11 + $0x60] sm:$0xff]   ;;  %v1022_v21 = vld [vmem:[%s1158_s11 + $0x58] sm:$0xff]   ;;  %v1025_v24 = vld [vmem:[%s1158_s11 + $0x50] sm:$0xff]  }
  0x2a   : > { %948 = vmatpush3.bf16.msra.mxu1 %v1012_v11  ;;  %v1020_v19 = vld [vmem:[%s1158_s11 + $0x20] sm:$0xff]   ;;  %v1024_v22 = vld [vmem:[%s1158_s11 + $0x98] sm:$0xff]   ;;  %v1027_v25 = vld [vmem:[%s1158_s11 + $0x90] sm:$0xff]  }
  0x2b   : > { %949 = vmatprep.subr.bf16.mxu1 %v1015_v14  ;;  %v1021_v20 = vld [vmem:[%s1158_s11 + $0xa0] sm:$0xff]   ;;  %v1023_v23 = vld [vmem:[%s1158_s11 + $0x18] sm:$0xff]   ;;  %v1026_v26 = vld [vmem:[%s1158_s11 + $0x10] sm:$0xff]  }
  0x2c   : > { %912 = vmatpush3.bf16.msra.mxu0 %v1014_v13  ;;  %v1028_v27 = vld [vmem:[%s1158_s11 + $0x48] sm:$0xff]   ;;  %v1031_v30 = vld [vmem:[%s1158_s11 + $0x40] sm:$0xff]   ;;  %v347_v44 = vld [vmem:[#allocation2 + $0x10] sm:$0xff] }
  0x2d   : > { %913 = vmatprep.subr.bf16.mxu0 %v1016_v15  ;;  %v1029_v28 = vld [vmem:[%s1158_s11 + $0x8] sm:$0xff]   ;;  %v1033_v31 = vld [vmem:[%s1158_s11 + $0x80] sm:$0xff]   ;;  %v349_v58 = vld [vmem:[#allocation2 + $0x18] sm:$0xff] }
  0x2e   : > { %950 = vmatpush3.bf16.msra.mxu1 %v1015_v14  ;;  %v1030_v29 = vld [vmem:[%s1158_s11 + $0x88] sm:$0xff]   ;;  %v1036_v32 = vld [vmem:[%s1160_s12 + $0x4] ss:$12 sps:$4 sm:$0xff]  }
  0x2f   : > { %951 = vmatprep.subr.bf16.mxu1 %v1018_v17  ;;  %v1037_v33 = vld [vmem:[%s1160_s12 + $0x8] ss:$12 sps:$4 sm:$0xff]   ;;  %615 = vmatprep.mubr.bf16.mxu0 %v1036_v32  ;;  %v1034_v35 = vld [vmem:[%s1160_s12] ss:$12 sps:$4 sm:$0xff]   ;;  %v1041_v38 = vld [vmem:[%s1160_s12 + $0x18] ss:$12 sps:$4 sm:$0xff]  }
  0x30   : > { %914 = vmatpush3.bf16.msra.mxu0 %v1017_v16  ;;  %v1032_v34 = vld [vmem:[%s1158_s11] sm:$0xff]   ;;  %963 = vmatprep.mubr.bf16.mxu1 %v1037_v33  ;;  %v1039_v36 = vld [vmem:[%s1160_s12 + $0x1c] ss:$12 sps:$4 sm:$0xff]  }
  0x31   : > { %915 = vmatprep.subr.bf16.mxu0 %v1019_v18  ;;  %v1038_v37 = vld [vmem:[%s1160_s12 + $0x20] ss:$12 sps:$4 sm:$0xff]  }
  0x32   : > { %952 = vmatpush3.bf16.msra.mxu1 %v1018_v17  ;;  %v348_v52 = vld [vmem:[#allocation2] sm:$0xff]  ;;  %v350_v0 = vld [vmem:[#allocation2 + $0x8] sm:$0xff] }
  0x33   : > { %953 = vmatprep.subr.bf16.mxu1 %v1021_v20 }
  0x34   : > { %916 = vmatpush3.bf16.msra.mxu0 %v1020_v19 }
  0x35   : > { %917 = vmatprep.subr.bf16.mxu0 %v1022_v21 }
  0x36   : > { %954 = vmatpush3.bf16.msra.mxu1 %v1021_v20 }
  0x37   : > { %955 = vmatprep.subr.bf16.mxu1 %v1024_v22 }
  0x38   : > { %918 = vmatpush3.bf16.msra.mxu0 %v1023_v23 }
  0x39   : > { %919 = vmatprep.subr.bf16.mxu0 %v1025_v24 }
  0x3a   : > { %956 = vmatpush3.bf16.msra.mxu1 %v1024_v22 }
  0x3b   : > { %957 = vmatprep.subr.bf16.mxu1 %v1027_v25 }
  0x3c   : > { %920 = vmatpush3.bf16.msra.mxu0 %v1026_v26 }
  0x3d   : > { %921 = vmatprep.subr.bf16.mxu0 %v1028_v27 }
  0x3e   : > { %958 = vmatpush3.bf16.msra.mxu1 %v1027_v25 }
  0x3f   : > { %959 = vmatprep.subr.bf16.mxu1 %v1030_v29 }
  0x40   : > { %922 = vmatpush3.bf16.msra.mxu0 %v1029_v28 }
  0x41   : > { %923 = vmatprep.subr.bf16.mxu0 %v1031_v30 }
  0x42   : > { %960 = vmatpush3.bf16.msra.mxu1 %v1030_v29 }
  0x43   : > { %961 = vmatprep.subr.bf16.mxu1 %v1033_v31 }
  0x44   : > { %924 = vmatpush3.bf16.msra.mxu0 %v1032_v34 }
  0x46   : > { %962 = vmatpush3.bf16.msra.mxu1 %v1033_v31 }
  0x47   : > { %616 = vmatmul.mubr.bf16.vlgmr.msra.gmra.mxu0 %v1034_v35 }
  0x48   : > { %623 = vmatprep.mubr.bf16.mxu0 %v1039_v36 }
  0x49   : > { %964 = vmatmul.mubr.bf16.vlgmr.msra.gmra.mxu1 %v1038_v37 }
  0x4f   : > { %624 = vmatmul.mubr.bf16.gmra.mxu0 %v1041_v38 }
 0x107   : > { %v925_v39 = vpop.f32.mrf.mxu0 }
 0x109   : > { %v926_v40 = vpop.f32.mrf.mxu0  ;;  %v965_v41 = vpop.f32.mrf.mxu1 }
 0x10a   : > { %v927_v42 = vadd.f32 %v926_v40, %v925_v39 }
 0x10b   : > { %v928_v43 = vpop.f32.mrf.mxu0  ;;  %v666_v45 = vpop.f32.mrf.mxu1 }
 0x10c   : > { %v667_v46 = vadd.f32 %v927_v42, %v666_v45 }
 0x10d   : > { %v929_v47 = vpop.f32.mrf.mxu0  ;;  %v966_v48 = vpop.f32.mrf.mxu1 }
 0x10e   : > { %v681_v49 = vadd.f32 %v667_v46, %v347_v44  ;;  %v930_v50 = vadd.f32 %v929_v47, %v928_v43 }
 0x10f   : > { %v931_v51 = vpop.f32.mrf.mxu0  ;;  %v669_v53 = vpop.f32.mrf.mxu1 }
 0x110   : > { %685 = vst [vmem:[#allocation2 + $0x10] sm:$0xff] %v681_v49  ;;  %v670_v54 = vadd.f32 %v930_v50, %v669_v53 }
 0x111   : > { %v932_v55 = vpop.f32.mrf.mxu0 }
 0x112   : > { %v682_v56 = vadd.f32 %v670_v54, %v348_v52  ;;  %v933_v57 = vadd.f32 %v932_v55, %v931_v51 }
 0x113   : > { %v934_v59 = vpop.f32.mrf.mxu0 }
 0x114   : > { %686 = vst [vmem:[#allocation2] sm:$0xff] %v682_v56  ;;  %v675_v60 = vadd.f32 %v965_v41, %v933_v57 }
 0x115   : > { %v935_v61 = vpop.f32.mrf.mxu0 }
 0x116   : > { %v683_v62 = vadd.f32 %v675_v60, %v349_v58  ;;  %v936_v63 = vadd.f32 %v935_v61, %v934_v59 }
 0x118   : > { %687 = vst [vmem:[#allocation2 + $0x18] sm:$0xff] %v683_v62  ;;  %v678_v1 = vadd.f32 %v966_v48, %v936_v63  ;;  %692 = sbr.rel (%p901_p11) target bundleno = 299 (0x12b), region = 70 }
 0x11a   : > { %v684_v2 = vadd.f32 %v678_v1, %v350_v0 }
 0x11c   : > { %688 = vst [vmem:[#allocation2 + $0x8] sm:$0xff] %v684_v2 }
 0x11d   : > { %v693_v3 = vld [vmem:[#allocation2 + $0x10] sm:$0xff]  ;;  %v902_v4 = vld [vmem:[%s1229_s2] ss:$0 sm:$0xff] }
 0x11e   : > { %v903_v5 = vld [vmem:[%s1230_s3] ss:$0 sm:$0xff]  ;;  %v704_v6 = vmul.f32 %v902_v4, %v693_v3 }
 0x11f   : > { %v694_v7 = vld [vmem:[#allocation2] sm:$0xff]  ;;  %v695_v8 = vld [vmem:[#allocation2 + $0x18] sm:$0xff] }
 0x120   : > { %v705_v10 = vmul.f32 %v902_v4, %v694_v7  ;;  %v706_v11 = vmul.f32 %v902_v4, %v695_v8  ;;  %v715_v13 = vadd.f32 %v903_v5, %v704_v6 }
 0x122   : > { %v716_v14 = vadd.f32 %v903_v5, %v705_v10  ;;  %v717_v15 = vadd.f32 %v903_v5, %v706_v11  ;;  %v719_v17 = vmax.f32 %v715_v13, 0.0 }
 0x123   : > { %v696_v9 = vld [vmem:[#allocation2 + $0x8] sm:$0xff] }
 0x124   : > { %v707_v12 = vmul.f32 %v902_v4, %v696_v9  ;;  %v720_v18 = vmax.f32 %v716_v14, 0.0  ;;  %v721_v19 = vmax.f32 %v717_v15, 0.0  ;;  %723 = vst [vmem:[%s1231_s4] sm:$0xff] %v719_v17 }
 0x126   : > { %v718_v16 = vadd.f32 %v903_v5, %v707_v12  ;;  %724 = vst [vmem:[%s1231_s4 + $0x8] sm:$0xff] %v720_v18  ;;  %725 = vst [vmem:[%s1231_s4 + $0x10] sm:$0xff] %v721_v19 }
 0x128   : > { %v722_v20 = vmax.f32 %v718_v16, 0.0 }
 0x12a   : > { %726 = vst [vmem:[%s1231_s4 + $0x18] sm:$0xff] %v722_v20 }
 0x12b PF: > { %s14_s19 = sadd.s32 1, %s1080_s19   ;;  %s1232_s15 = smov %s1068_s16 }
 0x12c   : > { %p11_p12 = scmp.ge.s32.totalorder %s14_s19, 5   ;;  %s1233_s16 = smov %s1143_s23 }
 0x12d   : > { %s1234_s17 = smov %s1076_s18  ;;  %s1235_s18 = smov %s1237_s20 }
 0x12e   :  { %13 = sbr.rel (!%p11_p12) target bundleno = 3 (0x3), region = 120 }

// kernel: supervised_net_forward.31
= control target key start
LH: loop header
LB: loop body
LE: loop exit
PB: predicated region body
PF: predicated region fallthrough
CT: control target
= control target key end

     0   :  { %s1200_s18 = smov 0   ;;  %s1202_s19 = smov 0   ;;  %s1331_s0 = inlined_call_operand.vmem [shape: bf16[32,1152], index: 0, kind: input, shape index: {}]   ;;  %s1332_s1 = inlined_call_operand.vmem [shape: bf16[1152,128], index: 1, kind: input, shape index: {}]   ;;  %s1333_s2 = inlined_call_operand.vmem [shape: f32[1,128], index: 2, kind: input, shape index: {}]   ;;  %s1334_s3 = inlined_call_operand.vmem [shape: f32[1,128], index: 3, kind: input, shape index: {}]   ;;  %s1335_s4 = inlined_call_operand.vmem [shape: f32[32,128], index: 4, kind: input, shape index: {}]   ;;  %s1336_s5 = inlined_call_operand.vmem [shape: f32[32,128], index: 5, kind: output, shape index: {}]  }
   0x1   :  { %s1204_s20 = smov 0   ;;  %s1206_s21 = smov 0  }
   0x2   :  { %s1208_s22 = smov 0  }
   0x3 LB: > { %s27_s23 = sadd.s32 1, %s1163_s21  ;;  %p50_p1 = scmp.ne.s32.totalorder %s1155_s19, %s1151_s18  ;;  %s1167_s22 = sphi %s1208_s22, %s15_s22   ;;  %s1163_s21 = sphi %s1206_s21, %s1340_s21   ;;  %s1159_s20 = sphi %s1204_s20, %s1339_s20   ;;  %s1155_s19 = sphi %s1202_s19, %s1338_s19   ;;  %s1151_s18 = sphi %s1200_s18, %s1337_s18  }
   0x4   : > { %p28_p0 = scmp.ge.s32.totalorder %s27_s23, 3  ;;  %p51_p2 = scmp.eq.s32.totalorder %s1167_s22, 0 }
   0x5   : > { %s43_s25 = sadd.s32 1, %s1155_s19  ;;  %p945_p5 = scmp.ge.s32.totalorder %s1167_s22, 3 }
   0x6   : > { %s1342_s23 = smov (%p28_p0, %s27_s23), 0  ;;  %p52_p3 = por %p51_p2, %p50_p1 }
   0x7   : > { %s39_s24 = ssub.s32 %s1163_s21, %s1342_s23  ;;  %236 = sbr.rel (%p945_p5) target bundleno = 21 (0x15), region = 28 }
   0x8   : > { %p41_p4 = scmp.eq.s32.totalorder %s39_s24, 0 }
   0xa   : > { %s1235_s26 = scalar_select %p41_p4, %s1155_s19, %s43_s25  }
   0xc   : > { %239 = sbr.rel (!%p52_p3) target bundleno = 21 (0x15), region = 32  ;;  %s241_s27 = sand.u32 (%p52_p3), 1, %s1155_s19  }
   0xd   : > { %s995_s28 = smul.u32 (%p52_p3), 12, %s1163_s21 }
   0xe   : > { %s1054_s29 = smul.u32 (%p52_p3), 48, %s241_s27 }
   0xf   : > { %s249_s7 = scalar_lea.vmem (%p52_p3), %s1331_s0, %s995_s28 }
  0x10   : > { %v264_v0 = vld [vmem:[%s249_s7] sm:$0xff] (%p52_p3)  ;;  %v268_v2 = vld [vmem:[%s249_s7 + $0x48] sm:$0xff] (%p52_p3)  ;;  %s243_s8 = scalar_lea.vmem (%p52_p3), [#allocation3], %s1054_s29  ;;  %v951_v6 = vld [vmem:[%s249_s7 + $0x50] sm:$0xf] (%p52_p3) }
  0x11   : > { %v266_v1 = vld [vmem:[%s249_s7 + $0x24] sm:$0xff]  ;;  %265 = vst [vmem:[%s243_s8] sm:$0xff] %v264_v0  ;;  %269 = vst [vmem:[%s243_s8 + $0x18] sm:$0xff] %v268_v2  ;;  %v270_v3 = vld [vmem:[%s249_s7 + $0x6c] sm:$0xff] }
  0x12   : > { %267 = vst [vmem:[%s243_s8 + $0xc] sm:$0xff] %v266_v1  ;;  %v947_v4 = vld [vmem:[%s249_s7 + $0x8] sm:$0xf]  ;;  %v949_v5 = vld [vmem:[%s249_s7 + $0x2c] sm:$0xf]  ;;  %271 = vst [vmem:[%s243_s8 + $0x24] sm:$0xff] %v270_v3 }
  0x13   : > { %948 = vst [vmem:[%s243_s8 + $0x8] sm:$0xf] %v947_v4  ;;  %950 = vst [vmem:[%s243_s8 + $0x14] sm:$0xf] %v949_v5  ;;  %v953_v7 = vld [vmem:[%s249_s7 + $0x74] sm:$0xf] }
  0x14   : > { %952 = vst [vmem:[%s243_s8 + $0x20] sm:$0xf] %v951_v6  ;;  %954 = vst [vmem:[%s243_s8 + $0x2c] sm:$0xf] %v953_v7 }
  0x15 PF: > { %p955_p6 = scmp.ge.s32.totalorder %s1167_s22, 1  ;;  %p304_p7 = scmp.lt.s32.totalorder %s1167_s22, 4 }
  0x17   : > { %p305_p8 = pnand %p955_p6, %p304_p7 }
  0x18   : > { %s311_s9 = sand.u32 (!%p305_p8), 1, %s1151_s18   ;;  %s365_s10 = smul.u32 (!%p305_p8), 48, %s1159_s20 }
  0x19   : > { %308 = sbr.rel (%p305_p8) target bundleno = 301 (0x12d), region = 62  ;;  %p957_p10 = scmp.ne.s32.totalorder (!%p305_p8), %s1159_s20, 0 }
  0x1a   : > { %s1055_s11 = smul.u32 (!%p305_p8), 48, %s311_s9  ;;  %p366_p9 = scmp.lt.s32.totalorder (!%p305_p8), %s365_s10, 143 }
  0x1c   : > { %s1252_s16 = scalar_lea.vmem (!%p305_p8), [#allocation3], %s1055_s11 }
  0x1e   : > { %s1344_s10 = smov (!%p366_p9, %s365_s10), 143  ;;  %402 = sbr.rel (%p957_p10) target bundleno = 38 (0x26), region = 70 }
  0x1f   : > { %s956_s12 = sshll.u32 %s1344_s10, 2 }
  0x20   : > { %s1250_s15 = scalar_lea.vmem %s1332_s1, %s956_s12 }
  0x23   : > { %v1169_v8 = vmov 0.0  }
  0x24   : > { %403 = vst [vmem:[#allocation2 + $0x10] sm:$0xff] %v1169_v8  ;;  %404 = vst [vmem:[#allocation2] sm:$0xff] %v1169_v8 }
  0x25   : > { %405 = vst [vmem:[#allocation2 + $0x18] sm:$0xff] %v1169_v8  ;;  %406 = vst [vmem:[#allocation2 + $0x8] sm:$0xff] %v1169_v8 }
  0x26 PF: > { %v1097_v9 = vld [vmem:[%s1250_s15 + $0x78] sm:$0xff]   ;;  %v1100_v12 = vld [vmem:[%s1250_s15 + $0x70] sm:$0xff]   ;;  %v1103_v15 = vld [vmem:[%s1250_s15 + $0x68] sm:$0xff]   ;;  %p988_p11 = scmp.ne.s32.totalorder %s1159_s20, 2 }
  0x27   : > { %v1098_v10 = vld [vmem:[%s1250_s15 + $0x38] sm:$0xff]   ;;  %996 = vmatprep.subr.bf16.mxu0 %v1097_v9  ;;  %v1101_v13 = vld [vmem:[%s1250_s15 + $0x30] sm:$0xff]   ;;  %v1104_v16 = vld [vmem:[%s1250_s15 + $0x28] sm:$0xff]  }
  0x28   : > { %v1099_v11 = vld [vmem:[%s1250_s15 + $0xb8] sm:$0xff]   ;;  %997 = vmatpush3.bf16.msra.mxu0 %v1098_v10  ;;  %v1102_v14 = vld [vmem:[%s1250_s15 + $0xb0] sm:$0xff]   ;;  %v1105_v17 = vld [vmem:[%s1250_s15 + $0xa8] sm:$0xff]  }
  0x29   : > { %1034 = vmatprep.subr.bf16.mxu1 %v1099_v11  ;;  %998 = vmatprep.subr.bf16.mxu0 %v1100_v12  ;;  %v1106_v18 = vld [vmem:[%s1250_s15 + $0x60] sm:$0xff]   ;;  %v1109_v21 = vld [vmem:[%s1250_s15 + $0x58] sm:$0xff]   ;;  %v1112_v24 = vld [vmem:[%s1250_s15 + $0x50] sm:$0xff]  }
  0x2a   : > { %1035 = vmatpush3.bf16.msra.mxu1 %v1099_v11  ;;  %v1107_v19 = vld [vmem:[%s1250_s15 + $0x20] sm:$0xff]   ;;  %v1111_v22 = vld [vmem:[%s1250_s15 + $0x98] sm:$0xff]   ;;  %v1114_v25 = vld [vmem:[%s1250_s15 + $0x90] sm:$0xff]  }
  0x2b   : > { %1036 = vmatprep.subr.bf16.mxu1 %v1102_v14  ;;  %v1108_v20 = vld [vmem:[%s1250_s15 + $0xa0] sm:$0xff]   ;;  %v1110_v23 = vld [vmem:[%s1250_s15 + $0x18] sm:$0xff]   ;;  %v1113_v26 = vld [vmem:[%s1250_s15 + $0x10] sm:$0xff]  }
  0x2c   : > { %999 = vmatpush3.bf16.msra.mxu0 %v1101_v13  ;;  %v1115_v27 = vld [vmem:[%s1250_s15 + $0x48] sm:$0xff]   ;;  %v1118_v30 = vld [vmem:[%s1250_s15 + $0x40] sm:$0xff]   ;;  %v407_v44 = vld [vmem:[#allocation2 + $0x10] sm:$0xff] }
  0x2d   : > { %1000 = vmatprep.subr.bf16.mxu0 %v1103_v15  ;;  %v1116_v28 = vld [vmem:[%s1250_s15 + $0x8] sm:$0xff]   ;;  %v1120_v31 = vld [vmem:[%s1250_s15 + $0x80] sm:$0xff]   ;;  %v409_v58 = vld [vmem:[#allocation2 + $0x18] sm:$0xff] }
  0x2e   : > { %1037 = vmatpush3.bf16.msra.mxu1 %v1102_v14  ;;  %v1117_v29 = vld [vmem:[%s1250_s15 + $0x88] sm:$0xff]   ;;  %v1123_v32 = vld [vmem:[%s1252_s16 + $0x4] ss:$12 sps:$4 sm:$0xff]  }
  0x2f   : > { %1038 = vmatprep.subr.bf16.mxu1 %v1105_v17  ;;  %v1124_v33 = vld [vmem:[%s1252_s16 + $0x8] ss:$12 sps:$4 sm:$0xff]   ;;  %675 = vmatprep.mubr.bf16.mxu0 %v1123_v32  ;;  %v1121_v35 = vld [vmem:[%s1252_s16] ss:$12 sps:$4 sm:$0xff]   ;;  %v1128_v38 = vld [vmem:[%s1252_s16 + $0x18] ss:$12 sps:$4 sm:$0xff]  }
  0x30   : > { %1001 = vmatpush3.bf16.msra.mxu0 %v1104_v16  ;;  %v1119_v34 = vld [vmem:[%s1250_s15] sm:$0xff]   ;;  %1050 = vmatprep.mubr.bf16.mxu1 %v1124_v33  ;;  %v1126_v36 = vld [vmem:[%s1252_s16 + $0x1c] ss:$12 sps:$4 sm:$0xff]  }
  0x31   : > { %1002 = vmatprep.subr.bf16.mxu0 %v1106_v18  ;;  %v1125_v37 = vld [vmem:[%s1252_s16 + $0x20] ss:$12 sps:$4 sm:$0xff]  }
  0x32   : > { %1039 = vmatpush3.bf16.msra.mxu1 %v1105_v17  ;;  %v408_v52 = vld [vmem:[#allocation2] sm:$0xff]  ;;  %v410_v0 = vld [vmem:[#allocation2 + $0x8] sm:$0xff] }
  0x33   : > { %1040 = vmatprep.subr.bf16.mxu1 %v1108_v20 }
  0x34   : > { %1003 = vmatpush3.bf16.msra.mxu0 %v1107_v19 }
  0x35   : > { %1004 = vmatprep.subr.bf16.mxu0 %v1109_v21 }
  0x36   : > { %1041 = vmatpush3.bf16.msra.mxu1 %v1108_v20 }
  0x37   : > { %1042 = vmatprep.subr.bf16.mxu1 %v1111_v22 }
  0x38   : > { %1005 = vmatpush3.bf16.msra.mxu0 %v1110_v23 }
  0x39   : > { %1006 = vmatprep.subr.bf16.mxu0 %v1112_v24 }
  0x3a   : > { %1043 = vmatpush3.bf16.msra.mxu1 %v1111_v22 }
  0x3b   : > { %1044 = vmatprep.subr.bf16.mxu1 %v1114_v25 }
  0x3c   : > { %1007 = vmatpush3.bf16.msra.mxu0 %v1113_v26 }
  0x3d   : > { %1008 = vmatprep.subr.bf16.mxu0 %v1115_v27 }
  0x3e   : > { %1045 = vmatpush3.bf16.msra.mxu1 %v1114_v25 }
  0x3f   : > { %1046 = vmatprep.subr.bf16.mxu1 %v1117_v29 }
  0x40   : > { %1009 = vmatpush3.bf16.msra.mxu0 %v1116_v28 }
  0x41   : > { %1010 = vmatprep.subr.bf16.mxu0 %v1118_v30 }
  0x42   : > { %1047 = vmatpush3.bf16.msra.mxu1 %v1117_v29 }
  0x43   : > { %1048 = vmatprep.subr.bf16.mxu1 %v1120_v31 }
  0x44   : > { %1011 = vmatpush3.bf16.msra.mxu0 %v1119_v34 }
  0x46   : > { %1049 = vmatpush3.bf16.msra.mxu1 %v1120_v31 }
  0x47   : > { %676 = vmatmul.mubr.bf16.vlgmr.msra.gmra.mxu0 %v1121_v35 }
  0x48   : > { %683 = vmatprep.mubr.bf16.mxu0 %v1126_v36 }
  0x49   : > { %1051 = vmatmul.mubr.bf16.vlgmr.msra.gmra.mxu1 %v1125_v37 }
  0x4f   : > { %684 = vmatmul.mubr.bf16.gmra.mxu0 %v1128_v38 }
 0x107   : > { %v1012_v39 = vpop.f32.mrf.mxu0 }
 0x109   : > { %v1013_v40 = vpop.f32.mrf.mxu0  ;;  %v1052_v41 = vpop.f32.mrf.mxu1 }
 0x10a   : > { %v1014_v42 = vadd.f32 %v1013_v40, %v1012_v39 }
 0x10b   : > { %v1015_v43 = vpop.f32.mrf.mxu0  ;;  %v726_v45 = vpop.f32.mrf.mxu1 }
 0x10c   : > { %v727_v46 = vadd.f32 %v1014_v42, %v726_v45 }
 0x10d   : > { %v1016_v47 = vpop.f32.mrf.mxu0  ;;  %v1053_v48 = vpop.f32.mrf.mxu1 }
 0x10e   : > { %v741_v49 = vadd.f32 %v727_v46, %v407_v44  ;;  %v1017_v50 = vadd.f32 %v1016_v47, %v1015_v43 }
 0x10f   : > { %v1018_v51 = vpop.f32.mrf.mxu0  ;;  %v729_v53 = vpop.f32.mrf.mxu1 }
 0x110   : > { %745 = vst [vmem:[#allocation2 + $0x10] sm:$0xff] %v741_v49  ;;  %v730_v54 = vadd.f32 %v1017_v50, %v729_v53 }
 0x111   : > { %v1019_v55 = vpop.f32.mrf.mxu0 }
 0x112   : > { %v742_v56 = vadd.f32 %v730_v54, %v408_v52  ;;  %v1020_v57 = vadd.f32 %v1019_v55, %v1018_v51 }
 0x113   : > { %v1021_v59 = vpop.f32.mrf.mxu0 }
 0x114   : > { %746 = vst [vmem:[#allocation2] sm:$0xff] %v742_v56  ;;  %v735_v60 = vadd.f32 %v1052_v41, %v1020_v57 }
 0x115   : > { %v1022_v61 = vpop.f32.mrf.mxu0 }
 0x116   : > { %v743_v62 = vadd.f32 %v735_v60, %v409_v58  ;;  %v1023_v63 = vadd.f32 %v1022_v61, %v1021_v59 }
 0x118   : > { %747 = vst [vmem:[#allocation2 + $0x18] sm:$0xff] %v743_v62  ;;  %v738_v1 = vadd.f32 %v1053_v48, %v1023_v63  ;;  %752 = sbr.rel (%p988_p11) target bundleno = 301 (0x12d), region = 74 }
 0x11a   : > { %v744_v2 = vadd.f32 %v738_v1, %v410_v0 }
 0x11c   : > { %748 = vst [vmem:[#allocation2 + $0x8] sm:$0xff] %v744_v2 }
 0x11d   : > { %v753_v3 = vld [vmem:[#allocation2 + $0x10] sm:$0xff]  ;;  %v989_v4 = vld [vmem:[%s1333_s2] ss:$0 sm:$0xff]  ;;  %v780_v13 = vld [vmem:[%s1335_s4 + $0x8] sm:$0xff] }
 0x11e   : > { %v990_v5 = vld [vmem:[%s1334_s3] ss:$0 sm:$0xff]  ;;  %v764_v6 = vmul.f32 %v989_v4, %v753_v3  ;;  %v781_v17 = vld [vmem:[%s1335_s4 + $0x10] sm:$0xff]  ;;  %v782_v18 = vld [vmem:[%s1335_s4 + $0x18] sm:$0xff] }
 0x11f   : > { %v754_v7 = vld [vmem:[#allocation2] sm:$0xff]  ;;  %v755_v10 = vld [vmem:[#allocation2 + $0x18] sm:$0xff] }
 0x120   : > { %v779_v8 = vld [vmem:[%s1335_s4] sm:$0xff]  ;;  %v765_v9 = vmul.f32 %v989_v4, %v754_v7  ;;  %v775_v12 = vadd.f32 %v990_v5, %v764_v6  ;;  %v766_v14 = vmul.f32 %v989_v4, %v755_v10 }
 0x122   : > { %v776_v16 = vadd.f32 %v990_v5, %v765_v9  ;;  %v783_v19 = vadd.f32 %v779_v8, %v775_v12  ;;  %v777_v20 = vadd.f32 %v990_v5, %v766_v14 }
 0x123   : > { %v756_v11 = vld [vmem:[#allocation2 + $0x8] sm:$0xff] }
 0x124   : > { %v767_v15 = vmul.f32 %v989_v4, %v756_v11  ;;  %v784_v22 = vadd.f32 %v780_v13, %v776_v16  ;;  %v787_v23 = vmax.f32 %v783_v19, 0.0  ;;  %v785_v24 = vadd.f32 %v781_v17, %v777_v20 }
 0x126   : > { %v778_v21 = vadd.f32 %v990_v5, %v767_v15  ;;  %v788_v26 = vmax.f32 %v784_v22, 0.0  ;;  %791 = vst [vmem:[%s1336_s5] sm:$0xff] %v787_v23  ;;  %v789_v27 = vmax.f32 %v785_v24, 0.0 }
 0x128   : > { %v786_v25 = vadd.f32 %v782_v18, %v778_v21  ;;  %792 = vst [vmem:[%s1336_s5 + $0x8] sm:$0xff] %v788_v26  ;;  %793 = vst [vmem:[%s1336_s5 + $0x10] sm:$0xff] %v789_v27 }
 0x12a   : > { %v790_v28 = vmax.f32 %v786_v25, 0.0 }
 0x12c   : > { %794 = vst [vmem:[%s1336_s5 + $0x18] sm:$0xff] %v790_v28 }
 0x12d PF: > { %s15_s22 = sadd.s32 1, %s1167_s22   ;;  %s1337_s18 = smov %s1155_s19 }
 0x12e   : > { %p12_p12 = scmp.ge.s32.totalorder %s15_s22, 5   ;;  %s1338_s19 = smov %s1235_s26 }
 0x12f   : > { %s1339_s20 = smov %s1163_s21  ;;  %s1340_s21 = smov %s1342_s23 }
 0x130   :  { %14 = sbr.rel (!%p12_p12) target bundleno = 3 (0x3), region = 127 }

// kernel: supervised_net_forward.35
= control target key start
LH: loop header
LB: loop body
LE: loop exit
PB: predicated region body
PF: predicated region fallthrough
CT: control target
= control target key end

     0   :  { %s1214_s15 = smov 0   ;;  %s1216_s16 = smov 0   ;;  %s1354_s0 = inlined_call_operand.vmem [shape: bf16[16,1152], index: 0, kind: input, shape index: {}]   ;;  %s1355_s1 = inlined_call_operand.vmem [shape: bf16[1152,256], index: 1, kind: input, shape index: {}]   ;;  %s1356_s2 = inlined_call_operand.vmem [shape: f32[1,256], index: 2, kind: input, shape index: {}]   ;;  %s1357_s3 = inlined_call_operand.vmem [shape: f32[1,256], index: 3, kind: input, shape index: {}]   ;;  %s1358_s4 = inlined_call_operand.vmem [shape: f32[16,256], index: 4, kind: output, shape index: {}]  }
   0x1   :  { %s1218_s17 = smov 0   ;;  %s1220_s18 = smov 0  }
   0x2   :  { %s1222_s19 = smov 0  }
   0x3 LB: > { %s26_s20 = sadd.s32 1, %s1181_s18  ;;  %p49_p1 = scmp.ne.s32.totalorder %s1173_s16, %s1169_s15  ;;  %s1185_s19 = sphi %s1222_s19, %s14_s19   ;;  %s1181_s18 = sphi %s1220_s18, %s1362_s18   ;;  %s1177_s17 = sphi %s1218_s17, %s1361_s17   ;;  %s1173_s16 = sphi %s1216_s16, %s1360_s16   ;;  %s1169_s15 = sphi %s1214_s15, %s1359_s15  }
   0x4   : > { %p27_p0 = scmp.ge.s32.totalorder %s26_s20, 3  ;;  %p50_p2 = scmp.eq.s32.totalorder %s1185_s19, 0 }
   0x5   : > { %s42_s22 = sadd.s32 1, %s1173_s16  ;;  %p959_p5 = scmp.ge.s32.totalorder %s1185_s19, 3 }
   0x6   : > { %s1364_s20 = smov (%p27_p0, %s26_s20), 0  ;;  %p51_p3 = por %p50_p2, %p49_p1 }
   0x7   : > { %s38_s21 = ssub.s32 %s1181_s18, %s1364_s20  ;;  %199 = sbr.rel (%p959_p5) target bundleno = 19 (0x13), region = 24 }
   0x8   : > { %p40_p4 = scmp.eq.s32.totalorder %s38_s21, 0 }
   0xa   : > { %s1249_s23 = scalar_select %p40_p4, %s1173_s16, %s42_s22  }
   0xc   : > { %202 = sbr.rel (!%p51_p3) target bundleno = 19 (0x13), region = 28  ;;  %s204_s24 = sand.u32 (%p51_p3), 1, %s1173_s16  }
   0xd   : > { %s1025_s25 = smul.u32 (%p51_p3), 12, %s1181_s18 }
   0xe   : > { %s1027_s26 = smul.u32 (%p51_p3), 24, %s204_s24 }
   0xf   : > { %s212_s29 = scalar_lea.vmem (%p51_p3), %s1354_s0, %s1025_s25 }
  0x10   : > { %v227_v0 = vld [vmem:[%s212_s29] sm:$0xff] (%p51_p3)  ;;  %v961_v2 = vld [vmem:[%s212_s29 + $0x8] sm:$0xf] (%p51_p3)  ;;  %s206_s30 = scalar_lea.vmem (%p51_p3), [#allocation3], %s1027_s26  ;;  %v963_v3 = vld [vmem:[%s212_s29 + $0x2c] sm:$0xf] (%p51_p3) }
  0x11   : > { %v229_v1 = vld [vmem:[%s212_s29 + $0x24] sm:$0xff]  ;;  %228 = vst [vmem:[%s206_s30] sm:$0xff] %v227_v0  ;;  %962 = vst [vmem:[%s206_s30 + $0x8] sm:$0xf] %v961_v2 }
  0x12   : > { %230 = vst [vmem:[%s206_s30 + $0xc] sm:$0xff] %v229_v1  ;;  %964 = vst [vmem:[%s206_s30 + $0x14] sm:$0xf] %v963_v3 }
  0x13 PF: > { %p965_p6 = scmp.ge.s32.totalorder %s1185_s19, 1  ;;  %p262_p7 = scmp.lt.s32.totalorder %s1185_s19, 4 }
  0x15   : > { %p263_p8 = pnand %p965_p6, %p262_p7 }
  0x16   : > { %s269_s5 = sand.u32 (!%p263_p8), 1, %s1169_s15   ;;  %s319_s6 = smul.u32 (!%p263_p8), 48, %s1177_s17 }
  0x17   : > { %266 = sbr.rel (%p263_p8) target bundleno = 321 (0x141), region = 58  ;;  %p968_p10 = scmp.ne.s32.totalorder (!%p263_p8), %s1177_s17, 0 }
  0x18   : > { %s1028_s7 = smul.u32 (!%p263_p8), 24, %s269_s5  ;;  %p321_p9 = scmp.lt.s32.totalorder (!%p263_p8), %s319_s6, 143 }
  0x1a   : > { %s1266_s12 = scalar_lea.vmem (!%p263_p8), [#allocation3], %s1028_s7 }
  0x1c   : > { %s1366_s6 = smov (!%p321_p9, %s319_s6), 143  ;;  %357 = sbr.rel (%p968_p10) target bundleno = 36 (0x24), region = 66 }
  0x1d   : > { %s1026_s8 = sshll.u32 %s1366_s6, 3 }
  0x1e   : > { %s1264_s11 = scalar_lea.vmem %s1355_s1, %s1026_s8 }
  0x21   : > { %v1187_v4 = vmov 0.0  }
  0x22   : > { %358 = vst [vmem:[#allocation2 + $0x10] sm:$0xff] %v1187_v4  ;;  %359 = vst [vmem:[#allocation2] sm:$0xff] %v1187_v4 }
  0x23   : > { %360 = vst [vmem:[#allocation2 + $0x18] sm:$0xff] %v1187_v4  ;;  %361 = vst [vmem:[#allocation2 + $0x8] sm:$0xff] %v1187_v4 }
  0x24 PF: > { %v1071_v5 = vld [vmem:[%s1264_s11 + $0x74] ss:$8 sps:$4 sm:$0xff]   ;;  %v1073_v6 = vld [vmem:[%s1264_s11 + $0x70] ss:$8 sps:$4 sm:$0xff]   ;;  %v1188_v7 = vmov 0   ;;  %p1020_p11 = scmp.ne.s32.totalorder %s1177_s17, 2 }
  0x25   : > { %749 = vmatprep.mubr.bf16.mxu1 %v1188_v7  ;;  %674 = vmatprep.subr.bf16.mxu0 %v1071_v5  ;;  %v1074_v8 = vld [vmem:[%s1264_s11 + $0x64] ss:$8 sps:$4 sm:$0xff]   ;;  %v1076_v9 = vld [vmem:[%s1264_s11 + $0x60] ss:$8 sps:$4 sm:$0xff]   ;;  %v1077_v10 = vld [vmem:[%s1264_s11 + $0x54] ss:$8 sps:$4 sm:$0xff]  }
  0x26   : > { %675 = vmatpush1.bf16.msra.mxu0 %v1073_v6  ;;  %v1079_v11 = vld [vmem:[%s1264_s11 + $0x50] ss:$8 sps:$4 sm:$0xff]   ;;  %v1080_v12 = vld [vmem:[%s1264_s11 + $0x44] ss:$8 sps:$4 sm:$0xff]   ;;  %v1092_v13 = vld [vmem:[%s1264_s11 + $0x174] ss:$8 sps:$4 sm:$0xff]  }
  0x27   : > { %676 = vmatprep.subr.bf16.mxu0 %v1074_v8  ;;  %v1094_v14 = vld [vmem:[%s1264_s11 + $0x170] ss:$8 sps:$4 sm:$0xff]   ;;  %v1082_v15 = vld [vmem:[%s1264_s11 + $0x40] ss:$8 sps:$4 sm:$0xff]   ;;  %v1083_v16 = vld [vmem:[%s1264_s11 + $0x34] ss:$8 sps:$4 sm:$0xff]   ;;  %717 = vmatprep.subr.bf16.mxu1 %v1092_v13 }
  0x28   : > { %v1098_v17 = vld [vmem:[%s1264_s11 + $0x164] ss:$8 sps:$4 sm:$0xff]   ;;  %718 = vmatpush1.bf16.msra.mxu1 %v1094_v14  ;;  %v1100_v18 = vld [vmem:[%s1264_s11 + $0x160] ss:$8 sps:$4 sm:$0xff]   ;;  %v1085_v19 = vld [vmem:[%s1264_s11 + $0x30] ss:$8 sps:$4 sm:$0xff]  }
  0x29   : > { %719 = vmatprep.subr.bf16.mxu1 %v1098_v17  ;;  %v1104_v20 = vld [vmem:[%s1264_s11 + $0x154] ss:$8 sps:$4 sm:$0xff]   ;;  %v1086_v21 = vld [vmem:[%s1264_s11 + $0x24] ss:$8 sps:$4 sm:$0xff]   ;;  %v1106_v22 = vld [vmem:[%s1264_s11 + $0x150] ss:$8 sps:$4 sm:$0xff]  }
  0x2a   : > { %677 = vmatpush1.bf16.msra.mxu0 %v1076_v9  ;;  %v1110_v23 = vld [vmem:[%s1264_s11 + $0x144] ss:$8 sps:$4 sm:$0xff]   ;;  %v1088_v24 = vld [vmem:[%s1264_s11 + $0x20] ss:$8 sps:$4 sm:$0xff]   ;;  %v1089_v25 = vld [vmem:[%s1264_s11 + $0x14] ss:$8 sps:$4 sm:$0xff]  }
  0x2b   : > { %678 = vmatprep.subr.bf16.mxu0 %v1077_v10  ;;  %v1112_v26 = vld [vmem:[%s1264_s11 + $0x140] ss:$8 sps:$4 sm:$0xff]   ;;  %v1116_v27 = vld [vmem:[%s1264_s11 + $0x134] ss:$8 sps:$4 sm:$0xff]   ;;  %v1091_v28 = vld [vmem:[%s1264_s11 + $0x10] ss:$8 sps:$4 sm:$0xff]  }
  0x2c   : > { %720 = vmatpush1.bf16.msra.mxu1 %v1100_v18  ;;  %v1095_v29 = vld [vmem:[%s1264_s11 + $0x4] ss:$8 sps:$4 sm:$0xff]   ;;  %v1118_v30 = vld [vmem:[%s1264_s11 + $0x130] ss:$8 sps:$4 sm:$0xff]   ;;  %v1097_v32 = vld [vmem:[%s1264_s11] ss:$8 sps:$4 sm:$0xff]  }
  0x2d   : > { %721 = vmatprep.subr.bf16.mxu1 %v1104_v20  ;;  %v1122_v31 = vld [vmem:[%s1264_s11 + $0x124] ss:$8 sps:$4 sm:$0xff]   ;;  %v1101_v33 = vld [vmem:[%s1264_s11 + $0xf4] ss:$8 sps:$4 sm:$0xff]   ;;  %v1124_v34 = vld [vmem:[%s1264_s11 + $0x120] ss:$8 sps:$4 sm:$0xff]  }
  0x2e   : > { %679 = vmatpush1.bf16.msra.mxu0 %v1079_v11  ;;  %v1128_v35 = vld [vmem:[%s1264_s11 + $0x114] ss:$8 sps:$4 sm:$0xff]   ;;  %v1103_v36 = vld [vmem:[%s1264_s11 + $0xf0] ss:$8 sps:$4 sm:$0xff]   ;;  %v1107_v37 = vld [vmem:[%s1264_s11 + $0xe4] ss:$8 sps:$4 sm:$0xff]  }
  0x2f   : > { %680 = vmatprep.subr.bf16.mxu0 %v1080_v12  ;;  %v1130_v38 = vld [vmem:[%s1264_s11 + $0x110] ss:$8 sps:$4 sm:$0xff]   ;;  %v1134_v39 = vld [vmem:[%s1264_s11 + $0x104] ss:$8 sps:$4 sm:$0xff]   ;;  %v1109_v41 = vld [vmem:[%s1264_s11 + $0xe0] ss:$8 sps:$4 sm:$0xff]  }
  0x30   : > { %722 = vmatpush1.bf16.msra.mxu1 %v1106_v22  ;;  %v1146_v40 = vld [vmem:[%s1266_s12 + $0x4] ss:$12 sps:$4 sm:$0xff]   ;;  %v1140_v46 = vld [vmem:[%s1266_s12 + $0x8] ss:$12 sps:$4 sm:$0xff]   ;;  %v1144_v56 = vld [vmem:[%s1266_s12] ss:$12 sps:$4 sm:$0xff]  }
  0x31   : > { %723 = vmatprep.subr.bf16.mxu1 %v1110_v23  ;;  %v1113_v42 = vld [vmem:[%s1264_s11 + $0xd4] ss:$8 sps:$4 sm:$0xff]   ;;  %706 = vmatprep.mubr.bf16.mxu0 %v1146_v40  ;;  %v1136_v43 = vld [vmem:[%s1264_s11 + $0x100] ss:$8 sps:$4 sm:$0xff]   ;;  %v1115_v44 = vld [vmem:[%s1264_s11 + $0xd0] ss:$8 sps:$4 sm:$0xff]  }
  0x32   : > { %681 = vmatpush1.bf16.msra.mxu0 %v1082_v15  ;;  %v1119_v45 = vld [vmem:[%s1264_s11 + $0xc4] ss:$8 sps:$4 sm:$0xff]   ;;  %v1121_v47 = vld [vmem:[%s1264_s11 + $0xc0] ss:$8 sps:$4 sm:$0xff]   ;;  %v1125_v48 = vld [vmem:[%s1264_s11 + $0xb4] ss:$8 sps:$4 sm:$0xff]  }
  0x33   : > { %682 = vmatprep.subr.bf16.mxu0 %v1083_v16  ;;  %v1127_v49 = vld [vmem:[%s1264_s11 + $0xb0] ss:$8 sps:$4 sm:$0xff]   ;;  %v1131_v50 = vld [vmem:[%s1264_s11 + $0xa4] ss:$8 sps:$4 sm:$0xff]   ;;  %v1133_v51 = vld [vmem:[%s1264_s11 + $0xa0] ss:$8 sps:$4 sm:$0xff]  }
  0x34   : > { %724 = vmatpush1.bf16.msra.mxu1 %v1112_v26  ;;  %v1137_v52 = vld [vmem:[%s1264_s11 + $0x94] ss:$8 sps:$4 sm:$0xff]   ;;  %v1139_v53 = vld [vmem:[%s1264_s11 + $0x90] ss:$8 sps:$4 sm:$0xff]   ;;  %v1141_v54 = vld [vmem:[%s1264_s11 + $0x84] ss:$8 sps:$4 sm:$0xff]  }
  0x35   : > { %725 = vmatprep.subr.bf16.mxu1 %v1116_v27  ;;  %v1143_v55 = vld [vmem:[%s1264_s11 + $0x80] ss:$8 sps:$4 sm:$0xff]   ;;  %v362_v59 = vld [vmem:[#allocation2 + $0x10] sm:$0xff]  ;;  %v364_v3 = vld [vmem:[#allocation2 + $0x18] sm:$0xff] }
  0x36   : > { %683 = vmatpush1.bf16.msra.mxu0 %v1085_v19  ;;  %v363_v63 = vld [vmem:[#allocation2] sm:$0xff]  ;;  %v365_v8 = vld [vmem:[#allocation2 + $0x8] sm:$0xff] }
  0x37   : > { %684 = vmatprep.subr.bf16.mxu0 %v1086_v21 }
  0x38   : > { %726 = vmatpush1.bf16.msra.mxu1 %v1118_v30 }
  0x39   : > { %727 = vmatprep.subr.bf16.mxu1 %v1122_v31 }
  0x3a   : > { %685 = vmatpush1.bf16.msra.mxu0 %v1088_v24 }
  0x3b   : > { %686 = vmatprep.subr.bf16.mxu0 %v1089_v25 }
  0x3c   : > { %728 = vmatpush1.bf16.msra.mxu1 %v1124_v34 }
  0x3d   : > { %729 = vmatprep.subr.bf16.mxu1 %v1128_v35 }
  0x3e   : > { %687 = vmatpush1.bf16.msra.mxu0 %v1091_v28 }
  0x3f   : > { %688 = vmatprep.subr.bf16.mxu0 %v1095_v29 }
  0x40   : > { %730 = vmatpush1.bf16.msra.mxu1 %v1130_v38 }
  0x41   : > { %731 = vmatprep.subr.bf16.mxu1 %v1134_v39 }
  0x42   : > { %689 = vmatpush1.bf16.msra.mxu0 %v1097_v32 }
  0x43   : > { %690 = vmatprep.subr.bf16.mxu0 %v1101_v33 }
  0x44   : > { %732 = vmatpush1.bf16.msra.mxu1 %v1136_v43 }
  0x46   : > { %691 = vmatpush2.bf16.msra.mxu0 %v1103_v36 }
  0x47   : > { %692 = vmatprep.subr.bf16.mxu0 %v1107_v37  ;;  %750 = vmatmul.mubr.bf16.vlgmr.msra.gmra.mxu1 %v1140_v46 }
  0x4a   : > { %693 = vmatpush2.bf16.msra.mxu0 %v1109_v41 }
  0x4b   : > { %694 = vmatprep.subr.bf16.mxu0 %v1113_v42 }
  0x4e   : > { %695 = vmatpush2.bf16.msra.mxu0 %v1115_v44 }
  0x4f   : > { %696 = vmatprep.subr.bf16.mxu0 %v1119_v45 }
  0x52   : > { %697 = vmatpush2.bf16.msra.mxu0 %v1121_v47 }
  0x53   : > { %698 = vmatprep.subr.bf16.mxu0 %v1125_v48 }
  0x56   : > { %699 = vmatpush2.bf16.msra.mxu0 %v1127_v49 }
  0x57   : > { %700 = vmatprep.subr.bf16.mxu0 %v1131_v50 }
  0x5a   : > { %701 = vmatpush2.bf16.msra.mxu0 %v1133_v51 }
  0x5b   : > { %702 = vmatprep.subr.bf16.mxu0 %v1137_v52 }
  0x5e   : > { %703 = vmatpush2.bf16.msra.mxu0 %v1139_v53 }
  0x5f   : > { %704 = vmatprep.subr.bf16.mxu0 %v1141_v54 }
  0x62   : > { %705 = vmatpush2.bf16.msra.mxu0 %v1143_v55 }
  0x65   : > { %707 = vmatmul.mubr.bf16.vlgmr.msra.gmra.mxu0 %v1144_v56 }
 0x107   : > { %v751_v57 = vpop.f32.mrf.mxu1 }
 0x109   : > { %v753_v58 = vpop.f32.mrf.mxu1 }
 0x10b   : > { %v755_v62 = vpop.f32.mrf.mxu1 }
 0x10d   : > { %v757_v7 = vpop.f32.mrf.mxu1 }
 0x125   : > { %v708_v60 = vpop.f32.mrf.mxu0 }
 0x126   : > { %v752_v61 = vadd.f32 %v751_v57, %v708_v60 }
 0x127   : > { %v710_v0 = vpop.f32.mrf.mxu0 }
 0x128   : > { %v760_v1 = vadd.f32 %v752_v61, %v362_v59  ;;  %v754_v2 = vadd.f32 %v753_v58, %v710_v0 }
 0x129   : > { %v712_v4 = vpop.f32.mrf.mxu0 }
 0x12a   : > { %764 = vst [vmem:[#allocation2 + $0x10] sm:$0xff] %v760_v1  ;;  %v761_v5 = vadd.f32 %v754_v2, %v363_v63  ;;  %v756_v6 = vadd.f32 %v755_v62, %v712_v4 }
 0x12b   : > { %v714_v9 = vpop.f32.mrf.mxu0 }
 0x12c   : > { %765 = vst [vmem:[#allocation2] sm:$0xff] %v761_v5  ;;  %v762_v10 = vadd.f32 %v756_v6, %v364_v3  ;;  %v758_v11 = vadd.f32 %v757_v7, %v714_v9  ;;  %771 = sbr.rel (%p1020_p11) target bundleno = 321 (0x141), region = 70 }
 0x12e   : > { %766 = vst [vmem:[#allocation2 + $0x18] sm:$0xff] %v762_v10  ;;  %v763_v12 = vadd.f32 %v758_v11, %v365_v8 }
 0x130   : > { %767 = vst [vmem:[#allocation2 + $0x8] sm:$0xff] %v763_v12 }
 0x131   : > { %v778_v13 = vlaneseq  ;;  %v776_v15 = vld [vmem:[%s1356_s2] sm:$0x3]  ;;  %v772_v17 = vld [vmem:[#allocation2 + $0x10] sm:$0xff] }
 0x132   : > { %v792_v16 = vld [vmem:[%s1357_s3] sm:$0x3] }
 0x133   : > { %v779_v14 = vshrl.u32 %v778_v13, 7  ;;  %v773_v20 = vld [vmem:[#allocation2] sm:$0xff] }
 0x135   : > { %v780_v18 = vsub.s32 0, %v779_v14  ;;  %v784_v19 = vsub.s32 1, %v779_v14  ;;  %v774_v21 = vld [vmem:[#allocation2 + $0x18] sm:$0xff] }
 0x137   : > { %v775_v22 = vld [vmem:[#allocation2 + $0x8] sm:$0xff]  ;;  %v781_v23 = vrot.slane %v776_v15, %v780_v18  ;;  %v797_v24 = vrot.slane %v792_v16, %v780_v18  ;;  %v785_v25 = vrot.slane %v776_v15, %v784_v19  ;;  %v801_v26 = vrot.slane %v792_v16, %v784_v19 }
 0x139   : > { %v788_v27 = vmul.f32 %v781_v23, %v772_v17  ;;  %v789_v28 = vmul.f32 %v785_v25, %v773_v20  ;;  %v790_v29 = vmul.f32 %v781_v23, %v774_v21  ;;  %v791_v30 = vmul.f32 %v785_v25, %v775_v22 }
 0x13b   : > { %v804_v31 = vadd.f32 %v797_v24, %v788_v27  ;;  %v805_v32 = vadd.f32 %v801_v26, %v789_v28  ;;  %v806_v33 = vadd.f32 %v797_v24, %v790_v29  ;;  %v807_v34 = vadd.f32 %v801_v26, %v791_v30 }
 0x13d   : > { %v808_v35 = vmax.f32 %v804_v31, 0.0  ;;  %v809_v36 = vmax.f32 %v805_v32, 0.0  ;;  %v810_v37 = vmax.f32 %v806_v33, 0.0  ;;  %v811_v38 = vmax.f32 %v807_v34, 0.0 }
 0x13f   : > { %812 = vst [vmem:[%s1358_s4] sm:$0xff] %v808_v35  ;;  %813 = vst [vmem:[%s1358_s4 + $0x8] sm:$0xff] %v809_v36 }
 0x140   : > { %814 = vst [vmem:[%s1358_s4 + $0x10] sm:$0xff] %v810_v37  ;;  %815 = vst [vmem:[%s1358_s4 + $0x18] sm:$0xff] %v811_v38 }
 0x141 PF: > { %s14_s19 = sadd.s32 1, %s1185_s19   ;;  %s1359_s15 = smov %s1173_s16 }
 0x142   : > { %p11_p12 = scmp.ge.s32.totalorder %s14_s19, 5   ;;  %s1360_s16 = smov %s1249_s23 }
 0x143   : > { %s1361_s17 = smov %s1181_s18  ;;  %s1362_s18 = smov %s1364_s20 }
 0x144   :  { %13 = sbr.rel (!%p11_p12) target bundleno = 3 (0x3), region = 120 }

// kernel: supervised_net_forward.34
= control target key start
LH: loop header
LB: loop body
LE: loop exit
PB: predicated region body
PF: predicated region fallthrough
CT: control target
= control target key end

     0   :  { %v275_v1 = vmov 0   ;;  %v194_v18 = vlaneseq  ;;  %s370_s1 = inlined_call_operand.vmem [shape: bf16[128,256], index: 1, kind: input, shape index: {}]   ;;  %s371_s0 = inlined_call_operand.vmem [shape: bf16[16,128], index: 0, kind: input, shape index: {}]   ;;  %s372_s2 = inlined_call_operand.vmem [shape: f32[1,256], index: 2, kind: input, shape index: {}]   ;;  %s373_s3 = inlined_call_operand.vmem [shape: f32[1,256], index: 3, kind: input, shape index: {}]   ;;  %s374_s4 = inlined_call_operand.vmem [shape: f32[16,256], index: 4, kind: output, shape index: {}]  }
   0x1   :  { %v250_v0 = vld [vmem:[%s370_s1 + $0x74] ss:$8 sps:$4 sm:$0xff]   ;;  %166 = vmatprep.mubr.bf16.mxu0 %v275_v1  ;;  %v252_v2 = vld [vmem:[%s370_s1 + $0x70] ss:$8 sps:$4 sm:$0xff]   ;;  %v253_v3 = vld [vmem:[%s370_s1 + $0x64] ss:$8 sps:$4 sm:$0xff]  }
   0x2   :  { %134 = vmatprep.subr.bf16.mxu0 %v250_v0  ;;  %v255_v4 = vld [vmem:[%s370_s1 + $0x60] ss:$8 sps:$4 sm:$0xff]   ;;  %v256_v5 = vld [vmem:[%s370_s1 + $0x54] ss:$8 sps:$4 sm:$0xff]   ;;  %v258_v6 = vld [vmem:[%s370_s1 + $0x50] ss:$8 sps:$4 sm:$0xff]  }
   0x3   :  { %135 = vmatpush1.bf16.msra.mxu0 %v252_v2  ;;  %v259_v7 = vld [vmem:[%s370_s1 + $0x44] ss:$8 sps:$4 sm:$0xff]   ;;  %v261_v8 = vld [vmem:[%s370_s1 + $0x40] ss:$8 sps:$4 sm:$0xff]   ;;  %v262_v9 = vld [vmem:[%s370_s1 + $0x34] ss:$8 sps:$4 sm:$0xff]  }
   0x4   :  { %136 = vmatprep.subr.bf16.mxu0 %v253_v3  ;;  %v264_v10 = vld [vmem:[%s370_s1 + $0x30] ss:$8 sps:$4 sm:$0xff]   ;;  %v265_v11 = vld [vmem:[%s370_s1 + $0x24] ss:$8 sps:$4 sm:$0xff]   ;;  %v267_v12 = vld [vmem:[%s370_s1 + $0x20] ss:$8 sps:$4 sm:$0xff]  }
   0x5   :  { %v268_v13 = vld [vmem:[%s370_s1 + $0x14] ss:$8 sps:$4 sm:$0xff]   ;;  %v270_v14 = vld [vmem:[%s370_s1 + $0x10] ss:$8 sps:$4 sm:$0xff]   ;;  %v271_v15 = vld [vmem:[%s370_s1 + $0x4] ss:$8 sps:$4 sm:$0xff]  }
   0x6   :  { %v273_v16 = vld [vmem:[%s370_s1] ss:$8 sps:$4 sm:$0xff]   ;;  %v195_v19 = vshrl.u32 %v194_v18, 7 }
   0x7   :  { %137 = vmatpush1.bf16.msra.mxu0 %v255_v4  ;;  %v274_v17 = vld [vmem:[%s371_s0] sm:$0xff]  }
   0x8   :  { %138 = vmatprep.subr.bf16.mxu0 %v256_v5  ;;  %v196_v20 = vsub.s32 0, %v195_v19  ;;  %v192_v21 = vld [vmem:[%s372_s2] sm:$0x3]  ;;  %v200_v22 = vsub.s32 1, %v195_v19 }
   0x9   :  { %v208_v23 = vld [vmem:[%s373_s3] sm:$0x3] }
   0xa   :  { %v197_v24 = vrot.slane %v192_v21, %v196_v20  ;;  %v213_v25 = vrot.slane %v208_v23, %v196_v20  ;;  %v201_v26 = vrot.slane %v192_v21, %v200_v22  ;;  %v217_v29 = vrot.slane %v208_v23, %v200_v22 }
   0xb   :  { %139 = vmatpush1.bf16.msra.mxu0 %v258_v6 }
   0xc   :  { %140 = vmatprep.subr.bf16.mxu0 %v259_v7 }
   0xf   :  { %141 = vmatpush1.bf16.msra.mxu0 %v261_v8 }
  0x10   :  { %142 = vmatprep.subr.bf16.mxu0 %v262_v9 }
  0x13   :  { %143 = vmatpush1.bf16.msra.mxu0 %v264_v10 }
  0x14   :  { %144 = vmatprep.subr.bf16.mxu0 %v265_v11 }
  0x17   :  { %145 = vmatpush1.bf16.msra.mxu0 %v267_v12 }
  0x18   :  { %146 = vmatprep.subr.bf16.mxu0 %v268_v13 }
  0x1b   :  { %147 = vmatpush1.bf16.msra.mxu0 %v270_v14 }
  0x1c   :  { %148 = vmatprep.subr.bf16.mxu0 %v271_v15 }
  0x1f   :  { %149 = vmatpush1.bf16.msra.mxu0 %v273_v16 }
  0x22   :  { %167 = vmatmul.mubr.bf16.vlgmr.msra.gmra.mxu0 %v274_v17 }
  0xe2   :  { %v168_v27 = vpop.f32.mrf.mxu0 }
  0xe3   :  { %v204_v28 = vmul.f32 %v197_v24, %v168_v27 }
  0xe4   :  { %v170_v30 = vpop.f32.mrf.mxu0 }
  0xe5   :  { %v220_v31 = vadd.f32 %v213_v25, %v204_v28  ;;  %v205_v32 = vmul.f32 %v201_v26, %v170_v30 }
  0xe6   :  { %v172_v33 = vpop.f32.mrf.mxu0 }
  0xe7   :  { %224 = vst [vmem:[%s374_s4] sm:$0xff] %v220_v31  ;;  %v221_v34 = vadd.f32 %v217_v29, %v205_v32  ;;  %v206_v35 = vmul.f32 %v197_v24, %v172_v33 }
  0xe8   :  { %v174_v36 = vpop.f32.mrf.mxu0 }
  0xe9   :  { %225 = vst [vmem:[%s374_s4 + $0x8] sm:$0xff] %v221_v34  ;;  %v222_v37 = vadd.f32 %v213_v25, %v206_v35  ;;  %v207_v38 = vmul.f32 %v201_v26, %v174_v36 }
  0xeb   :  { %226 = vst [vmem:[%s374_s4 + $0x10] sm:$0xff] %v222_v37  ;;  %v223_v39 = vadd.f32 %v217_v29, %v207_v38 }
  0xed   :  { %227 = vst [vmem:[%s374_s4 + $0x18] sm:$0xff] %v223_v39 }

// kernel: supervised_net_forward.36
= control target key start
LH: loop header
LB: loop body
LE: loop exit
PB: predicated region body
PF: predicated region fallthrough
CT: control target
= control target key end

     0   :  { %s1317_s18 = smov 0   ;;  %s1319_s19 = smov 0   ;;  %s1469_s0 = inlined_call_operand.vmem [shape: bf16[16,2304], index: 0, kind: input, shape index: {}]   ;;  %s1470_s1 = inlined_call_operand.vmem [shape: bf16[2304,256], index: 1, kind: input, shape index: {}]   ;;  %s1471_s2 = inlined_call_operand.vmem [shape: f32[1,256], index: 2, kind: input, shape index: {}]   ;;  %s1472_s3 = inlined_call_operand.vmem [shape: f32[1,256], index: 3, kind: input, shape index: {}]   ;;  %s1473_s4 = inlined_call_operand.vmem [shape: f32[16,256], index: 4, kind: input, shape index: {}]   ;;  %s1474_s5 = inlined_call_operand.vmem [shape: f32[16,256], index: 5, kind: output, shape index: {}]  }
   0x1   :  { %s1321_s20 = smov 0   ;;  %s1323_s21 = smov 0  }
   0x2   :  { %s1325_s22 = smov 0  }
   0x3 LB: > { %s27_s23 = sadd.s32 1, %s1279_s21  ;;  %p50_p1 = scmp.ne.s32.totalorder %s1271_s19, %s1267_s18  ;;  %s1283_s22 = sphi %s1325_s22, %s15_s22   ;;  %s1279_s21 = sphi %s1323_s21, %s1478_s21   ;;  %s1275_s20 = sphi %s1321_s20, %s1477_s20   ;;  %s1271_s19 = sphi %s1319_s19, %s1476_s19   ;;  %s1267_s18 = sphi %s1317_s18, %s1475_s18  }
   0x4   : > { %p28_p0 = scmp.ge.s32.totalorder %s27_s23, 6  ;;  %p51_p2 = scmp.eq.s32.totalorder %s1283_s22, 0 }
   0x5   : > { %s43_s25 = sadd.s32 1, %s1271_s19  ;;  %p1057_p5 = scmp.ge.s32.totalorder %s1283_s22, 6 }
   0x6   : > { %s1480_s23 = smov (%p28_p0, %s27_s23), 0  ;;  %p52_p3 = por %p51_p2, %p50_p1 }
   0x7   : > { %s39_s24 = ssub.s32 %s1279_s21, %s1480_s23  ;;  %243 = sbr.rel (%p1057_p5) target bundleno = 19 (0x13), region = 28 }
   0x8   : > { %p41_p4 = scmp.eq.s32.totalorder %s39_s24, 0 }
   0xa   : > { %s1352_s26 = scalar_select %p41_p4, %s1271_s19, %s43_s25  }
   0xc   : > { %246 = sbr.rel (!%p52_p3) target bundleno = 19 (0x13), region = 32  ;;  %s248_s27 = sand.u32 (%p52_p3), 1, %s1271_s19  }
   0xd   : > { %s1123_s28 = smul.u32 (%p52_p3), 12, %s1279_s21 }
   0xe   : > { %s1125_s29 = smul.u32 (%p52_p3), 24, %s248_s27 }
   0xf   : > { %s256_s7 = scalar_lea.vmem (%p52_p3), %s1469_s0, %s1123_s28 }
  0x10   : > { %v271_v0 = vld [vmem:[%s256_s7] sm:$0xff] (%p52_p3)  ;;  %v273_v1 = vld [vmem:[%s256_s7 + $0x48] sm:$0xff] (%p52_p3)  ;;  %s250_s8 = scalar_lea.vmem (%p52_p3), [#allocation3], %s1125_s29  ;;  %v1061_v3 = vld [vmem:[%s256_s7 + $0x50] sm:$0xf] (%p52_p3) }
  0x11   : > { %v1059_v2 = vld [vmem:[%s256_s7 + $0x8] sm:$0xf]  ;;  %272 = vst [vmem:[%s250_s8] sm:$0xff] %v271_v0  ;;  %274 = vst [vmem:[%s250_s8 + $0xc] sm:$0xff] %v273_v1 }
  0x12   : > { %1060 = vst [vmem:[%s250_s8 + $0x8] sm:$0xf] %v1059_v2  ;;  %1062 = vst [vmem:[%s250_s8 + $0x14] sm:$0xf] %v1061_v3 }
  0x13 PF: > { %p1063_p6 = scmp.ge.s32.totalorder %s1283_s22, 1  ;;  %p306_p7 = scmp.lt.s32.totalorder %s1283_s22, 7 }
  0x15   : > { %p307_p8 = pnand %p1063_p6, %p306_p7 }
  0x16   : > { %s313_s9 = sand.u32 (!%p307_p8), 1, %s1267_s18   ;;  %s375_s10 = smul.u32 (!%p307_p8), 48, %s1275_s20 }
  0x17   : > { %310 = sbr.rel (%p307_p8) target bundleno = 323 (0x143), region = 62  ;;  %p1066_p10 = scmp.ne.s32.totalorder (!%p307_p8), %s1275_s20, 0 }
  0x18   : > { %s1126_s11 = smul.u32 (!%p307_p8), 24, %s313_s9  ;;  %p377_p9 = scmp.lt.s32.totalorder (!%p307_p8), %s375_s10, 287 }
  0x1a   : > { %s1369_s16 = scalar_lea.vmem (!%p307_p8), [#allocation3], %s1126_s11 }
  0x1c   : > { %s1482_s10 = smov (!%p377_p9, %s375_s10), 287  ;;  %425 = sbr.rel (%p1066_p10) target bundleno = 36 (0x24), region = 70 }
  0x1d   : > { %s1124_s12 = sshll.u32 %s1482_s10, 3 }
  0x1e   : > { %s1367_s15 = scalar_lea.vmem %s1470_s1, %s1124_s12 }
  0x21   : > { %v1285_v4 = vmov 0.0  }
  0x22   : > { %426 = vst [vmem:[#allocation2 + $0x10] sm:$0xff] %v1285_v4  ;;  %427 = vst [vmem:[#allocation2] sm:$0xff] %v1285_v4 }
  0x23   : > { %428 = vst [vmem:[#allocation2 + $0x18] sm:$0xff] %v1285_v4  ;;  %429 = vst [vmem:[#allocation2 + $0x8] sm:$0xff] %v1285_v4 }
  0x24 PF: > { %v1169_v5 = vld [vmem:[%s1367_s15 + $0x74] ss:$8 sps:$4 sm:$0xff]   ;;  %v1171_v6 = vld [vmem:[%s1367_s15 + $0x70] ss:$8 sps:$4 sm:$0xff]   ;;  %v1286_v7 = vmov 0   ;;  %p1118_p11 = scmp.ne.s32.totalorder %s1275_s20, 5 }
  0x25   : > { %817 = vmatprep.mubr.bf16.mxu1 %v1286_v7  ;;  %742 = vmatprep.subr.bf16.mxu0 %v1169_v5  ;;  %v1172_v8 = vld [vmem:[%s1367_s15 + $0x64] ss:$8 sps:$4 sm:$0xff]   ;;  %v1174_v9 = vld [vmem:[%s1367_s15 + $0x60] ss:$8 sps:$4 sm:$0xff]   ;;  %v1175_v10 = vld [vmem:[%s1367_s15 + $0x54] ss:$8 sps:$4 sm:$0xff]  }
  0x26   : > { %743 = vmatpush1.bf16.msra.mxu0 %v1171_v6  ;;  %v1177_v11 = vld [vmem:[%s1367_s15 + $0x50] ss:$8 sps:$4 sm:$0xff]   ;;  %v1178_v12 = vld [vmem:[%s1367_s15 + $0x44] ss:$8 sps:$4 sm:$0xff]   ;;  %v1190_v13 = vld [vmem:[%s1367_s15 + $0x174] ss:$8 sps:$4 sm:$0xff]  }
  0x27   : > { %744 = vmatprep.subr.bf16.mxu0 %v1172_v8  ;;  %v1192_v14 = vld [vmem:[%s1367_s15 + $0x170] ss:$8 sps:$4 sm:$0xff]   ;;  %v1180_v15 = vld [vmem:[%s1367_s15 + $0x40] ss:$8 sps:$4 sm:$0xff]   ;;  %v1181_v16 = vld [vmem:[%s1367_s15 + $0x34] ss:$8 sps:$4 sm:$0xff]   ;;  %785 = vmatprep.subr.bf16.mxu1 %v1190_v13 }
  0x28   : > { %v1196_v17 = vld [vmem:[%s1367_s15 + $0x164] ss:$8 sps:$4 sm:$0xff]   ;;  %786 = vmatpush1.bf16.msra.mxu1 %v1192_v14  ;;  %v1198_v18 = vld [vmem:[%s1367_s15 + $0x160] ss:$8 sps:$4 sm:$0xff]   ;;  %v1183_v19 = vld [vmem:[%s1367_s15 + $0x30] ss:$8 sps:$4 sm:$0xff]  }
  0x29   : > { %787 = vmatprep.subr.bf16.mxu1 %v1196_v17  ;;  %v1202_v20 = vld [vmem:[%s1367_s15 + $0x154] ss:$8 sps:$4 sm:$0xff]   ;;  %v1184_v21 = vld [vmem:[%s1367_s15 + $0x24] ss:$8 sps:$4 sm:$0xff]   ;;  %v1204_v22 = vld [vmem:[%s1367_s15 + $0x150] ss:$8 sps:$4 sm:$0xff]  }
  0x2a   : > { %745 = vmatpush1.bf16.msra.mxu0 %v1174_v9  ;;  %v1208_v23 = vld [vmem:[%s1367_s15 + $0x144] ss:$8 sps:$4 sm:$0xff]   ;;  %v1186_v24 = vld [vmem:[%s1367_s15 + $0x20] ss:$8 sps:$4 sm:$0xff]   ;;  %v1187_v25 = vld [vmem:[%s1367_s15 + $0x14] ss:$8 sps:$4 sm:$0xff]  }
  0x2b   : > { %746 = vmatprep.subr.bf16.mxu0 %v1175_v10  ;;  %v1210_v26 = vld [vmem:[%s1367_s15 + $0x140] ss:$8 sps:$4 sm:$0xff]   ;;  %v1214_v27 = vld [vmem:[%s1367_s15 + $0x134] ss:$8 sps:$4 sm:$0xff]   ;;  %v1189_v28 = vld [vmem:[%s1367_s15 + $0x10] ss:$8 sps:$4 sm:$0xff]  }
  0x2c   : > { %788 = vmatpush1.bf16.msra.mxu1 %v1198_v18  ;;  %v1193_v29 = vld [vmem:[%s1367_s15 + $0x4] ss:$8 sps:$4 sm:$0xff]   ;;  %v1216_v30 = vld [vmem:[%s1367_s15 + $0x130] ss:$8 sps:$4 sm:$0xff]   ;;  %v1195_v32 = vld [vmem:[%s1367_s15] ss:$8 sps:$4 sm:$0xff]  }
  0x2d   : > { %789 = vmatprep.subr.bf16.mxu1 %v1202_v20  ;;  %v1220_v31 = vld [vmem:[%s1367_s15 + $0x124] ss:$8 sps:$4 sm:$0xff]   ;;  %v1199_v33 = vld [vmem:[%s1367_s15 + $0xf4] ss:$8 sps:$4 sm:$0xff]   ;;  %v1222_v34 = vld [vmem:[%s1367_s15 + $0x120] ss:$8 sps:$4 sm:$0xff]  }
  0x2e   : > { %747 = vmatpush1.bf16.msra.mxu0 %v1177_v11  ;;  %v1226_v35 = vld [vmem:[%s1367_s15 + $0x114] ss:$8 sps:$4 sm:$0xff]   ;;  %v1201_v36 = vld [vmem:[%s1367_s15 + $0xf0] ss:$8 sps:$4 sm:$0xff]   ;;  %v1205_v37 = vld [vmem:[%s1367_s15 + $0xe4] ss:$8 sps:$4 sm:$0xff]  }
  0x2f   : > { %748 = vmatprep.subr.bf16.mxu0 %v1178_v12  ;;  %v1228_v38 = vld [vmem:[%s1367_s15 + $0x110] ss:$8 sps:$4 sm:$0xff]   ;;  %v1232_v39 = vld [vmem:[%s1367_s15 + $0x104] ss:$8 sps:$4 sm:$0xff]   ;;  %v1207_v41 = vld [vmem:[%s1367_s15 + $0xe0] ss:$8 sps:$4 sm:$0xff]  }
  0x30   : > { %790 = vmatpush1.bf16.msra.mxu1 %v1204_v22  ;;  %v1244_v40 = vld [vmem:[%s1369_s16 + $0x4] ss:$12 sps:$4 sm:$0xff]   ;;  %v1238_v46 = vld [vmem:[%s1369_s16 + $0x8] ss:$12 sps:$4 sm:$0xff]   ;;  %v1242_v56 = vld [vmem:[%s1369_s16] ss:$12 sps:$4 sm:$0xff]  }
  0x31   : > { %791 = vmatprep.subr.bf16.mxu1 %v1208_v23  ;;  %v1211_v42 = vld [vmem:[%s1367_s15 + $0xd4] ss:$8 sps:$4 sm:$0xff]   ;;  %774 = vmatprep.mubr.bf16.mxu0 %v1244_v40  ;;  %v1234_v43 = vld [vmem:[%s1367_s15 + $0x100] ss:$8 sps:$4 sm:$0xff]   ;;  %v1213_v44 = vld [vmem:[%s1367_s15 + $0xd0] ss:$8 sps:$4 sm:$0xff]  }
  0x32   : > { %749 = vmatpush1.bf16.msra.mxu0 %v1180_v15  ;;  %v1217_v45 = vld [vmem:[%s1367_s15 + $0xc4] ss:$8 sps:$4 sm:$0xff]   ;;  %v1219_v47 = vld [vmem:[%s1367_s15 + $0xc0] ss:$8 sps:$4 sm:$0xff]   ;;  %v1223_v48 = vld [vmem:[%s1367_s15 + $0xb4] ss:$8 sps:$4 sm:$0xff]  }
  0x33   : > { %750 = vmatprep.subr.bf16.mxu0 %v1181_v16  ;;  %v1225_v49 = vld [vmem:[%s1367_s15 + $0xb0] ss:$8 sps:$4 sm:$0xff]   ;;  %v1229_v50 = vld [vmem:[%s1367_s15 + $0xa4] ss:$8 sps:$4 sm:$0xff]   ;;  %v1231_v51 = vld [vmem:[%s1367_s15 + $0xa0] ss:$8 sps:$4 sm:$0xff]  }
  0x34   : > { %792 = vmatpush1.bf16.msra.mxu1 %v1210_v26  ;;  %v1235_v52 = vld [vmem:[%s1367_s15 + $0x94] ss:$8 sps:$4 sm:$0xff]   ;;  %v1237_v53 = vld [vmem:[%s1367_s15 + $0x90] ss:$8 sps:$4 sm:$0xff]   ;;  %v1239_v54 = vld [vmem:[%s1367_s15 + $0x84] ss:$8 sps:$4 sm:$0xff]  }
  0x35   : > { %793 = vmatprep.subr.bf16.mxu1 %v1214_v27  ;;  %v1241_v55 = vld [vmem:[%s1367_s15 + $0x80] ss:$8 sps:$4 sm:$0xff]   ;;  %v430_v59 = vld [vmem:[#allocation2 + $0x10] sm:$0xff]  ;;  %v432_v3 = vld [vmem:[#allocation2 + $0x18] sm:$0xff] }
  0x36   : > { %751 = vmatpush1.bf16.msra.mxu0 %v1183_v19  ;;  %v431_v63 = vld [vmem:[#allocation2] sm:$0xff]  ;;  %v433_v8 = vld [vmem:[#allocation2 + $0x8] sm:$0xff] }
  0x37   : > { %752 = vmatprep.subr.bf16.mxu0 %v1184_v21 }
  0x38   : > { %794 = vmatpush1.bf16.msra.mxu1 %v1216_v30 }
  0x39   : > { %795 = vmatprep.subr.bf16.mxu1 %v1220_v31 }
  0x3a   : > { %753 = vmatpush1.bf16.msra.mxu0 %v1186_v24 }
  0x3b   : > { %754 = vmatprep.subr.bf16.mxu0 %v1187_v25 }
  0x3c   : > { %796 = vmatpush1.bf16.msra.mxu1 %v1222_v34 }
  0x3d   : > { %797 = vmatprep.subr.bf16.mxu1 %v1226_v35 }
  0x3e   : > { %755 = vmatpush1.bf16.msra.mxu0 %v1189_v28 }
  0x3f   : > { %756 = vmatprep.subr.bf16.mxu0 %v1193_v29 }
  0x40   : > { %798 = vmatpush1.bf16.msra.mxu1 %v1228_v38 }
  0x41   : > { %799 = vmatprep.subr.bf16.mxu1 %v1232_v39 }
  0x42   : > { %757 = vmatpush1.bf16.msra.mxu0 %v1195_v32 }
  0x43   : > { %758 = vmatprep.subr.bf16.mxu0 %v1199_v33 }
  0x44   : > { %800 = vmatpush1.bf16.msra.mxu1 %v1234_v43 }
  0x46   : > { %759 = vmatpush2.bf16.msra.mxu0 %v1201_v36 }
  0x47   : > { %760 = vmatprep.subr.bf16.mxu0 %v1205_v37  ;;  %818 = vmatmul.mubr.bf16.vlgmr.msra.gmra.mxu1 %v1238_v46 }
  0x4a   : > { %761 = vmatpush2.bf16.msra.mxu0 %v1207_v41 }
  0x4b   : > { %762 = vmatprep.subr.bf16.mxu0 %v1211_v42 }
  0x4e   : > { %763 = vmatpush2.bf16.msra.mxu0 %v1213_v44 }
  0x4f   : > { %764 = vmatprep.subr.bf16.mxu0 %v1217_v45 }
  0x52   : > { %765 = vmatpush2.bf16.msra.mxu0 %v1219_v47 }
  0x53   : > { %766 = vmatprep.subr.bf16.mxu0 %v1223_v48 }
  0x56   : > { %767 = vmatpush2.bf16.msra.mxu0 %v1225_v49 }
  0x57   : > { %768 = vmatprep.subr.bf16.mxu0 %v1229_v50 }
  0x5a   : > { %769 = vmatpush2.bf16.msra.mxu0 %v1231_v51 }
  0x5b   : > { %770 = vmatprep.subr.bf16.mxu0 %v1235_v52 }
  0x5e   : > { %771 = vmatpush2.bf16.msra.mxu0 %v1237_v53 }
  0x5f   : > { %772 = vmatprep.subr.bf16.mxu0 %v1239_v54 }
  0x62   : > { %773 = vmatpush2.bf16.msra.mxu0 %v1241_v55 }
  0x65   : > { %775 = vmatmul.mubr.bf16.vlgmr.msra.gmra.mxu0 %v1242_v56 }
 0x107   : > { %v819_v57 = vpop.f32.mrf.mxu1 }
 0x109   : > { %v821_v58 = vpop.f32.mrf.mxu1 }
 0x10b   : > { %v823_v62 = vpop.f32.mrf.mxu1 }
 0x10d   : > { %v825_v7 = vpop.f32.mrf.mxu1 }
 0x125   : > { %v776_v60 = vpop.f32.mrf.mxu0 }
 0x126   : > { %v820_v61 = vadd.f32 %v819_v57, %v776_v60 }
 0x127   : > { %v778_v0 = vpop.f32.mrf.mxu0 }
 0x128   : > { %v828_v1 = vadd.f32 %v820_v61, %v430_v59  ;;  %v822_v2 = vadd.f32 %v821_v58, %v778_v0 }
 0x129   : > { %v780_v4 = vpop.f32.mrf.mxu0 }
 0x12a   : > { %832 = vst [vmem:[#allocation2 + $0x10] sm:$0xff] %v828_v1  ;;  %v829_v5 = vadd.f32 %v822_v2, %v431_v63  ;;  %v824_v6 = vadd.f32 %v823_v62, %v780_v4 }
 0x12b   : > { %v782_v9 = vpop.f32.mrf.mxu0 }
 0x12c   : > { %833 = vst [vmem:[#allocation2] sm:$0xff] %v829_v5  ;;  %v830_v10 = vadd.f32 %v824_v6, %v432_v3  ;;  %v826_v11 = vadd.f32 %v825_v7, %v782_v9  ;;  %839 = sbr.rel (%p1118_p11) target bundleno = 323 (0x143), region = 74 }
 0x12e   : > { %834 = vst [vmem:[#allocation2 + $0x18] sm:$0xff] %v830_v10  ;;  %v831_v12 = vadd.f32 %v826_v11, %v433_v8 }
 0x130   : > { %835 = vst [vmem:[#allocation2 + $0x8] sm:$0xff] %v831_v12 }
 0x131   : > { %v846_v13 = vlaneseq  ;;  %v844_v15 = vld [vmem:[%s1471_s2] sm:$0x3]  ;;  %v840_v17 = vld [vmem:[#allocation2 + $0x10] sm:$0xff]  ;;  %v877_v32 = vld [vmem:[%s1473_s4 + $0x8] sm:$0xff] }
 0x132   : > { %v860_v16 = vld [vmem:[%s1472_s3] sm:$0x3]  ;;  %v878_v33 = vld [vmem:[%s1473_s4 + $0x10] sm:$0xff]  ;;  %v879_v34 = vld [vmem:[%s1473_s4 + $0x18] sm:$0xff] }
 0x133   : > { %v847_v14 = vshrl.u32 %v846_v13, 7  ;;  %v841_v20 = vld [vmem:[#allocation2] sm:$0xff] }
 0x134   : > { %v876_v28 = vld [vmem:[%s1473_s4] sm:$0xff] }
 0x135   : > { %v848_v18 = vsub.s32 0, %v847_v14  ;;  %v852_v19 = vsub.s32 1, %v847_v14  ;;  %v842_v21 = vld [vmem:[#allocation2 + $0x18] sm:$0xff] }
 0x137   : > { %v843_v22 = vld [vmem:[#allocation2 + $0x8] sm:$0xff]  ;;  %v849_v23 = vrot.slane %v844_v15, %v848_v18  ;;  %v865_v24 = vrot.slane %v860_v16, %v848_v18  ;;  %v853_v25 = vrot.slane %v844_v15, %v852_v19  ;;  %v869_v26 = vrot.slane %v860_v16, %v852_v19 }
 0x139   : > { %v856_v27 = vmul.f32 %v849_v23, %v840_v17  ;;  %v857_v29 = vmul.f32 %v853_v25, %v841_v20  ;;  %v858_v30 = vmul.f32 %v849_v23, %v842_v21  ;;  %v859_v31 = vmul.f32 %v853_v25, %v843_v22 }
 0x13b   : > { %v872_v35 = vadd.f32 %v865_v24, %v856_v27  ;;  %v873_v36 = vadd.f32 %v869_v26, %v857_v29  ;;  %v874_v37 = vadd.f32 %v865_v24, %v858_v30  ;;  %v875_v38 = vadd.f32 %v869_v26, %v859_v31 }
 0x13d   : > { %v880_v39 = vadd.f32 %v876_v28, %v872_v35  ;;  %v881_v40 = vadd.f32 %v877_v32, %v873_v36  ;;  %v882_v41 = vadd.f32 %v878_v33, %v874_v37  ;;  %v883_v42 = vadd.f32 %v879_v34, %v875_v38 }
 0x13f   : > { %v884_v43 = vmax.f32 %v880_v39, 0.0  ;;  %v885_v44 = vmax.f32 %v881_v40, 0.0  ;;  %v886_v45 = vmax.f32 %v882_v41, 0.0  ;;  %v887_v46 = vmax.f32 %v883_v42, 0.0 }
 0x141   : > { %888 = vst [vmem:[%s1474_s5] sm:$0xff] %v884_v43  ;;  %889 = vst [vmem:[%s1474_s5 + $0x8] sm:$0xff] %v885_v44 }
 0x142   : > { %890 = vst [vmem:[%s1474_s5 + $0x10] sm:$0xff] %v886_v45  ;;  %891 = vst [vmem:[%s1474_s5 + $0x18] sm:$0xff] %v887_v46 }
 0x143 PF: > { %s15_s22 = sadd.s32 1, %s1283_s22   ;;  %s1475_s18 = smov %s1271_s19 }
 0x144   : > { %p12_p12 = scmp.ge.s32.totalorder %s15_s22, 8   ;;  %s1476_s19 = smov %s1352_s26 }
 0x145   : > { %s1477_s20 = smov %s1279_s21  ;;  %s1478_s21 = smov %s1480_s23 }
 0x146   :  { %14 = sbr.rel (!%p12_p12) target bundleno = 3 (0x3), region = 127 }

// kernel: supervised_net_forward.37
= control target key start
LH: loop header
LB: loop body
LE: loop exit
PB: predicated region body
PF: predicated region fallthrough
CT: control target
= control target key end

     0   :  { %s1214_s15 = smov 0   ;;  %s1216_s16 = smov 0   ;;  %s1354_s0 = inlined_call_operand.vmem [shape: bf16[16,2304], index: 0, kind: input, shape index: {}]   ;;  %s1355_s1 = inlined_call_operand.vmem [shape: bf16[2304,256], index: 1, kind: input, shape index: {}]   ;;  %s1356_s2 = inlined_call_operand.vmem [shape: f32[1,256], index: 2, kind: input, shape index: {}]   ;;  %s1357_s3 = inlined_call_operand.vmem [shape: f32[1,256], index: 3, kind: input, shape index: {}]   ;;  %s1358_s4 = inlined_call_operand.vmem [shape: f32[16,256], index: 4, kind: output, shape index: {}]  }
   0x1   :  { %s1218_s17 = smov 0   ;;  %s1220_s18 = smov 0  }
   0x2   :  { %s1222_s19 = smov 0  }
   0x3 LB: > { %s26_s20 = sadd.s32 1, %s1181_s18  ;;  %p49_p1 = scmp.ne.s32.totalorder %s1173_s16, %s1169_s15  ;;  %s1185_s19 = sphi %s1222_s19, %s14_s19   ;;  %s1181_s18 = sphi %s1220_s18, %s1362_s18   ;;  %s1177_s17 = sphi %s1218_s17, %s1361_s17   ;;  %s1173_s16 = sphi %s1216_s16, %s1360_s16   ;;  %s1169_s15 = sphi %s1214_s15, %s1359_s15  }
   0x4   : > { %p27_p0 = scmp.ge.s32.totalorder %s26_s20, 6  ;;  %p50_p2 = scmp.eq.s32.totalorder %s1185_s19, 0 }
   0x5   : > { %s42_s22 = sadd.s32 1, %s1173_s16  ;;  %p959_p5 = scmp.ge.s32.totalorder %s1185_s19, 6 }
   0x6   : > { %s1364_s20 = smov (%p27_p0, %s26_s20), 0  ;;  %p51_p3 = por %p50_p2, %p49_p1 }
   0x7   : > { %s38_s21 = ssub.s32 %s1181_s18, %s1364_s20  ;;  %199 = sbr.rel (%p959_p5) target bundleno = 19 (0x13), region = 24 }
   0x8   : > { %p40_p4 = scmp.eq.s32.totalorder %s38_s21, 0 }
   0xa   : > { %s1249_s23 = scalar_select %p40_p4, %s1173_s16, %s42_s22  }
   0xc   : > { %202 = sbr.rel (!%p51_p3) target bundleno = 19 (0x13), region = 28  ;;  %s204_s24 = sand.u32 (%p51_p3), 1, %s1173_s16  }
   0xd   : > { %s1025_s25 = smul.u32 (%p51_p3), 12, %s1181_s18 }
   0xe   : > { %s1027_s26 = smul.u32 (%p51_p3), 24, %s204_s24 }
   0xf   : > { %s212_s29 = scalar_lea.vmem (%p51_p3), %s1354_s0, %s1025_s25 }
  0x10   : > { %v227_v0 = vld [vmem:[%s212_s29] sm:$0xff] (%p51_p3)  ;;  %v229_v1 = vld [vmem:[%s212_s29 + $0x48] sm:$0xff] (%p51_p3)  ;;  %s206_s30 = scalar_lea.vmem (%p51_p3), [#allocation3], %s1027_s26  ;;  %v963_v3 = vld [vmem:[%s212_s29 + $0x50] sm:$0xf] (%p51_p3) }
  0x11   : > { %v961_v2 = vld [vmem:[%s212_s29 + $0x8] sm:$0xf]  ;;  %228 = vst [vmem:[%s206_s30] sm:$0xff] %v227_v0  ;;  %230 = vst [vmem:[%s206_s30 + $0xc] sm:$0xff] %v229_v1 }
  0x12   : > { %962 = vst [vmem:[%s206_s30 + $0x8] sm:$0xf] %v961_v2  ;;  %964 = vst [vmem:[%s206_s30 + $0x14] sm:$0xf] %v963_v3 }
  0x13 PF: > { %p965_p6 = scmp.ge.s32.totalorder %s1185_s19, 1  ;;  %p262_p7 = scmp.lt.s32.totalorder %s1185_s19, 7 }
  0x15   : > { %p263_p8 = pnand %p965_p6, %p262_p7 }
  0x16   : > { %s269_s5 = sand.u32 (!%p263_p8), 1, %s1169_s15   ;;  %s319_s6 = smul.u32 (!%p263_p8), 48, %s1177_s17 }
  0x17   : > { %266 = sbr.rel (%p263_p8) target bundleno = 321 (0x141), region = 58  ;;  %p968_p10 = scmp.ne.s32.totalorder (!%p263_p8), %s1177_s17, 0 }
  0x18   : > { %s1028_s7 = smul.u32 (!%p263_p8), 24, %s269_s5  ;;  %p321_p9 = scmp.lt.s32.totalorder (!%p263_p8), %s319_s6, 287 }
  0x1a   : > { %s1266_s12 = scalar_lea.vmem (!%p263_p8), [#allocation3], %s1028_s7 }
  0x1c   : > { %s1366_s6 = smov (!%p321_p9, %s319_s6), 287  ;;  %357 = sbr.rel (%p968_p10) target bundleno = 36 (0x24), region = 66 }
  0x1d   : > { %s1026_s8 = sshll.u32 %s1366_s6, 3 }
  0x1e   : > { %s1264_s11 = scalar_lea.vmem %s1355_s1, %s1026_s8 }
  0x21   : > { %v1187_v4 = vmov 0.0  }
  0x22   : > { %358 = vst [vmem:[#allocation2 + $0x10] sm:$0xff] %v1187_v4  ;;  %359 = vst [vmem:[#allocation2] sm:$0xff] %v1187_v4 }
  0x23   : > { %360 = vst [vmem:[#allocation2 + $0x18] sm:$0xff] %v1187_v4  ;;  %361 = vst [vmem:[#allocation2 + $0x8] sm:$0xff] %v1187_v4 }
  0x24 PF: > { %v1071_v5 = vld [vmem:[%s1264_s11 + $0x74] ss:$8 sps:$4 sm:$0xff]   ;;  %v1073_v6 = vld [vmem:[%s1264_s11 + $0x70] ss:$8 sps:$4 sm:$0xff]   ;;  %v1188_v7 = vmov 0   ;;  %p1020_p11 = scmp.ne.s32.totalorder %s1177_s17, 5 }
  0x25   : > { %749 = vmatprep.mubr.bf16.mxu1 %v1188_v7  ;;  %674 = vmatprep.subr.bf16.mxu0 %v1071_v5  ;;  %v1074_v8 = vld [vmem:[%s1264_s11 + $0x64] ss:$8 sps:$4 sm:$0xff]   ;;  %v1076_v9 = vld [vmem:[%s1264_s11 + $0x60] ss:$8 sps:$4 sm:$0xff]   ;;  %v1077_v10 = vld [vmem:[%s1264_s11 + $0x54] ss:$8 sps:$4 sm:$0xff]  }
  0x26   : > { %675 = vmatpush1.bf16.msra.mxu0 %v1073_v6  ;;  %v1079_v11 = vld [vmem:[%s1264_s11 + $0x50] ss:$8 sps:$4 sm:$0xff]   ;;  %v1080_v12 = vld [vmem:[%s1264_s11 + $0x44] ss:$8 sps:$4 sm:$0xff]   ;;  %v1092_v13 = vld [vmem:[%s1264_s11 + $0x174] ss:$8 sps:$4 sm:$0xff]  }
  0x27   : > { %676 = vmatprep.subr.bf16.mxu0 %v1074_v8  ;;  %v1094_v14 = vld [vmem:[%s1264_s11 + $0x170] ss:$8 sps:$4 sm:$0xff]   ;;  %v1082_v15 = vld [vmem:[%s1264_s11 + $0x40] ss:$8 sps:$4 sm:$0xff]   ;;  %v1083_v16 = vld [vmem:[%s1264_s11 + $0x34] ss:$8 sps:$4 sm:$0xff]   ;;  %717 = vmatprep.subr.bf16.mxu1 %v1092_v13 }
  0x28   : > { %v1098_v17 = vld [vmem:[%s1264_s11 + $0x164] ss:$8 sps:$4 sm:$0xff]   ;;  %718 = vmatpush1.bf16.msra.mxu1 %v1094_v14  ;;  %v1100_v18 = vld [vmem:[%s1264_s11 + $0x160] ss:$8 sps:$4 sm:$0xff]   ;;  %v1085_v19 = vld [vmem:[%s1264_s11 + $0x30] ss:$8 sps:$4 sm:$0xff]  }
  0x29   : > { %719 = vmatprep.subr.bf16.mxu1 %v1098_v17  ;;  %v1104_v20 = vld [vmem:[%s1264_s11 + $0x154] ss:$8 sps:$4 sm:$0xff]   ;;  %v1086_v21 = vld [vmem:[%s1264_s11 + $0x24] ss:$8 sps:$4 sm:$0xff]   ;;  %v1106_v22 = vld [vmem:[%s1264_s11 + $0x150] ss:$8 sps:$4 sm:$0xff]  }
  0x2a   : > { %677 = vmatpush1.bf16.msra.mxu0 %v1076_v9  ;;  %v1110_v23 = vld [vmem:[%s1264_s11 + $0x144] ss:$8 sps:$4 sm:$0xff]   ;;  %v1088_v24 = vld [vmem:[%s1264_s11 + $0x20] ss:$8 sps:$4 sm:$0xff]   ;;  %v1089_v25 = vld [vmem:[%s1264_s11 + $0x14] ss:$8 sps:$4 sm:$0xff]  }
  0x2b   : > { %678 = vmatprep.subr.bf16.mxu0 %v1077_v10  ;;  %v1112_v26 = vld [vmem:[%s1264_s11 + $0x140] ss:$8 sps:$4 sm:$0xff]   ;;  %v1116_v27 = vld [vmem:[%s1264_s11 + $0x134] ss:$8 sps:$4 sm:$0xff]   ;;  %v1091_v28 = vld [vmem:[%s1264_s11 + $0x10] ss:$8 sps:$4 sm:$0xff]  }
  0x2c   : > { %720 = vmatpush1.bf16.msra.mxu1 %v1100_v18  ;;  %v1095_v29 = vld [vmem:[%s1264_s11 + $0x4] ss:$8 sps:$4 sm:$0xff]   ;;  %v1118_v30 = vld [vmem:[%s1264_s11 + $0x130] ss:$8 sps:$4 sm:$0xff]   ;;  %v1097_v32 = vld [vmem:[%s1264_s11] ss:$8 sps:$4 sm:$0xff]  }
  0x2d   : > { %721 = vmatprep.subr.bf16.mxu1 %v1104_v20  ;;  %v1122_v31 = vld [vmem:[%s1264_s11 + $0x124] ss:$8 sps:$4 sm:$0xff]   ;;  %v1101_v33 = vld [vmem:[%s1264_s11 + $0xf4] ss:$8 sps:$4 sm:$0xff]   ;;  %v1124_v34 = vld [vmem:[%s1264_s11 + $0x120] ss:$8 sps:$4 sm:$0xff]  }
  0x2e   : > { %679 = vmatpush1.bf16.msra.mxu0 %v1079_v11  ;;  %v1128_v35 = vld [vmem:[%s1264_s11 + $0x114] ss:$8 sps:$4 sm:$0xff]   ;;  %v1103_v36 = vld [vmem:[%s1264_s11 + $0xf0] ss:$8 sps:$4 sm:$0xff]   ;;  %v1107_v37 = vld [vmem:[%s1264_s11 + $0xe4] ss:$8 sps:$4 sm:$0xff]  }
  0x2f   : > { %680 = vmatprep.subr.bf16.mxu0 %v1080_v12  ;;  %v1130_v38 = vld [vmem:[%s1264_s11 + $0x110] ss:$8 sps:$4 sm:$0xff]   ;;  %v1134_v39 = vld [vmem:[%s1264_s11 + $0x104] ss:$8 sps:$4 sm:$0xff]   ;;  %v1109_v41 = vld [vmem:[%s1264_s11 + $0xe0] ss:$8 sps:$4 sm:$0xff]  }
  0x30   : > { %722 = vmatpush1.bf16.msra.mxu1 %v1106_v22  ;;  %v1146_v40 = vld [vmem:[%s1266_s12 + $0x4] ss:$12 sps:$4 sm:$0xff]   ;;  %v1140_v46 = vld [vmem:[%s1266_s12 + $0x8] ss:$12 sps:$4 sm:$0xff]   ;;  %v1144_v56 = vld [vmem:[%s1266_s12] ss:$12 sps:$4 sm:$0xff]  }
  0x31   : > { %723 = vmatprep.subr.bf16.mxu1 %v1110_v23  ;;  %v1113_v42 = vld [vmem:[%s1264_s11 + $0xd4] ss:$8 sps:$4 sm:$0xff]   ;;  %706 = vmatprep.mubr.bf16.mxu0 %v1146_v40  ;;  %v1136_v43 = vld [vmem:[%s1264_s11 + $0x100] ss:$8 sps:$4 sm:$0xff]   ;;  %v1115_v44 = vld [vmem:[%s1264_s11 + $0xd0] ss:$8 sps:$4 sm:$0xff]  }
  0x32   : > { %681 = vmatpush1.bf16.msra.mxu0 %v1082_v15  ;;  %v1119_v45 = vld [vmem:[%s1264_s11 + $0xc4] ss:$8 sps:$4 sm:$0xff]   ;;  %v1121_v47 = vld [vmem:[%s1264_s11 + $0xc0] ss:$8 sps:$4 sm:$0xff]   ;;  %v1125_v48 = vld [vmem:[%s1264_s11 + $0xb4] ss:$8 sps:$4 sm:$0xff]  }
  0x33   : > { %682 = vmatprep.subr.bf16.mxu0 %v1083_v16  ;;  %v1127_v49 = vld [vmem:[%s1264_s11 + $0xb0] ss:$8 sps:$4 sm:$0xff]   ;;  %v1131_v50 = vld [vmem:[%s1264_s11 + $0xa4] ss:$8 sps:$4 sm:$0xff]   ;;  %v1133_v51 = vld [vmem:[%s1264_s11 + $0xa0] ss:$8 sps:$4 sm:$0xff]  }
  0x34   : > { %724 = vmatpush1.bf16.msra.mxu1 %v1112_v26  ;;  %v1137_v52 = vld [vmem:[%s1264_s11 + $0x94] ss:$8 sps:$4 sm:$0xff]   ;;  %v1139_v53 = vld [vmem:[%s1264_s11 + $0x90] ss:$8 sps:$4 sm:$0xff]   ;;  %v1141_v54 = vld [vmem:[%s1264_s11 + $0x84] ss:$8 sps:$4 sm:$0xff]  }
  0x35   : > { %725 = vmatprep.subr.bf16.mxu1 %v1116_v27  ;;  %v1143_v55 = vld [vmem:[%s1264_s11 + $0x80] ss:$8 sps:$4 sm:$0xff]   ;;  %v362_v59 = vld [vmem:[#allocation2 + $0x10] sm:$0xff]  ;;  %v364_v3 = vld [vmem:[#allocation2 + $0x18] sm:$0xff] }
  0x36   : > { %683 = vmatpush1.bf16.msra.mxu0 %v1085_v19  ;;  %v363_v63 = vld [vmem:[#allocation2] sm:$0xff]  ;;  %v365_v8 = vld [vmem:[#allocation2 + $0x8] sm:$0xff] }
  0x37   : > { %684 = vmatprep.subr.bf16.mxu0 %v1086_v21 }
  0x38   : > { %726 = vmatpush1.bf16.msra.mxu1 %v1118_v30 }
  0x39   : > { %727 = vmatprep.subr.bf16.mxu1 %v1122_v31 }
  0x3a   : > { %685 = vmatpush1.bf16.msra.mxu0 %v1088_v24 }
  0x3b   : > { %686 = vmatprep.subr.bf16.mxu0 %v1089_v25 }
  0x3c   : > { %728 = vmatpush1.bf16.msra.mxu1 %v1124_v34 }
  0x3d   : > { %729 = vmatprep.subr.bf16.mxu1 %v1128_v35 }
  0x3e   : > { %687 = vmatpush1.bf16.msra.mxu0 %v1091_v28 }
  0x3f   : > { %688 = vmatprep.subr.bf16.mxu0 %v1095_v29 }
  0x40   : > { %730 = vmatpush1.bf16.msra.mxu1 %v1130_v38 }
  0x41   : > { %731 = vmatprep.subr.bf16.mxu1 %v1134_v39 }
  0x42   : > { %689 = vmatpush1.bf16.msra.mxu0 %v1097_v32 }
  0x43   : > { %690 = vmatprep.subr.bf16.mxu0 %v1101_v33 }
  0x44   : > { %732 = vmatpush1.bf16.msra.mxu1 %v1136_v43 }
  0x46   : > { %691 = vmatpush2.bf16.msra.mxu0 %v1103_v36 }
  0x47   : > { %692 = vmatprep.subr.bf16.mxu0 %v1107_v37  ;;  %750 = vmatmul.mubr.bf16.vlgmr.msra.gmra.mxu1 %v1140_v46 }
  0x4a   : > { %693 = vmatpush2.bf16.msra.mxu0 %v1109_v41 }
  0x4b   : > { %694 = vmatprep.subr.bf16.mxu0 %v1113_v42 }
  0x4e   : > { %695 = vmatpush2.bf16.msra.mxu0 %v1115_v44 }
  0x4f   : > { %696 = vmatprep.subr.bf16.mxu0 %v1119_v45 }
  0x52   : > { %697 = vmatpush2.bf16.msra.mxu0 %v1121_v47 }
  0x53   : > { %698 = vmatprep.subr.bf16.mxu0 %v1125_v48 }
  0x56   : > { %699 = vmatpush2.bf16.msra.mxu0 %v1127_v49 }
  0x57   : > { %700 = vmatprep.subr.bf16.mxu0 %v1131_v50 }
  0x5a   : > { %701 = vmatpush2.bf16.msra.mxu0 %v1133_v51 }
  0x5b   : > { %702 = vmatprep.subr.bf16.mxu0 %v1137_v52 }
  0x5e   : > { %703 = vmatpush2.bf16.msra.mxu0 %v1139_v53 }
  0x5f   : > { %704 = vmatprep.subr.bf16.mxu0 %v1141_v54 }
  0x62   : > { %705 = vmatpush2.bf16.msra.mxu0 %v1143_v55 }
  0x65   : > { %707 = vmatmul.mubr.bf16.vlgmr.msra.gmra.mxu0 %v1144_v56 }
 0x107   : > { %v751_v57 = vpop.f32.mrf.mxu1 }
 0x109   : > { %v753_v58 = vpop.f32.mrf.mxu1 }
 0x10b   : > { %v755_v62 = vpop.f32.mrf.mxu1 }
 0x10d   : > { %v757_v7 = vpop.f32.mrf.mxu1 }
 0x125   : > { %v708_v60 = vpop.f32.mrf.mxu0 }
 0x126   : > { %v752_v61 = vadd.f32 %v751_v57, %v708_v60 }
 0x127   : > { %v710_v0 = vpop.f32.mrf.mxu0 }
 0x128   : > { %v760_v1 = vadd.f32 %v752_v61, %v362_v59  ;;  %v754_v2 = vadd.f32 %v753_v58, %v710_v0 }
 0x129   : > { %v712_v4 = vpop.f32.mrf.mxu0 }
 0x12a   : > { %764 = vst [vmem:[#allocation2 + $0x10] sm:$0xff] %v760_v1  ;;  %v761_v5 = vadd.f32 %v754_v2, %v363_v63  ;;  %v756_v6 = vadd.f32 %v755_v62, %v712_v4 }
 0x12b   : > { %v714_v9 = vpop.f32.mrf.mxu0 }
 0x12c   : > { %765 = vst [vmem:[#allocation2] sm:$0xff] %v761_v5  ;;  %v762_v10 = vadd.f32 %v756_v6, %v364_v3  ;;  %v758_v11 = vadd.f32 %v757_v7, %v714_v9  ;;  %771 = sbr.rel (%p1020_p11) target bundleno = 321 (0x141), region = 70 }
 0x12e   : > { %766 = vst [vmem:[#allocation2 + $0x18] sm:$0xff] %v762_v10  ;;  %v763_v12 = vadd.f32 %v758_v11, %v365_v8 }
 0x130   : > { %767 = vst [vmem:[#allocation2 + $0x8] sm:$0xff] %v763_v12 }
 0x131   : > { %v778_v13 = vlaneseq  ;;  %v776_v15 = vld [vmem:[%s1356_s2] sm:$0x3]  ;;  %v772_v17 = vld [vmem:[#allocation2 + $0x10] sm:$0xff] }
 0x132   : > { %v792_v16 = vld [vmem:[%s1357_s3] sm:$0x3] }
 0x133   : > { %v779_v14 = vshrl.u32 %v778_v13, 7  ;;  %v773_v20 = vld [vmem:[#allocation2] sm:$0xff] }
 0x135   : > { %v780_v18 = vsub.s32 0, %v779_v14  ;;  %v784_v19 = vsub.s32 1, %v779_v14  ;;  %v774_v21 = vld [vmem:[#allocation2 + $0x18] sm:$0xff] }
 0x137   : > { %v775_v22 = vld [vmem:[#allocation2 + $0x8] sm:$0xff]  ;;  %v781_v23 = vrot.slane %v776_v15, %v780_v18  ;;  %v797_v24 = vrot.slane %v792_v16, %v780_v18  ;;  %v785_v25 = vrot.slane %v776_v15, %v784_v19  ;;  %v801_v26 = vrot.slane %v792_v16, %v784_v19 }
 0x139   : > { %v788_v27 = vmul.f32 %v781_v23, %v772_v17  ;;  %v789_v28 = vmul.f32 %v785_v25, %v773_v20  ;;  %v790_v29 = vmul.f32 %v781_v23, %v774_v21  ;;  %v791_v30 = vmul.f32 %v785_v25, %v775_v22 }
 0x13b   : > { %v804_v31 = vadd.f32 %v797_v24, %v788_v27  ;;  %v805_v32 = vadd.f32 %v801_v26, %v789_v28  ;;  %v806_v33 = vadd.f32 %v797_v24, %v790_v29  ;;  %v807_v34 = vadd.f32 %v801_v26, %v791_v30 }
 0x13d   : > { %v808_v35 = vmax.f32 %v804_v31, 0.0  ;;  %v809_v36 = vmax.f32 %v805_v32, 0.0  ;;  %v810_v37 = vmax.f32 %v806_v33, 0.0  ;;  %v811_v38 = vmax.f32 %v807_v34, 0.0 }
 0x13f   : > { %812 = vst [vmem:[%s1358_s4] sm:$0xff] %v808_v35  ;;  %813 = vst [vmem:[%s1358_s4 + $0x8] sm:$0xff] %v809_v36 }
 0x140   : > { %814 = vst [vmem:[%s1358_s4 + $0x10] sm:$0xff] %v810_v37  ;;  %815 = vst [vmem:[%s1358_s4 + $0x18] sm:$0xff] %v811_v38 }
 0x141 PF: > { %s14_s19 = sadd.s32 1, %s1185_s19   ;;  %s1359_s15 = smov %s1173_s16 }
 0x142   : > { %p11_p12 = scmp.ge.s32.totalorder %s14_s19, 8   ;;  %s1360_s16 = smov %s1249_s23 }
 0x143   : > { %s1361_s17 = smov %s1181_s18  ;;  %s1362_s18 = smov %s1364_s20 }
 0x144   :  { %13 = sbr.rel (!%p11_p12) target bundleno = 3 (0x3), region = 120 }

// kernel: supervised_net_forward.40
= control target key start
LH: loop header
LB: loop body
LE: loop exit
PB: predicated region body
PF: predicated region fallthrough
CT: control target
= control target key end

     0   :  { %s1874_s0 = inlined_call_operand.vmem [shape: bf16[16,2304], index: 0, kind: input, shape index: {}]   ;;  %s1875_s1 = inlined_call_operand.vmem [shape: bf16[2304,512], index: 1, kind: input, shape index: {}]   ;;  %s1876_s2 = inlined_call_operand.vmem [shape: f32[1,512], index: 2, kind: input, shape index: {}]   ;;  %s1877_s3 = inlined_call_operand.vmem [shape: f32[1,512], index: 3, kind: input, shape index: {}]   ;;  %s1878_s4 = inlined_call_operand.vmem [shape: f32[16,512], index: 4, kind: output, shape index: {}]  }
   0x1   :  { %1881 = sst [smem:[#allocation8_spill]] %s1874_s0 }
   0x2   :  { %1882 = sst [smem:[#allocation9_spill]] %s1875_s1 }
   0x3   :  { %s1528_s15 = smov 0   ;;  %s1530_s16 = smov 0  }
   0x4   :  { %s1532_s17 = smov 0   ;;  %s1534_s18 = smov 0  }
   0x5   :  { %s1536_s19 = smov 0   ;;  %s1538_s20 = smov 0  }
   0x6   :  { %s1540_s21 = smov 0   ;;  %s1542_s22 = smov 0  }
   0x7   :  { %s1544_s23 = smov 0   ;;  %s1546_s24 = smov 0  }
   0x8   :  { %s1548_s25 = smov 0  }
   0x9 LB: > { %s1166_s26 = sadd.s32 4294967295, %s1499_s25   ;;  %s26_s27 = sadd.s32 1, %s1491_s23  ;;  %s1499_s25 = sphi %s1548_s25, %s14_s25   ;;  %s1495_s24 = sphi %s1546_s24, %s1901_s24   ;;  %s1491_s23 = sphi %s1544_s23, %s1900_s23   ;;  %s1487_s22 = sphi %s1542_s22, %s1899_s22   ;;  %s1483_s21 = sphi %s1540_s21, %s1898_s21   ;;  %s1479_s20 = sphi %s1538_s20, %s1897_s20   ;;  %s1475_s19 = sphi %s1536_s19, %s1896_s19   ;;  %s1471_s18 = sphi %s1534_s18, %s1895_s18   ;;  %s1467_s17 = sphi %s1532_s17, %s1894_s17   ;;  %s1463_s16 = sphi %s1530_s16, %s1893_s16   ;;  %s1459_s15 = sphi %s1528_s15, %s1892_s15  }
   0xa   : > { %p27_p0 = scmp.ge.s32.totalorder %s26_s27, 6  ;;  %s29_s28 = sadd.s32 1, %s1495_s24 }
   0xb   : > { %s42_s29 = sadd.s32 1, %s1479_s20  ;;  %p49_p1 = scmp.ne.s32.totalorder %s1479_s20, %s1475_s19 }
   0xc   : > { %s1903_s27 = smov (%p27_p0, %s26_s27), 0  ;;  %s1905_s28 = smov (!%p27_p0, %s29_s28), %s1495_s24 }
   0xd   : > { %1883 = sst [smem:[#allocation6_spill]] %s1903_s27  ;;  %s38_s30 = ssub.s32 %s1491_s23, %s1903_s27 }
   0xe   : > { %p50_p2 = scmp.eq.s32.totalorder %s1499_s25, 0  ;;  %p31_p3 = scmp.ge.s32.totalorder %s1905_s28, 2 }
   0xf   : > { %p40_p4 = scmp.eq.s32.totalorder %s38_s30, 0  ;;  %s70_s6 = sadd.s32 1, %s1471_s18 }
  0x10   : > { %p1595_p5 = por %p50_p2, %p49_p1  ;;  %s1907_s28 = smov (%p31_p3, %s1905_s28), 0 }
  0x11   : > { %1885 = sst [smem:[#allocation7_spill]] %s1907_s28  ;;  %s66_s8 = ssub.s32 %s1495_s24, %s1907_s28 }
  0x12   : > { %s1603_s7 = scalar_select %p40_p4, %s1479_s20, %s42_s29  }
  0x13   : > { %p77_p6 = scmp.ne.s32.totalorder %s1471_s18, %s1467_s17  ;;  %s67_s9 = sor.u32 %s66_s8, %s38_s30 }
  0x14   : > { %p148_p7 = scmp.eq.s32.totalorder %s66_s8, 0  ;;  %p68_p8 = scmp.eq.s32.totalorder %s67_s9, 0 }
  0x15   : > { %p1609_p9 = por %p77_p6, %p50_p2  ;;  %s150_s11 = sadd.s32 1, %s1463_s16 }
  0x16   : > { %p160_p10 = scmp.ne.s32.totalorder %s1463_s16, %s1459_s15  ;;  %p161_p11 = scmp.eq.s32.totalorder %s1166_s26, 11 }
  0x17   : > { %s1617_s12 = scalar_select %p68_p8, %s1471_s18, %s70_s6  }
  0x18   : > { %s1620_s13 = scalar_select %p148_p7, %s1463_s16, %s150_s11  }
  0x19   : > { %p1622_p12 = por %p161_p11, %p160_p10  ;;  %p1169_p13 = scmp.ge.s32.totalorder %s1499_s25, 12 }
  0x1b   : > { %183 = sbr.rel (%p1169_p13) target bundleno = 77 (0x4d), region = 16 }
  0x20   : > { %186 = sbr.rel (!%p1595_p5) target bundleno = 43 (0x2b), region = 20  ;;  %s188_s29 = sand.u32 (%p1595_p5), 1, %s1479_s20  }
  0x21   : > { %s1240_s30 = smul.u32 (%p1595_p5), 12, %s1491_s23  ;;  %s1888_s0 = sld [smem:[#allocation8_spill]] (%p1595_p5) }
  0x22   : > { %s1243_s8 = smul.u32 (%p1595_p5), 24, %s188_s29 }
  0x24   : > { %s190_s26 = scalar_lea.vmem (%p1595_p5), [#allocation3], %s1243_s8 }
  0x27   : > { %s196_s11 = scalar_lea.vmem %s1888_s0, %s1240_s30 }
  0x28   : > { %v211_v0 = vld [vmem:[%s196_s11] sm:$0xff]  ;;  %v213_v1 = vld [vmem:[%s196_s11 + $0x48] sm:$0xff]  ;;  %v1173_v3 = vld [vmem:[%s196_s11 + $0x50] sm:$0xf] }
  0x29   : > { %v1171_v2 = vld [vmem:[%s196_s11 + $0x8] sm:$0xf]  ;;  %212 = vst [vmem:[%s190_s26] sm:$0xff] %v211_v0  ;;  %214 = vst [vmem:[%s190_s26 + $0xc] sm:$0xff] %v213_v1 }
  0x2a   : > { %1172 = vst [vmem:[%s190_s26 + $0x8] sm:$0xf] %v1171_v2  ;;  %1174 = vst [vmem:[%s190_s26 + $0x14] sm:$0xf] %v1173_v3 }
  0x2b PF: > { %232 = sbr.rel (!%p1609_p9) target bundleno = 77 (0x4d), region = 46  ;;  %s234_s5 = sand.u32 (%p1609_p9), 1, %s1471_s18  }
  0x2c   : > { %s1244_s29 = smul.u32 (%p1609_p9), 384, %s234_s5  ;;  %s1175_s6 = sshll.u32 (%p1609_p9), %s1495_s24, 1 }
  0x2d   : > { %s1241_s30 = smul.u32 (%p1609_p9), 192, %s1491_s23  ;;  %s1889_s1 = sld [smem:[#allocation9_spill]] (%p1609_p9) }
  0x2e   : > { %s1647_s10 = scalar_lea.vmem (%p1609_p9), [#allocation4], %s1244_s29 }
  0x2f   : > { %s240_s9 = sadd.s32 (%p1609_p9), %s1241_s30, %s1175_s6 }
  0x30   : > { %s1177_s0 = sshll.u32 %s240_s9, 2 }
  0x33   : > { %s1642_s27 = scalar_lea.vmem %s1889_s1, %s1177_s0 }
  0x34   : > { %v365_v4 = vld [vmem:[%s1642_s27] sm:$0xff]  ;;  %v367_v5 = vld [vmem:[%s1642_s27 + $0x10] sm:$0xff] }
  0x35   : > { %v369_v6 = vld [vmem:[%s1642_s27 + $0x20] sm:$0xff]  ;;  %366 = vst [vmem:[%s1647_s10] sm:$0xff] %v365_v4  ;;  %368 = vst [vmem:[%s1647_s10 + $0x8] sm:$0xff] %v367_v5  ;;  %v371_v7 = vld [vmem:[%s1642_s27 + $0x30] sm:$0xff] }
  0x36   : > { %370 = vst [vmem:[%s1647_s10 + $0x10] sm:$0xff] %v369_v6  ;;  %v373_v8 = vld [vmem:[%s1642_s27 + $0x40] sm:$0xff]  ;;  %v375_v9 = vld [vmem:[%s1642_s27 + $0x50] sm:$0xff]  ;;  %372 = vst [vmem:[%s1647_s10 + $0x18] sm:$0xff] %v371_v7 }
  0x37   : > { %374 = vst [vmem:[%s1647_s10 + $0x20] sm:$0xff] %v373_v8  ;;  %376 = vst [vmem:[%s1647_s10 + $0x28] sm:$0xff] %v375_v9  ;;  %v377_v10 = vld [vmem:[%s1642_s27 + $0x60] sm:$0xff]  ;;  %v379_v11 = vld [vmem:[%s1642_s27 + $0x70] sm:$0xff] }
  0x38   : > { %v381_v12 = vld [vmem:[%s1642_s27 + $0x80] sm:$0xff]  ;;  %378 = vst [vmem:[%s1647_s10 + $0x30] sm:$0xff] %v377_v10  ;;  %380 = vst [vmem:[%s1647_s10 + $0x38] sm:$0xff] %v379_v11  ;;  %v383_v13 = vld [vmem:[%s1642_s27 + $0x90] sm:$0xff] }
  0x39   : > { %382 = vst [vmem:[%s1647_s10 + $0x40] sm:$0xff] %v381_v12  ;;  %v385_v14 = vld [vmem:[%s1642_s27 + $0xa0] sm:$0xff]  ;;  %v387_v15 = vld [vmem:[%s1642_s27 + $0xb0] sm:$0xff]  ;;  %384 = vst [vmem:[%s1647_s10 + $0x48] sm:$0xff] %v383_v13 }
  0x3a   : > { %386 = vst [vmem:[%s1647_s10 + $0x50] sm:$0xff] %v385_v14  ;;  %388 = vst [vmem:[%s1647_s10 + $0x58] sm:$0xff] %v387_v15  ;;  %v389_v16 = vld [vmem:[%s1642_s27 + $0xc0] sm:$0xff]  ;;  %v391_v17 = vld [vmem:[%s1642_s27 + $0xd0] sm:$0xff] }
  0x3b   : > { %v393_v18 = vld [vmem:[%s1642_s27 + $0xe0] sm:$0xff]  ;;  %390 = vst [vmem:[%s1647_s10 + $0x60] sm:$0xff] %v389_v16  ;;  %392 = vst [vmem:[%s1647_s10 + $0x68] sm:$0xff] %v391_v17  ;;  %v395_v19 = vld [vmem:[%s1642_s27 + $0xf0] sm:$0xff] }
  0x3c   : > { %394 = vst [vmem:[%s1647_s10 + $0x70] sm:$0xff] %v393_v18  ;;  %v397_v20 = vld [vmem:[%s1642_s27 + $0x100] sm:$0xff]  ;;  %v399_v21 = vld [vmem:[%s1642_s27 + $0x110] sm:$0xff]  ;;  %396 = vst [vmem:[%s1647_s10 + $0x78] sm:$0xff] %v395_v19 }
  0x3d   : > { %398 = vst [vmem:[%s1647_s10 + $0x80] sm:$0xff] %v397_v20  ;;  %400 = vst [vmem:[%s1647_s10 + $0x88] sm:$0xff] %v399_v21  ;;  %v401_v22 = vld [vmem:[%s1642_s27 + $0x120] sm:$0xff]  ;;  %v403_v23 = vld [vmem:[%s1642_s27 + $0x130] sm:$0xff] }
  0x3e   : > { %v405_v24 = vld [vmem:[%s1642_s27 + $0x140] sm:$0xff]  ;;  %402 = vst [vmem:[%s1647_s10 + $0x90] sm:$0xff] %v401_v22  ;;  %404 = vst [vmem:[%s1647_s10 + $0x98] sm:$0xff] %v403_v23  ;;  %v407_v25 = vld [vmem:[%s1642_s27 + $0x150] sm:$0xff] }
  0x3f   : > { %406 = vst [vmem:[%s1647_s10 + $0xa0] sm:$0xff] %v405_v24  ;;  %v409_v26 = vld [vmem:[%s1642_s27 + $0x160] sm:$0xff]  ;;  %v411_v27 = vld [vmem:[%s1642_s27 + $0x170] sm:$0xff]  ;;  %408 = vst [vmem:[%s1647_s10 + $0xa8] sm:$0xff] %v407_v25 }
  0x40   : > { %410 = vst [vmem:[%s1647_s10 + $0xb0] sm:$0xff] %v409_v26  ;;  %412 = vst [vmem:[%s1647_s10 + $0xb8] sm:$0xff] %v411_v27  ;;  %v413_v28 = vld [vmem:[%s1642_s27 + $0x180] sm:$0xff]  ;;  %v415_v29 = vld [vmem:[%s1642_s27 + $0x190] sm:$0xff] }
  0x41   : > { %v417_v30 = vld [vmem:[%s1642_s27 + $0x1a0] sm:$0xff]  ;;  %414 = vst [vmem:[%s1647_s10 + $0xc0] sm:$0xff] %v413_v28  ;;  %416 = vst [vmem:[%s1647_s10 + $0xc8] sm:$0xff] %v415_v29  ;;  %v419_v31 = vld [vmem:[%s1642_s27 + $0x1b0] sm:$0xff] }
  0x42   : > { %418 = vst [vmem:[%s1647_s10 + $0xd0] sm:$0xff] %v417_v30  ;;  %v421_v32 = vld [vmem:[%s1642_s27 + $0x1c0] sm:$0xff]  ;;  %v423_v33 = vld [vmem:[%s1642_s27 + $0x1d0] sm:$0xff]  ;;  %420 = vst [vmem:[%s1647_s10 + $0xd8] sm:$0xff] %v419_v31 }
  0x43   : > { %422 = vst [vmem:[%s1647_s10 + $0xe0] sm:$0xff] %v421_v32  ;;  %424 = vst [vmem:[%s1647_s10 + $0xe8] sm:$0xff] %v423_v33  ;;  %v425_v34 = vld [vmem:[%s1642_s27 + $0x1e0] sm:$0xff]  ;;  %v427_v35 = vld [vmem:[%s1642_s27 + $0x1f0] sm:$0xff] }
  0x44   : > { %v429_v36 = vld [vmem:[%s1642_s27 + $0x200] sm:$0xff]  ;;  %426 = vst [vmem:[%s1647_s10 + $0xf0] sm:$0xff] %v425_v34  ;;  %428 = vst [vmem:[%s1647_s10 + $0xf8] sm:$0xff] %v427_v35  ;;  %v431_v37 = vld [vmem:[%s1642_s27 + $0x210] sm:$0xff] }
  0x45   : > { %430 = vst [vmem:[%s1647_s10 + $0x100] sm:$0xff] %v429_v36  ;;  %v433_v38 = vld [vmem:[%s1642_s27 + $0x220] sm:$0xff]  ;;  %v435_v39 = vld [vmem:[%s1642_s27 + $0x230] sm:$0xff]  ;;  %432 = vst [vmem:[%s1647_s10 + $0x108] sm:$0xff] %v431_v37 }
  0x46   : > { %434 = vst [vmem:[%s1647_s10 + $0x110] sm:$0xff] %v433_v38  ;;  %436 = vst [vmem:[%s1647_s10 + $0x118] sm:$0xff] %v435_v39  ;;  %v437_v40 = vld [vmem:[%s1642_s27 + $0x240] sm:$0xff]  ;;  %v439_v41 = vld [vmem:[%s1642_s27 + $0x250] sm:$0xff] }
  0x47   : > { %v441_v42 = vld [vmem:[%s1642_s27 + $0x260] sm:$0xff]  ;;  %438 = vst [vmem:[%s1647_s10 + $0x120] sm:$0xff] %v437_v40  ;;  %440 = vst [vmem:[%s1647_s10 + $0x128] sm:$0xff] %v439_v41  ;;  %v443_v43 = vld [vmem:[%s1642_s27 + $0x270] sm:$0xff] }
  0x48   : > { %442 = vst [vmem:[%s1647_s10 + $0x130] sm:$0xff] %v441_v42  ;;  %v445_v44 = vld [vmem:[%s1642_s27 + $0x280] sm:$0xff]  ;;  %v447_v45 = vld [vmem:[%s1642_s27 + $0x290] sm:$0xff]  ;;  %444 = vst [vmem:[%s1647_s10 + $0x138] sm:$0xff] %v443_v43 }
  0x49   : > { %446 = vst [vmem:[%s1647_s10 + $0x140] sm:$0xff] %v445_v44  ;;  %448 = vst [vmem:[%s1647_s10 + $0x148] sm:$0xff] %v447_v45  ;;  %v449_v46 = vld [vmem:[%s1642_s27 + $0x2a0] sm:$0xff]  ;;  %v451_v47 = vld [vmem:[%s1642_s27 + $0x2b0] sm:$0xff] }
  0x4a   : > { %v453_v48 = vld [vmem:[%s1642_s27 + $0x2c0] sm:$0xff]  ;;  %450 = vst [vmem:[%s1647_s10 + $0x150] sm:$0xff] %v449_v46  ;;  %452 = vst [vmem:[%s1647_s10 + $0x158] sm:$0xff] %v451_v47  ;;  %v455_v49 = vld [vmem:[%s1642_s27 + $0x2d0] sm:$0xff] }
  0x4b   : > { %454 = vst [vmem:[%s1647_s10 + $0x160] sm:$0xff] %v453_v48  ;;  %v457_v50 = vld [vmem:[%s1642_s27 + $0x2e0] sm:$0xff]  ;;  %v459_v51 = vld [vmem:[%s1642_s27 + $0x2f0] sm:$0xff]  ;;  %456 = vst [vmem:[%s1647_s10 + $0x168] sm:$0xff] %v455_v49 }
  0x4c   : > { %458 = vst [vmem:[%s1647_s10 + $0x170] sm:$0xff] %v457_v50  ;;  %460 = vst [vmem:[%s1647_s10 + $0x178] sm:$0xff] %v459_v51 }
  0x4d PF: > { %p1178_p0 = scmp.ge.s32.totalorder %s1499_s25, 1  ;;  %p481_p1 = scmp.lt.s32.totalorder %s1499_s25, 13 }
  0x4f   : > { %p482_p2 = pnand %p1178_p0, %p481_p1 }
  0x50   : > { %s488_s0 = sand.u32 (!%p482_p2), 1, %s1475_s19   ;;  %s495_s28 = sand.u32 (!%p482_p2), 1, %s1467_s17  }
  0x51   : > { %485 = sbr.rel (%p482_p2) target bundleno = 389 (0x185), region = 92  ;;  %s528_s26 = sand.u32 (!%p482_p2), 1, %s1459_s15  }
  0x52   : > { %s1245_s11 = smul.u32 (!%p482_p2), 24, %s488_s0  ;;  %s1179_s5 = sshll.u32 (!%p482_p2), %s528_s26, 5 }
  0x53   : > { %s1246_s27 = smul.u32 (!%p482_p2), 384, %s495_s28  ;;  %s1180_s29 = sshll.u32 (!%p482_p2), %s1487_s22, 1 }
  0x54   : > { %p536_p3 = scmp.lt.s32.totalorder (!%p482_p2), %s1180_s29, 3  ;;  %s1758_s19 = scalar_lea.vmem (!%p482_p2), [#allocation3], %s1245_s11 }
  0x55   : > { %s1760_s17 = scalar_lea.vmem (!%p482_p2), [#allocation4], %s1246_s27  ;;  %s1762_s15 = scalar_lea.vmem (!%p482_p2), [#allocation5], %s1179_s5 }
  0x56   : > { %s1909_s29 = smov (!%p536_p3, %s1180_s29), 3  ;;  %p1182_p4 = scmp.ne.s32.totalorder %s1483_s21, 0 }
  0x57   : > { %s538_s9 = scalar_lea.vmem %s1876_s2, %s1909_s29  ;;  %s543_s1 = scalar_lea.vmem %s1877_s3, %s1909_s29 }
  0x58   : > { %551 = sbr.rel (%p1182_p4) target bundleno = 96 (0x60), region = 104 }
  0x5d   : > { %v1501_v52 = vmov 0.0  }
  0x5e   : > { %552 = vst [vmem:[#allocation2 + $0x10] sm:$0xff] %v1501_v52  ;;  %553 = vst [vmem:[#allocation2] sm:$0xff] %v1501_v52 }
  0x5f   : > { %554 = vst [vmem:[#allocation2 + $0x18] sm:$0xff] %v1501_v52  ;;  %555 = vst [vmem:[#allocation2 + $0x8] sm:$0xff] %v1501_v52 }
  0x60 PF: > { %v1337_v53 = vld [vmem:[%s1760_s17 + $0x74] ss:$8 sps:$4 sm:$0xff]   ;;  %v1339_v54 = vld [vmem:[%s1760_s17 + $0x70] ss:$8 sps:$4 sm:$0xff]   ;;  %v1502_v55 = vmov 0   ;;  %p1234_p5 = scmp.ne.s32.totalorder %s1483_s21, 5 }
  0x61   : > { %943 = vmatprep.mubr.bf16.mxu1 %v1502_v55  ;;  %868 = vmatprep.subr.bf16.mxu0 %v1337_v53  ;;  %v1340_v56 = vld [vmem:[%s1760_s17 + $0x64] ss:$8 sps:$4 sm:$0xff]   ;;  %v1342_v57 = vld [vmem:[%s1760_s17 + $0x60] ss:$8 sps:$4 sm:$0xff]   ;;  %v1343_v58 = vld [vmem:[%s1760_s17 + $0x54] ss:$8 sps:$4 sm:$0xff]  }
  0x62   : > { %869 = vmatpush1.bf16.msra.mxu0 %v1339_v54  ;;  %v1345_v59 = vld [vmem:[%s1760_s17 + $0x50] ss:$8 sps:$4 sm:$0xff]   ;;  %v1346_v60 = vld [vmem:[%s1760_s17 + $0x44] ss:$8 sps:$4 sm:$0xff]   ;;  %v1358_v61 = vld [vmem:[%s1760_s17 + $0x174] ss:$8 sps:$4 sm:$0xff]  }
  0x63   : > { %870 = vmatprep.subr.bf16.mxu0 %v1340_v56  ;;  %v1360_v62 = vld [vmem:[%s1760_s17 + $0x170] ss:$8 sps:$4 sm:$0xff]   ;;  %v1348_v63 = vld [vmem:[%s1760_s17 + $0x40] ss:$8 sps:$4 sm:$0xff]   ;;  %v1349_v0 = vld [vmem:[%s1760_s17 + $0x34] ss:$8 sps:$4 sm:$0xff]   ;;  %911 = vmatprep.subr.bf16.mxu1 %v1358_v61 }
  0x64   : > { %v1364_v1 = vld [vmem:[%s1760_s17 + $0x164] ss:$8 sps:$4 sm:$0xff]   ;;  %912 = vmatpush1.bf16.msra.mxu1 %v1360_v62  ;;  %v1366_v2 = vld [vmem:[%s1760_s17 + $0x160] ss:$8 sps:$4 sm:$0xff]   ;;  %v1351_v3 = vld [vmem:[%s1760_s17 + $0x30] ss:$8 sps:$4 sm:$0xff]  }
  0x65   : > { %913 = vmatprep.subr.bf16.mxu1 %v1364_v1  ;;  %v1370_v4 = vld [vmem:[%s1760_s17 + $0x154] ss:$8 sps:$4 sm:$0xff]   ;;  %v1352_v5 = vld [vmem:[%s1760_s17 + $0x24] ss:$8 sps:$4 sm:$0xff]   ;;  %v1372_v6 = vld [vmem:[%s1760_s17 + $0x150] ss:$8 sps:$4 sm:$0xff]  }
  0x66   : > { %871 = vmatpush1.bf16.msra.mxu0 %v1342_v57  ;;  %v1376_v7 = vld [vmem:[%s1760_s17 + $0x144] ss:$8 sps:$4 sm:$0xff]   ;;  %v1354_v8 = vld [vmem:[%s1760_s17 + $0x20] ss:$8 sps:$4 sm:$0xff]   ;;  %v1355_v9 = vld [vmem:[%s1760_s17 + $0x14] ss:$8 sps:$4 sm:$0xff]  }
  0x67   : > { %872 = vmatprep.subr.bf16.mxu0 %v1343_v58  ;;  %v1378_v10 = vld [vmem:[%s1760_s17 + $0x140] ss:$8 sps:$4 sm:$0xff]   ;;  %v1382_v11 = vld [vmem:[%s1760_s17 + $0x134] ss:$8 sps:$4 sm:$0xff]   ;;  %v1357_v12 = vld [vmem:[%s1760_s17 + $0x10] ss:$8 sps:$4 sm:$0xff]  }
  0x68   : > { %914 = vmatpush1.bf16.msra.mxu1 %v1366_v2  ;;  %v1361_v13 = vld [vmem:[%s1760_s17 + $0x4] ss:$8 sps:$4 sm:$0xff]   ;;  %v1384_v14 = vld [vmem:[%s1760_s17 + $0x130] ss:$8 sps:$4 sm:$0xff]   ;;  %v1363_v16 = vld [vmem:[%s1760_s17] ss:$8 sps:$4 sm:$0xff]  }
  0x69   : > { %915 = vmatprep.subr.bf16.mxu1 %v1370_v4  ;;  %v1388_v15 = vld [vmem:[%s1760_s17 + $0x124] ss:$8 sps:$4 sm:$0xff]   ;;  %v1367_v17 = vld [vmem:[%s1760_s17 + $0xf4] ss:$8 sps:$4 sm:$0xff]   ;;  %v1390_v18 = vld [vmem:[%s1760_s17 + $0x120] ss:$8 sps:$4 sm:$0xff]  }
  0x6a   : > { %873 = vmatpush1.bf16.msra.mxu0 %v1345_v59  ;;  %v1394_v19 = vld [vmem:[%s1760_s17 + $0x114] ss:$8 sps:$4 sm:$0xff]   ;;  %v1369_v20 = vld [vmem:[%s1760_s17 + $0xf0] ss:$8 sps:$4 sm:$0xff]   ;;  %v1373_v21 = vld [vmem:[%s1760_s17 + $0xe4] ss:$8 sps:$4 sm:$0xff]  }
  0x6b   : > { %874 = vmatprep.subr.bf16.mxu0 %v1346_v60  ;;  %v1396_v22 = vld [vmem:[%s1760_s17 + $0x110] ss:$8 sps:$4 sm:$0xff]   ;;  %v1400_v23 = vld [vmem:[%s1760_s17 + $0x104] ss:$8 sps:$4 sm:$0xff]   ;;  %v1375_v25 = vld [vmem:[%s1760_s17 + $0xe0] ss:$8 sps:$4 sm:$0xff]  }
  0x6c   : > { %916 = vmatpush1.bf16.msra.mxu1 %v1372_v6  ;;  %v1412_v24 = vld [vmem:[%s1758_s19 + $0x4] ss:$12 sps:$4 sm:$0xff]   ;;  %v1406_v30 = vld [vmem:[%s1758_s19 + $0x8] ss:$12 sps:$4 sm:$0xff]   ;;  %v1410_v40 = vld [vmem:[%s1758_s19] ss:$12 sps:$4 sm:$0xff]  }
  0x6d   : > { %917 = vmatprep.subr.bf16.mxu1 %v1376_v7  ;;  %v1379_v26 = vld [vmem:[%s1760_s17 + $0xd4] ss:$8 sps:$4 sm:$0xff]   ;;  %900 = vmatprep.mubr.bf16.mxu0 %v1412_v24  ;;  %v1402_v27 = vld [vmem:[%s1760_s17 + $0x100] ss:$8 sps:$4 sm:$0xff]   ;;  %v1381_v28 = vld [vmem:[%s1760_s17 + $0xd0] ss:$8 sps:$4 sm:$0xff]  }
  0x6e   : > { %875 = vmatpush1.bf16.msra.mxu0 %v1348_v63  ;;  %v1385_v29 = vld [vmem:[%s1760_s17 + $0xc4] ss:$8 sps:$4 sm:$0xff]   ;;  %v1387_v31 = vld [vmem:[%s1760_s17 + $0xc0] ss:$8 sps:$4 sm:$0xff]   ;;  %v1391_v32 = vld [vmem:[%s1760_s17 + $0xb4] ss:$8 sps:$4 sm:$0xff]  }
  0x6f   : > { %876 = vmatprep.subr.bf16.mxu0 %v1349_v0  ;;  %v1393_v33 = vld [vmem:[%s1760_s17 + $0xb0] ss:$8 sps:$4 sm:$0xff]   ;;  %v1397_v34 = vld [vmem:[%s1760_s17 + $0xa4] ss:$8 sps:$4 sm:$0xff]   ;;  %v1399_v35 = vld [vmem:[%s1760_s17 + $0xa0] ss:$8 sps:$4 sm:$0xff]  }
  0x70   : > { %918 = vmatpush1.bf16.msra.mxu1 %v1378_v10  ;;  %v1403_v36 = vld [vmem:[%s1760_s17 + $0x94] ss:$8 sps:$4 sm:$0xff]   ;;  %v1405_v37 = vld [vmem:[%s1760_s17 + $0x90] ss:$8 sps:$4 sm:$0xff]   ;;  %v1407_v38 = vld [vmem:[%s1760_s17 + $0x84] ss:$8 sps:$4 sm:$0xff]  }
  0x71   : > { %919 = vmatprep.subr.bf16.mxu1 %v1382_v11  ;;  %v1409_v39 = vld [vmem:[%s1760_s17 + $0x80] ss:$8 sps:$4 sm:$0xff]   ;;  %v557_v47 = vld [vmem:[#allocation2] sm:$0xff]  ;;  %v559_v56 = vld [vmem:[#allocation2 + $0x8] sm:$0xff] }
  0x72   : > { %877 = vmatpush1.bf16.msra.mxu0 %v1351_v3  ;;  %v556_v43 = vld [vmem:[#allocation2 + $0x10] sm:$0xff]  ;;  %v558_v51 = vld [vmem:[#allocation2 + $0x18] sm:$0xff] }
  0x73   : > { %878 = vmatprep.subr.bf16.mxu0 %v1352_v5 }
  0x74   : > { %920 = vmatpush1.bf16.msra.mxu1 %v1384_v14 }
  0x75   : > { %921 = vmatprep.subr.bf16.mxu1 %v1388_v15 }
  0x76   : > { %879 = vmatpush1.bf16.msra.mxu0 %v1354_v8 }
  0x77   : > { %880 = vmatprep.subr.bf16.mxu0 %v1355_v9 }
  0x78   : > { %922 = vmatpush1.bf16.msra.mxu1 %v1390_v18 }
  0x79   : > { %923 = vmatprep.subr.bf16.mxu1 %v1394_v19 }
  0x7a   : > { %881 = vmatpush1.bf16.msra.mxu0 %v1357_v12 }
  0x7b   : > { %882 = vmatprep.subr.bf16.mxu0 %v1361_v13 }
  0x7c   : > { %924 = vmatpush1.bf16.msra.mxu1 %v1396_v22 }
  0x7d   : > { %925 = vmatprep.subr.bf16.mxu1 %v1400_v23 }
  0x7e   : > { %883 = vmatpush1.bf16.msra.mxu0 %v1363_v16 }
  0x7f   : > { %884 = vmatprep.subr.bf16.mxu0 %v1367_v17 }
  0x80   : > { %926 = vmatpush1.bf16.msra.mxu1 %v1402_v27 }
  0x82   : > { %885 = vmatpush2.bf16.msra.mxu0 %v1369_v20 }
  0x83   : > { %886 = vmatprep.subr.bf16.mxu0 %v1373_v21  ;;  %944 = vmatmul.mubr.bf16.vlgmr.msra.gmra.mxu1 %v1406_v30 }
  0x86   : > { %887 = vmatpush2.bf16.msra.mxu0 %v1375_v25 }
  0x87   : > { %888 = vmatprep.subr.bf16.mxu0 %v1379_v26 }
  0x8a   : > { %889 = vmatpush2.bf16.msra.mxu0 %v1381_v28 }
  0x8b   : > { %890 = vmatprep.subr.bf16.mxu0 %v1385_v29 }
  0x8e   : > { %891 = vmatpush2.bf16.msra.mxu0 %v1387_v31 }
  0x8f   : > { %892 = vmatprep.subr.bf16.mxu0 %v1391_v32 }
  0x92   : > { %893 = vmatpush2.bf16.msra.mxu0 %v1393_v33 }
  0x93   : > { %894 = vmatprep.subr.bf16.mxu0 %v1397_v34 }
  0x96   : > { %895 = vmatpush2.bf16.msra.mxu0 %v1399_v35 }
  0x97   : > { %896 = vmatprep.subr.bf16.mxu0 %v1403_v36 }
  0x9a   : > { %897 = vmatpush2.bf16.msra.mxu0 %v1405_v37 }
  0x9b   : > { %898 = vmatprep.subr.bf16.mxu0 %v1407_v38 }
  0x9e   : > { %899 = vmatpush2.bf16.msra.mxu0 %v1409_v39 }
  0xa1   : > { %901 = vmatmul.mubr.bf16.vlgmr.msra.gmra.mxu0 %v1410_v40 }
 0x143   : > { %v945_v41 = vpop.f32.mrf.mxu1 }
 0x145   : > { %v947_v42 = vpop.f32.mrf.mxu1 }
 0x147   : > { %v949_v46 = vpop.f32.mrf.mxu1 }
 0x149   : > { %v951_v55 = vpop.f32.mrf.mxu1 }
 0x161   : > { %v902_v44 = vpop.f32.mrf.mxu0 }
 0x162   : > { %v946_v45 = vadd.f32 %v945_v41, %v902_v44 }
 0x163   : > { %v904_v48 = vpop.f32.mrf.mxu0 }
 0x164   : > { %v954_v49 = vadd.f32 %v946_v45, %v556_v43  ;;  %v948_v50 = vadd.f32 %v947_v42, %v904_v48 }
 0x165   : > { %v906_v52 = vpop.f32.mrf.mxu0 }
 0x166   : > { %958 = vst [vmem:[#allocation2 + $0x10] sm:$0xff] %v954_v49  ;;  %v955_v53 = vadd.f32 %v948_v50, %v557_v47  ;;  %v950_v54 = vadd.f32 %v949_v46, %v906_v52 }
 0x167   : > { %v908_v57 = vpop.f32.mrf.mxu0 }
 0x168   : > { %959 = vst [vmem:[#allocation2] sm:$0xff] %v955_v53  ;;  %v956_v58 = vadd.f32 %v950_v54, %v558_v51  ;;  %v952_v59 = vadd.f32 %v951_v55, %v908_v57  ;;  %965 = sbr.rel (%p1234_p5) target bundleno = 381 (0x17d), region = 108 }
 0x16a   : > { %960 = vst [vmem:[#allocation2 + $0x18] sm:$0xff] %v956_v58  ;;  %v957_v60 = vadd.f32 %v952_v59, %v559_v56 }
 0x16c   : > { %961 = vst [vmem:[#allocation2 + $0x8] sm:$0xff] %v957_v60 }
 0x16d   : > { %v972_v61 = vlaneseq  ;;  %v970_v63 = vld [vmem:[%s538_s9] sm:$0x3]  ;;  %v966_v1 = vld [vmem:[#allocation2 + $0x10] sm:$0xff] }
 0x16e   : > { %v986_v0 = vld [vmem:[%s543_s1] sm:$0x3] }
 0x16f   : > { %v973_v62 = vshrl.u32 %v972_v61, 7  ;;  %v967_v4 = vld [vmem:[#allocation2] sm:$0xff] }
 0x171   : > { %v974_v2 = vsub.s32 0, %v973_v62  ;;  %v978_v3 = vsub.s32 1, %v973_v62  ;;  %v968_v5 = vld [vmem:[#allocation2 + $0x18] sm:$0xff] }
 0x173   : > { %v969_v6 = vld [vmem:[#allocation2 + $0x8] sm:$0xff]  ;;  %v975_v7 = vrot.slane %v970_v63, %v974_v2  ;;  %v991_v8 = vrot.slane %v986_v0, %v974_v2  ;;  %v979_v9 = vrot.slane %v970_v63, %v978_v3  ;;  %v995_v10 = vrot.slane %v986_v0, %v978_v3 }
 0x175   : > { %v982_v11 = vmul.f32 %v975_v7, %v966_v1  ;;  %v983_v12 = vmul.f32 %v979_v9, %v967_v4  ;;  %v984_v13 = vmul.f32 %v975_v7, %v968_v5  ;;  %v985_v14 = vmul.f32 %v979_v9, %v969_v6 }
 0x177   : > { %v998_v15 = vadd.f32 %v991_v8, %v982_v11  ;;  %v999_v16 = vadd.f32 %v995_v10, %v983_v12  ;;  %v1000_v17 = vadd.f32 %v991_v8, %v984_v13  ;;  %v1001_v18 = vadd.f32 %v995_v10, %v985_v14 }
 0x179   : > { %v1002_v19 = vmax.f32 %v998_v15, 0.0  ;;  %v1003_v20 = vmax.f32 %v999_v16, 0.0  ;;  %v1004_v21 = vmax.f32 %v1000_v17, 0.0  ;;  %v1005_v22 = vmax.f32 %v1001_v18, 0.0 }
 0x17b   : > { %1006 = vst [vmem:[%s1762_s15] sm:$0xff] %v1002_v19  ;;  %1007 = vst [vmem:[%s1762_s15 + $0x8] sm:$0xff] %v1003_v20 }
 0x17c   : > { %1008 = vst [vmem:[%s1762_s15 + $0x10] sm:$0xff] %v1004_v21  ;;  %1009 = vst [vmem:[%s1762_s15 + $0x18] sm:$0xff] %v1005_v22 }
 0x17d PF: > { %1016 = sbr.rel (!%p1622_p12) target bundleno = 389 (0x185), region = 112  ;;  %s1242_s1 = sshll.u32 (%p1622_p12), %s1487_s22, 4 }
 0x17e   : > { %s1022_s5 = scalar_lea.vmem (%p1622_p12), %s1878_s4, %s1242_s1 }
 0x182   : > { %v1035_v23 = vld [vmem:[%s1762_s15] sm:$0xff]  ;;  %v1037_v24 = vld [vmem:[%s1762_s15 + $0x8] sm:$0xff] }
 0x183   : > { %v1039_v25 = vld [vmem:[%s1762_s15 + $0x10] sm:$0xff]  ;;  %v1041_v26 = vld [vmem:[%s1762_s15 + $0x18] sm:$0xff]  ;;  %1036 = vst [vmem:[%s1022_s5] sm:$0xff] %v1035_v23  ;;  %1038 = vst [vmem:[%s1022_s5 + $0x8] sm:$0xff] %v1037_v24 }
 0x184   : > { %1040 = vst [vmem:[%s1022_s5 + $0x20] sm:$0xff] %v1039_v25  ;;  %1042 = vst [vmem:[%s1022_s5 + $0x28] sm:$0xff] %v1041_v26 }
 0x185 PF: > { %s14_s25 = sadd.s32 1, %s1499_s25   ;;  %s1890_s14 = sld [smem:[#allocation6_spill]] }
 0x186   : > { %p11_p6 = scmp.ge.s32.totalorder %s14_s25, 14   ;;  %s1891_s29 = sld [smem:[#allocation7_spill]] }
 0x187   : > { %s1892_s15 = smov %s1463_s16  ;;  %s1893_s16 = smov %s1620_s13 }
 0x188   : > { %s1894_s17 = smov %s1471_s18  ;;  %s1895_s18 = smov %s1617_s12 }
 0x189   : > { %s1896_s19 = smov %s1479_s20  ;;  %s1897_s20 = smov %s1603_s7 }
 0x18a   : > { %s1898_s21 = smov %s1491_s23  ;;  %s1899_s22 = smov %s1495_s24 }
 0x18b   : > { %s1900_s23 = smov %s1890_s14  ;;  %13 = sbr.rel (!%p11_p6) target bundleno = 9 (0x9), region = 186 }
 0x18c   : > { %s1901_s24 = smov %s1891_s29 }

// kernel: supervised_net_forward.39
= control target key start
LH: loop header
LB: loop body
LE: loop exit
PB: predicated region body
PF: predicated region fallthrough
CT: control target
= control target key end

     0   :  { %s1130_s15 = smov 0   ;;  %s1132_s16 = smov 0   ;;  %s1321_s0 = inlined_call_operand.vmem [shape: bf16[16,256], index: 0, kind: input, shape index: {}]   ;;  %s1322_s1 = inlined_call_operand.vmem [shape: bf16[256,512], index: 1, kind: input, shape index: {}]   ;;  %s1323_s2 = inlined_call_operand.vmem [shape: f32[1,512], index: 2, kind: input, shape index: {}]   ;;  %s1324_s3 = inlined_call_operand.vmem [shape: f32[1,512], index: 3, kind: input, shape index: {}]   ;;  %s1325_s4 = inlined_call_operand.vmem [shape: f32[16,512], index: 4, kind: output, shape index: {}]  }
   0x1   :  { %s1134_s17 = smov 0   ;;  %s1136_s18 = smov 0  }
   0x2   :  { %s1138_s19 = smov 0  }
   0x3 LB: > { %s29_s20 = sadd.s32 1, %s1099_s18  ;;  %s920_s21 = sadd.s32 4294967295, %s1103_s19   ;;  %s1103_s19 = sphi %s1138_s19, %s14_s19   ;;  %s1099_s18 = sphi %s1136_s18, %s1330_s18   ;;  %s1095_s17 = sphi %s1134_s17, %s1329_s17   ;;  %s1091_s16 = sphi %s1132_s16, %s1328_s16   ;;  %s1087_s15 = sphi %s1130_s15, %s1327_s15  }
   0x4   : > { %p31_p0 = scmp.ge.s32.totalorder %s29_s20, 2  ;;  %p77_p1 = scmp.ne.s32.totalorder %s1091_s16, %s1087_s15 }
   0x5   : > { %p78_p2 = scmp.eq.s32.totalorder %s1103_s19, 0  ;;  %p161_p4 = scmp.eq.s32.totalorder %s920_s21, 1 }
   0x6   : > { %s1332_s20 = smov (%p31_p0, %s29_s20), 0  ;;  %s70_s23 = sadd.s32 1, %s1091_s16 }
   0x7   : > { %p79_p3 = por %p78_p2, %p77_p1  ;;  %s66_s22 = ssub.s32 %s1099_s18, %s1332_s20 }
   0x8   : > { %p68_p5 = scmp.eq.s32.totalorder %s66_s22, 0  ;;  %p1165_p6 = por %p161_p4, %p77_p1 }
   0x9   : > { %p924_p7 = scmp.ge.s32.totalorder %s1103_s19, 2 }
   0xa   : > { %s1170_s25 = scalar_select %p68_p5, %s1091_s16, %s70_s23  }
   0xb   : > { %198 = sbr.rel (%p924_p7) target bundleno = 36 (0x24), region = 20 }
  0x10   : > { %201 = sbr.rel (!%p79_p3) target bundleno = 36 (0x24), region = 24  ;;  %s203_s26 = sand.u32 (%p79_p3), 1, %s1091_s16  }
  0x11   : > { %s972_s27 = sshll.u32 (%p79_p3), %s1099_s18, 3  ;;  %s925_s28 = sshll.u32 (%p79_p3), %s203_s26, 8 }
  0x12   : > { %s1178_s5 = scalar_lea.vmem (%p79_p3), %s1322_s1, %s972_s27  ;;  %s1183_s6 = scalar_lea.vmem (%p79_p3), [#allocation3], %s925_s28 }
  0x13   : > { %v302_v0 = vld [vmem:[%s1178_s5] sm:$0xff] (%p79_p3)  ;;  %v304_v1 = vld [vmem:[%s1178_s5 + $0x10] sm:$0xff] (%p79_p3) }
  0x14   : > { %v306_v2 = vld [vmem:[%s1178_s5 + $0x20] sm:$0xff] (%p79_p3)  ;;  %303 = vst [vmem:[%s1183_s6] sm:$0xff] (%p79_p3), %v302_v0  ;;  %305 = vst [vmem:[%s1183_s6 + $0x8] sm:$0xff] (%p79_p3), %v304_v1  ;;  %v308_v3 = vld [vmem:[%s1178_s5 + $0x30] sm:$0xff] (%p79_p3) }
  0x15   : > { %307 = vst [vmem:[%s1183_s6 + $0x10] sm:$0xff] %v306_v2  ;;  %v310_v4 = vld [vmem:[%s1178_s5 + $0x40] sm:$0xff]  ;;  %v312_v5 = vld [vmem:[%s1178_s5 + $0x50] sm:$0xff]  ;;  %309 = vst [vmem:[%s1183_s6 + $0x18] sm:$0xff] %v308_v3 }
  0x16   : > { %311 = vst [vmem:[%s1183_s6 + $0x20] sm:$0xff] %v310_v4  ;;  %313 = vst [vmem:[%s1183_s6 + $0x28] sm:$0xff] %v312_v5  ;;  %v314_v6 = vld [vmem:[%s1178_s5 + $0x60] sm:$0xff]  ;;  %v316_v7 = vld [vmem:[%s1178_s5 + $0x70] sm:$0xff] }
  0x17   : > { %v318_v8 = vld [vmem:[%s1178_s5 + $0x80] sm:$0xff]  ;;  %315 = vst [vmem:[%s1183_s6 + $0x30] sm:$0xff] %v314_v6  ;;  %317 = vst [vmem:[%s1183_s6 + $0x38] sm:$0xff] %v316_v7  ;;  %v320_v9 = vld [vmem:[%s1178_s5 + $0x90] sm:$0xff] }
  0x18   : > { %319 = vst [vmem:[%s1183_s6 + $0x40] sm:$0xff] %v318_v8  ;;  %v322_v10 = vld [vmem:[%s1178_s5 + $0xa0] sm:$0xff]  ;;  %v324_v11 = vld [vmem:[%s1178_s5 + $0xb0] sm:$0xff]  ;;  %321 = vst [vmem:[%s1183_s6 + $0x48] sm:$0xff] %v320_v9 }
  0x19   : > { %323 = vst [vmem:[%s1183_s6 + $0x50] sm:$0xff] %v322_v10  ;;  %325 = vst [vmem:[%s1183_s6 + $0x58] sm:$0xff] %v324_v11  ;;  %v326_v12 = vld [vmem:[%s1178_s5 + $0xc0] sm:$0xff]  ;;  %v328_v13 = vld [vmem:[%s1178_s5 + $0xd0] sm:$0xff] }
  0x1a   : > { %v330_v14 = vld [vmem:[%s1178_s5 + $0xe0] sm:$0xff]  ;;  %327 = vst [vmem:[%s1183_s6 + $0x60] sm:$0xff] %v326_v12  ;;  %329 = vst [vmem:[%s1183_s6 + $0x68] sm:$0xff] %v328_v13  ;;  %v332_v15 = vld [vmem:[%s1178_s5 + $0xf0] sm:$0xff] }
  0x1b   : > { %331 = vst [vmem:[%s1183_s6 + $0x70] sm:$0xff] %v330_v14  ;;  %v334_v16 = vld [vmem:[%s1178_s5 + $0x100] sm:$0xff]  ;;  %v336_v17 = vld [vmem:[%s1178_s5 + $0x110] sm:$0xff]  ;;  %333 = vst [vmem:[%s1183_s6 + $0x78] sm:$0xff] %v332_v15 }
  0x1c   : > { %335 = vst [vmem:[%s1183_s6 + $0x80] sm:$0xff] %v334_v16  ;;  %337 = vst [vmem:[%s1183_s6 + $0x88] sm:$0xff] %v336_v17  ;;  %v338_v18 = vld [vmem:[%s1178_s5 + $0x120] sm:$0xff]  ;;  %v340_v19 = vld [vmem:[%s1178_s5 + $0x130] sm:$0xff] }
  0x1d   : > { %v342_v20 = vld [vmem:[%s1178_s5 + $0x140] sm:$0xff]  ;;  %339 = vst [vmem:[%s1183_s6 + $0x90] sm:$0xff] %v338_v18  ;;  %341 = vst [vmem:[%s1183_s6 + $0x98] sm:$0xff] %v340_v19  ;;  %v344_v21 = vld [vmem:[%s1178_s5 + $0x150] sm:$0xff] }
  0x1e   : > { %343 = vst [vmem:[%s1183_s6 + $0xa0] sm:$0xff] %v342_v20  ;;  %v346_v22 = vld [vmem:[%s1178_s5 + $0x160] sm:$0xff]  ;;  %v348_v23 = vld [vmem:[%s1178_s5 + $0x170] sm:$0xff]  ;;  %345 = vst [vmem:[%s1183_s6 + $0xa8] sm:$0xff] %v344_v21 }
  0x1f   : > { %347 = vst [vmem:[%s1183_s6 + $0xb0] sm:$0xff] %v346_v22  ;;  %349 = vst [vmem:[%s1183_s6 + $0xb8] sm:$0xff] %v348_v23  ;;  %v350_v24 = vld [vmem:[%s1178_s5 + $0x180] sm:$0xff]  ;;  %v352_v25 = vld [vmem:[%s1178_s5 + $0x190] sm:$0xff] }
  0x20   : > { %v354_v26 = vld [vmem:[%s1178_s5 + $0x1a0] sm:$0xff]  ;;  %351 = vst [vmem:[%s1183_s6 + $0xc0] sm:$0xff] %v350_v24  ;;  %353 = vst [vmem:[%s1183_s6 + $0xc8] sm:$0xff] %v352_v25  ;;  %v356_v27 = vld [vmem:[%s1178_s5 + $0x1b0] sm:$0xff] }
  0x21   : > { %355 = vst [vmem:[%s1183_s6 + $0xd0] sm:$0xff] %v354_v26  ;;  %v358_v28 = vld [vmem:[%s1178_s5 + $0x1c0] sm:$0xff]  ;;  %v360_v29 = vld [vmem:[%s1178_s5 + $0x1d0] sm:$0xff]  ;;  %357 = vst [vmem:[%s1183_s6 + $0xd8] sm:$0xff] %v356_v27 }
  0x22   : > { %359 = vst [vmem:[%s1183_s6 + $0xe0] sm:$0xff] %v358_v28  ;;  %361 = vst [vmem:[%s1183_s6 + $0xe8] sm:$0xff] %v360_v29  ;;  %v362_v30 = vld [vmem:[%s1178_s5 + $0x1e0] sm:$0xff]  ;;  %v364_v31 = vld [vmem:[%s1178_s5 + $0x1f0] sm:$0xff] }
  0x23   : > { %363 = vst [vmem:[%s1183_s6 + $0xf0] sm:$0xff] %v362_v30  ;;  %365 = vst [vmem:[%s1183_s6 + $0xf8] sm:$0xff] %v364_v31 }
  0x24 PF: > { %p928_p8 = scmp.ge.s32.totalorder %s1103_s19, 1  ;;  %p386_p9 = scmp.lt.s32.totalorder %s1103_s19, 3 }
  0x26   : > { %p387_p10 = pnand %p928_p8, %p386_p9 }
  0x27   : > { %s393_s7 = sand.u32 (!%p387_p10), 1, %s1087_s15   ;;  %s931_s14 = sshll.u32 (!%p387_p10), %s1095_s17, 1 }
  0x28   : > { %390 = sbr.rel (%p387_p10) target bundleno = 322 (0x142), region = 70  ;;  %s929_s8 = sshll.u32 (!%p387_p10), %s393_s7, 8 }
  0x29   : > { %s1254_s11 = scalar_lea.vmem (!%p387_p10), [#allocation3], %s929_s8  ;;  %p450_p11 = scmp.lt.s32.totalorder (!%p387_p10), %s931_s14, 3 }
  0x2a   : > { %s930_s29 = sshll.u32 (!%p387_p10), %s393_s7, 5 }
  0x2b   : > { %s434_s30 = scalar_lea.vmem (!%p387_p10), [#allocation4], %s930_s29 }
  0x2d   : > { %v1064_v32 = vld [vmem:[%s1321_s0 + $0x4] ss:$8 sps:$4 sm:$0xff]   ;;  %v1014_v33 = vld [vmem:[%s1254_s11 + $0x74] ss:$8 sps:$4 sm:$0xff]   ;;  %v1016_v34 = vld [vmem:[%s1254_s11 + $0x70] ss:$8 sps:$4 sm:$0xff]   ;;  %v737_v2 = vlaneseq }
  0x2e   : > { %709 = vmatprep.mubr.bf16.mxu0 %v1064_v32  ;;  %677 = vmatprep.subr.bf16.mxu0 %v1014_v33  ;;  %v1017_v35 = vld [vmem:[%s1254_s11 + $0x64] ss:$8 sps:$4 sm:$0xff]   ;;  %v1019_v36 = vld [vmem:[%s1254_s11 + $0x60] ss:$8 sps:$4 sm:$0xff]   ;;  %v1020_v37 = vld [vmem:[%s1254_s11 + $0x54] ss:$8 sps:$4 sm:$0xff]  }
  0x2f   : > { %678 = vmatpush1.bf16.msra.mxu0 %v1016_v34  ;;  %v1022_v38 = vld [vmem:[%s1254_s11 + $0x50] ss:$8 sps:$4 sm:$0xff]   ;;  %v1023_v39 = vld [vmem:[%s1254_s11 + $0x44] ss:$8 sps:$4 sm:$0xff]   ;;  %v1025_v40 = vld [vmem:[%s1254_s11 + $0x40] ss:$8 sps:$4 sm:$0xff]  }
  0x30   : > { %679 = vmatprep.subr.bf16.mxu0 %v1017_v35  ;;  %v1026_v41 = vld [vmem:[%s1254_s11 + $0x34] ss:$8 sps:$4 sm:$0xff]   ;;  %v1028_v42 = vld [vmem:[%s1254_s11 + $0x30] ss:$8 sps:$4 sm:$0xff]   ;;  %v1029_v43 = vld [vmem:[%s1254_s11 + $0x24] ss:$8 sps:$4 sm:$0xff]  }
  0x31   : > { %v1031_v44 = vld [vmem:[%s1254_s11 + $0x20] ss:$8 sps:$4 sm:$0xff]   ;;  %v1032_v45 = vld [vmem:[%s1254_s11 + $0x14] ss:$8 sps:$4 sm:$0xff]   ;;  %v1034_v46 = vld [vmem:[%s1254_s11 + $0x10] ss:$8 sps:$4 sm:$0xff]  }
  0x32   : > { %v1035_v47 = vld [vmem:[%s1254_s11 + $0x4] ss:$8 sps:$4 sm:$0xff]   ;;  %v1037_v48 = vld [vmem:[%s1254_s11] ss:$8 sps:$4 sm:$0xff]   ;;  %v1038_v49 = vld [vmem:[%s1254_s11 + $0xf4] ss:$8 sps:$4 sm:$0xff]  }
  0x33   : > { %680 = vmatpush1.bf16.msra.mxu0 %v1019_v36  ;;  %v1040_v50 = vld [vmem:[%s1254_s11 + $0xf0] ss:$8 sps:$4 sm:$0xff]   ;;  %v1041_v51 = vld [vmem:[%s1254_s11 + $0xe4] ss:$8 sps:$4 sm:$0xff]   ;;  %v1043_v52 = vld [vmem:[%s1254_s11 + $0xe0] ss:$8 sps:$4 sm:$0xff]  }
  0x34   : > { %681 = vmatprep.subr.bf16.mxu0 %v1020_v37  ;;  %v1044_v53 = vld [vmem:[%s1254_s11 + $0xd4] ss:$8 sps:$4 sm:$0xff]   ;;  %v1046_v54 = vld [vmem:[%s1254_s11 + $0xd0] ss:$8 sps:$4 sm:$0xff]   ;;  %v1047_v55 = vld [vmem:[%s1254_s11 + $0xc4] ss:$8 sps:$4 sm:$0xff]  }
  0x35   : > { %v1049_v56 = vld [vmem:[%s1254_s11 + $0xc0] ss:$8 sps:$4 sm:$0xff]   ;;  %v1050_v57 = vld [vmem:[%s1254_s11 + $0xb4] ss:$8 sps:$4 sm:$0xff]   ;;  %v1052_v58 = vld [vmem:[%s1254_s11 + $0xb0] ss:$8 sps:$4 sm:$0xff]  }
  0x36   : > { %v1053_v59 = vld [vmem:[%s1254_s11 + $0xa4] ss:$8 sps:$4 sm:$0xff]   ;;  %v1055_v60 = vld [vmem:[%s1254_s11 + $0xa0] ss:$8 sps:$4 sm:$0xff]   ;;  %v1056_v61 = vld [vmem:[%s1254_s11 + $0x94] ss:$8 sps:$4 sm:$0xff]  }
  0x37   : > { %682 = vmatpush1.bf16.msra.mxu0 %v1022_v38  ;;  %v1058_v62 = vld [vmem:[%s1254_s11 + $0x90] ss:$8 sps:$4 sm:$0xff]   ;;  %v1059_v63 = vld [vmem:[%s1254_s11 + $0x84] ss:$8 sps:$4 sm:$0xff]   ;;  %v1061_v0 = vld [vmem:[%s1254_s11 + $0x80] ss:$8 sps:$4 sm:$0xff]  }
  0x38   : > { %683 = vmatprep.subr.bf16.mxu0 %v1023_v39  ;;  %v1062_v1 = vld [vmem:[%s1321_s0] ss:$8 sps:$4 sm:$0xff]   ;;  %s1334_s14 = smov (!%p450_p11, %s931_s14), 3  ;;  %v738_v3 = vshrl.u32 %v737_v2, 7  ;;  %s973_s15 = sshll.u32 (%p1165_p6), %s1095_s17, 4 }
  0x39   : > { %s452_s23 = scalar_lea.vmem %s1323_s2, %s1334_s14  ;;  %s457_s28 = scalar_lea.vmem %s1324_s3, %s1334_s14 }
  0x3a   : > { %v739_v4 = vsub.s32 0, %v738_v3  ;;  %v735_v5 = vld [vmem:[%s452_s23] sm:$0x3]  ;;  %v743_v6 = vsub.s32 1, %v738_v3  ;;  %s783_s7 = scalar_lea.vmem (%p1165_p6), %s1325_s4, %s973_s15 }
  0x3b   : > { %684 = vmatpush1.bf16.msra.mxu0 %v1025_v40  ;;  %v751_v7 = vld [vmem:[%s457_s28] sm:$0x3] }
  0x3c   : > { %685 = vmatprep.subr.bf16.mxu0 %v1026_v41  ;;  %v740_v8 = vrot.slane %v735_v5, %v739_v4  ;;  %v756_v9 = vrot.slane %v751_v7, %v739_v4  ;;  %v744_v10 = vrot.slane %v735_v5, %v743_v6  ;;  %v760_v13 = vrot.slane %v751_v7, %v743_v6 }
  0x3f   : > { %686 = vmatpush1.bf16.msra.mxu0 %v1028_v42 }
  0x40   : > { %687 = vmatprep.subr.bf16.mxu0 %v1029_v43 }
  0x43   : > { %688 = vmatpush1.bf16.msra.mxu0 %v1031_v44 }
  0x44   : > { %689 = vmatprep.subr.bf16.mxu0 %v1032_v45 }
  0x47   : > { %690 = vmatpush1.bf16.msra.mxu0 %v1034_v46 }
  0x48   : > { %691 = vmatprep.subr.bf16.mxu0 %v1035_v47 }
  0x4b   : > { %692 = vmatpush1.bf16.msra.mxu0 %v1037_v48 }
  0x4c   : > { %693 = vmatprep.subr.bf16.mxu0 %v1038_v49 }
  0x4f   : > { %694 = vmatpush2.bf16.msra.mxu0 %v1040_v50 }
  0x50   : > { %695 = vmatprep.subr.bf16.mxu0 %v1041_v51 }
  0x53   : > { %696 = vmatpush2.bf16.msra.mxu0 %v1043_v52 }
  0x54   : > { %697 = vmatprep.subr.bf16.mxu0 %v1044_v53 }
  0x57   : > { %698 = vmatpush2.bf16.msra.mxu0 %v1046_v54 }
  0x58   : > { %699 = vmatprep.subr.bf16.mxu0 %v1047_v55 }
  0x5b   : > { %700 = vmatpush2.bf16.msra.mxu0 %v1049_v56 }
  0x5c   : > { %701 = vmatprep.subr.bf16.mxu0 %v1050_v57 }
  0x5f   : > { %702 = vmatpush2.bf16.msra.mxu0 %v1052_v58 }
  0x60   : > { %703 = vmatprep.subr.bf16.mxu0 %v1053_v59 }
  0x63   : > { %704 = vmatpush2.bf16.msra.mxu0 %v1055_v60 }
  0x64   : > { %705 = vmatprep.subr.bf16.mxu0 %v1056_v61 }
  0x67   : > { %706 = vmatpush2.bf16.msra.mxu0 %v1058_v62 }
  0x68   : > { %707 = vmatprep.subr.bf16.mxu0 %v1059_v63 }
  0x6b   : > { %708 = vmatpush2.bf16.msra.mxu0 %v1061_v0 }
  0x6e   : > { %710 = vmatmul.mubr.bf16.vlgmr.msra.gmra.mxu0 %v1062_v1 }
 0x12e   : > { %v711_v11 = vpop.f32.mrf.mxu0 }
 0x12f   : > { %v747_v12 = vmul.f32 %v740_v8, %v711_v11 }
 0x130   : > { %v713_v14 = vpop.f32.mrf.mxu0 }
 0x131   : > { %v763_v15 = vadd.f32 %v756_v9, %v747_v12  ;;  %v748_v16 = vmul.f32 %v744_v10, %v713_v14 }
 0x132   : > { %v715_v17 = vpop.f32.mrf.mxu0 }
 0x133   : > { %767 = vst [vmem:[%s434_s30] sm:$0xff] %v763_v15  ;;  %v764_v18 = vadd.f32 %v760_v13, %v748_v16  ;;  %v749_v19 = vmul.f32 %v740_v8, %v715_v17 }
 0x134   : > { %v717_v20 = vpop.f32.mrf.mxu0 }
 0x135   : > { %768 = vst [vmem:[%s434_s30 + $0x8] sm:$0xff] %v764_v18  ;;  %v765_v21 = vadd.f32 %v756_v9, %v749_v19  ;;  %v750_v22 = vmul.f32 %v744_v10, %v717_v20  ;;  %777 = sbr.rel (!%p1165_p6) target bundleno = 322 (0x142), region = 86 }
 0x137   : > { %769 = vst [vmem:[%s434_s30 + $0x10] sm:$0xff] %v765_v21  ;;  %v766_v23 = vadd.f32 %v760_v13, %v750_v22 }
 0x139   : > { %770 = vst [vmem:[%s434_s30 + $0x18] sm:$0xff] %v766_v23 }
 0x13a   : > { %v796_v24 = vld [vmem:[%s434_s30] sm:$0xff] }
 0x13b   : > { %797 = vst [vmem:[%s783_s7] sm:$0xff] %v796_v24 }
 0x13c   : > { %v798_v25 = vld [vmem:[%s434_s30 + $0x8] sm:$0xff] }
 0x13d   : > { %799 = vst [vmem:[%s783_s7 + $0x8] sm:$0xff] %v798_v25 }
 0x13e   : > { %v800_v26 = vld [vmem:[%s434_s30 + $0x10] sm:$0xff] }
 0x13f   : > { %801 = vst [vmem:[%s783_s7 + $0x20] sm:$0xff] %v800_v26 }
 0x140   : > { %v802_v27 = vld [vmem:[%s434_s30 + $0x18] sm:$0xff] }
 0x141   : > { %803 = vst [vmem:[%s783_s7 + $0x28] sm:$0xff] %v802_v27 }
 0x142 PF: > { %s14_s19 = sadd.s32 1, %s1103_s19   ;;  %s1327_s15 = smov %s1091_s16 }
 0x143   : > { %p11_p12 = scmp.ge.s32.totalorder %s14_s19, 4   ;;  %s1328_s16 = smov %s1170_s25 }
 0x144   : > { %s1329_s17 = smov %s1099_s18  ;;  %s1330_s18 = smov %s1332_s20 }
 0x145   :  { %13 = sbr.rel (!%p11_p12) target bundleno = 3 (0x3), region = 149 }

// kernel: supervised_net_forward.41
= control target key start
LH: loop header
LB: loop body
LE: loop exit
PB: predicated region body
PF: predicated region fallthrough
CT: control target
= control target key end

     0   :  { %s2253_s0 = inlined_call_operand.vmem [shape: bf16[16,4608], index: 0, kind: input, shape index: {}]   ;;  %s2254_s1 = inlined_call_operand.vmem [shape: bf16[4608,512], index: 1, kind: input, shape index: {}]   ;;  %s2255_s2 = inlined_call_operand.vmem [shape: f32[1,512], index: 2, kind: input, shape index: {}]   ;;  %s2256_s3 = inlined_call_operand.vmem [shape: f32[1,512], index: 3, kind: input, shape index: {}]   ;;  %s2257_s4 = inlined_call_operand.vmem [shape: f32[16,512], index: 4, kind: input, shape index: {}]   ;;  %s2258_s5 = inlined_call_operand.vmem [shape: f32[16,512], index: 5, kind: output, shape index: {}]  }
   0x1   :  { %2262 = sst [smem:[#allocation11_spill]] %s2253_s0 }
   0x2   :  { %s1835_s18 = smov 0   ;;  %s1837_s19 = smov 0  }
   0x3   :  { %s1839_s20 = smov 0   ;;  %s1841_s21 = smov 0  }
   0x4   :  { %s1843_s22 = smov 0   ;;  %s1845_s23 = smov 0  }
   0x5   :  { %s1847_s24 = smov 0   ;;  %s1849_s25 = smov 0  }
   0x6   :  { %s1851_s26 = smov 0   ;;  %s1853_s27 = smov 0  }
   0x7   :  { %s1855_s28 = smov 0  }
   0x8 LB: > { %2263 = sst [smem:[#allocation7_spill]] %s1782_s23  ;;  %s1424_s29 = sadd.s32 4294967295, %s1802_s28   ;;  %s1802_s28 = sphi %s1855_s28, %s15_s28   ;;  %s1798_s27 = sphi %s1853_s27, %s2283_s27   ;;  %s1794_s26 = sphi %s1851_s26, %s2282_s26   ;;  %s1790_s25 = sphi %s1849_s25, %s2281_s25   ;;  %s1786_s24 = sphi %s1847_s24, %s2280_s24   ;;  %s1782_s23 = sphi %s1845_s23, %s2273_s23   ;;  %s1778_s22 = sphi %s1843_s22, %s2272_s22   ;;  %s1774_s21 = sphi %s1841_s21, %s2279_s21   ;;  %s1770_s20 = sphi %s1839_s20, %s2278_s20   ;;  %s1766_s19 = sphi %s1837_s19, %s2277_s19   ;;  %s1762_s18 = sphi %s1835_s18, %s2276_s18  }
   0x9   : > { %s27_s30 = sadd.s32 1, %s1794_s26  ;;  %s30_s6 = sadd.s32 1, %s1798_s27 }
   0xa   : > { %p28_p0 = scmp.ge.s32.totalorder %s27_s30, 9  ;;  %s43_s7 = sadd.s32 1, %s1782_s23 }
   0xb   : > { %p50_p1 = scmp.ne.s32.totalorder %s1782_s23, %s1778_s22  ;;  %p51_p2 = scmp.eq.s32.totalorder %s1802_s28, 0 }
   0xc   : > { %s2285_s30 = smov (%p28_p0, %s27_s30), 0  ;;  %s2287_s6 = smov (!%p28_p0, %s30_s6), %s1798_s27 }
   0xd   : > { %2264 = sst [smem:[#allocation8_spill]] %s2285_s30  ;;  %s39_s8 = ssub.s32 %s1794_s26, %s2285_s30 }
   0xe   : > { %p32_p3 = scmp.ge.s32.totalorder %s2287_s6, 2  ;;  %p41_p4 = scmp.eq.s32.totalorder %s39_s8, 0 }
   0xf   : > { %p1904_p5 = por %p51_p2, %p50_p1  ;;  %s71_s10 = sadd.s32 1, %s1774_s21 }
  0x10   : > { %s2289_s6 = smov (%p32_p3, %s2287_s6), 0  ;;  %p78_p6 = scmp.ne.s32.totalorder %s1774_s21, %s1770_s20 }
  0x11   : > { %2266 = sst [smem:[#allocation9_spill]] %s2289_s6  ;;  %s67_s12 = ssub.s32 %s1798_s27, %s2289_s6 }
  0x12   : > { %s1912_s11 = scalar_select %p41_p4, %s1782_s23, %s43_s7  }
  0x13   : > { %s68_s13 = sor.u32 %s67_s12, %s39_s8  ;;  %p149_p7 = scmp.eq.s32.totalorder %s67_s12, 0 }
  0x14   : > { %2267 = sst [smem:[#allocation10_spill]] %s1912_s11  ;;  %p69_p8 = scmp.eq.s32.totalorder %s68_s13, 0 }
  0x15   : > { %p1920_p9 = por %p78_p6, %p51_p2  ;;  %s151_s15 = sadd.s32 1, %s1766_s19 }
  0x16   : > { %p158_p10 = scmp.ne.s32.totalorder %s1766_s19, %s1762_s18  ;;  %p190_p12 = scmp.eq.s32.totalorder %s1424_s29, 17 }
  0x17   : > { %s1928_s16 = scalar_select %p69_p8, %s1774_s21, %s71_s10  }
  0x18   : > { %s1931_s17 = scalar_select %p149_p7, %s1766_s19, %s151_s15  }
  0x19   : > { %p1935_p11 = por %p158_p10, %p51_p2  ;;  %p1939_p13 = por %p190_p12, %p158_p10 }
  0x1a   : > { %p1427_p0 = scmp.ge.s32.totalorder %s1802_s28, 18 }
  0x1c   : > { %212 = sbr.rel (%p1427_p0) target bundleno = 90 (0x5a), region = 16 }
  0x21   : > { %215 = sbr.rel (!%p1904_p5) target bundleno = 45 (0x2d), region = 20  ;;  %s217_s10 = sand.u32 (%p1904_p5), 1, %s1782_s23  }
  0x22   : > { %s1521_s12 = sshll.u32 (%p1904_p5), %s1794_s26, 4  ;;  %s1428_s13 = sshll.u32 (%p1904_p5), %s217_s10, 5 }
  0x23   : > { %s2271_s0 = sld [smem:[#allocation11_spill]] (%p1904_p5)  ;;  %s219_s29 = scalar_lea.vmem (%p1904_p5), [#allocation3], %s1428_s13 }
  0x29   : > { %s225_s30 = scalar_lea.vmem %s2271_s0, %s1521_s12 }
  0x2a   : > { %v238_v0 = vld [vmem:[%s225_s30] sm:$0xff]  ;;  %v240_v1 = vld [vmem:[%s225_s30 + $0x8] sm:$0xff]  ;;  %v242_v2 = vld [vmem:[%s225_s30 + $0x90] sm:$0xff] }
  0x2b   : > { %239 = vst [vmem:[%s219_s29] sm:$0xff] %v238_v0  ;;  %241 = vst [vmem:[%s219_s29 + $0x8] sm:$0xff] %v240_v1  ;;  %v244_v3 = vld [vmem:[%s225_s30 + $0x98] sm:$0xff] }
  0x2c   : > { %243 = vst [vmem:[%s219_s29 + $0x10] sm:$0xff] %v242_v2  ;;  %245 = vst [vmem:[%s219_s29 + $0x18] sm:$0xff] %v244_v3 }
  0x2d PF: > { %251 = sbr.rel (!%p1920_p9) target bundleno = 84 (0x54), region = 43  ;;  %s253_s9 = sand.u32 (%p1920_p9), 1, %s1774_s21  }
  0x2e   : > { %s1433_s10 = sshll.u32 (%p1920_p9), %s1798_s27, 1  ;;  %s1431_s6 = sshll.u32 (%p1920_p9), %s253_s9, 9 }
  0x2f   : > { %s1522_s12 = sshll.u32 (%p1920_p9), %s1794_s26, 8  ;;  %s1964_s30 = scalar_lea.vmem (%p1920_p9), [#allocation4], %s1431_s6 }
  0x30   : > { %s259_s15 = sadd.s32 (%p1920_p9), %s1522_s12, %s1433_s10 }
  0x31   : > { %s1435_s0 = sshll.u32 (%p1920_p9), %s259_s15, 2 }
  0x32   : > { %s1959_s23 = scalar_lea.vmem %s2254_s1, %s1435_s0 }
  0x33   : > { %v416_v4 = vld [vmem:[%s1959_s23] sm:$0xff]  ;;  %v418_v5 = vld [vmem:[%s1959_s23 + $0x10] sm:$0xff] }
  0x34   : > { %v420_v6 = vld [vmem:[%s1959_s23 + $0x20] sm:$0xff]  ;;  %417 = vst [vmem:[%s1964_s30] sm:$0xff] %v416_v4  ;;  %419 = vst [vmem:[%s1964_s30 + $0x8] sm:$0xff] %v418_v5  ;;  %v422_v7 = vld [vmem:[%s1959_s23 + $0x30] sm:$0xff] }
  0x35   : > { %421 = vst [vmem:[%s1964_s30 + $0x10] sm:$0xff] %v420_v6  ;;  %v424_v8 = vld [vmem:[%s1959_s23 + $0x40] sm:$0xff]  ;;  %v426_v9 = vld [vmem:[%s1959_s23 + $0x50] sm:$0xff]  ;;  %423 = vst [vmem:[%s1964_s30 + $0x18] sm:$0xff] %v422_v7 }
  0x36   : > { %425 = vst [vmem:[%s1964_s30 + $0x20] sm:$0xff] %v424_v8  ;;  %427 = vst [vmem:[%s1964_s30 + $0x28] sm:$0xff] %v426_v9  ;;  %v428_v10 = vld [vmem:[%s1959_s23 + $0x60] sm:$0xff]  ;;  %v430_v11 = vld [vmem:[%s1959_s23 + $0x70] sm:$0xff] }
  0x37   : > { %v432_v12 = vld [vmem:[%s1959_s23 + $0x80] sm:$0xff]  ;;  %429 = vst [vmem:[%s1964_s30 + $0x30] sm:$0xff] %v428_v10  ;;  %431 = vst [vmem:[%s1964_s30 + $0x38] sm:$0xff] %v430_v11  ;;  %v434_v13 = vld [vmem:[%s1959_s23 + $0x90] sm:$0xff] }
  0x38   : > { %433 = vst [vmem:[%s1964_s30 + $0x40] sm:$0xff] %v432_v12  ;;  %v436_v14 = vld [vmem:[%s1959_s23 + $0xa0] sm:$0xff]  ;;  %v438_v15 = vld [vmem:[%s1959_s23 + $0xb0] sm:$0xff]  ;;  %435 = vst [vmem:[%s1964_s30 + $0x48] sm:$0xff] %v434_v13 }
  0x39   : > { %437 = vst [vmem:[%s1964_s30 + $0x50] sm:$0xff] %v436_v14  ;;  %439 = vst [vmem:[%s1964_s30 + $0x58] sm:$0xff] %v438_v15  ;;  %v440_v16 = vld [vmem:[%s1959_s23 + $0xc0] sm:$0xff]  ;;  %v442_v17 = vld [vmem:[%s1959_s23 + $0xd0] sm:$0xff] }
  0x3a   : > { %v444_v18 = vld [vmem:[%s1959_s23 + $0xe0] sm:$0xff]  ;;  %441 = vst [vmem:[%s1964_s30 + $0x60] sm:$0xff] %v440_v16  ;;  %443 = vst [vmem:[%s1964_s30 + $0x68] sm:$0xff] %v442_v17  ;;  %v446_v19 = vld [vmem:[%s1959_s23 + $0xf0] sm:$0xff] }
  0x3b   : > { %445 = vst [vmem:[%s1964_s30 + $0x70] sm:$0xff] %v444_v18  ;;  %v448_v20 = vld [vmem:[%s1959_s23 + $0x100] sm:$0xff]  ;;  %v450_v21 = vld [vmem:[%s1959_s23 + $0x110] sm:$0xff]  ;;  %447 = vst [vmem:[%s1964_s30 + $0x78] sm:$0xff] %v446_v19 }
  0x3c   : > { %449 = vst [vmem:[%s1964_s30 + $0x80] sm:$0xff] %v448_v20  ;;  %451 = vst [vmem:[%s1964_s30 + $0x88] sm:$0xff] %v450_v21  ;;  %v452_v22 = vld [vmem:[%s1959_s23 + $0x120] sm:$0xff]  ;;  %v454_v23 = vld [vmem:[%s1959_s23 + $0x130] sm:$0xff] }
  0x3d   : > { %v456_v24 = vld [vmem:[%s1959_s23 + $0x140] sm:$0xff]  ;;  %453 = vst [vmem:[%s1964_s30 + $0x90] sm:$0xff] %v452_v22  ;;  %455 = vst [vmem:[%s1964_s30 + $0x98] sm:$0xff] %v454_v23  ;;  %v458_v25 = vld [vmem:[%s1959_s23 + $0x150] sm:$0xff] }
  0x3e   : > { %457 = vst [vmem:[%s1964_s30 + $0xa0] sm:$0xff] %v456_v24  ;;  %v460_v26 = vld [vmem:[%s1959_s23 + $0x160] sm:$0xff]  ;;  %v462_v27 = vld [vmem:[%s1959_s23 + $0x170] sm:$0xff]  ;;  %459 = vst [vmem:[%s1964_s30 + $0xa8] sm:$0xff] %v458_v25 }
  0x3f   : > { %461 = vst [vmem:[%s1964_s30 + $0xb0] sm:$0xff] %v460_v26  ;;  %463 = vst [vmem:[%s1964_s30 + $0xb8] sm:$0xff] %v462_v27  ;;  %v464_v28 = vld [vmem:[%s1959_s23 + $0x180] sm:$0xff]  ;;  %v466_v29 = vld [vmem:[%s1959_s23 + $0x190] sm:$0xff] }
  0x40   : > { %v468_v30 = vld [vmem:[%s1959_s23 + $0x1a0] sm:$0xff]  ;;  %465 = vst [vmem:[%s1964_s30 + $0xc0] sm:$0xff] %v464_v28  ;;  %467 = vst [vmem:[%s1964_s30 + $0xc8] sm:$0xff] %v466_v29  ;;  %v470_v31 = vld [vmem:[%s1959_s23 + $0x1b0] sm:$0xff] }
  0x41   : > { %469 = vst [vmem:[%s1964_s30 + $0xd0] sm:$0xff] %v468_v30  ;;  %v472_v32 = vld [vmem:[%s1959_s23 + $0x1c0] sm:$0xff]  ;;  %v474_v33 = vld [vmem:[%s1959_s23 + $0x1d0] sm:$0xff]  ;;  %471 = vst [vmem:[%s1964_s30 + $0xd8] sm:$0xff] %v470_v31 }
  0x42   : > { %473 = vst [vmem:[%s1964_s30 + $0xe0] sm:$0xff] %v472_v32  ;;  %475 = vst [vmem:[%s1964_s30 + $0xe8] sm:$0xff] %v474_v33  ;;  %v476_v34 = vld [vmem:[%s1959_s23 + $0x1e0] sm:$0xff]  ;;  %v478_v35 = vld [vmem:[%s1959_s23 + $0x1f0] sm:$0xff] }
  0x43   : > { %v480_v36 = vld [vmem:[%s1959_s23 + $0x200] sm:$0xff]  ;;  %477 = vst [vmem:[%s1964_s30 + $0xf0] sm:$0xff] %v476_v34  ;;  %479 = vst [vmem:[%s1964_s30 + $0xf8] sm:$0xff] %v478_v35  ;;  %v482_v37 = vld [vmem:[%s1959_s23 + $0x210] sm:$0xff] }
  0x44   : > { %481 = vst [vmem:[%s1964_s30 + $0x100] sm:$0xff] %v480_v36  ;;  %v484_v38 = vld [vmem:[%s1959_s23 + $0x220] sm:$0xff]  ;;  %v486_v39 = vld [vmem:[%s1959_s23 + $0x230] sm:$0xff]  ;;  %483 = vst [vmem:[%s1964_s30 + $0x108] sm:$0xff] %v482_v37 }
  0x45   : > { %485 = vst [vmem:[%s1964_s30 + $0x110] sm:$0xff] %v484_v38  ;;  %487 = vst [vmem:[%s1964_s30 + $0x118] sm:$0xff] %v486_v39  ;;  %v488_v40 = vld [vmem:[%s1959_s23 + $0x240] sm:$0xff]  ;;  %v490_v41 = vld [vmem:[%s1959_s23 + $0x250] sm:$0xff] }
  0x46   : > { %v492_v42 = vld [vmem:[%s1959_s23 + $0x260] sm:$0xff]  ;;  %489 = vst [vmem:[%s1964_s30 + $0x120] sm:$0xff] %v488_v40  ;;  %491 = vst [vmem:[%s1964_s30 + $0x128] sm:$0xff] %v490_v41  ;;  %v494_v43 = vld [vmem:[%s1959_s23 + $0x270] sm:$0xff] }
  0x47   : > { %493 = vst [vmem:[%s1964_s30 + $0x130] sm:$0xff] %v492_v42  ;;  %v496_v44 = vld [vmem:[%s1959_s23 + $0x280] sm:$0xff]  ;;  %v498_v45 = vld [vmem:[%s1959_s23 + $0x290] sm:$0xff]  ;;  %495 = vst [vmem:[%s1964_s30 + $0x138] sm:$0xff] %v494_v43 }
  0x48   : > { %497 = vst [vmem:[%s1964_s30 + $0x140] sm:$0xff] %v496_v44  ;;  %499 = vst [vmem:[%s1964_s30 + $0x148] sm:$0xff] %v498_v45  ;;  %v500_v46 = vld [vmem:[%s1959_s23 + $0x2a0] sm:$0xff]  ;;  %v502_v47 = vld [vmem:[%s1959_s23 + $0x2b0] sm:$0xff] }
  0x49   : > { %v504_v48 = vld [vmem:[%s1959_s23 + $0x2c0] sm:$0xff]  ;;  %501 = vst [vmem:[%s1964_s30 + $0x150] sm:$0xff] %v500_v46  ;;  %503 = vst [vmem:[%s1964_s30 + $0x158] sm:$0xff] %v502_v47  ;;  %v506_v49 = vld [vmem:[%s1959_s23 + $0x2d0] sm:$0xff] }
  0x4a   : > { %505 = vst [vmem:[%s1964_s30 + $0x160] sm:$0xff] %v504_v48  ;;  %v508_v50 = vld [vmem:[%s1959_s23 + $0x2e0] sm:$0xff]  ;;  %v510_v51 = vld [vmem:[%s1959_s23 + $0x2f0] sm:$0xff]  ;;  %507 = vst [vmem:[%s1964_s30 + $0x168] sm:$0xff] %v506_v49 }
  0x4b   : > { %509 = vst [vmem:[%s1964_s30 + $0x170] sm:$0xff] %v508_v50  ;;  %511 = vst [vmem:[%s1964_s30 + $0x178] sm:$0xff] %v510_v51  ;;  %v512_v52 = vld [vmem:[%s1959_s23 + $0x300] sm:$0xff]  ;;  %v514_v53 = vld [vmem:[%s1959_s23 + $0x310] sm:$0xff] }
  0x4c   : > { %v516_v54 = vld [vmem:[%s1959_s23 + $0x320] sm:$0xff]  ;;  %513 = vst [vmem:[%s1964_s30 + $0x180] sm:$0xff] %v512_v52  ;;  %515 = vst [vmem:[%s1964_s30 + $0x188] sm:$0xff] %v514_v53  ;;  %v518_v55 = vld [vmem:[%s1959_s23 + $0x330] sm:$0xff] }
  0x4d   : > { %517 = vst [vmem:[%s1964_s30 + $0x190] sm:$0xff] %v516_v54  ;;  %v520_v56 = vld [vmem:[%s1959_s23 + $0x340] sm:$0xff]  ;;  %v522_v57 = vld [vmem:[%s1959_s23 + $0x350] sm:$0xff]  ;;  %519 = vst [vmem:[%s1964_s30 + $0x198] sm:$0xff] %v518_v55 }
  0x4e   : > { %521 = vst [vmem:[%s1964_s30 + $0x1a0] sm:$0xff] %v520_v56  ;;  %523 = vst [vmem:[%s1964_s30 + $0x1a8] sm:$0xff] %v522_v57  ;;  %v524_v58 = vld [vmem:[%s1959_s23 + $0x360] sm:$0xff]  ;;  %v526_v59 = vld [vmem:[%s1959_s23 + $0x370] sm:$0xff] }
  0x4f   : > { %v528_v60 = vld [vmem:[%s1959_s23 + $0x380] sm:$0xff]  ;;  %525 = vst [vmem:[%s1964_s30 + $0x1b0] sm:$0xff] %v524_v58  ;;  %527 = vst [vmem:[%s1964_s30 + $0x1b8] sm:$0xff] %v526_v59  ;;  %v530_v61 = vld [vmem:[%s1959_s23 + $0x390] sm:$0xff] }
  0x50   : > { %529 = vst [vmem:[%s1964_s30 + $0x1c0] sm:$0xff] %v528_v60  ;;  %v532_v62 = vld [vmem:[%s1959_s23 + $0x3a0] sm:$0xff]  ;;  %v534_v63 = vld [vmem:[%s1959_s23 + $0x3b0] sm:$0xff]  ;;  %531 = vst [vmem:[%s1964_s30 + $0x1c8] sm:$0xff] %v530_v61 }
  0x51   : > { %533 = vst [vmem:[%s1964_s30 + $0x1d0] sm:$0xff] %v532_v62  ;;  %535 = vst [vmem:[%s1964_s30 + $0x1d8] sm:$0xff] %v534_v63  ;;  %v536_v0 = vld [vmem:[%s1959_s23 + $0x3c0] sm:$0xff]  ;;  %v538_v1 = vld [vmem:[%s1959_s23 + $0x3d0] sm:$0xff] }
  0x52   : > { %v540_v2 = vld [vmem:[%s1959_s23 + $0x3e0] sm:$0xff]  ;;  %537 = vst [vmem:[%s1964_s30 + $0x1e0] sm:$0xff] %v536_v0  ;;  %539 = vst [vmem:[%s1964_s30 + $0x1e8] sm:$0xff] %v538_v1  ;;  %v542_v3 = vld [vmem:[%s1959_s23 + $0x3f0] sm:$0xff] }
  0x53   : > { %541 = vst [vmem:[%s1964_s30 + $0x1f0] sm:$0xff] %v540_v2  ;;  %543 = vst [vmem:[%s1964_s30 + $0x1f8] sm:$0xff] %v542_v3 }
  0x54 PF: > { %565 = sbr.rel (!%p1935_p11) target bundleno = 90 (0x5a), region = 89  ;;  %s567_s0 = sand.u32 (%p1935_p11), 1, %s1766_s19  }
  0x55   : > { %s1523_s11 = sshll.u32 (%p1935_p11), %s1798_s27, 4  ;;  %s1436_s14 = sshll.u32 (%p1935_p11), %s567_s0, 5 }
  0x56   : > { %s575_s10 = scalar_lea.vmem (%p1935_p11), %s2257_s4, %s1523_s11  ;;  %s569_s6 = scalar_lea.vmem (%p1935_p11), [#allocation5], %s1436_s14 }
  0x57   : > { %v588_v4 = vld [vmem:[%s575_s10] sm:$0xff] (%p1935_p11)  ;;  %v590_v5 = vld [vmem:[%s575_s10 + $0x8] sm:$0xff] (%p1935_p11) }
  0x58   : > { %v592_v6 = vld [vmem:[%s575_s10 + $0x20] sm:$0xff] (%p1935_p11)  ;;  %589 = vst [vmem:[%s569_s6] sm:$0xff] (%p1935_p11), %v588_v4  ;;  %591 = vst [vmem:[%s569_s6 + $0x8] sm:$0xff] (%p1935_p11), %v590_v5  ;;  %v594_v7 = vld [vmem:[%s575_s10 + $0x28] sm:$0xff] (%p1935_p11) }
  0x59   : > { %593 = vst [vmem:[%s569_s6 + $0x10] sm:$0xff] %v592_v6  ;;  %595 = vst [vmem:[%s569_s6 + $0x18] sm:$0xff] %v594_v7 }
  0x5a PF: > { %p1439_p1 = scmp.ge.s32.totalorder %s1802_s28, 1  ;;  %p600_p2 = scmp.lt.s32.totalorder %s1802_s28, 19 }
  0x5c   : > { %p601_p3 = pnand %p1439_p1, %p600_p2 }
  0x5d   : > { %s607_s23 = sand.u32 (!%p601_p3), 1, %s1778_s22   ;;  %s614_s7 = sand.u32 (!%p601_p3), 1, %s1770_s20  }
  0x5e   : > { %604 = sbr.rel (%p601_p3) target bundleno = 407 (0x197), region = 112  ;;  %s1440_s12 = sshll.u32 (!%p601_p3), %s607_s23, 5 }
  0x5f   : > { %s1441_s15 = sshll.u32 (!%p601_p3), %s614_s7, 9  ;;  %s621_s13 = sand.u32 (!%p601_p3), 1, %s1762_s18  }
  0x60   : > { %s1444_s30 = sshll.u32 (!%p601_p3), %s1790_s25, 1  ;;  %s1442_s0 = sshll.u32 (!%p601_p3), %s621_s13, 5 }
  0x61   : > { %p668_p4 = scmp.lt.s32.totalorder (!%p601_p3), %s1444_s30, 3  ;;  %s2114_s22 = scalar_lea.vmem (!%p601_p3), [#allocation3], %s1440_s12 }
  0x62   : > { %s2116_s20 = scalar_lea.vmem (!%p601_p3), [#allocation4], %s1441_s15  ;;  %s2118_s18 = scalar_lea.vmem (!%p601_p3), [#allocation5], %s1442_s0 }
  0x63   : > { %s2291_s30 = smov (!%p668_p4, %s1444_s30), 3  ;;  %s2120_s23 = scalar_lea.vmem [#allocation6], %s1442_s0 }
  0x64   : > { %s670_s29 = scalar_lea.vmem %s2255_s2, %s2291_s30  ;;  %s675_s6 = scalar_lea.vmem %s2256_s3, %s2291_s30 }
  0x65   : > { %p1446_p5 = scmp.ne.s32.totalorder %s1786_s24, 0 }
  0x67   : > { %684 = sbr.rel (%p1446_p5) target bundleno = 111 (0x6f), region = 128 }
  0x6c   : > { %v1804_v8 = vmov 0.0  }
  0x6d   : > { %685 = vst [vmem:[#allocation2 + $0x10] sm:$0xff] %v1804_v8  ;;  %686 = vst [vmem:[#allocation2] sm:$0xff] %v1804_v8 }
  0x6e   : > { %687 = vst [vmem:[#allocation2 + $0x18] sm:$0xff] %v1804_v8  ;;  %688 = vst [vmem:[#allocation2 + $0x8] sm:$0xff] %v1804_v8 }
  0x6f PF: > { %v1614_v9 = vld [vmem:[%s2116_s20 + $0x74] ss:$8 sps:$4 sm:$0xff]   ;;  %v1618_v11 = vld [vmem:[%s2116_s20 + $0x70] ss:$8 sps:$4 sm:$0xff]   ;;  %v1620_v13 = vld [vmem:[%s2116_s20 + $0x64] ss:$8 sps:$4 sm:$0xff]  }
  0x70   : > { %v1616_v10 = vld [vmem:[%s2116_s20 + $0x174] ss:$8 sps:$4 sm:$0xff]   ;;  %1101 = vmatprep.subr.bf16.mxu0 %v1614_v9  ;;  %v1619_v12 = vld [vmem:[%s2116_s20 + $0x170] ss:$8 sps:$4 sm:$0xff]   ;;  %v1622_v14 = vld [vmem:[%s2116_s20 + $0x164] ss:$8 sps:$4 sm:$0xff]  }
  0x71   : > { %1144 = vmatprep.subr.bf16.mxu1 %v1616_v10  ;;  %1102 = vmatpush1.bf16.msra.mxu0 %v1618_v11  ;;  %v1624_v15 = vld [vmem:[%s2116_s20 + $0x60] ss:$8 sps:$4 sm:$0xff]   ;;  %v1626_v17 = vld [vmem:[%s2116_s20 + $0x54] ss:$8 sps:$4 sm:$0xff]   ;;  %v1630_v19 = vld [vmem:[%s2116_s20 + $0x50] ss:$8 sps:$4 sm:$0xff]  }
  0x72   : > { %1145 = vmatpush1.bf16.msra.mxu1 %v1619_v12  ;;  %1103 = vmatprep.subr.bf16.mxu0 %v1620_v13  ;;  %v1625_v16 = vld [vmem:[%s2116_s20 + $0x160] ss:$8 sps:$4 sm:$0xff]   ;;  %v1628_v18 = vld [vmem:[%s2116_s20 + $0x154] ss:$8 sps:$4 sm:$0xff]   ;;  %v1631_v20 = vld [vmem:[%s2116_s20 + $0x150] ss:$8 sps:$4 sm:$0xff]  }
  0x73   : > { %1146 = vmatprep.subr.bf16.mxu1 %v1622_v14  ;;  %v1632_v21 = vld [vmem:[%s2116_s20 + $0x44] ss:$8 sps:$4 sm:$0xff]   ;;  %v1636_v23 = vld [vmem:[%s2116_s20 + $0x40] ss:$8 sps:$4 sm:$0xff]   ;;  %v1638_v25 = vld [vmem:[%s2116_s20 + $0x34] ss:$8 sps:$4 sm:$0xff]  }
  0x74   : > { %v1634_v22 = vld [vmem:[%s2116_s20 + $0x144] ss:$8 sps:$4 sm:$0xff]   ;;  %v1637_v24 = vld [vmem:[%s2116_s20 + $0x140] ss:$8 sps:$4 sm:$0xff]   ;;  %v1640_v26 = vld [vmem:[%s2116_s20 + $0x134] ss:$8 sps:$4 sm:$0xff]  }
  0x75   : > { %1104 = vmatpush1.bf16.msra.mxu0 %v1624_v15  ;;  %v1642_v27 = vld [vmem:[%s2116_s20 + $0x30] ss:$8 sps:$4 sm:$0xff]   ;;  %v1644_v29 = vld [vmem:[%s2116_s20 + $0x24] ss:$8 sps:$4 sm:$0xff]   ;;  %v1648_v31 = vld [vmem:[%s2116_s20 + $0x20] ss:$8 sps:$4 sm:$0xff]  }
  0x76   : > { %1147 = vmatpush1.bf16.msra.mxu1 %v1625_v16  ;;  %1105 = vmatprep.subr.bf16.mxu0 %v1626_v17  ;;  %v1643_v28 = vld [vmem:[%s2116_s20 + $0x130] ss:$8 sps:$4 sm:$0xff]   ;;  %v1646_v30 = vld [vmem:[%s2116_s20 + $0x124] ss:$8 sps:$4 sm:$0xff]   ;;  %v1649_v32 = vld [vmem:[%s2116_s20 + $0x120] ss:$8 sps:$4 sm:$0xff]  }
  0x77   : > { %1148 = vmatprep.subr.bf16.mxu1 %v1628_v18  ;;  %v1650_v33 = vld [vmem:[%s2116_s20 + $0x14] ss:$8 sps:$4 sm:$0xff]   ;;  %v1654_v35 = vld [vmem:[%s2116_s20 + $0x10] ss:$8 sps:$4 sm:$0xff]   ;;  %v1656_v37 = vld [vmem:[%s2116_s20 + $0x4] ss:$8 sps:$4 sm:$0xff]  }
  0x78   : > { %v1652_v34 = vld [vmem:[%s2116_s20 + $0x114] ss:$8 sps:$4 sm:$0xff]   ;;  %v1655_v36 = vld [vmem:[%s2116_s20 + $0x110] ss:$8 sps:$4 sm:$0xff]   ;;  %v1658_v38 = vld [vmem:[%s2116_s20 + $0x104] ss:$8 sps:$4 sm:$0xff]  }
  0x79   : > { %1106 = vmatpush1.bf16.msra.mxu0 %v1630_v19  ;;  %v1660_v39 = vld [vmem:[%s2116_s20] ss:$8 sps:$4 sm:$0xff]   ;;  %v1662_v41 = vld [vmem:[%s2116_s20 + $0xf4] ss:$8 sps:$4 sm:$0xff]   ;;  %v1666_v43 = vld [vmem:[%s2116_s20 + $0xf0] ss:$8 sps:$4 sm:$0xff]  }
  0x7a   : > { %1149 = vmatpush1.bf16.msra.mxu1 %v1631_v20  ;;  %1107 = vmatprep.subr.bf16.mxu0 %v1632_v21  ;;  %v1661_v40 = vld [vmem:[%s2116_s20 + $0x100] ss:$8 sps:$4 sm:$0xff]   ;;  %v1664_v42 = vld [vmem:[%s2116_s20 + $0x1f4] ss:$8 sps:$4 sm:$0xff]   ;;  %v1667_v44 = vld [vmem:[%s2116_s20 + $0x1f0] ss:$8 sps:$4 sm:$0xff]  }
  0x7b   : > { %1150 = vmatprep.subr.bf16.mxu1 %v1634_v22  ;;  %v1668_v45 = vld [vmem:[%s2116_s20 + $0xe4] ss:$8 sps:$4 sm:$0xff]   ;;  %v1672_v47 = vld [vmem:[%s2116_s20 + $0xe0] ss:$8 sps:$4 sm:$0xff]   ;;  %v1674_v49 = vld [vmem:[%s2116_s20 + $0xd4] ss:$8 sps:$4 sm:$0xff]  }
  0x7c   : > { %v1670_v46 = vld [vmem:[%s2116_s20 + $0x1e4] ss:$8 sps:$4 sm:$0xff]   ;;  %v1673_v48 = vld [vmem:[%s2116_s20 + $0x1e0] ss:$8 sps:$4 sm:$0xff]   ;;  %v1676_v50 = vld [vmem:[%s2116_s20 + $0x1d4] ss:$8 sps:$4 sm:$0xff]  }
  0x7d   : > { %1108 = vmatpush1.bf16.msra.mxu0 %v1636_v23  ;;  %v1678_v51 = vld [vmem:[%s2116_s20 + $0xd0] ss:$8 sps:$4 sm:$0xff]   ;;  %v1680_v53 = vld [vmem:[%s2116_s20 + $0xc4] ss:$8 sps:$4 sm:$0xff]   ;;  %v1684_v55 = vld [vmem:[%s2116_s20 + $0xc0] ss:$8 sps:$4 sm:$0xff]  }
  0x7e   : > { %1151 = vmatpush1.bf16.msra.mxu1 %v1637_v24  ;;  %1109 = vmatprep.subr.bf16.mxu0 %v1638_v25  ;;  %v1679_v52 = vld [vmem:[%s2116_s20 + $0x1d0] ss:$8 sps:$4 sm:$0xff]   ;;  %v1682_v54 = vld [vmem:[%s2116_s20 + $0x1c4] ss:$8 sps:$4 sm:$0xff]   ;;  %v1685_v57 = vld [vmem:[%s2116_s20 + $0x1c0] ss:$8 sps:$4 sm:$0xff]  }
  0x7f   : > { %1152 = vmatprep.subr.bf16.mxu1 %v1640_v26  ;;  %v1712_v56 = vld [vmem:[%s2114_s22 + $0x4] ss:$16 sps:$4 sm:$0xff]   ;;  %v1715_v60 = vld [vmem:[%s2114_s22 + $0xc] ss:$16 sps:$4 sm:$0xff]   ;;  %v1690_v61 = vld [vmem:[%s2116_s20 + $0xb0] ss:$8 sps:$4 sm:$0xff]  }
  0x80   : > { %v1686_v58 = vld [vmem:[%s2116_s20 + $0xb4] ss:$8 sps:$4 sm:$0xff]   ;;  %1133 = vmatprep.mubr.bf16.mxu0 %v1712_v56  ;;  %1176 = vmatprep.mubr.bf16.mxu1 %v1715_v60  ;;  %v1691_v62 = vld [vmem:[%s2116_s20 + $0x1b0] ss:$8 sps:$4 sm:$0xff]   ;;  %v1692_v63 = vld [vmem:[%s2116_s20 + $0xa4] ss:$8 sps:$4 sm:$0xff]  }
  0x81   : > { %1110 = vmatpush1.bf16.msra.mxu0 %v1642_v27  ;;  %v1688_v59 = vld [vmem:[%s2116_s20 + $0x1b4] ss:$8 sps:$4 sm:$0xff]   ;;  %v1694_v0 = vld [vmem:[%s2116_s20 + $0x1a4] ss:$8 sps:$4 sm:$0xff]   ;;  %v1696_v1 = vld [vmem:[%s2116_s20 + $0xa0] ss:$8 sps:$4 sm:$0xff]  }
  0x82   : > { %1153 = vmatpush1.bf16.msra.mxu1 %v1643_v28  ;;  %1111 = vmatprep.subr.bf16.mxu0 %v1644_v29  ;;  %v1697_v2 = vld [vmem:[%s2116_s20 + $0x1a0] ss:$8 sps:$4 sm:$0xff]   ;;  %v1698_v3 = vld [vmem:[%s2116_s20 + $0x94] ss:$8 sps:$4 sm:$0xff]   ;;  %v1702_v5 = vld [vmem:[%s2116_s20 + $0x90] ss:$8 sps:$4 sm:$0xff]  }
  0x83   : > { %1154 = vmatprep.subr.bf16.mxu1 %v1646_v30  ;;  %v1700_v4 = vld [vmem:[%s2116_s20 + $0x194] ss:$8 sps:$4 sm:$0xff]   ;;  %v1703_v6 = vld [vmem:[%s2116_s20 + $0x190] ss:$8 sps:$4 sm:$0xff]   ;;  %v1704_v7 = vld [vmem:[%s2116_s20 + $0x84] ss:$8 sps:$4 sm:$0xff]  }
  0x84   : > { %v1706_v8 = vld [vmem:[%s2116_s20 + $0x184] ss:$8 sps:$4 sm:$0xff]   ;;  %v1708_v9 = vld [vmem:[%s2116_s20 + $0x80] ss:$8 sps:$4 sm:$0xff]   ;;  %v689_v14 = vld [vmem:[#allocation2 + $0x10] sm:$0xff]  ;;  %p1515_p6 = scmp.ne.s32.totalorder %s1786_s24, 8 }
  0x85   : > { %1112 = vmatpush1.bf16.msra.mxu0 %v1648_v31  ;;  %v1709_v10 = vld [vmem:[%s2116_s20 + $0x180] ss:$8 sps:$4 sm:$0xff]   ;;  %v691_v23 = vld [vmem:[#allocation2 + $0x18] sm:$0xff] }
  0x86   : > { %1155 = vmatpush1.bf16.msra.mxu1 %v1649_v32  ;;  %1113 = vmatprep.subr.bf16.mxu0 %v1650_v33  ;;  %v1710_v11 = vld [vmem:[%s2114_s22] ss:$16 sps:$4 sm:$0xff]   ;;  %v1713_v12 = vld [vmem:[%s2114_s22 + $0x8] ss:$16 sps:$4 sm:$0xff]  }
  0x87   : > { %1156 = vmatprep.subr.bf16.mxu1 %v1652_v34  ;;  %v690_v18 = vld [vmem:[#allocation2] sm:$0xff]  ;;  %v692_v28 = vld [vmem:[#allocation2 + $0x8] sm:$0xff] }
  0x89   : > { %1114 = vmatpush1.bf16.msra.mxu0 %v1654_v35 }
  0x8a   : > { %1157 = vmatpush1.bf16.msra.mxu1 %v1655_v36  ;;  %1115 = vmatprep.subr.bf16.mxu0 %v1656_v37 }
  0x8b   : > { %1158 = vmatprep.subr.bf16.mxu1 %v1658_v38 }
  0x8d   : > { %1116 = vmatpush1.bf16.msra.mxu0 %v1660_v39 }
  0x8e   : > { %1159 = vmatpush1.bf16.msra.mxu1 %v1661_v40  ;;  %1117 = vmatprep.subr.bf16.mxu0 %v1662_v41 }
  0x8f   : > { %1160 = vmatprep.subr.bf16.mxu1 %v1664_v42 }
  0x91   : > { %1118 = vmatpush2.bf16.msra.mxu0 %v1666_v43 }
  0x92   : > { %1161 = vmatpush2.bf16.msra.mxu1 %v1667_v44  ;;  %1119 = vmatprep.subr.bf16.mxu0 %v1668_v45 }
  0x93   : > { %1162 = vmatprep.subr.bf16.mxu1 %v1670_v46 }
  0x95   : > { %1120 = vmatpush2.bf16.msra.mxu0 %v1672_v47 }
  0x96   : > { %1163 = vmatpush2.bf16.msra.mxu1 %v1673_v48  ;;  %1121 = vmatprep.subr.bf16.mxu0 %v1674_v49 }
  0x97   : > { %1164 = vmatprep.subr.bf16.mxu1 %v1676_v50 }
  0x99   : > { %1122 = vmatpush2.bf16.msra.mxu0 %v1678_v51 }
  0x9a   : > { %1165 = vmatpush2.bf16.msra.mxu1 %v1679_v52  ;;  %1123 = vmatprep.subr.bf16.mxu0 %v1680_v53 }
  0x9b   : > { %1166 = vmatprep.subr.bf16.mxu1 %v1682_v54 }
  0x9d   : > { %1124 = vmatpush2.bf16.msra.mxu0 %v1684_v55 }
  0x9e   : > { %1167 = vmatpush2.bf16.msra.mxu1 %v1685_v57  ;;  %1125 = vmatprep.subr.bf16.mxu0 %v1686_v58 }
  0x9f   : > { %1168 = vmatprep.subr.bf16.mxu1 %v1688_v59 }
  0xa1   : > { %1126 = vmatpush2.bf16.msra.mxu0 %v1690_v61 }
  0xa2   : > { %1169 = vmatpush2.bf16.msra.mxu1 %v1691_v62  ;;  %1127 = vmatprep.subr.bf16.mxu0 %v1692_v63 }
  0xa3   : > { %1170 = vmatprep.subr.bf16.mxu1 %v1694_v0 }
  0xa5   : > { %1128 = vmatpush2.bf16.msra.mxu0 %v1696_v1 }
  0xa6   : > { %1171 = vmatpush2.bf16.msra.mxu1 %v1697_v2  ;;  %1129 = vmatprep.subr.bf16.mxu0 %v1698_v3 }
  0xa7   : > { %1172 = vmatprep.subr.bf16.mxu1 %v1700_v4 }
  0xa9   : > { %1130 = vmatpush2.bf16.msra.mxu0 %v1702_v5 }
  0xaa   : > { %1173 = vmatpush2.bf16.msra.mxu1 %v1703_v6  ;;  %1131 = vmatprep.subr.bf16.mxu0 %v1704_v7 }
  0xab   : > { %1174 = vmatprep.subr.bf16.mxu1 %v1706_v8 }
  0xad   : > { %1132 = vmatpush2.bf16.msra.mxu0 %v1708_v9 }
  0xae   : > { %1175 = vmatpush2.bf16.msra.mxu1 %v1709_v10 }
  0xb0   : > { %1134 = vmatmul.mubr.bf16.vlgmr.msra.gmra.mxu0 %v1710_v11 }
  0xb1   : > { %1177 = vmatmul.mubr.bf16.vlgmr.msra.gmra.mxu1 %v1713_v12 }
 0x170   : > { %v1135_v13 = vpop.f32.mrf.mxu0 }
 0x171   : > { %v1178_v15 = vpop.f32.mrf.mxu1 }
 0x172   : > { %v1179_v16 = vadd.f32 %v1178_v15, %v1135_v13  ;;  %v1137_v17 = vpop.f32.mrf.mxu0 }
 0x173   : > { %v1180_v19 = vpop.f32.mrf.mxu1 }
 0x174   : > { %v1187_v20 = vadd.f32 %v1179_v16, %v689_v14  ;;  %v1181_v21 = vadd.f32 %v1180_v19, %v1137_v17  ;;  %v1139_v22 = vpop.f32.mrf.mxu0 }
 0x175   : > { %v1182_v24 = vpop.f32.mrf.mxu1 }
 0x176   : > { %1191 = vst [vmem:[#allocation2 + $0x10] sm:$0xff] %v1187_v20  ;;  %v1188_v25 = vadd.f32 %v1181_v21, %v690_v18  ;;  %v1183_v26 = vadd.f32 %v1182_v24, %v1139_v22  ;;  %v1141_v27 = vpop.f32.mrf.mxu0 }
 0x177   : > { %v1184_v29 = vpop.f32.mrf.mxu1 }
 0x178   : > { %1192 = vst [vmem:[#allocation2] sm:$0xff] %v1188_v25  ;;  %v1189_v30 = vadd.f32 %v1183_v26, %v691_v23  ;;  %v1185_v31 = vadd.f32 %v1184_v29, %v1141_v27  ;;  %1198 = sbr.rel (%p1515_p6) target bundleno = 399 (0x18f), region = 132 }
 0x17a   : > { %1193 = vst [vmem:[#allocation2 + $0x18] sm:$0xff] %v1189_v30  ;;  %v1190_v32 = vadd.f32 %v1185_v31, %v692_v28 }
 0x17c   : > { %1194 = vst [vmem:[#allocation2 + $0x8] sm:$0xff] %v1190_v32 }
 0x17d   : > { %v1205_v33 = vlaneseq  ;;  %v1203_v35 = vld [vmem:[%s670_s29] sm:$0x3]  ;;  %v1199_v37 = vld [vmem:[#allocation2 + $0x10] sm:$0xff]  ;;  %v1236_v52 = vld [vmem:[%s2118_s18 + $0x8] sm:$0xff] }
 0x17e   : > { %v1219_v36 = vld [vmem:[%s675_s6] sm:$0x3]  ;;  %v1237_v53 = vld [vmem:[%s2118_s18 + $0x10] sm:$0xff]  ;;  %v1238_v54 = vld [vmem:[%s2118_s18 + $0x18] sm:$0xff] }
 0x17f   : > { %v1206_v34 = vshrl.u32 %v1205_v33, 7  ;;  %v1200_v40 = vld [vmem:[#allocation2] sm:$0xff] }
 0x180   : > { %v1235_v48 = vld [vmem:[%s2118_s18] sm:$0xff] }
 0x181   : > { %v1207_v38 = vsub.s32 0, %v1206_v34  ;;  %v1211_v39 = vsub.s32 1, %v1206_v34  ;;  %v1201_v41 = vld [vmem:[#allocation2 + $0x18] sm:$0xff] }
 0x183   : > { %v1202_v42 = vld [vmem:[#allocation2 + $0x8] sm:$0xff]  ;;  %v1208_v43 = vrot.slane %v1203_v35, %v1207_v38  ;;  %v1224_v44 = vrot.slane %v1219_v36, %v1207_v38  ;;  %v1212_v45 = vrot.slane %v1203_v35, %v1211_v39  ;;  %v1228_v46 = vrot.slane %v1219_v36, %v1211_v39 }
 0x185   : > { %v1215_v47 = vmul.f32 %v1208_v43, %v1199_v37  ;;  %v1216_v49 = vmul.f32 %v1212_v45, %v1200_v40  ;;  %v1217_v50 = vmul.f32 %v1208_v43, %v1201_v41  ;;  %v1218_v51 = vmul.f32 %v1212_v45, %v1202_v42 }
 0x187   : > { %v1231_v55 = vadd.f32 %v1224_v44, %v1215_v47  ;;  %v1232_v56 = vadd.f32 %v1228_v46, %v1216_v49  ;;  %v1233_v57 = vadd.f32 %v1224_v44, %v1217_v50  ;;  %v1234_v58 = vadd.f32 %v1228_v46, %v1218_v51 }
 0x189   : > { %v1239_v59 = vadd.f32 %v1235_v48, %v1231_v55  ;;  %v1240_v60 = vadd.f32 %v1236_v52, %v1232_v56  ;;  %v1241_v61 = vadd.f32 %v1237_v53, %v1233_v57  ;;  %v1242_v62 = vadd.f32 %v1238_v54, %v1234_v58 }
 0x18b   : > { %v1243_v63 = vmax.f32 %v1239_v59, 0.0  ;;  %v1244_v0 = vmax.f32 %v1240_v60, 0.0  ;;  %v1245_v1 = vmax.f32 %v1241_v61, 0.0  ;;  %v1246_v2 = vmax.f32 %v1242_v62, 0.0 }
 0x18d   : > { %1247 = vst [vmem:[%s2120_s23] sm:$0xff] %v1243_v63  ;;  %1248 = vst [vmem:[%s2120_s23 + $0x8] sm:$0xff] %v1244_v0 }
 0x18e   : > { %1249 = vst [vmem:[%s2120_s23 + $0x10] sm:$0xff] %v1245_v1  ;;  %1250 = vst [vmem:[%s2120_s23 + $0x18] sm:$0xff] %v1246_v2 }
 0x18f PF: > { %1257 = sbr.rel (!%p1939_p13) target bundleno = 407 (0x197), region = 136  ;;  %s1524_s24 = sshll.u32 (%p1939_p13), %s1790_s25, 4 }
 0x190   : > { %s1263_s11 = scalar_lea.vmem (%p1939_p13), %s2258_s5, %s1524_s24 }
 0x194   : > { %v1276_v3 = vld [vmem:[%s2120_s23] sm:$0xff]  ;;  %v1278_v4 = vld [vmem:[%s2120_s23 + $0x8] sm:$0xff] }
 0x195   : > { %v1280_v5 = vld [vmem:[%s2120_s23 + $0x10] sm:$0xff]  ;;  %v1282_v6 = vld [vmem:[%s2120_s23 + $0x18] sm:$0xff]  ;;  %1277 = vst [vmem:[%s1263_s11] sm:$0xff] %v1276_v3  ;;  %1279 = vst [vmem:[%s1263_s11 + $0x8] sm:$0xff] %v1278_v4 }
 0x196   : > { %1281 = vst [vmem:[%s1263_s11 + $0x20] sm:$0xff] %v1280_v5  ;;  %1283 = vst [vmem:[%s1263_s11 + $0x28] sm:$0xff] %v1282_v6 }
 0x197 PF: > { %s15_s28 = sadd.s32 1, %s1802_s28   ;;  %s2272_s22 = sld [smem:[#allocation7_spill]] }
 0x198   : > { %p12_p7 = scmp.ge.s32.totalorder %s15_s28, 20   ;;  %s2273_s23 = sld [smem:[#allocation10_spill]] }
 0x199   : > { %s2274_s8 = sld [smem:[#allocation8_spill]]  ;;  %s2276_s18 = smov %s1766_s19 }
 0x19a   : > { %s2275_s14 = sld [smem:[#allocation9_spill]]  ;;  %s2277_s19 = smov %s1931_s17 }
 0x19b   : > { %s2278_s20 = smov %s1774_s21  ;;  %s2279_s21 = smov %s1928_s16 }
 0x19c   : > { %s2280_s24 = smov %s1794_s26  ;;  %s2281_s25 = smov %s1798_s27 }
 0x19d   :  { %14 = sbr.rel (!%p12_p7) target bundleno = 8 (0x8), region = 212 }
 0x19f   : > { %s2282_s26 = smov %s2274_s8 }
 0x1a0   : > { %s2283_s27 = smov %s2275_s14 }

// kernel: supervised_net_forward.42
= control target key start
LH: loop header
LB: loop body
LE: loop exit
PB: predicated region body
PF: predicated region fallthrough
CT: control target
= control target key end

     0   :  { %s2111_s0 = inlined_call_operand.vmem [shape: bf16[16,4608], index: 0, kind: input, shape index: {}]   ;;  %s2112_s1 = inlined_call_operand.vmem [shape: bf16[4608,512], index: 1, kind: input, shape index: {}]   ;;  %s2113_s2 = inlined_call_operand.vmem [shape: f32[1,512], index: 2, kind: input, shape index: {}]   ;;  %s2114_s3 = inlined_call_operand.vmem [shape: f32[1,512], index: 3, kind: input, shape index: {}]   ;;  %s2115_s4 = inlined_call_operand.vmem [shape: f32[16,512], index: 4, kind: output, shape index: {}]  }
   0x1   :  { %2118 = sst [smem:[#allocation8_spill]] %s2111_s0 }
   0x2   :  { %2119 = sst [smem:[#allocation9_spill]] %s2112_s1 }
   0x3   :  { %s1716_s15 = smov 0   ;;  %s1718_s16 = smov 0  }
   0x4   :  { %s1720_s17 = smov 0   ;;  %s1722_s18 = smov 0  }
   0x5   :  { %s1724_s19 = smov 0   ;;  %s1726_s20 = smov 0  }
   0x6   :  { %s1728_s21 = smov 0   ;;  %s1730_s22 = smov 0  }
   0x7   :  { %s1732_s23 = smov 0   ;;  %s1734_s24 = smov 0  }
   0x8   :  { %s1736_s25 = smov 0  }
   0x9 LB: > { %s1315_s26 = sadd.s32 4294967295, %s1688_s25   ;;  %s26_s27 = sadd.s32 1, %s1680_s23  ;;  %s1688_s25 = sphi %s1736_s25, %s14_s25   ;;  %s1684_s24 = sphi %s1734_s24, %s2138_s24   ;;  %s1680_s23 = sphi %s1732_s23, %s2137_s23   ;;  %s1676_s22 = sphi %s1730_s22, %s2136_s22   ;;  %s1672_s21 = sphi %s1728_s21, %s2135_s21   ;;  %s1668_s20 = sphi %s1726_s20, %s2134_s20   ;;  %s1664_s19 = sphi %s1724_s19, %s2133_s19   ;;  %s1660_s18 = sphi %s1722_s18, %s2132_s18   ;;  %s1656_s17 = sphi %s1720_s17, %s2131_s17   ;;  %s1652_s16 = sphi %s1718_s16, %s2130_s16   ;;  %s1648_s15 = sphi %s1716_s15, %s2129_s15  }
   0xa   : > { %p27_p0 = scmp.ge.s32.totalorder %s26_s27, 9  ;;  %s29_s28 = sadd.s32 1, %s1684_s24 }
   0xb   : > { %s42_s29 = sadd.s32 1, %s1668_s20  ;;  %p49_p1 = scmp.ne.s32.totalorder %s1668_s20, %s1664_s19 }
   0xc   : > { %s2140_s27 = smov (%p27_p0, %s26_s27), 0  ;;  %s2142_s28 = smov (!%p27_p0, %s29_s28), %s1684_s24 }
   0xd   : > { %2120 = sst [smem:[#allocation6_spill]] %s2140_s27  ;;  %s38_s30 = ssub.s32 %s1680_s23, %s2140_s27 }
   0xe   : > { %p50_p2 = scmp.eq.s32.totalorder %s1688_s25, 0  ;;  %p31_p3 = scmp.ge.s32.totalorder %s2142_s28, 2 }
   0xf   : > { %p40_p4 = scmp.eq.s32.totalorder %s38_s30, 0  ;;  %s70_s6 = sadd.s32 1, %s1660_s18 }
  0x10   : > { %p1783_p5 = por %p50_p2, %p49_p1  ;;  %s2144_s28 = smov (%p31_p3, %s2142_s28), 0 }
  0x11   : > { %2122 = sst [smem:[#allocation7_spill]] %s2144_s28  ;;  %s66_s8 = ssub.s32 %s1684_s24, %s2144_s28 }
  0x12   : > { %s1791_s7 = scalar_select %p40_p4, %s1668_s20, %s42_s29  }
  0x13   : > { %p77_p6 = scmp.ne.s32.totalorder %s1660_s18, %s1656_s17  ;;  %s67_s9 = sor.u32 %s66_s8, %s38_s30 }
  0x14   : > { %p148_p7 = scmp.eq.s32.totalorder %s66_s8, 0  ;;  %p68_p8 = scmp.eq.s32.totalorder %s67_s9, 0 }
  0x15   : > { %p1797_p9 = por %p77_p6, %p50_p2  ;;  %s150_s11 = sadd.s32 1, %s1652_s16 }
  0x16   : > { %p160_p10 = scmp.ne.s32.totalorder %s1652_s16, %s1648_s15  ;;  %p161_p11 = scmp.eq.s32.totalorder %s1315_s26, 17 }
  0x17   : > { %s1805_s12 = scalar_select %p68_p8, %s1660_s18, %s70_s6  }
  0x18   : > { %s1808_s13 = scalar_select %p148_p7, %s1652_s16, %s150_s11  }
  0x19   : > { %p1810_p12 = por %p161_p11, %p160_p10  ;;  %p1318_p13 = scmp.ge.s32.totalorder %s1688_s25, 18 }
  0x1b   : > { %183 = sbr.rel (%p1318_p13) target bundleno = 86 (0x56), region = 16 }
  0x20   : > { %186 = sbr.rel (!%p1783_p5) target bundleno = 44 (0x2c), region = 20  ;;  %s188_s29 = sand.u32 (%p1783_p5), 1, %s1668_s20  }
  0x21   : > { %s1408_s30 = sshll.u32 (%p1783_p5), %s1680_s23, 4  ;;  %s1319_s8 = sshll.u32 (%p1783_p5), %s188_s29, 5 }
  0x22   : > { %s2125_s0 = sld [smem:[#allocation8_spill]] (%p1783_p5)  ;;  %s190_s26 = scalar_lea.vmem (%p1783_p5), [#allocation3], %s1319_s8 }
  0x28   : > { %s196_s11 = scalar_lea.vmem %s2125_s0, %s1408_s30 }
  0x29   : > { %v209_v0 = vld [vmem:[%s196_s11] sm:$0xff]  ;;  %v211_v1 = vld [vmem:[%s196_s11 + $0x8] sm:$0xff]  ;;  %v213_v2 = vld [vmem:[%s196_s11 + $0x90] sm:$0xff] }
  0x2a   : > { %210 = vst [vmem:[%s190_s26] sm:$0xff] %v209_v0  ;;  %212 = vst [vmem:[%s190_s26 + $0x8] sm:$0xff] %v211_v1  ;;  %v215_v3 = vld [vmem:[%s196_s11 + $0x98] sm:$0xff] }
  0x2b   : > { %214 = vst [vmem:[%s190_s26 + $0x10] sm:$0xff] %v213_v2  ;;  %216 = vst [vmem:[%s190_s26 + $0x18] sm:$0xff] %v215_v3 }
  0x2c PF: > { %222 = sbr.rel (!%p1797_p9) target bundleno = 86 (0x56), region = 43  ;;  %s224_s5 = sand.u32 (%p1797_p9), 1, %s1660_s18  }
  0x2d   : > { %s1324_s29 = sshll.u32 (%p1797_p9), %s1684_s24, 1  ;;  %s1322_s6 = sshll.u32 (%p1797_p9), %s224_s5, 9 }
  0x2e   : > { %s1409_s30 = sshll.u32 (%p1797_p9), %s1680_s23, 8  ;;  %s2126_s1 = sld [smem:[#allocation9_spill]] (%p1797_p9) }
  0x2f   : > { %s230_s9 = sadd.s32 (%p1797_p9), %s1409_s30, %s1324_s29  ;;  %s1835_s10 = scalar_lea.vmem (%p1797_p9), [#allocation4], %s1322_s6 }
  0x30   : > { %s1326_s0 = sshll.u32 (%p1797_p9), %s230_s9, 2 }
  0x34   : > { %s1830_s27 = scalar_lea.vmem %s2126_s1, %s1326_s0 }
  0x35   : > { %v387_v4 = vld [vmem:[%s1830_s27] sm:$0xff]  ;;  %v389_v5 = vld [vmem:[%s1830_s27 + $0x10] sm:$0xff] }
  0x36   : > { %v391_v6 = vld [vmem:[%s1830_s27 + $0x20] sm:$0xff]  ;;  %388 = vst [vmem:[%s1835_s10] sm:$0xff] %v387_v4  ;;  %390 = vst [vmem:[%s1835_s10 + $0x8] sm:$0xff] %v389_v5  ;;  %v393_v7 = vld [vmem:[%s1830_s27 + $0x30] sm:$0xff] }
  0x37   : > { %392 = vst [vmem:[%s1835_s10 + $0x10] sm:$0xff] %v391_v6  ;;  %v395_v8 = vld [vmem:[%s1830_s27 + $0x40] sm:$0xff]  ;;  %v397_v9 = vld [vmem:[%s1830_s27 + $0x50] sm:$0xff]  ;;  %394 = vst [vmem:[%s1835_s10 + $0x18] sm:$0xff] %v393_v7 }
  0x38   : > { %396 = vst [vmem:[%s1835_s10 + $0x20] sm:$0xff] %v395_v8  ;;  %398 = vst [vmem:[%s1835_s10 + $0x28] sm:$0xff] %v397_v9  ;;  %v399_v10 = vld [vmem:[%s1830_s27 + $0x60] sm:$0xff]  ;;  %v401_v11 = vld [vmem:[%s1830_s27 + $0x70] sm:$0xff] }
  0x39   : > { %v403_v12 = vld [vmem:[%s1830_s27 + $0x80] sm:$0xff]  ;;  %400 = vst [vmem:[%s1835_s10 + $0x30] sm:$0xff] %v399_v10  ;;  %402 = vst [vmem:[%s1835_s10 + $0x38] sm:$0xff] %v401_v11  ;;  %v405_v13 = vld [vmem:[%s1830_s27 + $0x90] sm:$0xff] }
  0x3a   : > { %404 = vst [vmem:[%s1835_s10 + $0x40] sm:$0xff] %v403_v12  ;;  %v407_v14 = vld [vmem:[%s1830_s27 + $0xa0] sm:$0xff]  ;;  %v409_v15 = vld [vmem:[%s1830_s27 + $0xb0] sm:$0xff]  ;;  %406 = vst [vmem:[%s1835_s10 + $0x48] sm:$0xff] %v405_v13 }
  0x3b   : > { %408 = vst [vmem:[%s1835_s10 + $0x50] sm:$0xff] %v407_v14  ;;  %410 = vst [vmem:[%s1835_s10 + $0x58] sm:$0xff] %v409_v15  ;;  %v411_v16 = vld [vmem:[%s1830_s27 + $0xc0] sm:$0xff]  ;;  %v413_v17 = vld [vmem:[%s1830_s27 + $0xd0] sm:$0xff] }
  0x3c   : > { %v415_v18 = vld [vmem:[%s1830_s27 + $0xe0] sm:$0xff]  ;;  %412 = vst [vmem:[%s1835_s10 + $0x60] sm:$0xff] %v411_v16  ;;  %414 = vst [vmem:[%s1835_s10 + $0x68] sm:$0xff] %v413_v17  ;;  %v417_v19 = vld [vmem:[%s1830_s27 + $0xf0] sm:$0xff] }
  0x3d   : > { %416 = vst [vmem:[%s1835_s10 + $0x70] sm:$0xff] %v415_v18  ;;  %v419_v20 = vld [vmem:[%s1830_s27 + $0x100] sm:$0xff]  ;;  %v421_v21 = vld [vmem:[%s1830_s27 + $0x110] sm:$0xff]  ;;  %418 = vst [vmem:[%s1835_s10 + $0x78] sm:$0xff] %v417_v19 }
  0x3e   : > { %420 = vst [vmem:[%s1835_s10 + $0x80] sm:$0xff] %v419_v20  ;;  %422 = vst [vmem:[%s1835_s10 + $0x88] sm:$0xff] %v421_v21  ;;  %v423_v22 = vld [vmem:[%s1830_s27 + $0x120] sm:$0xff]  ;;  %v425_v23 = vld [vmem:[%s1830_s27 + $0x130] sm:$0xff] }
  0x3f   : > { %v427_v24 = vld [vmem:[%s1830_s27 + $0x140] sm:$0xff]  ;;  %424 = vst [vmem:[%s1835_s10 + $0x90] sm:$0xff] %v423_v22  ;;  %426 = vst [vmem:[%s1835_s10 + $0x98] sm:$0xff] %v425_v23  ;;  %v429_v25 = vld [vmem:[%s1830_s27 + $0x150] sm:$0xff] }
  0x40   : > { %428 = vst [vmem:[%s1835_s10 + $0xa0] sm:$0xff] %v427_v24  ;;  %v431_v26 = vld [vmem:[%s1830_s27 + $0x160] sm:$0xff]  ;;  %v433_v27 = vld [vmem:[%s1830_s27 + $0x170] sm:$0xff]  ;;  %430 = vst [vmem:[%s1835_s10 + $0xa8] sm:$0xff] %v429_v25 }
  0x41   : > { %432 = vst [vmem:[%s1835_s10 + $0xb0] sm:$0xff] %v431_v26  ;;  %434 = vst [vmem:[%s1835_s10 + $0xb8] sm:$0xff] %v433_v27  ;;  %v435_v28 = vld [vmem:[%s1830_s27 + $0x180] sm:$0xff]  ;;  %v437_v29 = vld [vmem:[%s1830_s27 + $0x190] sm:$0xff] }
  0x42   : > { %v439_v30 = vld [vmem:[%s1830_s27 + $0x1a0] sm:$0xff]  ;;  %436 = vst [vmem:[%s1835_s10 + $0xc0] sm:$0xff] %v435_v28  ;;  %438 = vst [vmem:[%s1835_s10 + $0xc8] sm:$0xff] %v437_v29  ;;  %v441_v31 = vld [vmem:[%s1830_s27 + $0x1b0] sm:$0xff] }
  0x43   : > { %440 = vst [vmem:[%s1835_s10 + $0xd0] sm:$0xff] %v439_v30  ;;  %v443_v32 = vld [vmem:[%s1830_s27 + $0x1c0] sm:$0xff]  ;;  %v445_v33 = vld [vmem:[%s1830_s27 + $0x1d0] sm:$0xff]  ;;  %442 = vst [vmem:[%s1835_s10 + $0xd8] sm:$0xff] %v441_v31 }
  0x44   : > { %444 = vst [vmem:[%s1835_s10 + $0xe0] sm:$0xff] %v443_v32  ;;  %446 = vst [vmem:[%s1835_s10 + $0xe8] sm:$0xff] %v445_v33  ;;  %v447_v34 = vld [vmem:[%s1830_s27 + $0x1e0] sm:$0xff]  ;;  %v449_v35 = vld [vmem:[%s1830_s27 + $0x1f0] sm:$0xff] }
  0x45   : > { %v451_v36 = vld [vmem:[%s1830_s27 + $0x200] sm:$0xff]  ;;  %448 = vst [vmem:[%s1835_s10 + $0xf0] sm:$0xff] %v447_v34  ;;  %450 = vst [vmem:[%s1835_s10 + $0xf8] sm:$0xff] %v449_v35  ;;  %v453_v37 = vld [vmem:[%s1830_s27 + $0x210] sm:$0xff] }
  0x46   : > { %452 = vst [vmem:[%s1835_s10 + $0x100] sm:$0xff] %v451_v36  ;;  %v455_v38 = vld [vmem:[%s1830_s27 + $0x220] sm:$0xff]  ;;  %v457_v39 = vld [vmem:[%s1830_s27 + $0x230] sm:$0xff]  ;;  %454 = vst [vmem:[%s1835_s10 + $0x108] sm:$0xff] %v453_v37 }
  0x47   : > { %456 = vst [vmem:[%s1835_s10 + $0x110] sm:$0xff] %v455_v38  ;;  %458 = vst [vmem:[%s1835_s10 + $0x118] sm:$0xff] %v457_v39  ;;  %v459_v40 = vld [vmem:[%s1830_s27 + $0x240] sm:$0xff]  ;;  %v461_v41 = vld [vmem:[%s1830_s27 + $0x250] sm:$0xff] }
  0x48   : > { %v463_v42 = vld [vmem:[%s1830_s27 + $0x260] sm:$0xff]  ;;  %460 = vst [vmem:[%s1835_s10 + $0x120] sm:$0xff] %v459_v40  ;;  %462 = vst [vmem:[%s1835_s10 + $0x128] sm:$0xff] %v461_v41  ;;  %v465_v43 = vld [vmem:[%s1830_s27 + $0x270] sm:$0xff] }
  0x49   : > { %464 = vst [vmem:[%s1835_s10 + $0x130] sm:$0xff] %v463_v42  ;;  %v467_v44 = vld [vmem:[%s1830_s27 + $0x280] sm:$0xff]  ;;  %v469_v45 = vld [vmem:[%s1830_s27 + $0x290] sm:$0xff]  ;;  %466 = vst [vmem:[%s1835_s10 + $0x138] sm:$0xff] %v465_v43 }
  0x4a   : > { %468 = vst [vmem:[%s1835_s10 + $0x140] sm:$0xff] %v467_v44  ;;  %470 = vst [vmem:[%s1835_s10 + $0x148] sm:$0xff] %v469_v45  ;;  %v471_v46 = vld [vmem:[%s1830_s27 + $0x2a0] sm:$0xff]  ;;  %v473_v47 = vld [vmem:[%s1830_s27 + $0x2b0] sm:$0xff] }
  0x4b   : > { %v475_v48 = vld [vmem:[%s1830_s27 + $0x2c0] sm:$0xff]  ;;  %472 = vst [vmem:[%s1835_s10 + $0x150] sm:$0xff] %v471_v46  ;;  %474 = vst [vmem:[%s1835_s10 + $0x158] sm:$0xff] %v473_v47  ;;  %v477_v49 = vld [vmem:[%s1830_s27 + $0x2d0] sm:$0xff] }
  0x4c   : > { %476 = vst [vmem:[%s1835_s10 + $0x160] sm:$0xff] %v475_v48  ;;  %v479_v50 = vld [vmem:[%s1830_s27 + $0x2e0] sm:$0xff]  ;;  %v481_v51 = vld [vmem:[%s1830_s27 + $0x2f0] sm:$0xff]  ;;  %478 = vst [vmem:[%s1835_s10 + $0x168] sm:$0xff] %v477_v49 }
  0x4d   : > { %480 = vst [vmem:[%s1835_s10 + $0x170] sm:$0xff] %v479_v50  ;;  %482 = vst [vmem:[%s1835_s10 + $0x178] sm:$0xff] %v481_v51  ;;  %v483_v52 = vld [vmem:[%s1830_s27 + $0x300] sm:$0xff]  ;;  %v485_v53 = vld [vmem:[%s1830_s27 + $0x310] sm:$0xff] }
  0x4e   : > { %v487_v54 = vld [vmem:[%s1830_s27 + $0x320] sm:$0xff]  ;;  %484 = vst [vmem:[%s1835_s10 + $0x180] sm:$0xff] %v483_v52  ;;  %486 = vst [vmem:[%s1835_s10 + $0x188] sm:$0xff] %v485_v53  ;;  %v489_v55 = vld [vmem:[%s1830_s27 + $0x330] sm:$0xff] }
  0x4f   : > { %488 = vst [vmem:[%s1835_s10 + $0x190] sm:$0xff] %v487_v54  ;;  %v491_v56 = vld [vmem:[%s1830_s27 + $0x340] sm:$0xff]  ;;  %v493_v57 = vld [vmem:[%s1830_s27 + $0x350] sm:$0xff]  ;;  %490 = vst [vmem:[%s1835_s10 + $0x198] sm:$0xff] %v489_v55 }
  0x50   : > { %492 = vst [vmem:[%s1835_s10 + $0x1a0] sm:$0xff] %v491_v56  ;;  %494 = vst [vmem:[%s1835_s10 + $0x1a8] sm:$0xff] %v493_v57  ;;  %v495_v58 = vld [vmem:[%s1830_s27 + $0x360] sm:$0xff]  ;;  %v497_v59 = vld [vmem:[%s1830_s27 + $0x370] sm:$0xff] }
  0x51   : > { %v499_v60 = vld [vmem:[%s1830_s27 + $0x380] sm:$0xff]  ;;  %496 = vst [vmem:[%s1835_s10 + $0x1b0] sm:$0xff] %v495_v58  ;;  %498 = vst [vmem:[%s1835_s10 + $0x1b8] sm:$0xff] %v497_v59  ;;  %v501_v61 = vld [vmem:[%s1830_s27 + $0x390] sm:$0xff] }
  0x52   : > { %500 = vst [vmem:[%s1835_s10 + $0x1c0] sm:$0xff] %v499_v60  ;;  %v503_v62 = vld [vmem:[%s1830_s27 + $0x3a0] sm:$0xff]  ;;  %v505_v63 = vld [vmem:[%s1830_s27 + $0x3b0] sm:$0xff]  ;;  %502 = vst [vmem:[%s1835_s10 + $0x1c8] sm:$0xff] %v501_v61 }
  0x53   : > { %504 = vst [vmem:[%s1835_s10 + $0x1d0] sm:$0xff] %v503_v62  ;;  %506 = vst [vmem:[%s1835_s10 + $0x1d8] sm:$0xff] %v505_v63  ;;  %v507_v0 = vld [vmem:[%s1830_s27 + $0x3c0] sm:$0xff]  ;;  %v509_v1 = vld [vmem:[%s1830_s27 + $0x3d0] sm:$0xff] }
  0x54   : > { %v511_v2 = vld [vmem:[%s1830_s27 + $0x3e0] sm:$0xff]  ;;  %508 = vst [vmem:[%s1835_s10 + $0x1e0] sm:$0xff] %v507_v0  ;;  %510 = vst [vmem:[%s1835_s10 + $0x1e8] sm:$0xff] %v509_v1  ;;  %v513_v3 = vld [vmem:[%s1830_s27 + $0x3f0] sm:$0xff] }
  0x55   : > { %512 = vst [vmem:[%s1835_s10 + $0x1f0] sm:$0xff] %v511_v2  ;;  %514 = vst [vmem:[%s1835_s10 + $0x1f8] sm:$0xff] %v513_v3 }
  0x56 PF: > { %p1327_p0 = scmp.ge.s32.totalorder %s1688_s25, 1  ;;  %p535_p1 = scmp.lt.s32.totalorder %s1688_s25, 19 }
  0x58   : > { %p536_p2 = pnand %p1327_p0, %p535_p1 }
  0x59   : > { %s542_s0 = sand.u32 (!%p536_p2), 1, %s1664_s19   ;;  %s549_s28 = sand.u32 (!%p536_p2), 1, %s1656_s17  }
  0x5a   : > { %539 = sbr.rel (%p536_p2) target bundleno = 399 (0x18f), region = 89  ;;  %s1328_s11 = sshll.u32 (!%p536_p2), %s542_s0, 5 }
  0x5b   : > { %s1329_s26 = sshll.u32 (!%p536_p2), %s549_s28, 9  ;;  %s582_s5 = sand.u32 (!%p536_p2), 1, %s1648_s15  }
  0x5c   : > { %s1331_s29 = sshll.u32 (!%p536_p2), %s1676_s22, 1  ;;  %s1330_s27 = sshll.u32 (!%p536_p2), %s582_s5, 5 }
  0x5d   : > { %p590_p3 = scmp.lt.s32.totalorder (!%p536_p2), %s1331_s29, 3  ;;  %s1978_s19 = scalar_lea.vmem (!%p536_p2), [#allocation3], %s1328_s11 }
  0x5e   : > { %s1980_s17 = scalar_lea.vmem (!%p536_p2), [#allocation4], %s1329_s26  ;;  %s1982_s15 = scalar_lea.vmem (!%p536_p2), [#allocation5], %s1330_s27 }
  0x5f   : > { %s2146_s29 = smov (!%p590_p3, %s1331_s29), 3  ;;  %p1333_p4 = scmp.ne.s32.totalorder %s1672_s21, 0 }
  0x60   : > { %s592_s9 = scalar_lea.vmem %s2113_s2, %s2146_s29  ;;  %s597_s1 = scalar_lea.vmem %s2114_s3, %s2146_s29 }
  0x61   : > { %604 = sbr.rel (%p1333_p4) target bundleno = 105 (0x69), region = 101 }
  0x66   : > { %v1690_v4 = vmov 0.0  }
  0x67   : > { %605 = vst [vmem:[#allocation2 + $0x10] sm:$0xff] %v1690_v4  ;;  %606 = vst [vmem:[#allocation2] sm:$0xff] %v1690_v4 }
  0x68   : > { %607 = vst [vmem:[#allocation2 + $0x18] sm:$0xff] %v1690_v4  ;;  %608 = vst [vmem:[#allocation2 + $0x8] sm:$0xff] %v1690_v4 }
  0x69 PF: > { %v1500_v5 = vld [vmem:[%s1980_s17 + $0x74] ss:$8 sps:$4 sm:$0xff]   ;;  %v1504_v7 = vld [vmem:[%s1980_s17 + $0x70] ss:$8 sps:$4 sm:$0xff]   ;;  %v1506_v9 = vld [vmem:[%s1980_s17 + $0x64] ss:$8 sps:$4 sm:$0xff]  }
  0x6a   : > { %v1502_v6 = vld [vmem:[%s1980_s17 + $0x174] ss:$8 sps:$4 sm:$0xff]   ;;  %1021 = vmatprep.subr.bf16.mxu0 %v1500_v5  ;;  %v1505_v8 = vld [vmem:[%s1980_s17 + $0x170] ss:$8 sps:$4 sm:$0xff]   ;;  %v1508_v10 = vld [vmem:[%s1980_s17 + $0x164] ss:$8 sps:$4 sm:$0xff]  }
  0x6b   : > { %1064 = vmatprep.subr.bf16.mxu1 %v1502_v6  ;;  %1022 = vmatpush1.bf16.msra.mxu0 %v1504_v7  ;;  %v1510_v11 = vld [vmem:[%s1980_s17 + $0x60] ss:$8 sps:$4 sm:$0xff]   ;;  %v1512_v13 = vld [vmem:[%s1980_s17 + $0x54] ss:$8 sps:$4 sm:$0xff]   ;;  %v1516_v15 = vld [vmem:[%s1980_s17 + $0x50] ss:$8 sps:$4 sm:$0xff]  }
  0x6c   : > { %1065 = vmatpush1.bf16.msra.mxu1 %v1505_v8  ;;  %1023 = vmatprep.subr.bf16.mxu0 %v1506_v9  ;;  %v1511_v12 = vld [vmem:[%s1980_s17 + $0x160] ss:$8 sps:$4 sm:$0xff]   ;;  %v1514_v14 = vld [vmem:[%s1980_s17 + $0x154] ss:$8 sps:$4 sm:$0xff]   ;;  %v1517_v16 = vld [vmem:[%s1980_s17 + $0x150] ss:$8 sps:$4 sm:$0xff]  }
  0x6d   : > { %1066 = vmatprep.subr.bf16.mxu1 %v1508_v10  ;;  %v1518_v17 = vld [vmem:[%s1980_s17 + $0x44] ss:$8 sps:$4 sm:$0xff]   ;;  %v1522_v19 = vld [vmem:[%s1980_s17 + $0x40] ss:$8 sps:$4 sm:$0xff]   ;;  %v1524_v21 = vld [vmem:[%s1980_s17 + $0x34] ss:$8 sps:$4 sm:$0xff]  }
  0x6e   : > { %v1520_v18 = vld [vmem:[%s1980_s17 + $0x144] ss:$8 sps:$4 sm:$0xff]   ;;  %v1523_v20 = vld [vmem:[%s1980_s17 + $0x140] ss:$8 sps:$4 sm:$0xff]   ;;  %v1526_v22 = vld [vmem:[%s1980_s17 + $0x134] ss:$8 sps:$4 sm:$0xff]  }
  0x6f   : > { %1024 = vmatpush1.bf16.msra.mxu0 %v1510_v11  ;;  %v1528_v23 = vld [vmem:[%s1980_s17 + $0x30] ss:$8 sps:$4 sm:$0xff]   ;;  %v1530_v25 = vld [vmem:[%s1980_s17 + $0x24] ss:$8 sps:$4 sm:$0xff]   ;;  %v1534_v27 = vld [vmem:[%s1980_s17 + $0x20] ss:$8 sps:$4 sm:$0xff]  }
  0x70   : > { %1067 = vmatpush1.bf16.msra.mxu1 %v1511_v12  ;;  %1025 = vmatprep.subr.bf16.mxu0 %v1512_v13  ;;  %v1529_v24 = vld [vmem:[%s1980_s17 + $0x130] ss:$8 sps:$4 sm:$0xff]   ;;  %v1532_v26 = vld [vmem:[%s1980_s17 + $0x124] ss:$8 sps:$4 sm:$0xff]   ;;  %v1535_v28 = vld [vmem:[%s1980_s17 + $0x120] ss:$8 sps:$4 sm:$0xff]  }
  0x71   : > { %1068 = vmatprep.subr.bf16.mxu1 %v1514_v14  ;;  %v1536_v29 = vld [vmem:[%s1980_s17 + $0x14] ss:$8 sps:$4 sm:$0xff]   ;;  %v1540_v31 = vld [vmem:[%s1980_s17 + $0x10] ss:$8 sps:$4 sm:$0xff]   ;;  %v1542_v33 = vld [vmem:[%s1980_s17 + $0x4] ss:$8 sps:$4 sm:$0xff]  }
  0x72   : > { %v1538_v30 = vld [vmem:[%s1980_s17 + $0x114] ss:$8 sps:$4 sm:$0xff]   ;;  %v1541_v32 = vld [vmem:[%s1980_s17 + $0x110] ss:$8 sps:$4 sm:$0xff]   ;;  %v1544_v34 = vld [vmem:[%s1980_s17 + $0x104] ss:$8 sps:$4 sm:$0xff]  }
  0x73   : > { %1026 = vmatpush1.bf16.msra.mxu0 %v1516_v15  ;;  %v1546_v35 = vld [vmem:[%s1980_s17] ss:$8 sps:$4 sm:$0xff]   ;;  %v1548_v37 = vld [vmem:[%s1980_s17 + $0xf4] ss:$8 sps:$4 sm:$0xff]   ;;  %v1552_v39 = vld [vmem:[%s1980_s17 + $0xf0] ss:$8 sps:$4 sm:$0xff]  }
  0x74   : > { %1069 = vmatpush1.bf16.msra.mxu1 %v1517_v16  ;;  %1027 = vmatprep.subr.bf16.mxu0 %v1518_v17  ;;  %v1547_v36 = vld [vmem:[%s1980_s17 + $0x100] ss:$8 sps:$4 sm:$0xff]   ;;  %v1550_v38 = vld [vmem:[%s1980_s17 + $0x1f4] ss:$8 sps:$4 sm:$0xff]   ;;  %v1553_v40 = vld [vmem:[%s1980_s17 + $0x1f0] ss:$8 sps:$4 sm:$0xff]  }
  0x75   : > { %1070 = vmatprep.subr.bf16.mxu1 %v1520_v18  ;;  %v1554_v41 = vld [vmem:[%s1980_s17 + $0xe4] ss:$8 sps:$4 sm:$0xff]   ;;  %v1558_v43 = vld [vmem:[%s1980_s17 + $0xe0] ss:$8 sps:$4 sm:$0xff]   ;;  %v1560_v45 = vld [vmem:[%s1980_s17 + $0xd4] ss:$8 sps:$4 sm:$0xff]  }
  0x76   : > { %v1556_v42 = vld [vmem:[%s1980_s17 + $0x1e4] ss:$8 sps:$4 sm:$0xff]   ;;  %v1559_v44 = vld [vmem:[%s1980_s17 + $0x1e0] ss:$8 sps:$4 sm:$0xff]   ;;  %v1562_v46 = vld [vmem:[%s1980_s17 + $0x1d4] ss:$8 sps:$4 sm:$0xff]  }
  0x77   : > { %1028 = vmatpush1.bf16.msra.mxu0 %v1522_v19  ;;  %v1564_v47 = vld [vmem:[%s1980_s17 + $0xd0] ss:$8 sps:$4 sm:$0xff]   ;;  %v1566_v49 = vld [vmem:[%s1980_s17 + $0xc4] ss:$8 sps:$4 sm:$0xff]   ;;  %v1570_v51 = vld [vmem:[%s1980_s17 + $0xc0] ss:$8 sps:$4 sm:$0xff]  }
  0x78   : > { %1071 = vmatpush1.bf16.msra.mxu1 %v1523_v20  ;;  %1029 = vmatprep.subr.bf16.mxu0 %v1524_v21  ;;  %v1565_v48 = vld [vmem:[%s1980_s17 + $0x1d0] ss:$8 sps:$4 sm:$0xff]   ;;  %v1568_v50 = vld [vmem:[%s1980_s17 + $0x1c4] ss:$8 sps:$4 sm:$0xff]   ;;  %v1571_v53 = vld [vmem:[%s1980_s17 + $0x1c0] ss:$8 sps:$4 sm:$0xff]  }
  0x79   : > { %1072 = vmatprep.subr.bf16.mxu1 %v1526_v22  ;;  %v1598_v52 = vld [vmem:[%s1978_s19 + $0x4] ss:$16 sps:$4 sm:$0xff]   ;;  %v1601_v56 = vld [vmem:[%s1978_s19 + $0xc] ss:$16 sps:$4 sm:$0xff]   ;;  %v1576_v57 = vld [vmem:[%s1980_s17 + $0xb0] ss:$8 sps:$4 sm:$0xff]  }
  0x7a   : > { %v1572_v54 = vld [vmem:[%s1980_s17 + $0xb4] ss:$8 sps:$4 sm:$0xff]   ;;  %1053 = vmatprep.mubr.bf16.mxu0 %v1598_v52  ;;  %1096 = vmatprep.mubr.bf16.mxu1 %v1601_v56  ;;  %v1577_v58 = vld [vmem:[%s1980_s17 + $0x1b0] ss:$8 sps:$4 sm:$0xff]   ;;  %v1578_v59 = vld [vmem:[%s1980_s17 + $0xa4] ss:$8 sps:$4 sm:$0xff]  }
  0x7b   : > { %1030 = vmatpush1.bf16.msra.mxu0 %v1528_v23  ;;  %v1574_v55 = vld [vmem:[%s1980_s17 + $0x1b4] ss:$8 sps:$4 sm:$0xff]   ;;  %v1580_v60 = vld [vmem:[%s1980_s17 + $0x1a4] ss:$8 sps:$4 sm:$0xff]   ;;  %v1582_v61 = vld [vmem:[%s1980_s17 + $0xa0] ss:$8 sps:$4 sm:$0xff]  }
  0x7c   : > { %1073 = vmatpush1.bf16.msra.mxu1 %v1529_v24  ;;  %1031 = vmatprep.subr.bf16.mxu0 %v1530_v25  ;;  %v1583_v62 = vld [vmem:[%s1980_s17 + $0x1a0] ss:$8 sps:$4 sm:$0xff]   ;;  %v1584_v63 = vld [vmem:[%s1980_s17 + $0x94] ss:$8 sps:$4 sm:$0xff]   ;;  %v1588_v1 = vld [vmem:[%s1980_s17 + $0x90] ss:$8 sps:$4 sm:$0xff]  }
  0x7d   : > { %1074 = vmatprep.subr.bf16.mxu1 %v1532_v26  ;;  %v1586_v0 = vld [vmem:[%s1980_s17 + $0x194] ss:$8 sps:$4 sm:$0xff]   ;;  %v1589_v2 = vld [vmem:[%s1980_s17 + $0x190] ss:$8 sps:$4 sm:$0xff]   ;;  %v1590_v3 = vld [vmem:[%s1980_s17 + $0x84] ss:$8 sps:$4 sm:$0xff]  }
  0x7e   : > { %v1592_v4 = vld [vmem:[%s1980_s17 + $0x184] ss:$8 sps:$4 sm:$0xff]   ;;  %v1594_v5 = vld [vmem:[%s1980_s17 + $0x80] ss:$8 sps:$4 sm:$0xff]   ;;  %v609_v10 = vld [vmem:[#allocation2 + $0x10] sm:$0xff]  ;;  %p1402_p5 = scmp.ne.s32.totalorder %s1672_s21, 8 }
  0x7f   : > { %1032 = vmatpush1.bf16.msra.mxu0 %v1534_v27  ;;  %v1595_v6 = vld [vmem:[%s1980_s17 + $0x180] ss:$8 sps:$4 sm:$0xff]   ;;  %v611_v19 = vld [vmem:[#allocation2 + $0x18] sm:$0xff] }
  0x80   : > { %1075 = vmatpush1.bf16.msra.mxu1 %v1535_v28  ;;  %1033 = vmatprep.subr.bf16.mxu0 %v1536_v29  ;;  %v1596_v7 = vld [vmem:[%s1978_s19] ss:$16 sps:$4 sm:$0xff]   ;;  %v1599_v8 = vld [vmem:[%s1978_s19 + $0x8] ss:$16 sps:$4 sm:$0xff]  }
  0x81   : > { %1076 = vmatprep.subr.bf16.mxu1 %v1538_v30  ;;  %v610_v14 = vld [vmem:[#allocation2] sm:$0xff]  ;;  %v612_v24 = vld [vmem:[#allocation2 + $0x8] sm:$0xff] }
  0x83   : > { %1034 = vmatpush1.bf16.msra.mxu0 %v1540_v31 }
  0x84   : > { %1077 = vmatpush1.bf16.msra.mxu1 %v1541_v32  ;;  %1035 = vmatprep.subr.bf16.mxu0 %v1542_v33 }
  0x85   : > { %1078 = vmatprep.subr.bf16.mxu1 %v1544_v34 }
  0x87   : > { %1036 = vmatpush1.bf16.msra.mxu0 %v1546_v35 }
  0x88   : > { %1079 = vmatpush1.bf16.msra.mxu1 %v1547_v36  ;;  %1037 = vmatprep.subr.bf16.mxu0 %v1548_v37 }
  0x89   : > { %1080 = vmatprep.subr.bf16.mxu1 %v1550_v38 }
  0x8b   : > { %1038 = vmatpush2.bf16.msra.mxu0 %v1552_v39 }
  0x8c   : > { %1081 = vmatpush2.bf16.msra.mxu1 %v1553_v40  ;;  %1039 = vmatprep.subr.bf16.mxu0 %v1554_v41 }
  0x8d   : > { %1082 = vmatprep.subr.bf16.mxu1 %v1556_v42 }
  0x8f   : > { %1040 = vmatpush2.bf16.msra.mxu0 %v1558_v43 }
  0x90   : > { %1083 = vmatpush2.bf16.msra.mxu1 %v1559_v44  ;;  %1041 = vmatprep.subr.bf16.mxu0 %v1560_v45 }
  0x91   : > { %1084 = vmatprep.subr.bf16.mxu1 %v1562_v46 }
  0x93   : > { %1042 = vmatpush2.bf16.msra.mxu0 %v1564_v47 }
  0x94   : > { %1085 = vmatpush2.bf16.msra.mxu1 %v1565_v48  ;;  %1043 = vmatprep.subr.bf16.mxu0 %v1566_v49 }
  0x95   : > { %1086 = vmatprep.subr.bf16.mxu1 %v1568_v50 }
  0x97   : > { %1044 = vmatpush2.bf16.msra.mxu0 %v1570_v51 }
  0x98   : > { %1087 = vmatpush2.bf16.msra.mxu1 %v1571_v53  ;;  %1045 = vmatprep.subr.bf16.mxu0 %v1572_v54 }
  0x99   : > { %1088 = vmatprep.subr.bf16.mxu1 %v1574_v55 }
  0x9b   : > { %1046 = vmatpush2.bf16.msra.mxu0 %v1576_v57 }
  0x9c   : > { %1089 = vmatpush2.bf16.msra.mxu1 %v1577_v58  ;;  %1047 = vmatprep.subr.bf16.mxu0 %v1578_v59 }
  0x9d   : > { %1090 = vmatprep.subr.bf16.mxu1 %v1580_v60 }
  0x9f   : > { %1048 = vmatpush2.bf16.msra.mxu0 %v1582_v61 }
  0xa0   : > { %1091 = vmatpush2.bf16.msra.mxu1 %v1583_v62  ;;  %1049 = vmatprep.subr.bf16.mxu0 %v1584_v63 }
  0xa1   : > { %1092 = vmatprep.subr.bf16.mxu1 %v1586_v0 }
  0xa3   : > { %1050 = vmatpush2.bf16.msra.mxu0 %v1588_v1 }
  0xa4   : > { %1093 = vmatpush2.bf16.msra.mxu1 %v1589_v2  ;;  %1051 = vmatprep.subr.bf16.mxu0 %v1590_v3 }
  0xa5   : > { %1094 = vmatprep.subr.bf16.mxu1 %v1592_v4 }
  0xa7   : > { %1052 = vmatpush2.bf16.msra.mxu0 %v1594_v5 }
  0xa8   : > { %1095 = vmatpush2.bf16.msra.mxu1 %v1595_v6 }
  0xaa   : > { %1054 = vmatmul.mubr.bf16.vlgmr.msra.gmra.mxu0 %v1596_v7 }
  0xab   : > { %1097 = vmatmul.mubr.bf16.vlgmr.msra.gmra.mxu1 %v1599_v8 }
 0x16a   : > { %v1055_v9 = vpop.f32.mrf.mxu0 }
 0x16b   : > { %v1098_v11 = vpop.f32.mrf.mxu1 }
 0x16c   : > { %v1099_v12 = vadd.f32 %v1098_v11, %v1055_v9  ;;  %v1057_v13 = vpop.f32.mrf.mxu0 }
 0x16d   : > { %v1100_v15 = vpop.f32.mrf.mxu1 }
 0x16e   : > { %v1107_v16 = vadd.f32 %v1099_v12, %v609_v10  ;;  %v1101_v17 = vadd.f32 %v1100_v15, %v1057_v13  ;;  %v1059_v18 = vpop.f32.mrf.mxu0 }
 0x16f   : > { %v1102_v20 = vpop.f32.mrf.mxu1 }
 0x170   : > { %1111 = vst [vmem:[#allocation2 + $0x10] sm:$0xff] %v1107_v16  ;;  %v1108_v21 = vadd.f32 %v1101_v17, %v610_v14  ;;  %v1103_v22 = vadd.f32 %v1102_v20, %v1059_v18  ;;  %v1061_v23 = vpop.f32.mrf.mxu0 }
 0x171   : > { %v1104_v25 = vpop.f32.mrf.mxu1 }
 0x172   : > { %1112 = vst [vmem:[#allocation2] sm:$0xff] %v1108_v21  ;;  %v1109_v26 = vadd.f32 %v1103_v22, %v611_v19  ;;  %v1105_v27 = vadd.f32 %v1104_v25, %v1061_v23  ;;  %1118 = sbr.rel (%p1402_p5) target bundleno = 391 (0x187), region = 105 }
 0x174   : > { %1113 = vst [vmem:[#allocation2 + $0x18] sm:$0xff] %v1109_v26  ;;  %v1110_v28 = vadd.f32 %v1105_v27, %v612_v24 }
 0x176   : > { %1114 = vst [vmem:[#allocation2 + $0x8] sm:$0xff] %v1110_v28 }
 0x177   : > { %v1125_v29 = vlaneseq  ;;  %v1123_v31 = vld [vmem:[%s592_s9] sm:$0x3]  ;;  %v1119_v33 = vld [vmem:[#allocation2 + $0x10] sm:$0xff] }
 0x178   : > { %v1139_v32 = vld [vmem:[%s597_s1] sm:$0x3] }
 0x179   : > { %v1126_v30 = vshrl.u32 %v1125_v29, 7  ;;  %v1120_v36 = vld [vmem:[#allocation2] sm:$0xff] }
 0x17b   : > { %v1127_v34 = vsub.s32 0, %v1126_v30  ;;  %v1131_v35 = vsub.s32 1, %v1126_v30  ;;  %v1121_v37 = vld [vmem:[#allocation2 + $0x18] sm:$0xff] }
 0x17d   : > { %v1122_v38 = vld [vmem:[#allocation2 + $0x8] sm:$0xff]  ;;  %v1128_v39 = vrot.slane %v1123_v31, %v1127_v34  ;;  %v1144_v40 = vrot.slane %v1139_v32, %v1127_v34  ;;  %v1132_v41 = vrot.slane %v1123_v31, %v1131_v35  ;;  %v1148_v42 = vrot.slane %v1139_v32, %v1131_v35 }
 0x17f   : > { %v1135_v43 = vmul.f32 %v1128_v39, %v1119_v33  ;;  %v1136_v44 = vmul.f32 %v1132_v41, %v1120_v36  ;;  %v1137_v45 = vmul.f32 %v1128_v39, %v1121_v37  ;;  %v1138_v46 = vmul.f32 %v1132_v41, %v1122_v38 }
 0x181   : > { %v1151_v47 = vadd.f32 %v1144_v40, %v1135_v43  ;;  %v1152_v48 = vadd.f32 %v1148_v42, %v1136_v44  ;;  %v1153_v49 = vadd.f32 %v1144_v40, %v1137_v45  ;;  %v1154_v50 = vadd.f32 %v1148_v42, %v1138_v46 }
 0x183   : > { %v1155_v51 = vmax.f32 %v1151_v47, 0.0  ;;  %v1156_v52 = vmax.f32 %v1152_v48, 0.0  ;;  %v1157_v53 = vmax.f32 %v1153_v49, 0.0  ;;  %v1158_v54 = vmax.f32 %v1154_v50, 0.0 }
 0x185   : > { %1159 = vst [vmem:[%s1982_s15] sm:$0xff] %v1155_v51  ;;  %1160 = vst [vmem:[%s1982_s15 + $0x8] sm:$0xff] %v1156_v52 }
 0x186   : > { %1161 = vst [vmem:[%s1982_s15 + $0x10] sm:$0xff] %v1157_v53  ;;  %1162 = vst [vmem:[%s1982_s15 + $0x18] sm:$0xff] %v1158_v54 }
 0x187 PF: > { %1169 = sbr.rel (!%p1810_p12) target bundleno = 399 (0x18f), region = 109  ;;  %s1410_s1 = sshll.u32 (%p1810_p12), %s1676_s22, 4 }
 0x188   : > { %s1175_s29 = scalar_lea.vmem (%p1810_p12), %s2115_s4, %s1410_s1 }
 0x18c   : > { %v1188_v55 = vld [vmem:[%s1982_s15] sm:$0xff]  ;;  %v1190_v56 = vld [vmem:[%s1982_s15 + $0x8] sm:$0xff] }
 0x18d   : > { %v1192_v57 = vld [vmem:[%s1982_s15 + $0x10] sm:$0xff]  ;;  %v1194_v58 = vld [vmem:[%s1982_s15 + $0x18] sm:$0xff]  ;;  %1189 = vst [vmem:[%s1175_s29] sm:$0xff] %v1188_v55  ;;  %1191 = vst [vmem:[%s1175_s29 + $0x8] sm:$0xff] %v1190_v56 }
 0x18e   : > { %1193 = vst [vmem:[%s1175_s29 + $0x20] sm:$0xff] %v1192_v57  ;;  %1195 = vst [vmem:[%s1175_s29 + $0x28] sm:$0xff] %v1194_v58 }
 0x18f PF: > { %s14_s25 = sadd.s32 1, %s1688_s25   ;;  %s2127_s14 = sld [smem:[#allocation6_spill]] }
 0x190   : > { %p11_p6 = scmp.ge.s32.totalorder %s14_s25, 20   ;;  %s2128_s27 = sld [smem:[#allocation7_spill]] }
 0x191   : > { %s2129_s15 = smov %s1652_s16  ;;  %s2130_s16 = smov %s1808_s13 }
 0x192   : > { %s2131_s17 = smov %s1660_s18  ;;  %s2132_s18 = smov %s1805_s12 }
 0x193   : > { %s2133_s19 = smov %s1668_s20  ;;  %s2134_s20 = smov %s1791_s7 }
 0x194   : > { %s2135_s21 = smov %s1680_s23  ;;  %s2136_s22 = smov %s1684_s24 }
 0x195   : > { %s2137_s23 = smov %s2127_s14  ;;  %13 = sbr.rel (!%p11_p6) target bundleno = 9 (0x9), region = 177 }
 0x196   : > { %s2138_s24 = smov %s2128_s27 }

// kernel: supervised_net_forward.44
= control target key start
LH: loop header
LB: loop body
LE: loop exit
PB: predicated region body
PF: predicated region fallthrough
CT: control target
= control target key end

     0   :  { %s46_s0 = inlined_call_operand.vmem [shape: f32[2,1,512], index: 0, kind: input, shape index: {}]   ;;  %s47_s1 = inlined_call_operand.vmem [shape: f32[2,512], index: 1, kind: output, shape index: {}]  }
   0x1   :  { %v29_v0 = vld [vmem:[%s46_s0] sm:$0xff]  }
   0x2   :  { %28 = vst.sshfl [vmem:[%s47_s1] sm:$0xff pattern:$0x75316420] %v29_v0 }

// kernel: supervised_net_forward.45
= control target key start
LH: loop header
LB: loop body
LE: loop exit
PB: predicated region body
PF: predicated region fallthrough
CT: control target
= control target key end

     0   :  { %vm461_vm0 = vmmov 0   ;;  %s753_s1 = inlined_call_operand.vmem [shape: f32[512,128], index: 1, kind: input, shape index: {}]   ;;  %s754_s0 = inlined_call_operand.vmem [shape: f32[8,512], index: 0, kind: input, shape index: {}]   ;;  %s755_s3 = inlined_call_operand.vmem [shape: f32[128,128], index: 3, kind: input, shape index: {}]   ;;  %s756_s2 = inlined_call_operand.vmem [shape: f32[1,128], index: 2, kind: input, shape index: {}]   ;;  %s757_s4 = inlined_call_operand.vmem [shape: f32[1,128], index: 4, kind: input, shape index: {}]   ;;  %s758_s5 = inlined_call_operand.vmem [shape: f32[8,128], index: 5, kind: output, shape index: {}]  }
   0x1   :  { %v55_v0 = vld [vmem:[%s753_s1 + $0xf8] sm:$0xff]  ;;  %v54_v4 = vld [vmem:[%s753_s1 + $0xf0] sm:$0xff]  ;;  %v53_v8 = vld [vmem:[%s753_s1 + $0xe8] sm:$0xff] }
   0x2   :  { %v87_v1 = vld [vmem:[%s753_s1 + $0x1f8] sm:$0xff]  ;;  %336 = vmatprep.subr.mxu0 %v55_v0  ;;  %v86_v5 = vld [vmem:[%s753_s1 + $0x1f0] sm:$0xff]  ;;  %v85_v9 = vld [vmem:[%s753_s1 + $0x1e8] sm:$0xff] }
   0x3   :  { %v39_v2 = vld [vmem:[%s753_s1 + $0x78] sm:$0xff]  ;;  %371 = vmatprep.subr.mxu1 %v87_v1  ;;  %v38_v6 = vld [vmem:[%s753_s1 + $0x70] sm:$0xff]  ;;  %v37_v10 = vld [vmem:[%s753_s1 + $0x68] sm:$0xff] }
   0x4   :  { %v71_v3 = vld [vmem:[%s753_s1 + $0x178] sm:$0xff]  ;;  %337 = vmatpush3.msra.mxu0 %v39_v2  ;;  %v70_v7 = vld [vmem:[%s753_s1 + $0x170] sm:$0xff]  ;;  %v69_v11 = vld [vmem:[%s753_s1 + $0x168] sm:$0xff] }
   0x5   :  { %372 = vmatpush3.msra.mxu1 %v71_v3  ;;  %338 = vmatprep.subr.mxu0 %v54_v4  ;;  %v52_v12 = vld [vmem:[%s753_s1 + $0xe0] sm:$0xff]  ;;  %v51_v16 = vld [vmem:[%s753_s1 + $0xd8] sm:$0xff]  ;;  %v50_v20 = vld [vmem:[%s753_s1 + $0xd0] sm:$0xff] }
   0x6   :  { %373 = vmatprep.subr.mxu1 %v86_v5  ;;  %339 = vmatpush3.msra.mxu0 %v38_v6  ;;  %v84_v13 = vld [vmem:[%s753_s1 + $0x1e0] sm:$0xff]  ;;  %v83_v17 = vld [vmem:[%s753_s1 + $0x1d8] sm:$0xff]  ;;  %v82_v21 = vld [vmem:[%s753_s1 + $0x1d0] sm:$0xff]  ;;  %v460_v5 = vmov 0.0  }
   0x7   :  { %374 = vmatpush3.msra.mxu1 %v70_v7  ;;  %340 = vmatprep.subr.mxu0 %v53_v8  ;;  %v36_v14 = vld [vmem:[%s753_s1 + $0x60] sm:$0xff]  ;;  %v35_v18 = vld [vmem:[%s753_s1 + $0x58] sm:$0xff]  ;;  %v34_v22 = vld [vmem:[%s753_s1 + $0x50] sm:$0xff] }
   0x8   :  { %375 = vmatprep.subr.mxu1 %v85_v9  ;;  %v68_v15 = vld [vmem:[%s753_s1 + $0x160] sm:$0xff]  ;;  %341 = vmatpush3.msra.mxu0 %v37_v10  ;;  %v67_v19 = vld [vmem:[%s753_s1 + $0x158] sm:$0xff]  ;;  %v66_v23 = vld [vmem:[%s753_s1 + $0x150] sm:$0xff] }
   0x9   :  { %376 = vmatpush3.msra.mxu1 %v69_v11  ;;  %342 = vmatprep.subr.mxu0 %v52_v12  ;;  %v49_v24 = vld [vmem:[%s753_s1 + $0xc8] sm:$0xff]  ;;  %v48_v28 = vld [vmem:[%s753_s1 + $0xc0] sm:$0xff]  ;;  %v47_v32 = vld [vmem:[%s753_s1 + $0xb8] sm:$0xff] }
   0xa   :  { %377 = vmatprep.subr.mxu1 %v84_v13  ;;  %343 = vmatpush3.msra.mxu0 %v36_v14  ;;  %v81_v25 = vld [vmem:[%s753_s1 + $0x1c8] sm:$0xff]  ;;  %v80_v29 = vld [vmem:[%s753_s1 + $0x1c0] sm:$0xff]  ;;  %v79_v33 = vld [vmem:[%s753_s1 + $0x1b8] sm:$0xff] }
   0xb   :  { %378 = vmatpush3.msra.mxu1 %v68_v15  ;;  %344 = vmatprep.subr.mxu0 %v51_v16  ;;  %v33_v26 = vld [vmem:[%s753_s1 + $0x48] sm:$0xff]  ;;  %v32_v30 = vld [vmem:[%s753_s1 + $0x40] sm:$0xff]  ;;  %v31_v34 = vld [vmem:[%s753_s1 + $0x38] sm:$0xff] }
   0xc   :  { %379 = vmatprep.subr.mxu1 %v83_v17  ;;  %345 = vmatpush3.msra.mxu0 %v35_v18  ;;  %v65_v27 = vld [vmem:[%s753_s1 + $0x148] sm:$0xff]  ;;  %v64_v31 = vld [vmem:[%s753_s1 + $0x140] sm:$0xff]  ;;  %v63_v35 = vld [vmem:[%s753_s1 + $0x138] sm:$0xff] }
   0xd   :  { %380 = vmatpush3.msra.mxu1 %v67_v19  ;;  %346 = vmatprep.subr.mxu0 %v50_v20  ;;  %v46_v36 = vld [vmem:[%s753_s1 + $0xb0] sm:$0xff]  ;;  %v45_v40 = vld [vmem:[%s753_s1 + $0xa8] sm:$0xff]  ;;  %v44_v44 = vld [vmem:[%s753_s1 + $0xa0] sm:$0xff] }
   0xe   :  { %381 = vmatprep.subr.mxu1 %v82_v21  ;;  %347 = vmatpush3.msra.mxu0 %v34_v22  ;;  %v78_v37 = vld [vmem:[%s753_s1 + $0x1b0] sm:$0xff]  ;;  %v77_v41 = vld [vmem:[%s753_s1 + $0x1a8] sm:$0xff]  ;;  %v76_v45 = vld [vmem:[%s753_s1 + $0x1a0] sm:$0xff] }
   0xf   :  { %382 = vmatpush3.msra.mxu1 %v66_v23  ;;  %348 = vmatprep.subr.mxu0 %v49_v24  ;;  %v30_v38 = vld [vmem:[%s753_s1 + $0x30] sm:$0xff]  ;;  %v29_v42 = vld [vmem:[%s753_s1 + $0x28] sm:$0xff]  ;;  %v28_v46 = vld [vmem:[%s753_s1 + $0x20] sm:$0xff] }
  0x10   :  { %383 = vmatprep.subr.mxu1 %v81_v25  ;;  %349 = vmatpush3.msra.mxu0 %v33_v26  ;;  %v62_v39 = vld [vmem:[%s753_s1 + $0x130] sm:$0xff]  ;;  %v61_v43 = vld [vmem:[%s753_s1 + $0x128] sm:$0xff]  ;;  %v60_v47 = vld [vmem:[%s753_s1 + $0x120] sm:$0xff] }
  0x11   :  { %384 = vmatpush3.msra.mxu1 %v65_v27  ;;  %350 = vmatprep.subr.mxu0 %v48_v28  ;;  %v43_v48 = vld [vmem:[%s753_s1 + $0x98] sm:$0xff]  ;;  %v42_v52 = vld [vmem:[%s753_s1 + $0x90] sm:$0xff]  ;;  %v41_v56 = vld [vmem:[%s753_s1 + $0x88] sm:$0xff] }
  0x12   :  { %385 = vmatprep.subr.mxu1 %v80_v29  ;;  %351 = vmatpush3.msra.mxu0 %v32_v30  ;;  %v75_v49 = vld [vmem:[%s753_s1 + $0x198] sm:$0xff]  ;;  %v74_v53 = vld [vmem:[%s753_s1 + $0x190] sm:$0xff]  ;;  %v73_v57 = vld [vmem:[%s753_s1 + $0x188] sm:$0xff] }
  0x13   :  { %386 = vmatpush3.msra.mxu1 %v64_v31  ;;  %352 = vmatprep.subr.mxu0 %v47_v32  ;;  %v27_v50 = vld [vmem:[%s753_s1 + $0x18] sm:$0xff]  ;;  %v26_v54 = vld [vmem:[%s753_s1 + $0x10] sm:$0xff]  ;;  %v25_v58 = vld [vmem:[%s753_s1 + $0x8] sm:$0xff] }
  0x14   :  { %387 = vmatprep.subr.mxu1 %v79_v33  ;;  %353 = vmatpush3.msra.mxu0 %v31_v34  ;;  %v59_v51 = vld [vmem:[%s753_s1 + $0x118] sm:$0xff]  ;;  %v58_v55 = vld [vmem:[%s753_s1 + $0x110] sm:$0xff]  ;;  %v57_v59 = vld [vmem:[%s753_s1 + $0x108] sm:$0xff] }
  0x15   :  { %388 = vmatpush3.msra.mxu1 %v63_v35  ;;  %354 = vmatprep.subr.mxu0 %v46_v36  ;;  %v40_v60 = vld [vmem:[%s753_s1 + $0x80] sm:$0xff]  ;;  %v21_v63 = vld [vmem:[%s754_s0 + $0x8] sm:$0xff]  ;;  %v23_v1 = vld [vmem:[%s754_s0 + $0x18] sm:$0xff] }
  0x16   :  { %389 = vmatprep.subr.mxu1 %v78_v37  ;;  %355 = vmatpush3.msra.mxu0 %v30_v38  ;;  %v72_v61 = vld [vmem:[%s753_s1 + $0x180] sm:$0xff]  ;;  %v22_v3 = vld [vmem:[%s754_s0 + $0x10] sm:$0xff]  ;;  %v251_v4 = vld [vmem:[%s755_s3 + $0x78] sm:$0xff] }
  0x17   :  { %390 = vmatpush3.msra.mxu1 %v62_v39  ;;  %356 = vmatprep.subr.mxu0 %v45_v40  ;;  %v24_v62 = vld [vmem:[%s753_s1] sm:$0xff]  ;;  %v250_v6 = vld [vmem:[%s755_s3 + $0x70] sm:$0xff]  ;;  %v249_v7 = vld [vmem:[%s755_s3 + $0x68] sm:$0xff] }
  0x18   :  { %391 = vmatprep.subr.mxu1 %v77_v41  ;;  %357 = vmatpush3.msra.mxu0 %v29_v42  ;;  %v56_v0 = vld [vmem:[%s753_s1 + $0x100] sm:$0xff]  ;;  %v247_v9 = vld [vmem:[%s755_s3 + $0x58] sm:$0xff]  ;;  %v246_v10 = vld [vmem:[%s755_s3 + $0x50] sm:$0xff] }
  0x19   :  { %392 = vmatpush3.msra.mxu1 %v61_v43  ;;  %358 = vmatprep.subr.mxu0 %v44_v44  ;;  %v20_v2 = vld [vmem:[%s754_s0] sm:$0xff]  ;;  %v245_v11 = vld [vmem:[%s755_s3 + $0x48] sm:$0xff]  ;;  %v243_v13 = vld [vmem:[%s755_s3 + $0x38] sm:$0xff] }
  0x1a   :  { %393 = vmatprep.subr.mxu1 %v76_v45  ;;  %359 = vmatpush3.msra.mxu0 %v28_v46  ;;  %v248_v8 = vld [vmem:[%s755_s3 + $0x60] sm:$0xff]  ;;  %v242_v14 = vld [vmem:[%s755_s3 + $0x30] sm:$0xff]  ;;  %v241_v15 = vld [vmem:[%s755_s3 + $0x28] sm:$0xff] }
  0x1b   :  { %394 = vmatpush3.msra.mxu1 %v60_v47  ;;  %360 = vmatprep.subr.mxu0 %v43_v48  ;;  %v244_v12 = vld [vmem:[%s755_s3 + $0x40] sm:$0xff]  ;;  %v239_v17 = vld [vmem:[%s755_s3 + $0x18] sm:$0xff]  ;;  %v238_v18 = vld [vmem:[%s755_s3 + $0x10] sm:$0xff] }
  0x1c   :  { %395 = vmatprep.subr.mxu1 %v75_v49  ;;  %361 = vmatpush3.msra.mxu0 %v27_v50  ;;  %v240_v16 = vld [vmem:[%s755_s3 + $0x20] sm:$0xff]  ;;  %v237_v19 = vld [vmem:[%s755_s3 + $0x8] sm:$0xff] }
  0x1d   :  { %396 = vmatpush3.msra.mxu1 %v59_v51  ;;  %362 = vmatprep.subr.mxu0 %v42_v52  ;;  %v236_v20 = vld [vmem:[%s755_s3] sm:$0xff] }
  0x1e   :  { %397 = vmatprep.subr.mxu1 %v74_v53  ;;  %363 = vmatpush3.msra.mxu0 %v26_v54  ;;  %v334_v23 = vld [vmem:[%s756_s2] ss:$0 sm:$0xff] }
  0x1f   :  { %398 = vmatpush3.msra.mxu1 %v58_v55  ;;  %364 = vmatprep.subr.mxu0 %v41_v56  ;;  %v335_v31 = vld [vmem:[%s757_s4] ss:$0 sm:$0xff] }
  0x20   :  { %399 = vmatprep.subr.mxu1 %v73_v57  ;;  %365 = vmatpush3.msra.mxu0 %v25_v58 }
  0x21   :  { %400 = vmatpush3.msra.mxu1 %v57_v59  ;;  %366 = vmatprep.subr.mxu0 %v40_v60 }
  0x22   :  { %401 = vmatprep.subr.mxu1 %v72_v61  ;;  %367 = vmatpush3.msra.mxu0 %v24_v62 }
  0x23   :  { %159 = vmatprep.mubr.f32.mxu0 %v21_v63  ;;  %402 = vmatpush3.msra.mxu1 %v56_v0 }
  0x24   :  { %229 = vmatprep.mubr.f32.mxu1 %v23_v1  ;;  %160 = vmatmul.mubr.f32.vlgmr.msra.gmra.mxu0 %v20_v2 }
  0x25   :  { %230 = vmatmul.mubr.f32.vlgmr.msra.gmra.mxu1 %v22_v3  ;;  %423 = vmatprep.subr.mxu0 %v460_v5 }
  0x26   :  { %424 = vmatpush3.msra.mxu0 %v251_v4  ;;  %455 = vmatprep.mubr.msk.f32.mxu0 %vm461_vm0, %v460_v5 }
  0x27   :  { %425 = vmatprep.subr.mxu0 %v460_v5 }
  0x28   :  { %426 = vmatpush3.msra.mxu0 %v250_v6 }
  0x29   :  { %427 = vmatprep.subr.mxu0 %v460_v5 }
  0x2a   :  { %428 = vmatpush3.msra.mxu0 %v249_v7 }
  0x2b   :  { %429 = vmatprep.subr.mxu0 %v460_v5 }
  0x2c   :  { %430 = vmatpush3.msra.mxu0 %v248_v8 }
  0x2d   :  { %431 = vmatprep.subr.mxu0 %v460_v5 }
  0x2e   :  { %432 = vmatpush3.msra.mxu0 %v247_v9 }
  0x2f   :  { %433 = vmatprep.subr.mxu0 %v460_v5 }
  0x30   :  { %434 = vmatpush3.msra.mxu0 %v246_v10 }
  0x31   :  { %435 = vmatprep.subr.mxu0 %v460_v5 }
  0x32   :  { %436 = vmatpush3.msra.mxu0 %v245_v11 }
  0x33   :  { %437 = vmatprep.subr.mxu0 %v460_v5 }
  0x34   :  { %438 = vmatpush3.msra.mxu0 %v244_v12 }
  0x35   :  { %439 = vmatprep.subr.mxu0 %v460_v5 }
  0x36   :  { %440 = vmatpush3.msra.mxu0 %v243_v13 }
  0x37   :  { %441 = vmatprep.subr.mxu0 %v460_v5 }
  0x38   :  { %442 = vmatpush3.msra.mxu0 %v242_v14 }
  0x39   :  { %443 = vmatprep.subr.mxu0 %v460_v5 }
  0x3a   :  { %444 = vmatpush3.msra.mxu0 %v241_v15 }
  0x3b   :  { %445 = vmatprep.subr.mxu0 %v460_v5 }
  0x3c   :  { %446 = vmatpush3.msra.mxu0 %v240_v16 }
  0x3d   :  { %447 = vmatprep.subr.mxu0 %v460_v5 }
  0x3e   :  { %448 = vmatpush3.msra.mxu0 %v239_v17 }
  0x3f   :  { %449 = vmatprep.subr.mxu0 %v460_v5 }
  0x40   :  { %450 = vmatpush3.msra.mxu0 %v238_v18 }
  0x41   :  { %451 = vmatprep.subr.mxu0 %v460_v5 }
  0x42   :  { %452 = vmatpush3.msra.mxu0 %v237_v19 }
  0x43   :  { %453 = vmatprep.subr.mxu0 %v460_v5 }
  0x44   :  { %454 = vmatpush3.msra.mxu0 %v236_v20 }
  0xe4   :  { %v368_v21 = vpop.f32.mrf.mxu0 }
  0xe5   :  { %v403_v22 = vpop.f32.mrf.mxu1 }
  0xe6   :  { %v369_v24 = vpop.f32.mrf.mxu0 }
  0xe7   :  { %v404_v25 = vpop.f32.mrf.mxu1  ;;  %v370_v26 = vadd.f32 %v369_v24, %v368_v21 }
  0xe8   :  { %v405_v28 = vadd.f32 %v404_v25, %v403_v22 }
  0xe9   :  { %v162_v27 = vadd.f32 %v370_v26, %v334_v23 }
  0xeb   :  { %v232_v29 = vadd.f32 %v405_v28, %v162_v27 }
  0xed   :  { %v235_v30 = vmax.f32 %v232_v29, 0.0 }
  0xef   :  { %456 = vmatmul.mubr.f32.vlgmr.msra.gmra.mxu0 %v235_v30 }
 0x1af   :  { %v325_v32 = vpop.f32.mrf.mxu0 }
 0x1b0   :  { %v326_v33 = vadd.f32 %v335_v31, %v325_v32 }
 0x1b1   :  { %v457_v34 = vpop.f32.mrf.mxu0 }
 0x1b2   :  { %329 = vst [vmem:[%s758_s5] sm:$0xff] %v326_v33 }

</bundles_post_ra>
